<compile_context>
chip_gen: v5e
topology: v5e:2x2
jax: 0.10.0
libtpu: 0.0.40
codegen_flags: <defaults>
</compile_context>

<pallas_src>
import functools
import math

import jax
import jax.numpy as jnp
from jax.experimental import pallas as pl
from jax.experimental.pallas import tpu as pltpu

BN_EPS = 1e-5


def _vmem_limit_bytes():
    # ~3/4 of physical VMEM: ~96 MiB on v5e/v6e (128 MiB), ~48 MiB on v7x (64 MiB).
    try:
        cap = pltpu.get_tpu_info().vmem_capacity_bytes
    except Exception:
        cap = 64 * 1024 * 1024
    return int(cap * 3 // 4)


# ----------------------------------------------------------------------------
# Pallas kernels
# ----------------------------------------------------------------------------
def _conv3x3_kernel(xc_ref, xt_ref, xb_ref, sc_ref, sh_ref, w_ref,
                    z_ref, s_ref, q_ref, xp_ref, patch_ref,
                    *, TH, W, Cin, Cout, relu_in):
    """One (TH, W) row-tile of one image:
         y = [relu](x * sc + sh)   input affine (identity for conv1, BN1 for conv2)
         z = conv3x3(y)            single K=9*Cin MXU matmul, f32 accumulation
         s, q                      per-tile sum / sum-of-squares of z (BN stats)."""
    r = pl.program_id(1)
    nr = pl.num_programs(1)
    sc = sc_ref[...].reshape(1, 1, Cin)
    sh = sh_ref[...].reshape(1, 1, Cin)

    def prep(v):                                   # bf16 -> affine in f32 -> bf16
        y = v.astype(jnp.float32) * sc + sh
        if relu_in:
            y = jnp.maximum(y, 0.0)
        return y.astype(jnp.bfloat16)

    # Stage the zero-padded input tile in VMEM (1-pixel halo, edges masked).
    xp_ref[...] = jnp.zeros_like(xp_ref)
    xp_ref[1:TH + 1, 1:W + 1, :] = prep(xc_ref[0])
    top = prep(xt_ref[0])                          # (1, W, Cin)
    bot = prep(xb_ref[0])
    xp_ref[0:1, 1:W + 1, :] = jnp.where(r > 0, top, jnp.zeros_like(top))
    xp_ref[TH + 1:TH + 2, 1:W + 1, :] = jnp.where(r < nr - 1, bot,
                                                  jnp.zeros_like(bot))

    # im2col patch in VMEM: (TH*W, 9*Cin), tap-major columns (no HBM im2col).
    for t in range(9):
        dy, dx = divmod(t, 3)
        patch_ref[:, t * Cin:(t + 1) * Cin] = \
            xp_ref[dy:dy + TH, dx:dx + W, :].reshape(TH * W, Cin)

    # One big matmul: K = 9*Cin fills the systolic depth (vs 9 K=Cin matmuls).
    acc = jnp.dot(patch_ref[...], w_ref[...],
                  preferred_element_type=jnp.float32)          # (TH*W, Cout) f32

    z_ref[0] = acc.reshape(TH, W, Cout).astype(z_ref.dtype)    # bf16 store
    s_ref[0, 0] = jnp.sum(acc, axis=0, keepdims=True)          # f32 stats
    q_ref[0, 0] = jnp.sum(acc * acc, axis=0, keepdims=True)


def _affine_kernel(z_ref, s_ref, b_ref, o_ref, *, relu):
    y = z_ref[...].astype(jnp.float32) * s_ref[...] + b_ref[...]
    if relu:
        y = jnp.maximum(y, 0.0)
    o_ref[...] = y.astype(o_ref.dtype)


def _affine_res_kernel(z_ref, s_ref, b_ref, r_ref, o_ref, *, relu):
    y = (z_ref[...].astype(jnp.float32) * s_ref[...] + b_ref[...]
         + r_ref[...].astype(jnp.float32))
    if relu:
        y = jnp.maximum(y, 0.0)
    o_ref[...] = y.astype(o_ref.dtype)


# ----------------------------------------------------------------------------
# Pallas wrappers
# ----------------------------------------------------------------------------
def _round_up(a, b):
    return ((a + b - 1) // b) * b


def _pick_row_tile(H, W, Cin, patch_budget_bytes=6 << 20):
    """Largest divisor of H whose im2col patch fits the per-step VMEM budget."""
    max_rows = max(1, patch_budget_bytes // (W * 9 * Cin * 2))
    th = 1
    for cand in range(1, H + 1):
        if H % cand == 0 and cand <= max_rows:
            th = cand
    return th


def conv3x3_bn_stats(x, w_km, scale, shift, *, relu_in):
    """x: [N, H, W, Cin] bf16 (unpadded).  w_km: [9*Cin, Cout] bf16 (tap-major).
       scale/shift: [1, Cin] f32 affine applied to x before the conv.
       Returns z [N,H,W,Cout] bf16, s/q [N,R,1,Cout] f32 per-tile BN stats."""
    N, H, W, Cin = x.shape
    Cout = w_km.shape[-1]
    TH = _pick_row_tile(H, W, Cin)
    R = H // TH

    kern = functools.partial(_conv3x3_kernel, TH=TH, W=W, Cin=Cin, Cout=Cout,
                             relu_in=relu_in)
    z, s, q = pl.pallas_call(
        kern,
        out_shape=(jax.ShapeDtypeStruct((N, H, W, Cout), jnp.bfloat16),
                   jax.ShapeDtypeStruct((N, R, 1, Cout), jnp.float32),
                   jax.ShapeDtypeStruct((N, R, 1, Cout), jnp.float32)),
        grid=(N, R),
        in_specs=[
            # center row-tile + clamped 1-row top/bottom halos (same array).
            pl.BlockSpec((1, TH, W, Cin), lambda n, r: (n, r, 0, 0)),
            pl.BlockSpec((1, 1, W, Cin),
                         lambda n, r: (n, jnp.maximum(r * TH - 1, 0), 0, 0)),
            pl.BlockSpec((1, 1, W, Cin),
                         lambda n, r: (n, jnp.minimum(r * TH + TH, H - 1), 0, 0)),
            pl.BlockSpec((1, Cin), lambda n, r: (0, 0)),
            pl.BlockSpec((1, Cin), lambda n, r: (0, 0)),
            pl.BlockSpec((9 * Cin, Cout), lambda n, r: (0, 0)),
        ],
        out_specs=(
            pl.BlockSpec((1, TH, W, Cout), lambda n, r: (n, r, 0, 0)),
            pl.BlockSpec((1, 1, 1, Cout), lambda n, r: (n, r, 0, 0)),
            pl.BlockSpec((1, 1, 1, Cout), lambda n, r: (n, r, 0, 0)),
        ),
        scratch_shapes=[
            pltpu.VMEM((TH + 2, W + 2, Cin), jnp.bfloat16),   # padded input tile
            pltpu.VMEM((TH * W, 9 * Cin), jnp.bfloat16),      # im2col patch
        ],
        compiler_params=pltpu.CompilerParams(
            dimension_semantics=("parallel", "parallel"),
            vmem_limit_bytes=_vmem_limit_bytes()),
    )(x, x, x, scale, shift, w_km)
    return z, s, q


def _pick_pack(M, C, max_lanes=512):
    for pack in (16, 8, 4, 2, 1):
        L = C * pack
        if L <= max_lanes and L % 128 == 0 and M % pack == 0:
            return pack
    return 1


def _pick_row_block(Mp, target=1024):
    if Mp <= target:
        return Mp
    for tm in range(target, 7, -1):
        if Mp % tm == 0 and tm % 8 == 0:
            return tm
    return 0


def bn_affine(z_flat, scale_c, shift_c, residual=None, *, relu, out_dtype):
    """Fused y = [relu](z * scale + shift [+ residual]) over [M, C] rows,
    evaluated on a lane-dense packed [M/pack, C*pack] view when possible."""
    M, C = z_flat.shape
    pack = _pick_pack(M, C)
    L = C * pack
    Mp = M // pack

    z2 = z_flat.reshape(Mp, L)                 # contiguous reshape, stays bf16
    sc = jnp.tile(scale_c.reshape(1, C).astype(jnp.float32), (1, pack))
    sh = jnp.tile(shift_c.reshape(1, C).astype(jnp.float32), (1, pack))

    tm = _pick_row_block(Mp)
    if tm == 0:
        # TODO(synk): ragged-M fallback pads in HBM; a masked tail store inside
        #             the kernel would avoid the extra copy.
        tm = 1024
        Mpad = _round_up(Mp, tm)
    else:
        Mpad = Mp

    def pad_rows(a):
        return a if Mpad == Mp else jnp.pad(a, ((0, Mpad - Mp), (0, 0)))

    args = [pad_rows(z2), sc, sh]
    in_specs = [pl.BlockSpec((tm, L), lambda i: (i, 0)),
                pl.BlockSpec((1, L), lambda i: (0, 0)),
                pl.BlockSpec((1, L), lambda i: (0, 0))]
    if residual is not None:
        args.append(pad_rows(residual.reshape(Mp, L)))
        in_specs.append(pl.BlockSpec((tm, L), lambda i: (i, 0)))
        kern = functools.partial(_affine_res_kernel, relu=relu)
    else:
        kern = functools.partial(_affine_kernel, relu=relu)

    out = pl.pallas_call(
        kern,
        out_shape=jax.ShapeDtypeStruct((Mpad, L), out_dtype),
        grid=(Mpad // tm,),
        in_specs=in_specs,
        out_specs=pl.BlockSpec((tm, L), lambda i: (i, 0)),
        compiler_params=pltpu.CompilerParams(
            dimension_semantics=("parallel",),
            vmem_limit_bytes=_vmem_limit_bytes()),
    )(*args)
    if Mpad != Mp:
        out = out[:Mp]
    return out.reshape(M, C)


# ----------------------------------------------------------------------------
# BasicBlock forward (glue in plain JAX)
# ----------------------------------------------------------------------------
def _repack_weight(w_torch):
    """torch [Cout, Cin, 3, 3] -> tap-major [9*Cin, Cout] bf16."""
    cout, cin = w_torch.shape[0], w_torch.shape[1]
    return (jnp.transpose(w_torch, (2, 3, 1, 0))
            .reshape(9 * cin, cout).astype(jnp.bfloat16))


def _bn_scale_shift(s, q, gamma, beta, m):
    total = jnp.sum(s, axis=(0, 1, 2))
    total_sq = jnp.sum(q, axis=(0, 1, 2))
    mean = total / m
    var = jnp.maximum(total_sq / m - mean * mean, 0.0)   # biased (training) var
    scale = gamma * jax.lax.rsqrt(var + BN_EPS)
    shift = beta - mean * scale
    return scale, shift


@jax.jit
def basic_block_forward(params, x_nchw):
    N, Cin, H, W = x_nchw.shape
    P = params['w1'].shape[0]
    M = N * H * W
    x_nhwc = jnp.transpose(x_nchw, (0, 2, 3, 1)).astype(jnp.float32)
    x_bf = x_nhwc.astype(jnp.bfloat16)

    # conv1 (+ fused BN1 batch-stat collection); input affine is identity.
    one = jnp.ones((1, Cin), jnp.float32)
    zero = jnp.zeros((1, Cin), jnp.float32)
    z1, s1, q1 = conv3x3_bn_stats(x_bf, _repack_weight(params['w1']),
                                  one, zero, relu_in=False)
    sc1, sh1 = _bn_scale_shift(s1, q1, params['g1'], params['b1'], M)

    # conv2 with BN1 affine + ReLU fused into its prologue (+ BN2 stats).
    z2, s2, q2 = conv3x3_bn_stats(z1, _repack_weight(params['w2']),
                                  sc1.reshape(1, P), sh1.reshape(1, P),
                                  relu_in=True)
    sc2, sh2 = _bn_scale_shift(s2, q2, params['g2'], params['b2'], M)

    # BN2 affine + residual + ReLU, single lane-dense elementwise pass.
    out = bn_affine(z2.reshape(M, P), sc2, sh2,
                    residual=x_nhwc.reshape(M, Cin), relu=True,
                    out_dtype=jnp.float32)
    return jnp.transpose(out.reshape(N, H, W, P), (0, 3, 1, 2))     # NCHW


# ----------------------------------------------------------------------------
# Pure-JAX reference (same bf16 matmul / bf16 intermediate precision choices)
# ----------------------------------------------------------------------------
def _ref_conv(x_bf, w_torch):
    wb = jnp.transpose(w_torch, (2, 3, 1, 0)).astype(jnp.bfloat16)  # HWIO
    return jax.lax.conv_general_dilated(
        x_bf, wb, window_strides=(1, 1), padding=((1, 1), (1, 1)),
        dimension_numbers=('NHWC', 'HWIO', 'NHWC'),
        preferred_element_type=jnp.float32)


def _ref_bn(z_f32, gamma, beta):
    mean = jnp.mean(z_f32, axis=(0, 1, 2))
    var = jnp.maximum(jnp.mean(z_f32 * z_f32, axis=(0, 1, 2)) - mean * mean, 0.0)
    scale = gamma * jax.lax.rsqrt(var + BN_EPS)
    return scale, beta - mean * scale


@jax.jit
def ref_forward(params, x_nchw):
    x = jnp.transpose(x_nchw, (0, 2, 3, 1)).astype(jnp.float32)
    z1 = _ref_conv(x.astype(jnp.bfloat16), params['w1'])
    sc1, sh1 = _ref_bn(z1, params['g1'], params['b1'])
    z1b = z1.astype(jnp.bfloat16).astype(jnp.float32)     # kernel stores z1 bf16
    y1 = jnp.maximum(z1b * sc1 + sh1, 0.0).astype(jnp.bfloat16)
    z2 = _ref_conv(y1, params['w2'])
    sc2, sh2 = _ref_bn(z2, params['g2'], params['b2'])
    z2b = z2.astype(jnp.bfloat16).astype(jnp.float32)     # kernel stores z2 bf16
    out = jnp.maximum(z2b * sc2 + sh2 + x, 0.0)
    return jnp.transpose(out, (0, 3, 1, 2))


# ----------------------------------------------------------------------------
if __name__ == "__main__":
    key = jax.random.PRNGKey(0)
    kw1, kg1, kb1, kw2, kg2, kb2, kx = jax.random.split(key, 7)

    N, C, H, W = 2, 32, 16, 16        # in_planes == planes (GCNet BasicBlock)
    P = C
    he1 = math.sqrt(2.0 / (C * 9))
    he2 = math.sqrt(2.0 / (P * 9))
    params = {
        'w1': he1 * jax.random.normal(kw1, (P, C, 3, 3), jnp.float32),
        'g1': 1.0 + 0.1 * jax.random.normal(kg1, (P,), jnp.float32),
        'b1': 0.05 * jax.random.normal(kb1, (P,), jnp.float32),
        'w2': he2 * jax.random.normal(kw2, (P, P, 3, 3), jnp.float32),
        'g2': 1.0 + 0.1 * jax.random.normal(kg2, (P,), jnp.float32),
        'b2': 0.05 * jax.random.normal(kb2, (P,), jnp.float32),
    }
    x = jax.random.normal(kx, (N, C, H, W), jnp.float32)

    out = jax.block_until_ready(basic_block_forward(params, x))
    assert out.shape == (N, P, H, W)
    assert bool(jnp.all(jnp.isfinite(out)))

    ref = jax.block_until_ready(ref_forward(params, x))
    err = float(jnp.max(jnp.abs(out - ref)))
    assert err < 5e-2, f"max abs diff vs reference: {err}"

    print("KERNEL_OK")
</pallas_src>

<mosaic_0001>
module attributes {stable_mosaic.version = 11 : i64} {
  func.func @_conv3x3_kernel(%arg0: i32, %arg1: i32, %arg2: memref<1x16x16x32xbf16, #tpu.memory_space<vmem>>, %arg3: memref<1x1x16x32xbf16, #tpu.memory_space<vmem>>, %arg4: memref<1x1x16x32xbf16, #tpu.memory_space<vmem>>, %arg5: memref<1x32xf32, #tpu.memory_space<vmem>>, %arg6: memref<1x32xf32, #tpu.memory_space<vmem>>, %arg7: memref<288x32xbf16, #tpu.memory_space<vmem>>, %arg8: memref<1x16x16x32xbf16, #tpu.memory_space<vmem>>, %arg9: memref<1x1x1x32xf32, #tpu.memory_space<vmem>>, %arg10: memref<1x1x1x32xf32, #tpu.memory_space<vmem>>, %arg11: memref<18x18x32xbf16, #tpu.memory_space<vmem>>, %arg12: memref<256x288xbf16, #tpu.memory_space<vmem>>) attributes {dimension_semantics = [#tpu.dimension_semantics<parallel>, #tpu.dimension_semantics<parallel>], iteration_bounds = array<i64: 2, 1>, scalar_prefetch = 0 : i64, scratch_operands = 2 : i64, tpu.core_type = #tpu.core_type<tc>, window_params = [{transform_indices = @transform_0, window_bounds = array<i64: 1, 16, 16, 32>}, {transform_indices = @transform_1, window_bounds = array<i64: 1, 1, 16, 32>}, {transform_indices = @transform_2, window_bounds = array<i64: 1, 1, 16, 32>}, {pipeline_mode = #tpu.pipeline_mode<synchronous>, transform_indices = @transform_3, window_bounds = array<i64: 1, 32>}, {pipeline_mode = #tpu.pipeline_mode<synchronous>, transform_indices = @transform_4, window_bounds = array<i64: 1, 32>}, {pipeline_mode = #tpu.pipeline_mode<synchronous>, transform_indices = @transform_5, window_bounds = array<i64: 288, 32>}, {transform_indices = @transform_6, window_bounds = array<i64: 1, 16, 16, 32>}, {transform_indices = @transform_7, window_bounds = array<i64: 1, 1, 1, 32>}, {transform_indices = @transform_8, window_bounds = array<i64: 1, 1, 1, 32>}]} {
    %c0 = arith.constant 0 : index
    %c0_0 = arith.constant 0 : index
    %0 = vector.load %arg5[%c0, %c0_0] : memref<1x32xf32, #tpu.memory_space<vmem>>, vector<1x32xf32>
    %1 = vector.shape_cast %0 : vector<1x32xf32> to vector<1x1x32xf32>
    %c0_1 = arith.constant 0 : index
    %c0_2 = arith.constant 0 : index
    %2 = vector.load %arg6[%c0_1, %c0_2] : memref<1x32xf32, #tpu.memory_space<vmem>>, vector<1x32xf32>
    %3 = vector.shape_cast %2 : vector<1x32xf32> to vector<1x1x32xf32>
    %cst = arith.constant 0.000000e+00 : bf16
    %4 = vector.broadcast %cst : bf16 to vector<18x18x32xbf16>
    %c0_3 = arith.constant 0 : index
    %c0_4 = arith.constant 0 : index
    %c0_5 = arith.constant 0 : index
    %5 = vector.load %arg11[%c0_3, %c0_4, %c0_5] : memref<18x18x32xbf16, #tpu.memory_space<vmem>>, vector<18x18x32xbf16>
    tpu.vector_store %arg11[%c0_3, %c0_4, %c0_5], %4 {strides = array<i32>} : memref<18x18x32xbf16, #tpu.memory_space<vmem>>, vector<18x18x32xbf16>,
    %c0_6 = arith.constant 0 : index
    %c0_7 = arith.constant 0 : index
    %c0_8 = arith.constant 0 : index
    %c0_9 = arith.constant 0 : index
    %6 = vector.load %arg2[%c0_6, %c0_7, %c0_8, %c0_9] : memref<1x16x16x32xbf16, #tpu.memory_space<vmem>>, vector<1x16x16x32xbf16>
    %7 = vector.shape_cast %6 : vector<1x16x16x32xbf16> to vector<16x16x32xbf16>
    %8 = arith.extf %7 : vector<16x16x32xbf16> to vector<16x16x32xf32>
    %9 = vector.broadcast %1 : vector<1x1x32xf32> to vector<16x16x32xf32>
    %10 = arith.mulf %8, %9 : vector<16x16x32xf32>
    %11 = vector.broadcast %3 : vector<1x1x32xf32> to vector<16x16x32xf32>
    %12 = arith.addf %10, %11 : vector<16x16x32xf32>
    %13 = arith.truncf %12 : vector<16x16x32xf32> to vector<16x16x32xbf16>
    %c1 = arith.constant 1 : index
    %c1_10 = arith.constant 1 : index
    %c0_11 = arith.constant 0 : index
    %14 = vector.load %arg11[%c1, %c1_10, %c0_11] : memref<18x18x32xbf16, #tpu.memory_space<vmem>>, vector<16x16x32xbf16>
    tpu.vector_store %arg11[%c1, %c1_10, %c0_11], %13 {strides = array<i32>} : memref<18x18x32xbf16, #tpu.memory_space<vmem>>, vector<16x16x32xbf16>,
    %c0_12 = arith.constant 0 : index
    %c0_13 = arith.constant 0 : index
    %c0_14 = arith.constant 0 : index
    %c0_15 = arith.constant 0 : index
    %15 = vector.load %arg3[%c0_12, %c0_13, %c0_14, %c0_15] : memref<1x1x16x32xbf16, #tpu.memory_space<vmem>>, vector<1x1x16x32xbf16>
    %16 = vector.shape_cast %15 : vector<1x1x16x32xbf16> to vector<1x16x32xbf16>
    %17 = arith.extf %16 : vector<1x16x32xbf16> to vector<1x16x32xf32>
    %18 = vector.broadcast %1 : vector<1x1x32xf32> to vector<1x16x32xf32>
    %19 = arith.mulf %17, %18 : vector<1x16x32xf32>
    %20 = vector.broadcast %3 : vector<1x1x32xf32> to vector<1x16x32xf32>
    %21 = arith.addf %19, %20 : vector<1x16x32xf32>
    %22 = arith.truncf %21 : vector<1x16x32xf32> to vector<1x16x32xbf16>
    %c0_16 = arith.constant 0 : index
    %c0_17 = arith.constant 0 : index
    %c0_18 = arith.constant 0 : index
    %c0_19 = arith.constant 0 : index
    %23 = vector.load %arg4[%c0_16, %c0_17, %c0_18, %c0_19] : memref<1x1x16x32xbf16, #tpu.memory_space<vmem>>, vector<1x1x16x32xbf16>
    %24 = vector.shape_cast %23 : vector<1x1x16x32xbf16> to vector<1x16x32xbf16>
    %25 = arith.extf %24 : vector<1x16x32xbf16> to vector<1x16x32xf32>
    %26 = vector.broadcast %1 : vector<1x1x32xf32> to vector<1x16x32xf32>
    %27 = arith.mulf %25, %26 : vector<1x16x32xf32>
    %28 = vector.broadcast %3 : vector<1x1x32xf32> to vector<1x16x32xf32>
    %29 = arith.addf %27, %28 : vector<1x16x32xf32>
    %30 = arith.truncf %29 : vector<1x16x32xf32> to vector<1x16x32xbf16>
    %c0_i32 = arith.constant 0 : i32
    %31 = arith.cmpi sgt, %arg1, %c0_i32 : i32
    %cst_20 = arith.constant 0.000000e+00 : bf16
    %32 = vector.broadcast %cst_20 : bf16 to vector<1x16x32xbf16>
    %33 = arith.select %31, %22, %32 : vector<1x16x32xbf16>
    %c0_21 = arith.constant 0 : index
    %c1_22 = arith.constant 1 : index
    %c0_23 = arith.constant 0 : index
    %34 = vector.load %arg11[%c0_21, %c1_22, %c0_23] : memref<18x18x32xbf16, #tpu.memory_space<vmem>>, vector<1x16x32xbf16>
    tpu.vector_store %arg11[%c0_21, %c1_22, %c0_23], %33 {strides = array<i32>} : memref<18x18x32xbf16, #tpu.memory_space<vmem>>, vector<1x16x32xbf16>,
    %c0_i32_24 = arith.constant 0 : i32
    %35 = arith.cmpi slt, %arg1, %c0_i32_24 : i32
    %cst_25 = arith.constant 0.000000e+00 : bf16
    %36 = vector.broadcast %cst_25 : bf16 to vector<1x16x32xbf16>
    %37 = arith.select %35, %30, %36 : vector<1x16x32xbf16>
    %c17 = arith.constant 17 : index
    %c1_26 = arith.constant 1 : index
    %c0_27 = arith.constant 0 : index
    %38 = vector.load %arg11[%c17, %c1_26, %c0_27] : memref<18x18x32xbf16, #tpu.memory_space<vmem>>, vector<1x16x32xbf16>
    tpu.vector_store %arg11[%c17, %c1_26, %c0_27], %37 {strides = array<i32>} : memref<18x18x32xbf16, #tpu.memory_space<vmem>>, vector<1x16x32xbf16>,
    %c0_28 = arith.constant 0 : index
    %c0_29 = arith.constant 0 : index
    %c0_30 = arith.constant 0 : index
    %39 = vector.load %arg11[%c0_28, %c0_29, %c0_30] : memref<18x18x32xbf16, #tpu.memory_space<vmem>>, vector<16x16x32xbf16>
    %40 = vector.shape_cast %39 : vector<16x16x32xbf16> to vector<256x32xbf16>
    %c0_31 = arith.constant 0 : index
    %c0_32 = arith.constant 0 : index
    %41 = vector.load %arg12[%c0_31, %c0_32] : memref<256x288xbf16, #tpu.memory_space<vmem>>, vector<256x32xbf16>
    tpu.vector_store %arg12[%c0_31, %c0_32], %40 {strides = array<i32>} : memref<256x288xbf16, #tpu.memory_space<vmem>>, vector<256x32xbf16>,
    %c0_33 = arith.constant 0 : index
    %c1_34 = arith.constant 1 : index
    %c0_35 = arith.constant 0 : index
    %42 = vector.load %arg11[%c0_33, %c1_34, %c0_35] : memref<18x18x32xbf16, #tpu.memory_space<vmem>>, vector<16x16x32xbf16>
    %43 = vector.shape_cast %42 : vector<16x16x32xbf16> to vector<256x32xbf16>
    %c0_36 = arith.constant 0 : index
    %c32 = arith.constant 32 : index
    %44 = vector.load %arg12[%c0_36, %c32] : memref<256x288xbf16, #tpu.memory_space<vmem>>, vector<256x32xbf16>
    tpu.vector_store %arg12[%c0_36, %c32], %43 {strides = array<i32>} : memref<256x288xbf16, #tpu.memory_space<vmem>>, vector<256x32xbf16>,
    %c0_37 = arith.constant 0 : index
    %c2 = arith.constant 2 : index
    %c0_38 = arith.constant 0 : index
    %45 = vector.load %arg11[%c0_37, %c2, %c0_38] : memref<18x18x32xbf16, #tpu.memory_space<vmem>>, vector<16x16x32xbf16>
    %46 = vector.shape_cast %45 : vector<16x16x32xbf16> to vector<256x32xbf16>
    %c0_39 = arith.constant 0 : index
    %c64 = arith.constant 64 : index
    %47 = vector.load %arg12[%c0_39, %c64] : memref<256x288xbf16, #tpu.memory_space<vmem>>, vector<256x32xbf16>
    tpu.vector_store %arg12[%c0_39, %c64], %46 {strides = array<i32>} : memref<256x288xbf16, #tpu.memory_space<vmem>>, vector<256x32xbf16>,
    %c1_40 = arith.constant 1 : index
    %c0_41 = arith.constant 0 : index
    %c0_42 = arith.constant 0 : index
    %48 = vector.load %arg11[%c1_40, %c0_41, %c0_42] : memref<18x18x32xbf16, #tpu.memory_space<vmem>>, vector<16x16x32xbf16>
    %49 = vector.shape_cast %48 : vector<16x16x32xbf16> to vector<256x32xbf16>
    %c0_43 = arith.constant 0 : index
    %c96 = arith.constant 96 : index
    %50 = vector.load %arg12[%c0_43, %c96] : memref<256x288xbf16, #tpu.memory_space<vmem>>, vector<256x32xbf16>
    tpu.vector_store %arg12[%c0_43, %c96], %49 {strides = array<i32>} : memref<256x288xbf16, #tpu.memory_space<vmem>>, vector<256x32xbf16>,
    %c1_44 = arith.constant 1 : index
    %c1_45 = arith.constant 1 : index
    %c0_46 = arith.constant 0 : index
    %51 = vector.load %arg11[%c1_44, %c1_45, %c0_46] : memref<18x18x32xbf16, #tpu.memory_space<vmem>>, vector<16x16x32xbf16>
    %52 = vector.shape_cast %51 : vector<16x16x32xbf16> to vector<256x32xbf16>
    %c0_47 = arith.constant 0 : index
    %c128 = arith.constant 128 : index
    %53 = vector.load %arg12[%c0_47, %c128] : memref<256x288xbf16, #tpu.memory_space<vmem>>, vector<256x32xbf16>
    tpu.vector_store %arg12[%c0_47, %c128], %52 {strides = array<i32>} : memref<256x288xbf16, #tpu.memory_space<vmem>>, vector<256x32xbf16>,
    %c1_48 = arith.constant 1 : index
    %c2_49 = arith.constant 2 : index
    %c0_50 = arith.constant 0 : index
    %54 = vector.load %arg11[%c1_48, %c2_49, %c0_50] : memref<18x18x32xbf16, #tpu.memory_space<vmem>>, vector<16x16x32xbf16>
    %55 = vector.shape_cast %54 : vector<16x16x32xbf16> to vector<256x32xbf16>
    %c0_51 = arith.constant 0 : index
    %c160 = arith.constant 160 : index
    %56 = vector.load %arg12[%c0_51, %c160] : memref<256x288xbf16, #tpu.memory_space<vmem>>, vector<256x32xbf16>
    tpu.vector_store %arg12[%c0_51, %c160], %55 {strides = array<i32>} : memref<256x288xbf16, #tpu.memory_space<vmem>>, vector<256x32xbf16>,
    %c2_52 = arith.constant 2 : index
    %c0_53 = arith.constant 0 : index
    %c0_54 = arith.constant 0 : index
    %57 = vector.load %arg11[%c2_52, %c0_53, %c0_54] : memref<18x18x32xbf16, #tpu.memory_space<vmem>>, vector<16x16x32xbf16>
    %58 = vector.shape_cast %57 : vector<16x16x32xbf16> to vector<256x32xbf16>
    %c0_55 = arith.constant 0 : index
    %c192 = arith.constant 192 : index
    %59 = vector.load %arg12[%c0_55, %c192] : memref<256x288xbf16, #tpu.memory_space<vmem>>, vector<256x32xbf16>
    tpu.vector_store %arg12[%c0_55, %c192], %58 {strides = array<i32>} : memref<256x288xbf16, #tpu.memory_space<vmem>>, vector<256x32xbf16>,
    %c2_56 = arith.constant 2 : index
    %c1_57 = arith.constant 1 : index
    %c0_58 = arith.constant 0 : index
    %60 = vector.load %arg11[%c2_56, %c1_57, %c0_58] : memref<18x18x32xbf16, #tpu.memory_space<vmem>>, vector<16x16x32xbf16>
    %61 = vector.shape_cast %60 : vector<16x16x32xbf16> to vector<256x32xbf16>
    %c0_59 = arith.constant 0 : index
    %c224 = arith.constant 224 : index
    %62 = vector.load %arg12[%c0_59, %c224] : memref<256x288xbf16, #tpu.memory_space<vmem>>, vector<256x32xbf16>
    tpu.vector_store %arg12[%c0_59, %c224], %61 {strides = array<i32>} : memref<256x288xbf16, #tpu.memory_space<vmem>>, vector<256x32xbf16>,
    %c2_60 = arith.constant 2 : index
    %c2_61 = arith.constant 2 : index
    %c0_62 = arith.constant 0 : index
    %63 = vector.load %arg11[%c2_60, %c2_61, %c0_62] : memref<18x18x32xbf16, #tpu.memory_space<vmem>>, vector<16x16x32xbf16>
    %64 = vector.shape_cast %63 : vector<16x16x32xbf16> to vector<256x32xbf16>
    %c0_63 = arith.constant 0 : index
    %c256 = arith.constant 256 : index
    %65 = vector.load %arg12[%c0_63, %c256] : memref<256x288xbf16, #tpu.memory_space<vmem>>, vector<256x32xbf16>
    tpu.vector_store %arg12[%c0_63, %c256], %64 {strides = array<i32>} : memref<256x288xbf16, #tpu.memory_space<vmem>>, vector<256x32xbf16>,
    %c0_64 = arith.constant 0 : index
    %c0_65 = arith.constant 0 : index
    %66 = vector.load %arg12[%c0_64, %c0_65] : memref<256x288xbf16, #tpu.memory_space<vmem>>, vector<256x288xbf16>
    %c0_66 = arith.constant 0 : index
    %c0_67 = arith.constant 0 : index
    %67 = vector.load %arg7[%c0_66, %c0_67] : memref<288x32xbf16, #tpu.memory_space<vmem>>, vector<288x32xbf16>
    %cst_68 = arith.constant dense<0.000000e+00> : vector<256x32xf32>
    %68 = tpu.matmul %66, %67, %cst_68 {dimension_numbers = #tpu.dot_dimension_numbers<[1], [0], [0], [1], [0, 0, 1, 1], [], []>} : vector<256x288xbf16>, vector<288x32xbf16>, vector<256x32xf32> -> vector<256x32xf32>
    %69 = vector.shape_cast %68 : vector<256x32xf32> to vector<16x16x32xf32>
    %70 = arith.truncf %69 : vector<16x16x32xf32> to vector<16x16x32xbf16>
    %c0_69 = arith.constant 0 : index
    %c0_70 = arith.constant 0 : index
    %c0_71 = arith.constant 0 : index
    %c0_72 = arith.constant 0 : index
    %71 = vector.load %arg8[%c0_69, %c0_70, %c0_71, %c0_72] : memref<1x16x16x32xbf16, #tpu.memory_space<vmem>>, vector<1x16x16x32xbf16>
    %72 = vector.shape_cast %71 : vector<1x16x16x32xbf16> to vector<16x16x32xbf16>
    %73 = vector.shape_cast %70 : vector<16x16x32xbf16> to vector<1x16x16x32xbf16>
    tpu.vector_store %arg8[%c0_69, %c0_70, %c0_71, %c0_72], %73 {strides = array<i32>} : memref<1x16x16x32xbf16, #tpu.memory_space<vmem>>, vector<1x16x16x32xbf16>,
    %cst_73 = arith.constant dense<0.000000e+00> : vector<32xf32>
    %74 = vector.multi_reduction <add>, %68, %cst_73 [0] : vector<256x32xf32> to vector<32xf32>
    %75 = vector.shape_cast %74 : vector<32xf32> to vector<1x32xf32>
    %c0_74 = arith.constant 0 : index
    %c0_75 = arith.constant 0 : index
    %c0_76 = arith.constant 0 : index
    %c0_77 = arith.constant 0 : index
    %76 = vector.load %arg9[%c0_74, %c0_75, %c0_76, %c0_77] : memref<1x1x1x32xf32, #tpu.memory_space<vmem>>, vector<1x1x1x32xf32>
    %77 = vector.shape_cast %76 : vector<1x1x1x32xf32> to vector<1x32xf32>
    %78 = vector.shape_cast %75 : vector<1x32xf32> to vector<1x1x1x32xf32>
    tpu.vector_store %arg9[%c0_74, %c0_75, %c0_76, %c0_77], %78 {strides = array<i32>} : memref<1x1x1x32xf32, #tpu.memory_space<vmem>>, vector<1x1x1x32xf32>,
    %79 = arith.mulf %68, %68 : vector<256x32xf32>
    %cst_78 = arith.constant dense<0.000000e+00> : vector<32xf32>
    %80 = vector.multi_reduction <add>, %79, %cst_78 [0] : vector<256x32xf32> to vector<32xf32>
    %81 = vector.shape_cast %80 : vector<32xf32> to vector<1x32xf32>
    %c0_79 = arith.constant 0 : index
    %c0_80 = arith.constant 0 : index
    %c0_81 = arith.constant 0 : index
    %c0_82 = arith.constant 0 : index
    %82 = vector.load %arg10[%c0_79, %c0_80, %c0_81, %c0_82] : memref<1x1x1x32xf32, #tpu.memory_space<vmem>>, vector<1x1x1x32xf32>
    %83 = vector.shape_cast %82 : vector<1x1x1x32xf32> to vector<1x32xf32>
    %84 = vector.shape_cast %81 : vector<1x32xf32> to vector<1x1x1x32xf32>
    tpu.vector_store %arg10[%c0_79, %c0_80, %c0_81, %c0_82], %84 {strides = array<i32>} : memref<1x1x1x32xf32, #tpu.memory_space<vmem>>, vector<1x1x1x32xf32>,
    return
  }
  func.func @transform_0(%arg0: i32, %arg1: i32) -> (i32, i32, i32, i32) {
    %c0_i32 = arith.constant 0 : i32
    %c0_i32_0 = arith.constant 0 : i32
    %c0_i32_1 = arith.constant 0 : i32
    return %arg0, %arg1, %c0_i32, %c0_i32_0 : i32, i32, i32, i32
  }
  func.func @transform_1(%arg0: i32, %arg1: i32) -> (i32, i32, i32, i32) {
    %c16_i32 = arith.constant 16 : i32
    %0 = arith.muli %arg1, %c16_i32 : i32
    %c1_i32 = arith.constant 1 : i32
    %1 = arith.subi %0, %c1_i32 : i32
    %c0_i32 = arith.constant 0 : i32
    %2 = arith.maxsi %1, %c0_i32 : i32
    %c0_i32_0 = arith.constant 0 : i32
    %c0_i32_1 = arith.constant 0 : i32
    %c0_i32_2 = arith.constant 0 : i32
    return %arg0, %2, %c0_i32_0, %c0_i32_1 : i32, i32, i32, i32
  }
  func.func @transform_2(%arg0: i32, %arg1: i32) -> (i32, i32, i32, i32) {
    %c16_i32 = arith.constant 16 : i32
    %0 = arith.muli %arg1, %c16_i32 : i32
    %c16_i32_0 = arith.constant 16 : i32
    %1 = arith.addi %0, %c16_i32_0 : i32
    %c15_i32 = arith.constant 15 : i32
    %2 = arith.minsi %1, %c15_i32 : i32
    %c0_i32 = arith.constant 0 : i32
    %c0_i32_1 = arith.constant 0 : i32
    %c0_i32_2 = arith.constant 0 : i32
    return %arg0, %2, %c0_i32, %c0_i32_1 : i32, i32, i32, i32
  }
  func.func @transform_3(%arg0: i32, %arg1: i32) -> (i32, i32) {
    %c0_i32 = arith.constant 0 : i32
    %c0_i32_0 = arith.constant 0 : i32
    %c0_i32_1 = arith.constant 0 : i32
    return %c0_i32, %c0_i32_0 : i32, i32
  }
  func.func @transform_4(%arg0: i32, %arg1: i32) -> (i32, i32) {
    %c0_i32 = arith.constant 0 : i32
    %c0_i32_0 = arith.constant 0 : i32
    %c0_i32_1 = arith.constant 0 : i32
    return %c0_i32, %c0_i32_0 : i32, i32
  }
  func.func @transform_5(%arg0: i32, %arg1: i32) -> (i32, i32) {
    %c0_i32 = arith.constant 0 : i32
    %c0_i32_0 = arith.constant 0 : i32
    %c0_i32_1 = arith.constant 0 : i32
    return %c0_i32, %c0_i32_0 : i32, i32
  }
  func.func @transform_6(%arg0: i32, %arg1: i32) -> (i32, i32, i32, i32) {
    %c0_i32 = arith.constant 0 : i32
    %c0_i32_0 = arith.constant 0 : i32
    %c0_i32_1 = arith.constant 0 : i32
    return %arg0, %arg1, %c0_i32, %c0_i32_0 : i32, i32, i32, i32
  }
  func.func @transform_7(%arg0: i32, %arg1: i32) -> (i32, i32, i32, i32) {
    %c0_i32 = arith.constant 0 : i32
    %c0_i32_0 = arith.constant 0 : i32
    %c0_i32_1 = arith.constant 0 : i32
    return %arg0, %arg1, %c0_i32, %c0_i32_0 : i32, i32, i32, i32
  }
  func.func @transform_8(%arg0: i32, %arg1: i32) -> (i32, i32, i32, i32) {
    %c0_i32 = arith.constant 0 : i32
    %c0_i32_0 = arith.constant 0 : i32
    %c0_i32_1 = arith.constant 0 : i32
    return %arg0, %arg1, %c0_i32, %c0_i32_0 : i32, i32, i32, i32
  }
}

module attributes {stable_mosaic.version = 11 : i64} {
  func.func @_conv3x3_kernel(%arg0: i32, %arg1: i32, %arg2: memref<1x16x16x32xbf16, #tpu.memory_space<vmem>>, %arg3: memref<1x1x16x32xbf16, #tpu.memory_space<vmem>>, %arg4: memref<1x1x16x32xbf16, #tpu.memory_space<vmem>>, %arg5: memref<1x32xf32, #tpu.memory_space<vmem>>, %arg6: memref<1x32xf32, #tpu.memory_space<vmem>>, %arg7: memref<288x32xbf16, #tpu.memory_space<vmem>>, %arg8: memref<1x16x16x32xbf16, #tpu.memory_space<vmem>>, %arg9: memref<1x1x1x32xf32, #tpu.memory_space<vmem>>, %arg10: memref<1x1x1x32xf32, #tpu.memory_space<vmem>>, %arg11: memref<18x18x32xbf16, #tpu.memory_space<vmem>>, %arg12: memref<256x288xbf16, #tpu.memory_space<vmem>>) attributes {dimension_semantics = [#tpu.dimension_semantics<parallel>, #tpu.dimension_semantics<parallel>], iteration_bounds = array<i64: 2, 1>, scalar_prefetch = 0 : i64, scratch_operands = 2 : i64, tpu.core_type = #tpu.core_type<tc>, window_params = [{transform_indices = @transform_0, window_bounds = array<i64: 1, 16, 16, 32>}, {transform_indices = @transform_1, window_bounds = array<i64: 1, 1, 16, 32>}, {transform_indices = @transform_2, window_bounds = array<i64: 1, 1, 16, 32>}, {pipeline_mode = #tpu.pipeline_mode<synchronous>, transform_indices = @transform_3, window_bounds = array<i64: 1, 32>}, {pipeline_mode = #tpu.pipeline_mode<synchronous>, transform_indices = @transform_4, window_bounds = array<i64: 1, 32>}, {pipeline_mode = #tpu.pipeline_mode<synchronous>, transform_indices = @transform_5, window_bounds = array<i64: 288, 32>}, {transform_indices = @transform_6, window_bounds = array<i64: 1, 16, 16, 32>}, {transform_indices = @transform_7, window_bounds = array<i64: 1, 1, 1, 32>}, {transform_indices = @transform_8, window_bounds = array<i64: 1, 1, 1, 32>}]} {
    %c0 = arith.constant 0 : index
    %c0_0 = arith.constant 0 : index
    %0 = vector.load %arg5[%c0, %c0_0] : memref<1x32xf32, #tpu.memory_space<vmem>>, vector<1x32xf32>
    %1 = vector.shape_cast %0 : vector<1x32xf32> to vector<1x1x32xf32>
    %c0_1 = arith.constant 0 : index
    %c0_2 = arith.constant 0 : index
    %2 = vector.load %arg6[%c0_1, %c0_2] : memref<1x32xf32, #tpu.memory_space<vmem>>, vector<1x32xf32>
    %3 = vector.shape_cast %2 : vector<1x32xf32> to vector<1x1x32xf32>
    %cst = arith.constant 0.000000e+00 : bf16
    %4 = vector.broadcast %cst : bf16 to vector<18x18x32xbf16>
    %c0_3 = arith.constant 0 : index
    %c0_4 = arith.constant 0 : index
    %c0_5 = arith.constant 0 : index
    %5 = vector.load %arg11[%c0_3, %c0_4, %c0_5] : memref<18x18x32xbf16, #tpu.memory_space<vmem>>, vector<18x18x32xbf16>
    tpu.vector_store %arg11[%c0_3, %c0_4, %c0_5], %4 {strides = array<i32>} : memref<18x18x32xbf16, #tpu.memory_space<vmem>>, vector<18x18x32xbf16>,
    %c0_6 = arith.constant 0 : index
    %c0_7 = arith.constant 0 : index
    %c0_8 = arith.constant 0 : index
    %c0_9 = arith.constant 0 : index
    %6 = vector.load %arg2[%c0_6, %c0_7, %c0_8, %c0_9] : memref<1x16x16x32xbf16, #tpu.memory_space<vmem>>, vector<1x16x16x32xbf16>
    %7 = vector.shape_cast %6 : vector<1x16x16x32xbf16> to vector<16x16x32xbf16>
    %8 = arith.extf %7 : vector<16x16x32xbf16> to vector<16x16x32xf32>
    %9 = vector.broadcast %1 : vector<1x1x32xf32> to vector<16x16x32xf32>
    %10 = arith.mulf %8, %9 : vector<16x16x32xf32>
    %11 = vector.broadcast %3 : vector<1x1x32xf32> to vector<16x16x32xf32>
    %12 = arith.addf %10, %11 : vector<16x16x32xf32>
    %cst_10 = arith.constant 0.000000e+00 : f32
    %13 = vector.broadcast %cst_10 : f32 to vector<16x16x32xf32>
    %14 = arith.maximumf %12, %13 : vector<16x16x32xf32>
    %15 = arith.truncf %14 : vector<16x16x32xf32> to vector<16x16x32xbf16>
    %c1 = arith.constant 1 : index
    %c1_11 = arith.constant 1 : index
    %c0_12 = arith.constant 0 : index
    %16 = vector.load %arg11[%c1, %c1_11, %c0_12] : memref<18x18x32xbf16, #tpu.memory_space<vmem>>, vector<16x16x32xbf16>
    tpu.vector_store %arg11[%c1, %c1_11, %c0_12], %15 {strides = array<i32>} : memref<18x18x32xbf16, #tpu.memory_space<vmem>>, vector<16x16x32xbf16>,
    %c0_13 = arith.constant 0 : index
    %c0_14 = arith.constant 0 : index
    %c0_15 = arith.constant 0 : index
    %c0_16 = arith.constant 0 : index
    %17 = vector.load %arg3[%c0_13, %c0_14, %c0_15, %c0_16] : memref<1x1x16x32xbf16, #tpu.memory_space<vmem>>, vector<1x1x16x32xbf16>
    %18 = vector.shape_cast %17 : vector<1x1x16x32xbf16> to vector<1x16x32xbf16>
    %19 = arith.extf %18 : vector<1x16x32xbf16> to vector<1x16x32xf32>
    %20 = vector.broadcast %1 : vector<1x1x32xf32> to vector<1x16x32xf32>
    %21 = arith.mulf %19, %20 : vector<1x16x32xf32>
    %22 = vector.broadcast %3 : vector<1x1x32xf32> to vector<1x16x32xf32>
    %23 = arith.addf %21, %22 : vector<1x16x32xf32>
    %cst_17 = arith.constant 0.000000e+00 : f32
    %24 = vector.broadcast %cst_17 : f32 to vector<1x16x32xf32>
    %25 = arith.maximumf %23, %24 : vector<1x16x32xf32>
    %26 = arith.truncf %25 : vector<1x16x32xf32> to vector<1x16x32xbf16>
    %c0_18 = arith.constant 0 : index
    %c0_19 = arith.constant 0 : index
    %c0_20 = arith.constant 0 : index
    %c0_21 = arith.constant 0 : index
    %27 = vector.load %arg4[%c0_18, %c0_19, %c0_20, %c0_21] : memref<1x1x16x32xbf16, #tpu.memory_space<vmem>>, vector<1x1x16x32xbf16>
    %28 = vector.shape_cast %27 : vector<1x1x16x32xbf16> to vector<1x16x32xbf16>
    %29 = arith.extf %28 : vector<1x16x32xbf16> to vector<1x16x32xf32>
    %30 = vector.broadcast %1 : vector<1x1x32xf32> to vector<1x16x32xf32>
    %31 = arith.mulf %29, %30 : vector<1x16x32xf32>
    %32 = vector.broadcast %3 : vector<1x1x32xf32> to vector<1x16x32xf32>
    %33 = arith.addf %31, %32 : vector<1x16x32xf32>
    %cst_22 = arith.constant 0.000000e+00 : f32
    %34 = vector.broadcast %cst_22 : f32 to vector<1x16x32xf32>
    %35 = arith.maximumf %33, %34 : vector<1x16x32xf32>
    %36 = arith.truncf %35 : vector<1x16x32xf32> to vector<1x16x32xbf16>
    %c0_i32 = arith.constant 0 : i32
    %37 = arith.cmpi sgt, %arg1, %c0_i32 : i32
    %cst_23 = arith.constant 0.000000e+00 : bf16
    %38 = vector.broadcast %cst_23 : bf16 to vector<1x16x32xbf16>
    %39 = arith.select %37, %26, %38 : vector<1x16x32xbf16>
    %c0_24 = arith.constant 0 : index
    %c1_25 = arith.constant 1 : index
    %c0_26 = arith.constant 0 : index
    %40 = vector.load %arg11[%c0_24, %c1_25, %c0_26] : memref<18x18x32xbf16, #tpu.memory_space<vmem>>, vector<1x16x32xbf16>
    tpu.vector_store %arg11[%c0_24, %c1_25, %c0_26], %39 {strides = array<i32>} : memref<18x18x32xbf16, #tpu.memory_space<vmem>>, vector<1x16x32xbf16>,
    %c0_i32_27 = arith.constant 0 : i32
    %41 = arith.cmpi slt, %arg1, %c0_i32_27 : i32
    %cst_28 = arith.constant 0.000000e+00 : bf16
    %42 = vector.broadcast %cst_28 : bf16 to vector<1x16x32xbf16>
    %43 = arith.select %41, %36, %42 : vector<1x16x32xbf16>
    %c17 = arith.constant 17 : index
    %c1_29 = arith.constant 1 : index
    %c0_30 = arith.constant 0 : index
    %44 = vector.load %arg11[%c17, %c1_29, %c0_30] : memref<18x18x32xbf16, #tpu.memory_space<vmem>>, vector<1x16x32xbf16>
    tpu.vector_store %arg11[%c17, %c1_29, %c0_30], %43 {strides = array<i32>} : memref<18x18x32xbf16, #tpu.memory_space<vmem>>, vector<1x16x32xbf16>,
    %c0_31 = arith.constant 0 : index
    %c0_32 = arith.constant 0 : index
    %c0_33 = arith.constant 0 : index
    %45 = vector.load %arg11[%c0_31, %c0_32, %c0_33] : memref<18x18x32xbf16, #tpu.memory_space<vmem>>, vector<16x16x32xbf16>
    %46 = vector.shape_cast %45 : vector<16x16x32xbf16> to vector<256x32xbf16>
    %c0_34 = arith.constant 0 : index
    %c0_35 = arith.constant 0 : index
    %47 = vector.load %arg12[%c0_34, %c0_35] : memref<256x288xbf16, #tpu.memory_space<vmem>>, vector<256x32xbf16>
    tpu.vector_store %arg12[%c0_34, %c0_35], %46 {strides = array<i32>} : memref<256x288xbf16, #tpu.memory_space<vmem>>, vector<256x32xbf16>,
    %c0_36 = arith.constant 0 : index
    %c1_37 = arith.constant 1 : index
    %c0_38 = arith.constant 0 : index
    %48 = vector.load %arg11[%c0_36, %c1_37, %c0_38] : memref<18x18x32xbf16, #tpu.memory_space<vmem>>, vector<16x16x32xbf16>
    %49 = vector.shape_cast %48 : vector<16x16x32xbf16> to vector<256x32xbf16>
    %c0_39 = arith.constant 0 : index
    %c32 = arith.constant 32 : index
    %50 = vector.load %arg12[%c0_39, %c32] : memref<256x288xbf16, #tpu.memory_space<vmem>>, vector<256x32xbf16>
    tpu.vector_store %arg12[%c0_39, %c32], %49 {strides = array<i32>} : memref<256x288xbf16, #tpu.memory_space<vmem>>, vector<256x32xbf16>,
    %c0_40 = arith.constant 0 : index
    %c2 = arith.constant 2 : index
    %c0_41 = arith.constant 0 : index
    %51 = vector.load %arg11[%c0_40, %c2, %c0_41] : memref<18x18x32xbf16, #tpu.memory_space<vmem>>, vector<16x16x32xbf16>
    %52 = vector.shape_cast %51 : vector<16x16x32xbf16> to vector<256x32xbf16>
    %c0_42 = arith.constant 0 : index
    %c64 = arith.constant 64 : index
    %53 = vector.load %arg12[%c0_42, %c64] : memref<256x288xbf16, #tpu.memory_space<vmem>>, vector<256x32xbf16>
    tpu.vector_store %arg12[%c0_42, %c64], %52 {strides = array<i32>} : memref<256x288xbf16, #tpu.memory_space<vmem>>, vector<256x32xbf16>,
    %c1_43 = arith.constant 1 : index
    %c0_44 = arith.constant 0 : index
    %c0_45 = arith.constant 0 : index
    %54 = vector.load %arg11[%c1_43, %c0_44, %c0_45] : memref<18x18x32xbf16, #tpu.memory_space<vmem>>, vector<16x16x32xbf16>
    %55 = vector.shape_cast %54 : vector<16x16x32xbf16> to vector<256x32xbf16>
    %c0_46 = arith.constant 0 : index
    %c96 = arith.constant 96 : index
    %56 = vector.load %arg12[%c0_46, %c96] : memref<256x288xbf16, #tpu.memory_space<vmem>>, vector<256x32xbf16>
    tpu.vector_store %arg12[%c0_46, %c96], %55 {strides = array<i32>} : memref<256x288xbf16, #tpu.memory_space<vmem>>, vector<256x32xbf16>,
    %c1_47 = arith.constant 1 : index
    %c1_48 = arith.constant 1 : index
    %c0_49 = arith.constant 0 : index
    %57 = vector.load %arg11[%c1_47, %c1_48, %c0_49] : memref<18x18x32xbf16, #tpu.memory_space<vmem>>, vector<16x16x32xbf16>
    %58 = vector.shape_cast %57 : vector<16x16x32xbf16> to vector<256x32xbf16>
    %c0_50 = arith.constant 0 : index
    %c128 = arith.constant 128 : index
    %59 = vector.load %arg12[%c0_50, %c128] : memref<256x288xbf16, #tpu.memory_space<vmem>>, vector<256x32xbf16>
    tpu.vector_store %arg12[%c0_50, %c128], %58 {strides = array<i32>} : memref<256x288xbf16, #tpu.memory_space<vmem>>, vector<256x32xbf16>,
    %c1_51 = arith.constant 1 : index
    %c2_52 = arith.constant 2 : index
    %c0_53 = arith.constant 0 : index
    %60 = vector.load %arg11[%c1_51, %c2_52, %c0_53] : memref<18x18x32xbf16, #tpu.memory_space<vmem>>, vector<16x16x32xbf16>
    %61 = vector.shape_cast %60 : vector<16x16x32xbf16> to vector<256x32xbf16>
    %c0_54 = arith.constant 0 : index
    %c160 = arith.constant 160 : index
    %62 = vector.load %arg12[%c0_54, %c160] : memref<256x288xbf16, #tpu.memory_space<vmem>>, vector<256x32xbf16>
    tpu.vector_store %arg12[%c0_54, %c160], %61 {strides = array<i32>} : memref<256x288xbf16, #tpu.memory_space<vmem>>, vector<256x32xbf16>,
    %c2_55 = arith.constant 2 : index
    %c0_56 = arith.constant 0 : index
    %c0_57 = arith.constant 0 : index
    %63 = vector.load %arg11[%c2_55, %c0_56, %c0_57] : memref<18x18x32xbf16, #tpu.memory_space<vmem>>, vector<16x16x32xbf16>
    %64 = vector.shape_cast %63 : vector<16x16x32xbf16> to vector<256x32xbf16>
    %c0_58 = arith.constant 0 : index
    %c192 = arith.constant 192 : index
    %65 = vector.load %arg12[%c0_58, %c192] : memref<256x288xbf16, #tpu.memory_space<vmem>>, vector<256x32xbf16>
    tpu.vector_store %arg12[%c0_58, %c192], %64 {strides = array<i32>} : memref<256x288xbf16, #tpu.memory_space<vmem>>, vector<256x32xbf16>,
    %c2_59 = arith.constant 2 : index
    %c1_60 = arith.constant 1 : index
    %c0_61 = arith.constant 0 : index
    %66 = vector.load %arg11[%c2_59, %c1_60, %c0_61] : memref<18x18x32xbf16, #tpu.memory_space<vmem>>, vector<16x16x32xbf16>
    %67 = vector.shape_cast %66 : vector<16x16x32xbf16> to vector<256x32xbf16>
    %c0_62 = arith.constant 0 : index
    %c224 = arith.constant 224 : index
    %68 = vector.load %arg12[%c0_62, %c224] : memref<256x288xbf16, #tpu.memory_space<vmem>>, vector<256x32xbf16>
    tpu.vector_store %arg12[%c0_62, %c224], %67 {strides = array<i32>} : memref<256x288xbf16, #tpu.memory_space<vmem>>, vector<256x32xbf16>,
    %c2_63 = arith.constant 2 : index
    %c2_64 = arith.constant 2 : index
    %c0_65 = arith.constant 0 : index
    %69 = vector.load %arg11[%c2_63, %c2_64, %c0_65] : memref<18x18x32xbf16, #tpu.memory_space<vmem>>, vector<16x16x32xbf16>
    %70 = vector.shape_cast %69 : vector<16x16x32xbf16> to vector<256x32xbf16>
    %c0_66 = arith.constant 0 : index
    %c256 = arith.constant 256 : index
    %71 = vector.load %arg12[%c0_66, %c256] : memref<256x288xbf16, #tpu.memory_space<vmem>>, vector<256x32xbf16>
    tpu.vector_store %arg12[%c0_66, %c256], %70 {strides = array<i32>} : memref<256x288xbf16, #tpu.memory_space<vmem>>, vector<256x32xbf16>,
    %c0_67 = arith.constant 0 : index
    %c0_68 = arith.constant 0 : index
    %72 = vector.load %arg12[%c0_67, %c0_68] : memref<256x288xbf16, #tpu.memory_space<vmem>>, vector<256x288xbf16>
    %c0_69 = arith.constant 0 : index
    %c0_70 = arith.constant 0 : index
    %73 = vector.load %arg7[%c0_69, %c0_70] : memref<288x32xbf16, #tpu.memory_space<vmem>>, vector<288x32xbf16>
    %cst_71 = arith.constant dense<0.000000e+00> : vector<256x32xf32>
    %74 = tpu.matmul %72, %73, %cst_71 {dimension_numbers = #tpu.dot_dimension_numbers<[1], [0], [0], [1], [0, 0, 1, 1], [], []>} : vector<256x288xbf16>, vector<288x32xbf16>, vector<256x32xf32> -> vector<256x32xf32>
    %75 = vector.shape_cast %74 : vector<256x32xf32> to vector<16x16x32xf32>
    %76 = arith.truncf %75 : vector<16x16x32xf32> to vector<16x16x32xbf16>
    %c0_72 = arith.constant 0 : index
    %c0_73 = arith.constant 0 : index
    %c0_74 = arith.constant 0 : index
    %c0_75 = arith.constant 0 : index
    %77 = vector.load %arg8[%c0_72, %c0_73, %c0_74, %c0_75] : memref<1x16x16x32xbf16, #tpu.memory_space<vmem>>, vector<1x16x16x32xbf16>
    %78 = vector.shape_cast %77 : vector<1x16x16x32xbf16> to vector<16x16x32xbf16>
    %79 = vector.shape_cast %76 : vector<16x16x32xbf16> to vector<1x16x16x32xbf16>
    tpu.vector_store %arg8[%c0_72, %c0_73, %c0_74, %c0_75], %79 {strides = array<i32>} : memref<1x16x16x32xbf16, #tpu.memory_space<vmem>>, vector<1x16x16x32xbf16>,
    %cst_76 = arith.constant dense<0.000000e+00> : vector<32xf32>
    %80 = vector.multi_reduction <add>, %74, %cst_76 [0] : vector<256x32xf32> to vector<32xf32>
    %81 = vector.shape_cast %80 : vector<32xf32> to vector<1x32xf32>
    %c0_77 = arith.constant 0 : index
    %c0_78 = arith.constant 0 : index
    %c0_79 = arith.constant 0 : index
    %c0_80 = arith.constant 0 : index
    %82 = vector.load %arg9[%c0_77, %c0_78, %c0_79, %c0_80] : memref<1x1x1x32xf32, #tpu.memory_space<vmem>>, vector<1x1x1x32xf32>
    %83 = vector.shape_cast %82 : vector<1x1x1x32xf32> to vector<1x32xf32>
    %84 = vector.shape_cast %81 : vector<1x32xf32> to vector<1x1x1x32xf32>
    tpu.vector_store %arg9[%c0_77, %c0_78, %c0_79, %c0_80], %84 {strides = array<i32>} : memref<1x1x1x32xf32, #tpu.memory_space<vmem>>, vector<1x1x1x32xf32>,
    %85 = arith.mulf %74, %74 : vector<256x32xf32>
    %cst_81 = arith.constant dense<0.000000e+00> : vector<32xf32>
    %86 = vector.multi_reduction <add>, %85, %cst_81 [0] : vector<256x32xf32> to vector<32xf32>
    %87 = vector.shape_cast %86 : vector<32xf32> to vector<1x32xf32>
    %c0_82 = arith.constant 0 : index
    %c0_83 = arith.constant 0 : index
    %c0_84 = arith.constant 0 : index
    %c0_85 = arith.constant 0 : index
    %88 = vector.load %arg10[%c0_82, %c0_83, %c0_84, %c0_85] : memref<1x1x1x32xf32, #tpu.memory_space<vmem>>, vector<1x1x1x32xf32>
    %89 = vector.shape_cast %88 : vector<1x1x1x32xf32> to vector<1x32xf32>
    %90 = vector.shape_cast %87 : vector<1x32xf32> to vector<1x1x1x32xf32>
    tpu.vector_store %arg10[%c0_82, %c0_83, %c0_84, %c0_85], %90 {strides = array<i32>} : memref<1x1x1x32xf32, #tpu.memory_space<vmem>>, vector<1x1x1x32xf32>,
    return
  }
  func.func @transform_0(%arg0: i32, %arg1: i32) -> (i32, i32, i32, i32) {
    %c0_i32 = arith.constant 0 : i32
    %c0_i32_0 = arith.constant 0 : i32
    %c0_i32_1 = arith.constant 0 : i32
    return %arg0, %arg1, %c0_i32, %c0_i32_0 : i32, i32, i32, i32
  }
  func.func @transform_1(%arg0: i32, %arg1: i32) -> (i32, i32, i32, i32) {
    %c16_i32 = arith.constant 16 : i32
    %0 = arith.muli %arg1, %c16_i32 : i32
    %c1_i32 = arith.constant 1 : i32
    %1 = arith.subi %0, %c1_i32 : i32
    %c0_i32 = arith.constant 0 : i32
    %2 = arith.maxsi %1, %c0_i32 : i32
    %c0_i32_0 = arith.constant 0 : i32
    %c0_i32_1 = arith.constant 0 : i32
    %c0_i32_2 = arith.constant 0 : i32
    return %arg0, %2, %c0_i32_0, %c0_i32_1 : i32, i32, i32, i32
  }
  func.func @transform_2(%arg0: i32, %arg1: i32) -> (i32, i32, i32, i32) {
    %c16_i32 = arith.constant 16 : i32
    %0 = arith.muli %arg1, %c16_i32 : i32
    %c16_i32_0 = arith.constant 16 : i32
    %1 = arith.addi %0, %c16_i32_0 : i32
    %c15_i32 = arith.constant 15 : i32
    %2 = arith.minsi %1, %c15_i32 : i32
    %c0_i32 = arith.constant 0 : i32
    %c0_i32_1 = arith.constant 0 : i32
    %c0_i32_2 = arith.constant 0 : i32
    return %arg0, %2, %c0_i32, %c0_i32_1 : i32, i32, i32, i32
  }
  func.func @transform_3(%arg0: i32, %arg1: i32) -> (i32, i32) {
    %c0_i32 = arith.constant 0 : i32
    %c0_i32_0 = arith.constant 0 : i32
    %c0_i32_1 = arith.constant 0 : i32
    return %c0_i32, %c0_i32_0 : i32, i32
  }
  func.func @transform_4(%arg0: i32, %arg1: i32) -> (i32, i32) {
    %c0_i32 = arith.constant 0 : i32
    %c0_i32_0 = arith.constant 0 : i32
    %c0_i32_1 = arith.constant 0 : i32
    return %c0_i32, %c0_i32_0 : i32, i32
  }
  func.func @transform_5(%arg0: i32, %arg1: i32) -> (i32, i32) {
    %c0_i32 = arith.constant 0 : i32
    %c0_i32_0 = arith.constant 0 : i32
    %c0_i32_1 = arith.constant 0 : i32
    return %c0_i32, %c0_i32_0 : i32, i32
  }
  func.func @transform_6(%arg0: i32, %arg1: i32) -> (i32, i32, i32, i32) {
    %c0_i32 = arith.constant 0 : i32
    %c0_i32_0 = arith.constant 0 : i32
    %c0_i32_1 = arith.constant 0 : i32
    return %arg0, %arg1, %c0_i32, %c0_i32_0 : i32, i32, i32, i32
  }
  func.func @transform_7(%arg0: i32, %arg1: i32) -> (i32, i32, i32, i32) {
    %c0_i32 = arith.constant 0 : i32
    %c0_i32_0 = arith.constant 0 : i32
    %c0_i32_1 = arith.constant 0 : i32
    return %arg0, %arg1, %c0_i32, %c0_i32_0 : i32, i32, i32, i32
  }
  func.func @transform_8(%arg0: i32, %arg1: i32) -> (i32, i32, i32, i32) {
    %c0_i32 = arith.constant 0 : i32
    %c0_i32_0 = arith.constant 0 : i32
    %c0_i32_1 = arith.constant 0 : i32
    return %arg0, %arg1, %c0_i32, %c0_i32_0 : i32, i32, i32, i32
  }
}

module attributes {stable_mosaic.version = 11 : i64} {
  func.func @_affine_res_kernel(%arg0: i32, %arg1: memref<32x512xbf16, #tpu.memory_space<vmem>>, %arg2: memref<1x512xf32, #tpu.memory_space<vmem>>, %arg3: memref<1x512xf32, #tpu.memory_space<vmem>>, %arg4: memref<32x512xf32, #tpu.memory_space<vmem>>, %arg5: memref<32x512xf32, #tpu.memory_space<vmem>>) attributes {dimension_semantics = [#tpu.dimension_semantics<parallel>], iteration_bounds = array<i64: 1>, scalar_prefetch = 0 : i64, scratch_operands = 0 : i64, tpu.core_type = #tpu.core_type<tc>, window_params = [{transform_indices = @transform_0, window_bounds = array<i64: 32, 512>}, {pipeline_mode = #tpu.pipeline_mode<synchronous>, transform_indices = @transform_1, window_bounds = array<i64: 1, 512>}, {pipeline_mode = #tpu.pipeline_mode<synchronous>, transform_indices = @transform_2, window_bounds = array<i64: 1, 512>}, {transform_indices = @transform_3, window_bounds = array<i64: 32, 512>}, {transform_indices = @transform_4, window_bounds = array<i64: 32, 512>}]} {
    %c0 = arith.constant 0 : index
    %c0_0 = arith.constant 0 : index
    %0 = vector.load %arg1[%c0, %c0_0] : memref<32x512xbf16, #tpu.memory_space<vmem>>, vector<32x512xbf16>
    %1 = arith.extf %0 : vector<32x512xbf16> to vector<32x512xf32>
    %c0_1 = arith.constant 0 : index
    %c0_2 = arith.constant 0 : index
    %2 = vector.load %arg2[%c0_1, %c0_2] : memref<1x512xf32, #tpu.memory_space<vmem>>, vector<1x512xf32>
    %3 = vector.broadcast %2 : vector<1x512xf32> to vector<32x512xf32>
    %4 = arith.mulf %1, %3 : vector<32x512xf32>
    %c0_3 = arith.constant 0 : index
    %c0_4 = arith.constant 0 : index
    %5 = vector.load %arg3[%c0_3, %c0_4] : memref<1x512xf32, #tpu.memory_space<vmem>>, vector<1x512xf32>
    %6 = vector.broadcast %5 : vector<1x512xf32> to vector<32x512xf32>
    %7 = arith.addf %4, %6 : vector<32x512xf32>
    %c0_5 = arith.constant 0 : index
    %c0_6 = arith.constant 0 : index
    %8 = vector.load %arg4[%c0_5, %c0_6] : memref<32x512xf32, #tpu.memory_space<vmem>>, vector<32x512xf32>
    %9 = arith.addf %7, %8 : vector<32x512xf32>
    %cst = arith.constant 0.000000e+00 : f32
    %10 = vector.broadcast %cst : f32 to vector<32x512xf32>
    %11 = arith.maximumf %9, %10 : vector<32x512xf32>
    %c0_7 = arith.constant 0 : index
    %c0_8 = arith.constant 0 : index
    %12 = vector.load %arg5[%c0_7, %c0_8] : memref<32x512xf32, #tpu.memory_space<vmem>>, vector<32x512xf32>
    tpu.vector_store %arg5[%c0_7, %c0_8], %11 {strides = array<i32>} : memref<32x512xf32, #tpu.memory_space<vmem>>, vector<32x512xf32>,
    return
  }
  func.func @transform_0(%arg0: i32) -> (i32, i32) {
    %c0_i32 = arith.constant 0 : i32
    %c0_i32_0 = arith.constant 0 : i32
    return %arg0, %c0_i32 : i32, i32
  }
  func.func @transform_1(%arg0: i32) -> (i32, i32) {
    %c0_i32 = arith.constant 0 : i32
    %c0_i32_0 = arith.constant 0 : i32
    %c0_i32_1 = arith.constant 0 : i32
    return %c0_i32, %c0_i32_0 : i32, i32
  }
  func.func @transform_2(%arg0: i32) -> (i32, i32) {
    %c0_i32 = arith.constant 0 : i32
    %c0_i32_0 = arith.constant 0 : i32
    %c0_i32_1 = arith.constant 0 : i32
    return %c0_i32, %c0_i32_0 : i32, i32
  }
  func.func @transform_3(%arg0: i32) -> (i32, i32) {
    %c0_i32 = arith.constant 0 : i32
    %c0_i32_0 = arith.constant 0 : i32
    return %arg0, %c0_i32 : i32, i32
  }
  func.func @transform_4(%arg0: i32) -> (i32, i32) {
    %c0_i32 = arith.constant 0 : i32
    %c0_i32_0 = arith.constant 0 : i32
    return %arg0, %c0_i32 : i32, i32
  }
}

</mosaic_0001>

<bundles_post_ra>
// kernel: basic_block_forward.5
= control target key start
LH: loop header
LB: loop body
LE: loop exit
PB: predicated region body
PF: predicated region fallthrough
CT: control target
= control target key end

     0   :  { %s360_s0 = inlined_call_operand.vmem [shape: bf16[32,512], index: 0, kind: input, shape index: {}]   ;;  %s361_s1 = inlined_call_operand.vmem [shape: f32[1,512], index: 1, kind: input, shape index: {}]   ;;  %s362_s2 = inlined_call_operand.vmem [shape: f32[1,512], index: 2, kind: input, shape index: {}]   ;;  %s363_s3 = inlined_call_operand.vmem [shape: f32[32,512], index: 3, kind: input, shape index: {}]   ;;  %s364_s4 = inlined_call_operand.vmem [shape: f32[32,512], index: 4, kind: output, shape index: {}]  }
   0x1   :  { %v17_v0 = vld [vmem:[%s360_s0] sm:$0xff]  ;;  %v18_v7 = vld [vmem:[%s360_s0 + $0x8] sm:$0xff]  ;;  %v19_v12 = vld [vmem:[%s360_s0 + $0x10] sm:$0xff] }
   0x2   :  { %v41_v1 = vld [vmem:[%s361_s1] sm:$0xf]  ;;  %v25_v3 = vunpack.c.l.bf16 %v17_v0  ;;  %v26_v6 = vunpack.c.h.bf16 %v17_v0  ;;  %v27_v10 = vunpack.c.l.bf16 %v18_v7  ;;  %v28_v15 = vunpack.c.h.bf16 %v18_v7  ;;  %v20_v17 = vld [vmem:[%s360_s0 + $0x18] sm:$0xff]  ;;  %v94_v24 = vld [vmem:[%s363_s3 + $0x8] sm:$0xff] }
   0x3   :  { %v67_v2 = vld [vmem:[%s362_s2] sm:$0xf]  ;;  %v195_v4 = vperm.slane %v41_v1, 0  ;;  %v202_v8 = vperm.slane %v41_v1, 1  ;;  %v206_v11 = vperm.slane %v41_v1, 2  ;;  %v214_v16 = vperm.slane %v41_v1, 3 }
   0x4   :  { %v197_v5 = vperm.slane %v67_v2, 0  ;;  %v204_v9 = vperm.slane %v67_v2, 1  ;;  %v212_v14 = vperm.slane %v67_v2, 2  ;;  %v93_v18 = vld [vmem:[%s363_s3] sm:$0xff]  ;;  %v224_v21 = vperm.slane %v67_v2, 3  ;;  %v95_v25 = vld [vmem:[%s363_s3 + $0x10] sm:$0xff] }
   0x5   :  { %v51_v13 = vmul.f32 %v195_v4, %v25_v3  ;;  %v52_v19 = vmul.f32 %v202_v8, %v26_v6  ;;  %v53_v20 = vmul.f32 %v206_v11, %v27_v10  ;;  %v29_v22 = vunpack.c.l.bf16 %v19_v12  ;;  %v96_v31 = vld [vmem:[%s363_s3 + $0x18] sm:$0xff]  ;;  %v97_v36 = vld [vmem:[%s363_s3 + $0x20] sm:$0xff]  ;;  %v98_v42 = vld [vmem:[%s363_s3 + $0x28] sm:$0xff] }
   0x6   :  { %v54_v26 = vmul.f32 %v214_v16, %v28_v15  ;;  %v30_v27 = vunpack.c.h.bf16 %v19_v12  ;;  %v31_v28 = vunpack.c.l.bf16 %v20_v17  ;;  %v32_v33 = vunpack.c.h.bf16 %v20_v17  ;;  %v99_v43 = vld [vmem:[%s363_s3 + $0x30] sm:$0xff]  ;;  %v21_v45 = vld [vmem:[%s360_s0 + $0x20] sm:$0xff]  ;;  %v100_v50 = vld [vmem:[%s363_s3 + $0x38] sm:$0xff] }
   0x7   :  { %v77_v23 = vadd.f32 %v197_v5, %v51_v13  ;;  %v78_v29 = vadd.f32 %v204_v9, %v52_v19  ;;  %v79_v30 = vadd.f32 %v212_v14, %v53_v20  ;;  %v55_v32 = vmul.f32 %v195_v4, %v29_v22  ;;  %v22_v51 = vld [vmem:[%s360_s0 + $0x28] sm:$0xff]  ;;  %v23_v60 = vld [vmem:[%s360_s0 + $0x30] sm:$0xff]  ;;  %v24_v1 = vld [vmem:[%s360_s0 + $0x38] sm:$0xff] }
   0x8   :  { %v80_v35 = vadd.f32 %v224_v21, %v54_v26  ;;  %v56_v37 = vmul.f32 %v202_v8, %v30_v27  ;;  %v57_v38 = vmul.f32 %v206_v11, %v31_v28  ;;  %v58_v44 = vmul.f32 %v214_v16, %v32_v33  ;;  %v101_v12 = vld [vmem:[%s363_s3 + $0x40] sm:$0xff]  ;;  %v102_v19 = vld [vmem:[%s363_s3 + $0x48] sm:$0xff]  ;;  %v103_v20 = vld [vmem:[%s363_s3 + $0x50] sm:$0xff] }
   0x9   :  { %v109_v34 = vadd.f32 %v93_v18, %v77_v23  ;;  %v110_v39 = vadd.f32 %v94_v24, %v78_v29  ;;  %v111_v40 = vadd.f32 %v95_v25, %v79_v30  ;;  %v81_v41 = vadd.f32 %v197_v5, %v55_v32  ;;  %v104_v27 = vld [vmem:[%s363_s3 + $0x58] sm:$0xff]  ;;  %v105_v32 = vld [vmem:[%s363_s3 + $0x60] sm:$0xff] }
   0xa   :  { %v112_v47 = vadd.f32 %v96_v31, %v80_v35  ;;  %v82_v48 = vadd.f32 %v204_v9, %v56_v37  ;;  %v83_v49 = vadd.f32 %v212_v14, %v57_v38  ;;  %v84_v55 = vadd.f32 %v224_v21, %v58_v44  ;;  %v106_v37 = vld [vmem:[%s363_s3 + $0x68] sm:$0xff]  ;;  %v107_v38 = vld [vmem:[%s363_s3 + $0x70] sm:$0xff] }
   0xb   :  { %v125_v46 = vmax.f32 %v109_v34, 0.0  ;;  %v126_v52 = vmax.f32 %v110_v39, 0.0  ;;  %v127_v53 = vmax.f32 %v111_v40, 0.0  ;;  %v113_v54 = vadd.f32 %v97_v36, %v81_v41 }
   0xc   :  { %v128_v56 = vmax.f32 %v112_v47, 0.0  ;;  %v114_v57 = vadd.f32 %v98_v42, %v82_v48  ;;  %v115_v58 = vadd.f32 %v99_v43, %v83_v49  ;;  %v33_v59 = vunpack.c.l.bf16 %v21_v45 }
   0xd   :  { %141 = vst [vmem:[%s364_s4] sm:$0xff] %v125_v46  ;;  %v129_v61 = vmax.f32 %v113_v54, 0.0  ;;  %v116_v62 = vadd.f32 %v100_v50, %v84_v55  ;;  %v34_v63 = vunpack.c.h.bf16 %v21_v45  ;;  %v35_v0 = vunpack.c.l.bf16 %v22_v51 }
   0xe   :  { %142 = vst [vmem:[%s364_s4 + $0x8] sm:$0xff] %v126_v52  ;;  %v130_v2 = vmax.f32 %v114_v57, 0.0  ;;  %v131_v3 = vmax.f32 %v115_v58, 0.0  ;;  %v59_v6 = vmul.f32 %v195_v4, %v33_v59  ;;  %v36_v7 = vunpack.c.h.bf16 %v22_v51 }
   0xf   :  { %143 = vst [vmem:[%s364_s4 + $0x10] sm:$0xff] %v127_v53  ;;  %v132_v10 = vmax.f32 %v116_v62, 0.0  ;;  %v60_v13 = vmul.f32 %v202_v8, %v34_v63  ;;  %v61_v15 = vmul.f32 %v206_v11, %v35_v0  ;;  %v37_v17 = vunpack.c.l.bf16 %v23_v60 }
  0x10   :  { %144 = vst [vmem:[%s364_s4 + $0x18] sm:$0xff] %v128_v56  ;;  %v85_v18 = vadd.f32 %v197_v5, %v59_v6  ;;  %v62_v22 = vmul.f32 %v214_v16, %v36_v7  ;;  %v38_v23 = vunpack.c.h.bf16 %v23_v60  ;;  %v39_v24 = vunpack.c.l.bf16 %v24_v1 }
  0x11   :  { %145 = vst [vmem:[%s364_s4 + $0x20] sm:$0xff] %v129_v61  ;;  %v86_v25 = vadd.f32 %v204_v9, %v60_v13  ;;  %v87_v26 = vadd.f32 %v212_v14, %v61_v15  ;;  %v63_v28 = vmul.f32 %v195_v4, %v37_v17  ;;  %v40_v29 = vunpack.c.h.bf16 %v24_v1 }
  0x12   :  { %146 = vst [vmem:[%s364_s4 + $0x28] sm:$0xff] %v130_v2  ;;  %v117_v30 = vadd.f32 %v101_v12, %v85_v18  ;;  %v88_v31 = vadd.f32 %v224_v21, %v62_v22  ;;  %v64_v33 = vmul.f32 %v202_v8, %v38_v23  ;;  %v65_v34 = vmul.f32 %v206_v11, %v39_v24 }
  0x13   :  { %147 = vst [vmem:[%s364_s4 + $0x30] sm:$0xff] %v131_v3  ;;  %v118_v4 = vadd.f32 %v102_v19, %v86_v25  ;;  %v119_v35 = vadd.f32 %v103_v20, %v87_v26  ;;  %v89_v36 = vadd.f32 %v197_v5, %v63_v28  ;;  %v66_v8 = vmul.f32 %v214_v16, %v40_v29  ;;  %v108_v5 = vld [vmem:[%s363_s3 + $0x78] sm:$0xff] }
  0x14   :  { %148 = vst [vmem:[%s364_s4 + $0x38] sm:$0xff] %v132_v10  ;;  %v133_v39 = vmax.f32 %v117_v30, 0.0  ;;  %v120_v11 = vadd.f32 %v104_v27, %v88_v31  ;;  %v90_v40 = vadd.f32 %v204_v9, %v64_v33  ;;  %v91_v41 = vadd.f32 %v212_v14, %v65_v34 }
  0x15   :  { %v134_v42 = vmax.f32 %v118_v4, 0.0  ;;  %v135_v43 = vmax.f32 %v119_v35, 0.0  ;;  %v121_v44 = vadd.f32 %v105_v32, %v89_v36  ;;  %v92_v45 = vadd.f32 %v224_v21, %v66_v8 }
  0x16   :  { %149 = vst [vmem:[%s364_s4 + $0x40] sm:$0xff] %v133_v39  ;;  %v136_v16 = vmax.f32 %v120_v11, 0.0  ;;  %v122_v46 = vadd.f32 %v106_v37, %v90_v40  ;;  %v123_v47 = vadd.f32 %v107_v38, %v91_v41 }
  0x17   :  { %150 = vst [vmem:[%s364_s4 + $0x48] sm:$0xff] %v134_v42  ;;  %v137_v9 = vmax.f32 %v121_v44, 0.0  ;;  %v124_v14 = vadd.f32 %v108_v5, %v92_v45 }
  0x18   :  { %151 = vst [vmem:[%s364_s4 + $0x50] sm:$0xff] %v135_v43  ;;  %v138_v48 = vmax.f32 %v122_v46, 0.0  ;;  %v139_v49 = vmax.f32 %v123_v47, 0.0 }
  0x19   :  { %152 = vst [vmem:[%s364_s4 + $0x58] sm:$0xff] %v136_v16  ;;  %v140_v21 = vmax.f32 %v124_v14, 0.0 }
  0x1a   :  { %153 = vst [vmem:[%s364_s4 + $0x60] sm:$0xff] %v137_v9 }
  0x1b   :  { %154 = vst [vmem:[%s364_s4 + $0x68] sm:$0xff] %v138_v48 }
  0x1c   :  { %155 = vst [vmem:[%s364_s4 + $0x70] sm:$0xff] %v139_v49 }
  0x1d   :  { %156 = vst [vmem:[%s364_s4 + $0x78] sm:$0xff] %v140_v21 }

// kernel: basic_block_forward.3
= control target key start
LH: loop header
LB: loop body
LE: loop exit
PB: predicated region body
PF: predicated region fallthrough
CT: control target
= control target key end

     0   :  { %s6106_s26 = smov 0   ;;  %s6108_s2 = smov 0   ;;  %s8484_s0 = inlined_call_operand.vmem [shape: bf16[2,16,16,32], index: 0, kind: input, shape index: {}, may-alias: {0,1,2}]   ;;  %s8485_s1 = inlined_call_operand.vmem [shape: bf16[2,16,16,32], index: 1, kind: input, shape index: {}, may-alias: {0,1,2}]   ;;  %s8486_s2 = inlined_call_operand.vmem [shape: bf16[2,16,16,32], index: 2, kind: input, shape index: {}, may-alias: {0,1,2}]   ;;  %s8487_s3 = inlined_call_operand.vmem [shape: f32[1,32], index: 3, kind: input, shape index: {}]   ;;  %s8488_s4 = inlined_call_operand.vmem [shape: f32[1,32], index: 4, kind: input, shape index: {}]   ;;  %s8489_s5 = inlined_call_operand.vmem [shape: bf16[288,32], index: 5, kind: input, shape index: {}]   ;;  %s8490_s6 = inlined_call_operand.vmem [shape: bf16[2,16,16,32], index: 6, kind: output, shape index: {0}]   ;;  %s8491_s7 = inlined_call_operand.vmem [shape: f32[2,1,1,32], index: 7, kind: output, shape index: {1}]   ;;  %s8492_s8 = inlined_call_operand.vmem [shape: f32[2,1,1,32], index: 8, kind: output, shape index: {2}]  }
   0x1   :  { %s6110_s27 = smov 0  }
   0x2 LB: > { %s31_s28 = sadd.s32 1, %s6051_s2  ;;  %p5490_p0 = scmp.ge.s32.totalorder %s6055_s27, 1  ;;  %s6055_s27 = sphi %s6110_s27, %s19_s27   ;;  %s6051_s2 = sphi %s6108_s2, %s8504_s2   ;;  %s6047_s26 = sphi %s6106_s26, %s8503_s26  }
   0x3   : > { %p33_p1 = scmp.ge.s32.totalorder %s31_s28, 2  ;;  %p357_p2 = scmp.lt.s32.totalorder %s6055_s27, 3 }
   0x5   : > { %s8506_s28 = smov (%p33_p1, %s31_s28), 0  ;;  %p358_p3 = pnand %p5490_p0, %p357_p2 }
   0x6   : > { %p440_p4 = scmp.lt.s32.totalorder (!%p358_p3), %s6047_s26, 1  ;;  %s6058_s15 = smov (!%p358_p3), 32  }
   0x7   : > { %361 = sbr.rel (%p358_p3) target bundleno = 918 (0x396), region = 44  ;;  %s6059_s20 = smov (!%p358_p3), 64  }
   0x8   : > { %s6060_s21 = smov (!%p358_p3), 96  }
   0xc   : > { %vm510_vm0 = vcmask 257024   ;;  %vm513_vm1 = vcmask 253952   ;;  %vm732_vm2 = vsmask.f32 256  ;;  %v6057_v0 = vmov 0   ;;  %s8508_s26 = smov (!%p440_p4, %s6047_s26), 1 }
   0xd   : > { %512 = vst.msk [vmem:[#allocation2 + $0x4] sm:$0xf] %vm510_vm0, %v6057_v0  ;;  %vm733_vm3 = vsmask.f32 4368  ;;  %v6127_v1 = vrot.slane %v6057_v0, 7  ;;  %vm6153_vm5 = vmand %vm513_vm1, %vm732_vm2  ;;  %s5829_s29 = sshll.u32 %s8508_s26, 7 }
   0xe   : > { %514 = vst.msk [vmem:[#allocation2 + $0x8] sm:$0x1] %vm513_vm1, %v6057_v0  ;;  %vm6131_vm4 = vmor %vm732_vm2, %vm733_vm3  ;;  %s6182_s10 = scalar_lea.vmem %s8484_s0, %s5829_s29  ;;  %vm1372_vm6 = vsmask.f32 3328  ;;  %vm1373_vm7 = vsmask.f32 7440  ;;  %s7917_s22 = scalar_lea.vmem %s8490_s6, %s5829_s29 }
   0xf   : > { %v6136_v3 = vrot.slane %v6127_v1, 4  ;;  %511 = vst.msk [vmem:[#allocation2] sm:$0xf] %vm510_vm0, %v6057_v0  ;;  %v5965_v13 = vld [vmem:[%s6182_s10 + $0x10] sm:$0xff]   ;;  %v5901_v14 = vld [vmem:[%s6182_s10] sm:$0xff]   ;;  %vm6205_vm8 = vmor %vm1372_vm6, %vm1373_vm7  ;;  %vm1984_vm11 = vcmask 1042432  }
  0x10   : > { %515 = vst.msk [vmem:[#allocation2 + $0xc] sm:$0xf] %vm510_vm0, %v6057_v0  ;;  %v5910_v17 = vunpack.c.l.bf16 %v5965_v13  ;;  %v6200_v18 = vld [vmem:[%s8487_s3] ss:$0 sm:$0xff]  ;;  %v5902_v19 = vunpack.c.l.bf16 %v5901_v14  ;;  %v5911_v27 = vunpack.c.h.bf16 %v5965_v13  ;;  %v5903_v29 = vunpack.c.h.bf16 %v5901_v14  ;;  %v5966_v36 = vld [vmem:[%s6182_s10 + $0x18] sm:$0xff]   ;;  %v5968_v61 = vld [vmem:[%s6182_s10 + $0x28] sm:$0xff]  }
  0x11   : > { %v6146_v4 = vsel %vm6131_vm4, %v6136_v3, %v6127_v1  ;;  %516 = vst.msk [vmem:[#allocation2 + $0x10] sm:$0xf] %vm510_vm0, %v6057_v0  ;;  %v6215_v24 = vld [vmem:[%s8488_s4] ss:$0 sm:$0xff]  ;;  %v5914_v40 = vunpack.c.l.bf16 %v5966_v36  ;;  %v5915_v42 = vunpack.c.h.bf16 %v5966_v36  ;;  %vm1057_vm9 = vsmask.f32 7938 }
  0x12   : > { %1222 = vst.msk [vmem:[#allocation2 + $0x4] sm:$0xf] %vm510_vm0, %v6146_v4  ;;  %v637_v23 = vmul.f32 %v6200_v18, %v5910_v17  ;;  %v633_v25 = vmul.f32 %v6200_v18, %v5902_v19  ;;  %v638_v32 = vmul.f32 %v6200_v18, %v5911_v27  ;;  %v634_v34 = vmul.f32 %v6200_v18, %v5903_v29  ;;  %v5964_v62 = vld [vmem:[%s6182_s10 + $0x8] sm:$0xff]   ;;  %vm6279_vm10 = vmand %vm510_vm0, %vm1057_vm9 }
  0x13   : > { %517 = vst.msk [vmem:[#allocation2 + $0x14] sm:$0x1] %vm513_vm1, %v6057_v0  ;;  %v639_v45 = vmul.f32 %v6200_v18, %v5914_v40  ;;  %v640_v46 = vmul.f32 %v6200_v18, %v5915_v42  ;;  %v5967_v42 = vld [vmem:[%s6182_s10 + $0x20] sm:$0xff]   ;;  %vm1985_vm12 = vcmask 1046532   ;;  %vm1855_vm14 = vcmask 519424  }
  0x14   : > { %518 = vst.msk [vmem:[#allocation2 + $0x18] sm:$0xf] %vm510_vm0, %v6057_v0  ;;  %v672_v28 = vadd.f32 %v6215_v24, %v637_v23  ;;  %v668_v30 = vadd.f32 %v6215_v24, %v633_v25  ;;  %v673_v37 = vadd.f32 %v6215_v24, %v638_v32  ;;  %v669_v39 = vadd.f32 %v6215_v24, %v634_v34  ;;  %vm6880_vm13 = vmor %vm1984_vm11, %vm1985_vm12 }
  0x15   : > { %v1223_v6 = vld [vmem:[#allocation2 + $0x8] sm:$0x1]  ;;  %519 = vst.msk [vmem:[#allocation2 + $0x1c] sm:$0xf] %vm510_vm0, %v6057_v0  ;;  %v674_v53 = vadd.f32 %v6215_v24, %v639_v45  ;;  %v675_v54 = vadd.f32 %v6215_v24, %v640_v46  ;;  %vm2195_vm15 = vcmask 781824   ;;  %vm4726_vm2 = vcmask 261120  }
  0x16   : > { %v1224_v7 = vsel %vm6153_vm5, %v6136_v3, %v1223_v6  ;;  %520 = vst.msk [vmem:[#allocation2 + $0x20] sm:$0x1] %vm513_vm1, %v6057_v0  ;;  %v704_v33 = vpack.c.bf16 %v672_v28, %v672_v28  ;;  %v700_v35 = vpack.c.bf16 %v668_v30, %v668_v30  ;;  %v705_v43 = vpack.c.bf16 %v673_v37, %v673_v37  ;;  %v6283_v13 = vld [vmem:[#allocation2] sm:$0xf] }
  0x17   : > { %1225 = vst [vmem:[#allocation2 + $0x8] sm:$0x1] %v1224_v7  ;;  %v701_v44 = vpack.c.bf16 %v669_v39, %v669_v39  ;;  %v6262_v59 = vpack.c.bf16 %v674_v53, %v674_v53  ;;  %v707_v60 = vpack.c.bf16 %v675_v54, %v675_v54  ;;  %v5922_v6 = vunpack.c.l.bf16 %v5968_v61 }
  0x18   : > { %521 = vst.msk [vmem:[#allocation2 + $0x24] sm:$0xf] %vm510_vm0, %v6057_v0  ;;  %v770_v38 = vshrl.u32 %v704_v33, 16  ;;  %v736_v41 = vshrl.u32 %v700_v35, 16  ;;  %v773_v48 = vshll.u32 %v704_v33, 16  ;;  %v778_v49 = vshrl.u32 %v705_v43, 16 }
  0x19   : > { %v1325_v8 = vld [vmem:[#allocation2 + $0x4] sm:$0xf]  ;;  %522 = vst.msk [vmem:[#allocation2 + $0x28] sm:$0xf] %vm510_vm0, %v6057_v0  ;;  %v744_v50 = vshrl.u32 %v701_v44, 16  ;;  %v739_v52 = vshll.u32 %v700_v35, 16  ;;  %v643_v17 = vmul.f32 %v6200_v18, %v5922_v6  ;;  %v5923_v28 = vunpack.c.h.bf16 %v5968_v61 }
  0x1a   : > { %v1385_v9 = vshll.u32 %v1325_v8, 16  ;;  %v1389_v10 = vshrl.u32 %v1325_v8, 16  ;;  %523 = vst.msk [vmem:[#allocation2 + $0x2c] sm:$0x1] %vm513_vm1, %v6057_v0  ;;  %v772_v47 = vrot.slane %v770_v38, 7  ;;  %v738_v51 = vrot.slane %v736_v41, 7 }
  0x1b   : > { %524 = vst.msk [vmem:[#allocation2 + $0x30] sm:$0xf] %vm510_vm0, %v6057_v0  ;;  %v6256_v55 = vrot.slane %v778_v49, 7  ;;  %v781_v56 = vshll.u32 %v705_v43, 16  ;;  %v6260_v57 = vrot.slane %v744_v50, 7  ;;  %v747_v58 = vshll.u32 %v701_v44, 16 }
  0x1c   : > { %v6186_v11 = vrot.slane %v1385_v9, 5  ;;  %v1391_v12 = vrot.slane %v1389_v10, 4  ;;  %525 = vst.msk [vmem:[#allocation2 + $0x34] sm:$0xf] %vm510_vm0, %v6057_v0  ;;  %v6268_v63 = vor.u32 %v773_v48, %v772_v47  ;;  %v6272_v7 = vor.u32 %v739_v52, %v738_v51  ;;  %v5969_v41 = vld [vmem:[%s6182_s10 + $0x30] sm:$0xff]  }
  0x1d   : > { %526 = vst.msk [vmem:[#allocation2 + $0x38] sm:$0x1] %vm513_vm1, %v6057_v0  ;;  %v787_v8 = vshrl.u32 %v6262_v59, 16  ;;  %v795_v9 = vshrl.u32 %v707_v60, 16  ;;  %v5906_v10 = vunpack.c.l.bf16 %v5964_v62  ;;  %v776_v14 = vrot.slane %v772_v47, 4 }
  0x1e   : > { %v1326_v15 = vld [vmem:[#allocation2 + $0x8] sm:$0x1]  ;;  %v1392_v16 = vor.u32 %v1391_v12, %v6186_v11  ;;  %527 = vst.msk [vmem:[#allocation2 + $0x3c] sm:$0xf] %vm510_vm0, %v6057_v0  ;;  %v798_v23 = vshll.u32 %v707_v60, 16  ;;  %v678_v29 = vadd.f32 %v6215_v24, %v643_v17  ;;  %v5907_v30 = vunpack.c.h.bf16 %v5964_v62 }
  0x1f   : > { %v1395_v20 = vshll.u32 %v1326_v15, 16  ;;  %528 = vst.msk [vmem:[#allocation2 + $0x40] sm:$0xf] %vm510_vm0, %v6057_v0  ;;  %v783_v15 = vor.u32 %v781_v56, %v6256_v55  ;;  %v6289_v19 = vld [vmem:[#allocation2 + $0x24] sm:$0xf]  ;;  %v635_v25 = vmul.f32 %v6200_v18, %v5906_v10  ;;  %v6299_v27 = vrot.slane %v795_v9, 7 }
  0x20   : > { %v1393_v22 = vrot.slane %v1392_v16, 4  ;;  %529 = vst.msk [vmem:[#allocation2 + $0x44] sm:$0x1] %vm513_vm1, %v6057_v0  ;;  %v742_v16 = vrot.slane %v738_v51, 4  ;;  %v1076_v33 = vsel %vm6279_vm10, %v6268_v63, %v6289_v19  ;;  %v644_v34 = vmul.f32 %v6200_v18, %v5923_v28  ;;  %v1065_v6 = vld [vmem:[#allocation2 + $0x14] sm:$0x1] }
  0x21   : > { %v1397_v26 = vrot.slane %v1395_v20, 5  ;;  %530 = vst.msk [vmem:[#allocation2 + $0x48] sm:$0xf] %vm510_vm0, %v6057_v0  ;;  %v749_v20 = vor.u32 %v747_v58, %v6260_v57  ;;  %v670_v32 = vadd.f32 %v6215_v24, %v635_v25  ;;  %v710_v35 = vpack.c.bf16 %v678_v29, %v678_v29 }
  0x22   : > { %531 = vst.msk [vmem:[#allocation2 + $0x4c] sm:$0xf] %vm510_vm0, %v6057_v0  ;;  %v636_v36 = vmul.f32 %v6200_v18, %v5907_v30  ;;  %v6321_v37 = vsel %vm6131_vm4, %v776_v14, %v783_v15  ;;  %v800_v44 = vor.u32 %v798_v23, %v6299_v27  ;;  %v679_v45 = vadd.f32 %v6215_v24, %v644_v34 }
  0x23   : > { %v1398_v31 = vsel %vm6205_vm8, %v1393_v22, %v1397_v26  ;;  %532 = vst.msk [vmem:[#allocation2 + $0x50] sm:$0x1] %vm513_vm1, %v6057_v0  ;;  %v6292_v22 = vrot.slane %v787_v8, 7  ;;  %v6297_v26 = vld [vmem:[#allocation2 + $0xc] sm:$0xf]  ;;  %v6325_v38 = vsel %vm6131_vm4, %v742_v16, %v749_v20  ;;  %v702_v40 = vpack.c.bf16 %v670_v32, %v670_v32 }
  0x24   : > { %1761 = vrot.lane.b32.xlu0 %v1398_v31, %s6058_s15  ;;  %533 = vst.msk [vmem:[#allocation2 + $0x54] sm:$0xf] %vm510_vm0, %v6057_v0  ;;  %v1220_v31 = vsel %vm6279_vm10, %v6127_v1, %v6283_v13  ;;  %v1060_v39 = vsel %vm6279_vm10, %v6272_v7, %v6297_v26  ;;  %v821_v46 = vshrl.u32 %v710_v35, 16  ;;  %v671_v47 = vadd.f32 %v6215_v24, %v636_v36  ;;  %v1086_v56 = vld [vmem:[#allocation2 + $0x38] sm:$0x1] }
  0x25   : > { %534 = vst.msk [vmem:[#allocation2 + $0x58] sm:$0xf] %vm510_vm0, %v6057_v0  ;;  %v793_v43 = vrot.slane %v6292_v22, 4  ;;  %v5926_v48 = vunpack.c.l.bf16 %v5969_v41  ;;  %v5927_v49 = vunpack.c.h.bf16 %v5969_v41  ;;  %v5918_v50 = vunpack.c.l.bf16 %v5967_v42 }
  0x26   : > { %535 = vst.msk [vmem:[#allocation2 + $0x5c] sm:$0x1] %vm513_vm1, %v6057_v0  ;;  %v802_v51 = vrot.slane %v6299_v27, 4  ;;  %v751_v52 = vrot.slane %v6260_v57, 4  ;;  %v711_v53 = vpack.c.bf16 %v679_v45, %v679_v45  ;;  %v823_v54 = vrot.slane %v821_v46, 7 }
  0x27   : > { %536 = vst.msk [vmem:[#allocation2 + $0x60] sm:$0xf] %vm510_vm0, %v6057_v0  ;;  %v824_v58 = vshll.u32 %v710_v35, 16  ;;  %v703_v60 = vpack.c.bf16 %v671_v47, %v671_v47  ;;  %v753_v61 = vshrl.u32 %v702_v40, 16  ;;  %v756_v62 = vshll.u32 %v702_v40, 16  ;;  %v5971_v47 = vld [vmem:[%s6182_s10 + $0x40] sm:$0xff]  }
  0x28   : > { %537 = vst.msk [vmem:[#allocation2 + $0x64] sm:$0xf] %vm510_vm0, %v6057_v0  ;;  %v829_v8 = vshrl.u32 %v711_v53, 16  ;;  %v645_v9 = vmul.f32 %v6200_v18, %v5926_v48  ;;  %v646_v10 = vmul.f32 %v6200_v18, %v5927_v49  ;;  %v5919_v57 = vunpack.c.h.bf16 %v5967_v42  ;;  %v6355_v15 = vld [vmem:[#allocation2 + $0x48] sm:$0xf] }
  0x29   : > { %538 = vst.msk [vmem:[#allocation2 + $0x68] sm:$0x1] %vm513_vm1, %v6057_v0  ;;  %v6353_v14 = vor.u32 %v824_v58, %v823_v54  ;;  %v755_v16 = vrot.slane %v753_v61, 7  ;;  %v761_v17 = vshrl.u32 %v703_v60, 16  ;;  %v641_v20 = vmul.f32 %v6200_v18, %v5918_v50  ;;  %v6388_v42 = vld [vmem:[#allocation2 + $0x18] sm:$0xf] }
  0x2a   : > { %539 = vst.msk [vmem:[#allocation2 + $0x6c] sm:$0xf] %vm510_vm0, %v6057_v0  ;;  %v6360_v23 = vrot.slane %v829_v8, 7  ;;  %v832_v25 = vshll.u32 %v711_v53, 16  ;;  %v764_v27 = vshll.u32 %v703_v60, 16  ;;  %v680_v28 = vadd.f32 %v6215_v24, %v645_v9 }
  0x2b   : > { %540 = vst.msk [vmem:[#allocation2 + $0x70] sm:$0xf] %vm510_vm0, %v6057_v0  ;;  %v6367_v29 = vsel %vm6131_vm4, %v793_v43, %v800_v44  ;;  %v6369_v30 = vor.u32 %v756_v62, %v755_v16  ;;  %v6371_v32 = vrot.slane %v761_v17, 7  ;;  %v681_v34 = vadd.f32 %v6215_v24, %v646_v10  ;;  %v1079_v50 = vld [vmem:[#allocation2 + $0x2c] sm:$0x1] }
  0x2c   : > { %541 = vst.msk [vmem:[#allocation2 + $0x74] sm:$0x1] %vm513_vm1, %v6057_v0  ;;  %v6378_v35 = vsel %vm6153_vm5, %v802_v51, %v1086_v56  ;;  %v6382_v36 = vsel %vm6153_vm5, %v751_v52, %v1065_v6  ;;  %v827_v40 = vrot.slane %v823_v54, 4  ;;  %v1097_v41 = vsel %vm6279_vm10, %v6353_v14, %v6355_v15 }
  0x2d   : > { %542 = vst.msk [vmem:[#allocation2 + $0x78] sm:$0xf] %vm510_vm0, %v6057_v0  ;;  %v834_v43 = vor.u32 %v832_v25, %v6360_v23  ;;  %v785_v44 = vrot.slane %v6256_v55, 4  ;;  %v6394_v45 = vpack.c.bf16 %v680_v28, %v680_v28  ;;  %v713_v46 = vpack.c.bf16 %v681_v34, %v681_v34  ;;  %v6437_v34 = vld [vmem:[#allocation2 + $0x3c] sm:$0xf] }
  0x2e   : > { %543 = vst.msk [vmem:[#allocation2 + $0x7c] sm:$0xf] %vm510_vm0, %v6057_v0  ;;  %v759_v48 = vrot.slane %v755_v16, 4  ;;  %v766_v49 = vor.u32 %v764_v27, %v6371_v32  ;;  %v642_v51 = vmul.f32 %v6200_v18, %v5919_v57  ;;  %v676_v52 = vadd.f32 %v6215_v24, %v641_v20 }
  0x2f   : > { %544 = vst.msk [vmem:[#allocation2 + $0x80] sm:$0x1] %vm513_vm1, %v6057_v0  ;;  %v1069_v55 = vsel %vm6279_vm10, %v6369_v30, %v6388_v42  ;;  %v838_v53 = vshrl.u32 %v6394_v45, 16  ;;  %v846_v54 = vshrl.u32 %v713_v46, 16  ;;  %v849_v56 = vshll.u32 %v713_v46, 16 }
  0x30   : > { %545 = vst.msk [vmem:[#allocation2 + $0x84] sm:$0xf] %vm510_vm0, %v6057_v0  ;;  %v677_v58 = vadd.f32 %v6215_v24, %v642_v51  ;;  %v708_v60 = vpack.c.bf16 %v676_v52, %v676_v52  ;;  %v5934_v61 = vunpack.c.l.bf16 %v5971_v47  ;;  %v5935_v62 = vunpack.c.h.bf16 %v5971_v47  ;;  %v1107_v47 = vld [vmem:[#allocation2 + $0x5c] sm:$0x1] }
  0x31   : > { %546 = vst.msk [vmem:[#allocation2 + $0x88] sm:$0xf] %vm510_vm0, %v6057_v0  ;;  %v6416_v6 = vsel %vm6131_vm4, %v827_v40, %v834_v43  ;;  %v6420_v8 = vsel %vm6153_vm5, %v785_v44, %v1079_v50  ;;  %v6422_v9 = vrot.slane %v838_v53, 7  ;;  %v848_v10 = vrot.slane %v846_v54, 7  ;;  %v5972_v40 = vld [vmem:[%s6182_s10 + $0x48] sm:$0xff]  }
  0x32   : > { %547 = vst.msk [vmem:[#allocation2 + $0x8c] sm:$0x1] %vm513_vm1, %v6057_v0  ;;  %v709_v57 = vpack.c.bf16 %v677_v58, %v677_v58  ;;  %v804_v16 = vshrl.u32 %v708_v60, 16  ;;  %v807_v17 = vshll.u32 %v708_v60, 16  ;;  %v649_v20 = vmul.f32 %v6200_v18, %v5934_v61 }
  0x33   : > { %548 = vst.msk [vmem:[#allocation2 + $0x90] sm:$0xf] %vm510_vm0, %v6057_v0  ;;  %v6434_v25 = vsel %vm6131_vm4, %v759_v48, %v766_v49  ;;  %v844_v27 = vrot.slane %v6422_v9, 4  ;;  %v851_v28 = vor.u32 %v849_v56, %v848_v10  ;;  %v853_v43 = vrot.slane %v848_v10, 4  ;;  %v1072_v48 = vld [vmem:[#allocation2 + $0x20] sm:$0x1] }
  0x34   : > { %549 = vst.msk [vmem:[#allocation2 + $0x94] sm:$0xf] %vm510_vm0, %v6057_v0  ;;  %v768_v44 = vrot.slane %v6371_v32, 4  ;;  %v806_v13 = vrot.slane %v804_v16, 7  ;;  %v684_v49 = vadd.f32 %v6215_v24, %v649_v20  ;;  %v5938_v50 = vunpack.c.l.bf16 %v5972_v40 }
  0x35   : > { %550 = vst.msk [vmem:[#allocation2 + $0x98] sm:$0x1] %vm513_vm1, %v6057_v0  ;;  %v6451_v46 = vsel %vm6131_vm4, %v844_v27, %v851_v28  ;;  %v6459_v32 = vsel %vm6153_vm5, %v853_v43, %v1107_v47  ;;  %v790_v56 = vshll.u32 %v6262_v59, 16  ;;  %v5939_v58 = vunpack.c.h.bf16 %v5972_v40 }
  0x36   : > { %551 = vst.msk [vmem:[#allocation2 + $0x9c] sm:$0xf] %vm510_vm0, %v6057_v0  ;;  %v6463_v63 = vsel %vm6153_vm5, %v768_v44, %v1072_v48  ;;  %v6465_v19 = vor.u32 %v807_v17, %v806_v13  ;;  %v716_v52 = vpack.c.bf16 %v684_v49, %v684_v49  ;;  %v651_v60 = vmul.f32 %v6200_v18, %v5938_v50 }
  0x37   : > { %552 = vst.msk [vmem:[#allocation2 + $0xa0] sm:$0xf] %vm510_vm0, %v6057_v0  ;;  %v6487_v10 = vor.u32 %v790_v56, %v6292_v22  ;;  %v652_v59 = vmul.f32 %v6200_v18, %v5939_v58  ;;  %vm2388_vm3 = vcmask 1044224  }
  0x38   : > { %553 = vst.msk [vmem:[#allocation2 + $0xa4] sm:$0x1] %vm513_vm1, %v6057_v0  ;;  %v1090_v54 = vsel %vm6279_vm10, %v6465_v19, %v6437_v34  ;;  %v872_v26 = vshrl.u32 %v716_v52, 16 }
  0x39   : > { %554 = vst.msk [vmem:[#allocation2 + $0xa8] sm:$0xf] %vm510_vm0, %v6057_v0  ;;  %v6507_v28 = vadd.f32 %v6215_v24, %v652_v59 }
  0x3a   : > { %555 = vst.msk [vmem:[#allocation2 + $0xac] sm:$0xf] %vm510_vm0, %v6057_v0  ;;  %v6496_v20 = vrot.slane %v872_v26, 7 }
  0x3b   : > { %556 = vst.msk [vmem:[#allocation2 + $0xb0] sm:$0x1] %vm513_vm1, %v6057_v0 }
  0x3c   : > { %557 = vst.msk [vmem:[#allocation2 + $0xb4] sm:$0xf] %vm510_vm0, %v6057_v0 }
  0x3d   : > { %558 = vst.msk [vmem:[#allocation2 + $0xb8] sm:$0xf] %vm510_vm0, %v6057_v0 }
  0x3e   : > { %559 = vst.msk [vmem:[#allocation2 + $0xbc] sm:$0x1] %vm513_vm1, %v6057_v0 }
  0x3f   : > { %560 = vst.msk [vmem:[#allocation2 + $0xc0] sm:$0xf] %vm510_vm0, %v6057_v0 }
  0x40   : > { %561 = vst.msk [vmem:[#allocation2 + $0xc4] sm:$0xf] %vm510_vm0, %v6057_v0 }
  0x41   : > { %562 = vst.msk [vmem:[#allocation2 + $0xc8] sm:$0x1] %vm513_vm1, %v6057_v0 }
  0x42   : > { %563 = vst.msk [vmem:[#allocation2 + $0xcc] sm:$0xf] %vm510_vm0, %v6057_v0 }
  0x43   : > { %564 = vst.msk [vmem:[#allocation2 + $0xd0] sm:$0xf] %vm510_vm0, %v6057_v0 }
  0x44   : > { %565 = vst.msk [vmem:[#allocation2 + $0xd4] sm:$0x1] %vm513_vm1, %v6057_v0  ;;  %v650_v0 = vmul.f32 %v6200_v18, %v5935_v62 }
  0x45   : > { %1221 = vst [vmem:[#allocation2] sm:$0xf] %v1220_v31  ;;  %v812_v31 = vshrl.u32 %v709_v57, 16 }
  0x46   : > { %1256 = vst.msk [vmem:[#allocation2 + $0xd0] sm:$0xf] %vm510_vm0, %v6146_v4  ;;  %v685_v4 = vadd.f32 %v6215_v24, %v650_v0 }
  0x47   : > { %1077 = vst [vmem:[#allocation2 + $0x24] sm:$0xf] %v1076_v33  ;;  %v810_v33 = vrot.slane %v806_v13, 4  ;;  %v6472_v51 = vrot.slane %v812_v31, 7 }
  0x48   : > { %1078 = vst.msk [vmem:[#allocation2 + $0x28] sm:$0xf] %vm510_vm0, %v6321_v37  ;;  %v815_v37 = vshll.u32 %v709_v57, 16  ;;  %v717_v53 = vpack.c.bf16 %v685_v4, %v685_v4  ;;  %v686_v57 = vadd.f32 %v6215_v24, %v651_v60 }
  0x49   : > { %1061 = vst [vmem:[#allocation2 + $0xc] sm:$0xf] %v1060_v39  ;;  %v875_v39 = vshll.u32 %v716_v52, 16 }
  0x4a   : > { %1062 = vst.msk [vmem:[#allocation2 + $0x10] sm:$0xf] %vm510_vm0, %v6325_v38  ;;  %v817_v7 = vor.u32 %v815_v37, %v6472_v51  ;;  %v880_v61 = vshrl.u32 %v717_v53, 16  ;;  %v883_v38 = vshll.u32 %v717_v53, 16 }
  0x4b   : > { %1085 = vst.msk [vmem:[#allocation2 + $0x34] sm:$0xf] %vm510_vm0, %v6367_v29  ;;  %v6514_v14 = vor.u32 %v875_v39, %v6496_v20 }
  0x4c   : > { %v1324_v62 = vld [vmem:[#allocation2] sm:$0xf]  ;;  %1088 = vst [vmem:[#allocation2 + $0x38] sm:$0x1] %v6378_v35  ;;  %v6494_v29 = vsel %vm6131_vm4, %v810_v33, %v817_v7  ;;  %v6503_v22 = vrot.slane %v880_v61, 7  ;;  %v836_v35 = vrot.slane %v6360_v23, 4 }
  0x4d   : > { %v1376_v16 = vshrl.u32 %v1324_v62, 16  ;;  %v1379_v17 = vshll.u32 %v1324_v62, 16  ;;  %1067 = vst [vmem:[#allocation2 + $0x14] sm:$0x1] %v6382_v36  ;;  %v6509_v36 = vpack.c.bf16 %v686_v57, %v686_v57 }
  0x4e   : > { %v1333_v27 = vld [vmem:[#allocation2 + $0x24] sm:$0xf]  ;;  %1098 = vst [vmem:[#allocation2 + $0x48] sm:$0xf] %v1097_v41  ;;  %v6517_v15 = vor.u32 %v883_v38, %v6503_v22 }
  0x4f   : > { %v1378_v0 = vrot.slane %v1376_v16, 4  ;;  %v1381_v40 = vrot.slane %v1379_v17, 5  ;;  %v1334_v43 = vld [vmem:[#allocation2 + $0x28] sm:$0xf]  ;;  %v1448_v44 = vshrl.u32 %v1333_v27, 16  ;;  %v1451_v13 = vshll.u32 %v1333_v27, 16 }
  0x50   : > { %v1457_v31 = vshll.u32 %v1334_v43, 16  ;;  %v1461_v47 = vshrl.u32 %v1334_v43, 16  ;;  %v1327_v48 = vld [vmem:[#allocation2 + $0xc] sm:$0xf]  ;;  %1099 = vst.msk [vmem:[#allocation2 + $0x4c] sm:$0xf] %vm510_vm0, %v6416_v6 }
  0x51   : > { %v1382_v41 = vor.u32 %v1381_v40, %v1378_v0  ;;  %v1450_v49 = vrot.slane %v1448_v44, 4  ;;  %v1453_v4 = vrot.slane %v1451_v13, 5  ;;  %v1328_v50 = vld [vmem:[#allocation2 + $0x10] sm:$0xf]  ;;  %v1400_v33 = vshrl.u32 %v1327_v48, 16 }
  0x52   : > { %v6519_v37 = vrot.slane %v1457_v31, 5  ;;  %v1403_v52 = vshll.u32 %v1327_v48, 16  ;;  %v1409_v53 = vshll.u32 %v1328_v50, 16  ;;  %v1413_v56 = vshrl.u32 %v1328_v50, 16  ;;  %v1337_v58 = vld [vmem:[#allocation2 + $0x34] sm:$0xf] }
  0x53   : > { %v1383_v60 = vrot.slane %v1382_v41, 4  ;;  %v1454_v7 = vor.u32 %v1453_v4, %v1450_v49  ;;  %v1402_v6 = vrot.slane %v1400_v33, 4  ;;  %v1338_v26 = vld [vmem:[#allocation2 + $0x38] sm:$0x1]  ;;  %v1481_v39 = vshll.u32 %v1337_v58, 16 }
  0x54   : > { %v1405_v61 = vrot.slane %v1403_v52, 5  ;;  %v1411_v62 = vrot.slane %v1409_v53, 5  ;;  %v1415_v38 = vrot.slane %v1413_v56, 4  ;;  %v1485_v59 = vshrl.u32 %v1337_v58, 16  ;;  %v1329_v57 = vld [vmem:[#allocation2 + $0x14] sm:$0x1] }
  0x55   : > { %v1388_v16 = vsel %vm6205_vm8, %v1383_v60, %v6186_v11  ;;  %v1455_v17 = vrot.slane %v1454_v7, 4  ;;  %v6524_v27 = vrot.slane %v1481_v39, 5  ;;  %v1491_v0 = vshll.u32 %v1338_v26, 16  ;;  %v1342_v40 = vld [vmem:[#allocation2 + $0x48] sm:$0xf] }
  0x56   : > { %1759 = vrot.lane.b32.xlu0 %v1388_v16, %s6058_s15  ;;  %v1406_v43 = vor.u32 %v1405_v61, %v1402_v6  ;;  %v1487_v44 = vrot.slane %v1485_v59, 4  ;;  %v1416_v13 = vor.u32 %v1415_v38, %v1411_v62  ;;  %v1419_v31 = vshll.u32 %v1329_v57, 16  ;;  %1070 = vst [vmem:[#allocation2 + $0x18] sm:$0xf] %v1069_v55  ;;  %v1117_v48 = vld [vmem:[#allocation2 + $0x6c] sm:$0xf] }
  0x57   : > { %v1460_v11 = vsel %vm6205_vm8, %v1455_v17, %v6519_v37  ;;  %v6535_v41 = vrot.slane %v1491_v0, 5  ;;  %v1343_v49 = vld [vmem:[#allocation2 + $0x4c] sm:$0xf]  ;;  %v1520_v4 = vshrl.u32 %v1342_v40, 16  ;;  %v1523_v50 = vshll.u32 %v1342_v40, 16 }
  0x58   : > { %v1407_v33 = vrot.slane %v1406_v43, 4  ;;  %v1488_v52 = vor.u32 %v1487_v44, %v6524_v27  ;;  %v1417_v53 = vrot.slane %v1416_v13, 4  ;;  %v1421_v56 = vrot.slane %v1419_v31, 5  ;;  %1071 = vst.msk [vmem:[#allocation2 + $0x1c] sm:$0xf] %vm510_vm0, %v6434_v25 }
  0x59   : > { %v1522_v30 = vrot.slane %v1520_v4, 4  ;;  %v1525_v42 = vrot.slane %v1523_v50, 5  ;;  %v1529_v55 = vshll.u32 %v1343_v49, 16  ;;  %v1533_v58 = vshrl.u32 %v1343_v49, 16  ;;  %1081 = vst [vmem:[#allocation2 + $0x2c] sm:$0x1] %v6420_v8 }
  0x5a   : > { %v1412_v60 = vsel %vm6205_vm8, %v1407_v33, %v1411_v62  ;;  %v6543_v7 = vrot.slane %v1488_v52, 4  ;;  %v1422_v6 = vsel %vm6205_vm8, %v1417_v53, %v1421_v56  ;;  %v1463_v26 = vrot.slane %v1461_v47, 4  ;;  %1106 = vst.msk [vmem:[#allocation2 + $0x58] sm:$0xf] %vm510_vm0, %v6451_v46  ;;  %v6549_v25 = vld [vmem:[#allocation2 + $0x30] sm:$0xf] }
  0x5b   : > { %1763 = vrot.lane.b32.xlu1 %v1412_v60, %s6058_s15  ;;  %v1526_v39 = vor.u32 %v1525_v42, %v1522_v30  ;;  %v6552_v61 = vrot.slane %v1529_v55, 5  ;;  %1109 = vst [vmem:[#allocation2 + $0x5c] sm:$0x1] %v6459_v32  ;;  %v878_v8 = vrot.slane %v6496_v20, 4  ;;  %v1118_v62 = vsel %vm6279_vm10, %v6514_v14, %v1117_v48  ;;  %v1100_v38 = vld [vmem:[#allocation2 + $0x50] sm:$0x1] }
  0x5c   : > { %v1494_v46 = vsel %vm6205_vm8, %v6543_v7, %v6535_v41  ;;  %v1464_v47 = vor.u32 %v1463_v26, %v6519_v37  ;;  %1074 = vst [vmem:[#allocation2 + $0x20] sm:$0x1] %v6463_v63  ;;  %v1083_v32 = vsel %vm6279_vm10, %v6487_v10, %v6549_v25  ;;  %v6573_v20 = vsel %vm6153_vm5, %v836_v35, %v1100_v38  ;;  %v6576_v14 = vld [vmem:[%s6182_s10 + $0x38] sm:$0xff]  }
  0x5d   : > { %v6578_v59 = vrot.slane %v1526_v39, 4  ;;  %v1330_v57 = vld [vmem:[#allocation2 + $0x18] sm:$0xf]  ;;  %1091 = vst [vmem:[#allocation2 + $0x3c] sm:$0xf] %v1090_v54  ;;  %v886_v63 = vsel %vm6131_vm4, %v878_v8, %v6517_v15  ;;  %v1535_v23 = vrot.slane %v1533_v58, 4  ;;  %v6590_v35 = vpack.c.bf16 %v6507_v28, %v6507_v28 }
  0x5e   : > { %1771 = vrot.lane.b32.xlu0 %v1460_v11, %s6058_s15  ;;  %v1424_v37 = vshrl.u32 %v1330_v57, 16  ;;  %v1427_v16 = vshll.u32 %v1330_v57, 16  ;;  %v6593_v17 = vrot.slane %v1464_v47, 4  ;;  %1092 = vst.msk [vmem:[#allocation2 + $0x40] sm:$0xf] %vm510_vm0, %v6494_v29  ;;  %v889_v34 = vshrl.u32 %v6509_v36, 16 }
  0x5f   : > { %v1532_v19 = vsel %vm6205_vm8, %v6578_v59, %v6552_v61  ;;  %v1331_v54 = vld [vmem:[#allocation2 + $0x1c] sm:$0xf]  ;;  %1119 = vst [vmem:[#allocation2 + $0x6c] sm:$0xf] %v1118_v62  ;;  %v1536_v28 = vor.u32 %v1535_v23, %v6552_v61  ;;  %v897_v15 = vshrl.u32 %v6590_v35, 16  ;;  %v900_v0 = vshll.u32 %v6590_v35, 16 }
  0x60   : > { %v1426_v40 = vrot.slane %v1424_v37, 4  ;;  %v1429_v43 = vrot.slane %v1427_v16, 5  ;;  %v1433_v44 = vshll.u32 %v1331_v54, 16  ;;  %v1437_v13 = vshrl.u32 %v1331_v54, 16  ;;  %v1335_v29 = vld [vmem:[#allocation2 + $0x2c] sm:$0x1] }
  0x61   : > { %v1467_v31 = vshll.u32 %v1335_v29, 16  ;;  %v1346_v48 = vld [vmem:[#allocation2 + $0x58] sm:$0xf]  ;;  %1120 = vst.msk [vmem:[#allocation2 + $0x70] sm:$0xf] %vm510_vm0, %v886_v63  ;;  %v6606_v11 = vrot.slane %v1536_v28, 4  ;;  %v5930_v41 = vunpack.c.l.bf16 %v6576_v14  ;;  %v5931_v49 = vunpack.c.h.bf16 %v6576_v14 }
  0x62   : > { %v1430_v4 = vor.u32 %v1429_v43, %v1426_v40  ;;  %v1435_v50 = vrot.slane %v1433_v44, 5  ;;  %v1439_v33 = vrot.slane %v1437_v13, 4  ;;  %v1347_v52 = vld [vmem:[#allocation2 + $0x5c] sm:$0x1]  ;;  %v1553_v53 = vshll.u32 %v1346_v48, 16 }
  0x63   : > { %1765 = vrot.lane.b32.xlu1 %v1422_v6, %s6058_s15  ;;  %v1469_v56 = vrot.slane %v1467_v31, 5  ;;  %v1557_v30 = vshrl.u32 %v1346_v48, 16  ;;  %v1563_v42 = vshll.u32 %v1347_v52, 16  ;;  %v1332_v55 = vld [vmem:[#allocation2 + $0x20] sm:$0x1]  ;;  %v6611_v58 = vrot.slane %v889_v34, 7 }
  0x64   : > { %v1431_v60 = vrot.slane %v1430_v4, 4  ;;  %v6613_v7 = vrot.slane %v1553_v53, 5  ;;  %v1440_v26 = vor.u32 %v1439_v33, %v1435_v50  ;;  %v1443_v39 = vshll.u32 %v1332_v55, 16  ;;  %v1339_v8 = vld [vmem:[#allocation2 + $0x3c] sm:$0xf] }
  0x65   : > { %v1470_v62 = vsel %vm6205_vm8, %v6593_v17, %v1469_v56  ;;  %v1559_v38 = vrot.slane %v1557_v30, 4  ;;  %v6618_v47 = vrot.slane %v1563_v42, 5  ;;  %v1340_v6 = vld [vmem:[#allocation2 + $0x40] sm:$0xf]  ;;  %v1496_v57 = vshrl.u32 %v1339_v8, 16  ;;  %v5974_v14 = vld [vmem:[%s6182_s10 + $0x58] sm:$0xff]  }
  0x66   : > { %1777 = vrot.lane.b32.xlu0 %v1494_v46, %s6058_s15  ;;  %v1436_v63 = vsel %vm6205_vm8, %v1431_v60, %v1435_v50  ;;  %v1441_v23 = vrot.slane %v1440_v26, 4  ;;  %v1445_v37 = vrot.slane %v1443_v39, 5  ;;  %v1499_v16 = vshll.u32 %v1339_v8, 16  ;;  %v1351_v34 = vld [vmem:[#allocation2 + $0x6c] sm:$0xf] }
  0x67   : > { %1767 = vrot.lane.b32.xlu2 %v1436_v63, %s6058_s15  ;;  %v1560_v54 = vor.u32 %v1559_v38, %v6613_v7  ;;  %v1498_v28 = vrot.slane %v1496_v57, 4  ;;  %v1505_v17 = vshll.u32 %v1340_v6, 16  ;;  %v1509_v40 = vshrl.u32 %v1340_v6, 16  ;;  %1084 = vst [vmem:[#allocation2 + $0x30] sm:$0xf] %v1083_v32 }
  0x68   : > { %v1446_v46 = vsel %vm6205_vm8, %v1441_v23, %v1445_v37  ;;  %v1501_v43 = vrot.slane %v1499_v16, 5  ;;  %v6632_v44 = vld [vmem:[#allocation2 + $0x70] sm:$0xf]  ;;  %v1592_v13 = vshrl.u32 %v1351_v34, 16  ;;  %v1595_v29 = vshll.u32 %v1351_v34, 16 }
  0x69   : > { %v6634_v31 = vrot.slane %v1560_v54, 4  ;;  %v1507_v48 = vrot.slane %v1505_v17, 5  ;;  %v1601_v4 = vshll.u32 %v6632_v44, 16  ;;  %v1605_v50 = vshrl.u32 %v6632_v44, 16  ;;  %1102 = vst [vmem:[#allocation2 + $0x50] sm:$0x1] %v6573_v20 }
  0x6a   : > { %v1502_v33 = vor.u32 %v1501_v43, %v1498_v28  ;;  %v1594_v10 = vrot.slane %v1592_v13, 4  ;;  %v1597_v25 = vrot.slane %v1595_v29, 5  ;;  %v895_v32 = vrot.slane %v6611_v58, 4  ;;  %v1093_v52 = vld [vmem:[#allocation2 + $0x44] sm:$0x1] }
  0x6b   : > { %1773 = vrot.lane.b32.xlu1 %v1470_v62, %s6058_s15  ;;  %v1566_v53 = vsel %vm6205_vm8, %v6634_v31, %v6618_v47  ;;  %v6645_v56 = vrot.slane %v1601_v4, 5  ;;  %v899_v30 = vrot.slane %v897_v15, 7  ;;  %v819_v20 = vrot.slane %v6472_v51, 4  ;;  %v1128_v60 = vld [vmem:[#allocation2 + $0x80] sm:$0x1] }
  0x6c   : > { %v1503_v42 = vrot.slane %v1502_v33, 4  ;;  %v1598_v55 = vor.u32 %v1597_v25, %v1594_v10  ;;  %v1511_v26 = vrot.slane %v1509_v40, 4  ;;  %v647_v39 = vmul.f32 %v6200_v18, %v5930_v41 }
  0x6d   : > { %v902_v8 = vor.u32 %v900_v0, %v899_v30  ;;  %v904_v62 = vrot.slane %v899_v30, 4  ;;  %v1094_v38 = vsel %vm6153_vm5, %v819_v20, %v1093_v52  ;;  %v648_v15 = vmul.f32 %v6200_v18, %v5931_v49 }
  0x6e   : > { %1783 = vrot.lane.b32.xlu0 %v1532_v19, %s6058_s15  ;;  %v1508_v51 = vsel %vm6205_vm8, %v1503_v42, %v1507_v48  ;;  %v6666_v35 = vrot.slane %v1598_v55, 4  ;;  %v1336_v0 = vld [vmem:[#allocation2 + $0x30] sm:$0xf]  ;;  %1095 = vst [vmem:[#allocation2 + $0x44] sm:$0x1] %v1094_v38  ;;  %v1512_v41 = vor.u32 %v1511_v26, %v1507_v48  ;;  %v682_v47 = vadd.f32 %v6215_v24, %v647_v39 }
  0x6f   : > { %1769 = vrot.lane.b32.xlu2 %v1446_v46, %s6058_s15  ;;  %v1472_v49 = vshrl.u32 %v1336_v0, 16  ;;  %v1475_v6 = vshll.u32 %v1336_v0, 16  ;;  %v903_v57 = vsel %vm6131_vm4, %v895_v32, %v902_v8  ;;  %v1129_v61 = vsel %vm6153_vm5, %v904_v62, %v1128_v60  ;;  %v1103_v32 = vld [vmem:[#allocation2 + $0x54] sm:$0xf]  ;;  %v1110_v8 = vld [vmem:[#allocation2 + $0x60] sm:$0xf] }
  0x70   : > { %v1604_v59 = vsel %vm6205_vm8, %v6666_v35, %v6645_v56  ;;  %v1344_v19 = vld [vmem:[#allocation2 + $0x50] sm:$0x1]  ;;  %1127 = vst.msk [vmem:[#allocation2 + $0x7c] sm:$0xf] %vm510_vm0, %v903_v57  ;;  %v6680_v63 = vrot.slane %v1512_v41, 4  ;;  %v683_v23 = vadd.f32 %v6215_v24, %v648_v15  ;;  %v714_v37 = vpack.c.bf16 %v682_v47, %v682_v47 }
  0x71   : > { %v1474_v16 = vrot.slane %v1472_v49, 4  ;;  %v1477_v34 = vrot.slane %v1475_v6, 5  ;;  %v1539_v54 = vshll.u32 %v1344_v19, 16  ;;  %1130 = vst [vmem:[#allocation2 + $0x80] sm:$0x1] %v1129_v61  ;;  %v5946_v28 = vunpack.c.l.bf16 %v5974_v14 }
  0x72   : > { %v715_v17 = vpack.c.bf16 %v683_v23, %v683_v23  ;;  %v855_v40 = vshrl.u32 %v714_v37, 16  ;;  %v858_v46 = vshll.u32 %v714_v37, 16  ;;  %v5947_v43 = vunpack.c.h.bf16 %v5974_v14  ;;  %v1121_v37 = vld [vmem:[#allocation2 + $0x74] sm:$0x1] }
  0x73   : > { %1779 = vrot.lane.b32.xlu1 %v1508_v51, %s6058_s15  ;;  %v1478_v13 = vor.u32 %v1477_v34, %v1474_v16  ;;  %v1541_v29 = vrot.slane %v1539_v54, 5  ;;  %v655_v31 = vmul.f32 %v6200_v18, %v5946_v28  ;;  %v841_v48 = vshll.u32 %v6394_v45, 16 }
  0x74   : > { %v857_v4 = vrot.slane %v855_v40, 7  ;;  %v863_v33 = vshrl.u32 %v715_v17, 16  ;;  %v866_v10 = vshll.u32 %v715_v17, 16  ;;  %v656_v25 = vmul.f32 %v6200_v18, %v5947_v43 }
  0x75   : > { %v1479_v52 = vrot.slane %v1478_v13, 4  ;;  %v1542_v30 = vsel %vm6205_vm8, %v6606_v11, %v1541_v29  ;;  %v1341_v20 = vld [vmem:[#allocation2 + $0x44] sm:$0x1]  ;;  %v690_v42 = vadd.f32 %v6215_v24, %v655_v31  ;;  %v843_v55 = vor.u32 %v841_v48, %v6422_v9 }
  0x76   : > { %1789 = vrot.lane.b32.xlu0 %v1566_v53, %s6058_s15  ;;  %v1515_v60 = vshll.u32 %v1341_v20, 16  ;;  %v860_v45 = vor.u32 %v858_v46, %v857_v4  ;;  %v861_v26 = vrot.slane %v857_v4, 4  ;;  %v6693_v39 = vrot.slane %v863_v33, 7  ;;  %v1138_v46 = vld [vmem:[#allocation2 + $0x90] sm:$0xf] }
  0x77   : > { %v1484_v62 = vsel %vm6205_vm8, %v1479_v52, %v6524_v27  ;;  %v1355_v38 = vld [vmem:[#allocation2 + $0x7c] sm:$0xf]  ;;  %v691_v11 = vadd.f32 %v6215_v24, %v656_v25  ;;  %v722_v15 = vpack.c.bf16 %v690_v42, %v690_v42  ;;  %v1104_v9 = vsel %vm6279_vm10, %v843_v55, %v1103_v32  ;;  %v5975_v24 = vld [vmem:[%s6182_s10 + $0x60] sm:$0xff]   ;;  %v6722_v4 = vld [vmem:[%s6182_s10 + $0x50] sm:$0xff]  }
  0x78   : > { %1775 = vrot.lane.b32.xlu2 %v1484_v62, %s6058_s15  ;;  %v1356_v53 = vld [vmem:[#allocation2 + $0x80] sm:$0x1]  ;;  %v1625_v51 = vshll.u32 %v1355_v38, 16  ;;  %v1629_v0 = vshrl.u32 %v1355_v38, 16  ;;  %v1517_v41 = vrot.slane %v1515_v60, 5  ;;  %v868_v47 = vor.u32 %v866_v10, %v6693_v39 }
  0x79   : > { %v1635_v14 = vshll.u32 %v1356_v53, 16  ;;  %v1111_v27 = vsel %vm6279_vm10, %v860_v45, %v1110_v8  ;;  %v723_v49 = vpack.c.bf16 %v691_v11, %v691_v11  ;;  %v923_v6 = vshrl.u32 %v722_v15, 16  ;;  %1105 = vst [vmem:[#allocation2 + $0x54] sm:$0xf] %v1104_v9  ;;  %v6746_v20 = vld [vmem:[%s8487_s3] ss:$0 sm:$0xff] }
  0x7a   : > { %v6706_v57 = vrot.slane %v1625_v51, 5  ;;  %v1631_v61 = vrot.slane %v1629_v0, 4  ;;  %v1518_v19 = vsel %vm6205_vm8, %v6680_v63, %v1517_v41  ;;  %v869_v23 = vsel %vm6131_vm4, %v861_v26, %v868_v47  ;;  %1112 = vst [vmem:[#allocation2 + $0x60] sm:$0xf] %v1111_v27 }
  0x7b   : > { %1785 = vrot.lane.b32.xlu1 %v1542_v30, %s6058_s15  ;;  %v1637_v16 = vrot.slane %v1635_v14, 5  ;;  %1113 = vst.msk [vmem:[#allocation2 + $0x64] sm:$0xf] %vm510_vm0, %v869_v23  ;;  %v925_v34 = vrot.slane %v923_v6, 7  ;;  %v926_v54 = vshll.u32 %v722_v15, 16  ;;  %v931_v28 = vshrl.u32 %v723_v49, 16 }
  0x7c   : > { %v1632_v17 = vor.u32 %v1631_v61, %v6706_v57  ;;  %v934_v40 = vshll.u32 %v723_v49, 16  ;;  %v887_v63 = vrot.slane %v6503_v22, 4  ;;  %v1607_v43 = vrot.slane %v1605_v50, 4  ;;  %v1114_v30 = vld [vmem:[#allocation2 + $0x68] sm:$0x1] }
  0x7d   : > { %v928_v13 = vor.u32 %v926_v54, %v925_v34  ;;  %v929_v29 = vrot.slane %v925_v34, 4  ;;  %v6719_v31 = vrot.slane %v931_v28, 7  ;;  %v5950_v48 = vunpack.c.l.bf16 %v5975_v24 }
  0x7e   : > { %1795 = vrot.lane.b32.xlu0 %v1604_v59, %s6058_s15  ;;  %v1633_v33 = vrot.slane %v1632_v17, 4  ;;  %v1122_v22 = vsel %vm6153_vm5, %v887_v63, %v1121_v37  ;;  %v1608_v44 = vor.u32 %v1607_v43, %v6645_v56  ;;  %v5951_v50 = vunpack.c.h.bf16 %v5975_v24 }
  0x7f   : > { %v936_v10 = vor.u32 %v934_v40, %v6719_v31  ;;  %v1139_v25 = vsel %vm6279_vm10, %v928_v13, %v1138_v46  ;;  %1123 = vst [vmem:[#allocation2 + $0x74] sm:$0x1] %v1122_v22  ;;  %v657_v32 = vmul.f32 %v6200_v18, %v5950_v48  ;;  %v870_v52 = vrot.slane %v6693_v39, 4  ;;  %v6755_v39 = vld [vmem:[%s8488_s4] ss:$0 sm:$0xff] }
  0x80   : > { %v1638_v35 = vsel %vm6205_vm8, %v1633_v33, %v1637_v16  ;;  %1781 = vrot.lane.b32.xlu2 %v1518_v19, %s6058_s15  ;;  %1140 = vst [vmem:[#allocation2 + $0x90] sm:$0xf] %v1139_v25  ;;  %v1345_v59 = vld [vmem:[#allocation2 + $0x54] sm:$0xf]  ;;  %v6741_v56 = vrot.slane %v1608_v44, 4  ;;  %v658_v42 = vmul.f32 %v6746_v20, %v5951_v50  ;;  %v5942_v18 = vunpack.c.l.bf16 %v6722_v4 }
  0x81   : > { %v1348_v55 = vld [vmem:[#allocation2 + $0x60] sm:$0xf]  ;;  %v937_v60 = vsel %vm6131_vm4, %v929_v29, %v936_v10  ;;  %v1544_v45 = vshrl.u32 %v1345_v59, 16  ;;  %v1547_v26 = vshll.u32 %v1345_v59, 16  ;;  %v692_v8 = vadd.f32 %v6755_v39, %v657_v32 }
  0x82   : > { %v1349_v62 = vld [vmem:[#allocation2 + $0x64] sm:$0xf]  ;;  %v1568_v38 = vshrl.u32 %v1348_v55, 16  ;;  %v1571_v11 = vshll.u32 %v1348_v55, 16  ;;  %1141 = vst.msk [vmem:[#allocation2 + $0x94] sm:$0xf] %vm510_vm0, %v937_v60  ;;  %v693_v15 = vadd.f32 %v6755_v39, %v658_v42  ;;  %v1115_v9 = vsel %vm6153_vm5, %v870_v52, %v1114_v30 }
  0x83   : > { %v1577_v53 = vshll.u32 %v1349_v62, 16  ;;  %v1581_v51 = vshrl.u32 %v1349_v62, 16  ;;  %v1546_v0 = vrot.slane %v1544_v45, 4  ;;  %v1549_v41 = vrot.slane %v1547_v26, 5  ;;  %1116 = vst [vmem:[#allocation2 + $0x68] sm:$0x1] %v1115_v9 }
  0x84   : > { %v1570_v47 = vrot.slane %v1568_v38, 4  ;;  %v1573_v14 = vrot.slane %v1571_v11, 5  ;;  %v6762_v27 = vpack.c.bf16 %v692_v8, %v692_v8  ;;  %v725_v49 = vpack.c.bf16 %v693_v15, %v693_v15  ;;  %v1149_v55 = vld [vmem:[#allocation2 + $0xa4] sm:$0x1] }
  0x85   : > { %v1579_v6 = vrot.slane %v1577_v53, 5  ;;  %v1550_v24 = vor.u32 %v1549_v41, %v1546_v0  ;;  %v1583_v61 = vrot.slane %v1581_v51, 4  ;;  %v5943_v19 = vunpack.c.h.bf16 %v6722_v4 }
  0x86   : > { %1801 = vrot.lane.b32.xlu0 %v1638_v35, %s6058_s15  ;;  %v1574_v23 = vor.u32 %v1573_v14, %v1570_v47  ;;  %v1353_v37 = vld [vmem:[#allocation2 + $0x74] sm:$0x1]  ;;  %v940_v16 = vshrl.u32 %v6762_v27, 16  ;;  %v948_v34 = vshrl.u32 %v725_v49, 16  ;;  %v951_v54 = vshll.u32 %v725_v49, 16 }
  0x87   : > { %v1360_v28 = vld [vmem:[#allocation2 + $0x90] sm:$0xf]  ;;  %v1551_v17 = vrot.slane %v1550_v24, 4  ;;  %v1611_v40 = vshll.u32 %v1353_v37, 16  ;;  %v1584_v46 = vor.u32 %v1583_v61, %v1579_v6  ;;  %v653_v63 = vmul.f32 %v6746_v20, %v5942_v18  ;;  %v1142_v49 = vld [vmem:[#allocation2 + $0x98] sm:$0x1] }
  0x88   : > { %v1575_v43 = vrot.slane %v1574_v23, 4  ;;  %v1664_v13 = vshrl.u32 %v1360_v28, 16  ;;  %v1667_v29 = vshll.u32 %v1360_v28, 16  ;;  %v6768_v48 = vrot.slane %v940_v16, 7  ;;  %v5977_v35 = vld [vmem:[%s6182_s10 + $0x70] sm:$0xff]  }
  0x89   : > { %v1361_v4 = vld [vmem:[#allocation2 + $0x94] sm:$0xf]  ;;  %v1556_v33 = vsel %vm6205_vm8, %v1551_v17, %v6613_v7  ;;  %v1613_v22 = vrot.slane %v1611_v40, 5  ;;  %v950_v44 = vrot.slane %v948_v34, 7  ;;  %v1585_v50 = vrot.slane %v1584_v46, 4 }
  0x8a   : > { %v1580_v10 = vsel %vm6205_vm8, %v1575_v43, %v1579_v6  ;;  %v1666_v25 = vrot.slane %v1664_v13, 4  ;;  %v1669_v32 = vrot.slane %v1667_v29, 5  ;;  %v1673_v52 = vshll.u32 %v1361_v4, 16  ;;  %1787 = vrot.lane.b32.xlu2 %v1556_v33, %s6058_s15  ;;  %v1350_v30 = vld [vmem:[#allocation2 + $0x68] sm:$0x1] }
  0x8b   : > { %1791 = vrot.lane.b32.xlu1 %v1580_v10, %s6058_s15  ;;  %v1677_v59 = vshrl.u32 %v1361_v4, 16  ;;  %v1614_v7 = vsel %vm6205_vm8, %v6741_v56, %v1613_v22  ;;  %v946_v42 = vrot.slane %v6768_v48, 4  ;;  %v953_v18 = vor.u32 %v951_v54, %v950_v44  ;;  %v1131_v43 = vld [vmem:[#allocation2 + $0x84] sm:$0xf] }
  0x8c   : > { %v1670_v60 = vor.u32 %v1669_v32, %v1666_v25  ;;  %v6782_v45 = vrot.slane %v1673_v52, 5  ;;  %v955_v26 = vrot.slane %v950_v44, 4  ;;  %v1587_v8 = vshll.u32 %v1350_v30, 16 }
  0x8d   : > { %v954_v62 = vsel %vm6131_vm4, %v946_v42, %v953_v18  ;;  %v654_v38 = vmul.f32 %v6746_v20, %v5943_v19  ;;  %v688_v11 = vadd.f32 %v6755_v39, %v653_v63  ;;  %v5958_v15 = vunpack.c.l.bf16 %v5977_v35 }
  0x8e   : > { %v1671_v9 = vrot.slane %v1670_v60, 4  ;;  %1148 = vst.msk [vmem:[#allocation2 + $0xa0] sm:$0xf] %vm510_vm0, %v954_v62  ;;  %v1150_v56 = vsel %vm6153_vm5, %v955_v26, %v1149_v55  ;;  %v1589_v53 = vrot.slane %v1587_v8, 5  ;;  %v5959_v51 = vunpack.c.h.bf16 %v5977_v35  ;;  %v1159_v55 = vld [vmem:[#allocation2 + $0xb4] sm:$0xf] }
  0x8f   : > { %1151 = vst [vmem:[#allocation2 + $0xa4] sm:$0x1] %v1150_v56  ;;  %v689_v0 = vadd.f32 %v6755_v39, %v654_v38  ;;  %v720_v41 = vpack.c.bf16 %v688_v11, %v688_v11  ;;  %v661_v47 = vmul.f32 %v6746_v20, %v5958_v15  ;;  %v892_v14 = vshll.u32 %v6509_v36, 16  ;;  %v1124_v36 = vld [vmem:[#allocation2 + $0x78] sm:$0xf]  ;;  %v5976_v15 = vld [vmem:[%s6182_s10 + $0x68] sm:$0xff]  }
  0x90   : > { %v1676_v6 = vsel %vm6205_vm8, %v1671_v9, %v6782_v45  ;;  %v1590_v24 = vsel %vm6205_vm8, %v1585_v50, %v1589_v53  ;;  %v662_v61 = vmul.f32 %v6746_v20, %v5959_v51  ;;  %v938_v19 = vrot.slane %v6719_v31, 4 }
  0x91   : > { %1807 = vrot.lane.b32.xlu0 %v1676_v6, %s6058_s15  ;;  %v721_v23 = vpack.c.bf16 %v689_v0, %v689_v0  ;;  %v906_v37 = vshrl.u32 %v720_v41, 16  ;;  %v909_v16 = vshll.u32 %v720_v41, 16  ;;  %v696_v34 = vadd.f32 %v6755_v39, %v661_v47  ;;  %v1135_v47 = vld [vmem:[#allocation2 + $0x8c] sm:$0x1] }
  0x92   : > { %1793 = vrot.lane.b32.xlu2 %v1590_v24, %s6058_s15  ;;  %v697_v54 = vadd.f32 %v6755_v39, %v662_v61  ;;  %v894_v28 = vor.u32 %v892_v14, %v6611_v58  ;;  %v1143_v17 = vsel %vm6153_vm5, %v938_v19, %v1142_v49  ;;  %v1679_v4 = vrot.slane %v1677_v59, 4 }
  0x93   : > { %1797 = vrot.lane.b32.xlu1 %v1614_v7, %s6058_s15  ;;  %v908_v31 = vrot.slane %v906_v37, 7  ;;  %v914_v40 = vshrl.u32 %v721_v23, 16  ;;  %v917_v46 = vshll.u32 %v721_v23, 16  ;;  %v728_v63 = vpack.c.bf16 %v696_v34, %v696_v34  ;;  %1144 = vst [vmem:[#allocation2 + $0x98] sm:$0x1] %v1143_v17 }
  0x94   : > { %v729_v13 = vpack.c.bf16 %v697_v54, %v697_v54  ;;  %v1125_v29 = vsel %vm6279_vm10, %v894_v28, %v1124_v36  ;;  %v1680_v0 = vor.u32 %v1679_v4, %v6782_v45  ;;  %v5954_v24 = vunpack.c.l.bf16 %v5976_v15 }
  0x95   : > { %v1364_v33 = vld [vmem:[#allocation2 + $0xa0] sm:$0xf]  ;;  %v911_v22 = vor.u32 %v909_v16, %v908_v31  ;;  %v912_v44 = vrot.slane %v908_v31, 4  ;;  %v916_v58 = vrot.slane %v914_v40, 7  ;;  %v974_v50 = vshrl.u32 %v728_v63, 16 }
  0x96   : > { %v1365_v10 = vld [vmem:[#allocation2 + $0xa4] sm:$0x1]  ;;  %v1697_v25 = vshll.u32 %v1364_v33, 16  ;;  %v1701_v32 = vshrl.u32 %v1364_v33, 16  ;;  %v977_v52 = vshll.u32 %v728_v63, 16  ;;  %v982_v30 = vshrl.u32 %v729_v13, 16 }
  0x97   : > { %v1707_v35 = vshll.u32 %v1365_v10, 16  ;;  %v919_v7 = vor.u32 %v917_v46, %v916_v58  ;;  %v1132_v42 = vsel %vm6279_vm10, %v911_v22, %v1131_v43  ;;  %v976_v18 = vrot.slane %v974_v50, 7  ;;  %1126 = vst [vmem:[#allocation2 + $0x78] sm:$0xf] %v1125_v29  ;;  %v6833_v16 = vld [vmem:[#allocation2 + $0x4] sm:$0xf] }
  0x98   : > { %v6813_v59 = vrot.slane %v1697_v25, 5  ;;  %v1703_v60 = vrot.slane %v1701_v32, 4  ;;  %1133 = vst [vmem:[#allocation2 + $0x84] sm:$0xf] %v1132_v42  ;;  %v6815_v26 = vrot.slane %v982_v30, 7  ;;  %v985_v8 = vshll.u32 %v729_v13, 16 }
  0x99   : > { %v920_v62 = vsel %vm6131_vm4, %v912_v44, %v919_v7  ;;  %v979_v38 = vor.u32 %v977_v52, %v976_v18  ;;  %v980_v11 = vrot.slane %v976_v18, 4  ;;  %v1709_v56 = vrot.slane %v1707_v35, 5 }
  0x9a   : > { %v1704_v9 = vor.u32 %v1703_v60, %v6813_v59  ;;  %1134 = vst.msk [vmem:[#allocation2 + $0x88] sm:$0xf] %vm510_vm0, %v920_v62  ;;  %v987_v53 = vor.u32 %v985_v8, %v6815_v26  ;;  %v1362_v51 = vld [vmem:[#allocation2 + $0x98] sm:$0x1]  ;;  %v921_v6 = vrot.slane %v916_v58, 4  ;;  %v5955_v19 = vunpack.c.h.bf16 %v5976_v15 }
  0x9b   : > { %v1160_v41 = vsel %vm6279_vm10, %v979_v38, %v1159_v55  ;;  %v1683_v61 = vshll.u32 %v1362_v51, 16  ;;  %v6831_v45 = vrot.slane %v1680_v0, 4  ;;  %v659_v36 = vmul.f32 %v6746_v20, %v5954_v24  ;;  %v1163_v0 = vld [vmem:[#allocation2 + $0xbc] sm:$0x1] }
  0x9c   : > { %v1705_v14 = vrot.slane %v1704_v9, 4  ;;  %v988_v49 = vsel %vm6131_vm4, %v980_v11, %v987_v53  ;;  %1161 = vst [vmem:[#allocation2 + $0xb4] sm:$0xf] %v1160_v41  ;;  %v1136_v34 = vsel %vm6153_vm5, %v921_v6, %v1135_v47  ;;  %v660_v46 = vmul.f32 %v6746_v20, %v5955_v19  ;;  %v1145_v19 = vld [vmem:[#allocation2 + $0x9c] sm:$0xf] }
  0x9d   : > { %1162 = vst.msk [vmem:[#allocation2 + $0xb8] sm:$0xf] %vm510_vm0, %v988_v49  ;;  %v694_v63 = vadd.f32 %v6755_v39, %v659_v36  ;;  %v6841_v4 = vrot.slane %v1683_v61, 5  ;;  %v1989_v33 = vrot.slane %v6833_v16, 5  ;;  %v943_v20 = vshll.u32 %v6762_v27, 16 }
  0x9e   : > { %v1710_v23 = vsel %vm6205_vm8, %v1705_v14, %v1709_v56  ;;  %v1354_v37 = vld [vmem:[#allocation2 + $0x78] sm:$0xf]  ;;  %1137 = vst [vmem:[#allocation2 + $0x8c] sm:$0x1] %v1136_v34  ;;  %v695_v32 = vadd.f32 %v6755_v39, %v660_v46  ;;  %v989_v62 = vrot.slane %v6815_v26, 4 }
  0x9f   : > { %1813 = vrot.lane.b32.xlu0 %v1710_v23, %s6058_s15  ;;  %v1357_v54 = vld [vmem:[#allocation2 + $0x84] sm:$0xf]  ;;  %v1616_v28 = vshrl.u32 %v1354_v37, 16  ;;  %v1619_v17 = vshll.u32 %v1354_v37, 16  ;;  %v726_v52 = vpack.c.bf16 %v694_v63, %v694_v63  ;;  %v1152_v34 = vld [vmem:[#allocation2 + $0xa8] sm:$0xf]  ;;  %v945_v36 = vor.u32 %v943_v20, %v6768_v48 }
  0xa0   : > { %v1640_v31 = vshrl.u32 %v1357_v54, 16  ;;  %v1643_v40 = vshll.u32 %v1357_v54, 16  ;;  %v727_v39 = vpack.c.bf16 %v695_v32, %v695_v32  ;;  %v1164_v54 = vsel %vm6153_vm5, %v989_v62, %v1163_v0  ;;  %v6893_v32 = vld [vmem:[#allocation2 + $0x1c] sm:$0xf]  ;;  %v1896_v16 = vld [vmem:[#allocation2 + $0x20] sm:$0x1] }
  0xa1   : > { %v1358_v43 = vld [vmem:[#allocation2 + $0x88] sm:$0xf]  ;;  %v1618_v13 = vrot.slane %v1616_v28, 4  ;;  %v1621_v29 = vrot.slane %v1619_v17, 5  ;;  %v957_v26 = vshrl.u32 %v726_v52, 16  ;;  %v960_v14 = vshll.u32 %v726_v52, 16 }
  0xa2   : > { %v1642_v22 = vrot.slane %v1640_v31, 4  ;;  %v1645_v44 = vrot.slane %v1643_v40, 5  ;;  %v1649_v58 = vshll.u32 %v1358_v43, 16  ;;  %v1653_v50 = vshrl.u32 %v1358_v43, 16  ;;  %1165 = vst [vmem:[#allocation2 + $0xbc] sm:$0x1] %v1164_v54 }
  0xa3   : > { %v1369_v10 = vld [vmem:[#allocation2 + $0xb4] sm:$0xf]  ;;  %v1622_v25 = vor.u32 %v1621_v29, %v1618_v13  ;;  %v965_v24 = vshrl.u32 %v727_v39, 16  ;;  %v968_v61 = vshll.u32 %v727_v39, 16  ;;  %v959_v37 = vrot.slane %v957_v26, 7 }
  0xa4   : > { %v1646_v30 = vor.u32 %v1645_v44, %v1642_v22  ;;  %v1651_v35 = vrot.slane %v1649_v58, 5  ;;  %v6846_v7 = vld [vmem:[#allocation2 + $0xb8] sm:$0xf]  ;;  %v1736_v42 = vshrl.u32 %v1369_v10, 16  ;;  %v1739_v18 = vshll.u32 %v1369_v10, 16 }
  0xa5   : > { %v1745_v55 = vshll.u32 %v6846_v7, 16  ;;  %v1623_v60 = vrot.slane %v1622_v25, 4  ;;  %v1655_v8 = vrot.slane %v1653_v50, 4  ;;  %v1359_v9 = vld [vmem:[#allocation2 + $0x8c] sm:$0x1]  ;;  %v967_v28 = vrot.slane %v965_v24, 7  ;;  %v1762_v24 = vpop.permute.xlu0 %1761 }
  0xa6   : > { %v1647_v38 = vrot.slane %v1646_v30, 4  ;;  %v1738_v11 = vrot.slane %v1736_v42, 4  ;;  %v1741_v15 = vrot.slane %v1739_v18, 5  ;;  %v1659_v51 = vshll.u32 %v1359_v9, 16  ;;  %v1156_v13 = vld [vmem:[#allocation2 + $0xb0] sm:$0x1] }
  0xa7   : > { %v6850_v56 = vrot.slane %v1745_v55, 5  ;;  %v1628_v27 = vsel %vm6205_vm8, %v1623_v60, %v6706_v57  ;;  %v1656_v53 = vor.u32 %v1655_v8, %v1651_v35  ;;  %v1890_v57 = vld [vmem:[#allocation2 + $0x8] sm:$0x1]  ;;  %v962_v31 = vor.u32 %v960_v14, %v959_v37  ;;  %v1894_v25 = vld [vmem:[#allocation2 + $0x18] sm:$0xe] }
  0xa8   : > { %v1652_v41 = vsel %vm6205_vm8, %v1647_v38, %v1651_v35  ;;  %v1742_v47 = vor.u32 %v1741_v15, %v1738_v11  ;;  %1799 = vrot.lane.b32.xlu2 %v1628_v27, %s6058_s15  ;;  %v1661_v6 = vrot.slane %v1659_v51, 5  ;;  %v963_v40 = vrot.slane %v959_v37, 4  ;;  %v6898_v60 = vld [vmem:[#allocation2 + $0x28] sm:$0xf] }
  0xa9   : > { %1803 = vrot.lane.b32.xlu1 %v1652_v41, %s6058_s15  ;;  %v1657_v49 = vrot.slane %v1656_v53, 4  ;;  %v1146_v46 = vsel %vm6279_vm10, %v945_v36, %v1145_v19  ;;  %v1992_v63 = vrot.slane %v1890_v57, 5  ;;  %v970_v43 = vor.u32 %v968_v61, %v967_v28 }
  0xaa   : > { %v1743_v23 = vrot.slane %v1742_v47, 4  ;;  %1147 = vst [vmem:[#allocation2 + $0x9c] sm:$0xf] %v1146_v46  ;;  %v1686_v29 = vsel %vm6205_vm8, %v6831_v45, %v6841_v4  ;;  %v1991_v22 = vrot.slane %v1989_v33, 4  ;;  %v1153_v44 = vsel %vm6279_vm10, %v962_v31, %v1152_v34  ;;  %v1261_v47 = vld [vmem:[#allocation2 + $0x4] sm:$0xf] }
  0xab   : > { %v1662_v48 = vsel %vm6205_vm8, %v1657_v49, %v1661_v6  ;;  %v972_v58 = vrot.slane %v967_v28, 4  ;;  %v971_v10 = vsel %vm6131_vm4, %v963_v40, %v970_v43  ;;  %1154 = vst [vmem:[#allocation2 + $0xa8] sm:$0xf] %v1153_v44  ;;  %v1749_v52 = vshrl.u32 %v6846_v7, 16  ;;  %v1371_v49 = vld [vmem:[#allocation2 + $0xbc] sm:$0x1] }
  0xac   : > { %v1748_v17 = vsel %vm6205_vm8, %v1743_v23, %v6850_v56  ;;  %1155 = vst.msk [vmem:[#allocation2 + $0xac] sm:$0xf] %vm510_vm0, %v971_v10  ;;  %v1993_v4 = vsel %vm6880_vm13, %v1991_v22, %v1992_v63  ;;  %v5501_v18 = vrot.slane %v1894_v25, 9  ;;  %v2003_v55 = vrot.slane %v6893_v32, 5  ;;  %v1899_v23 = vld [vmem:[#allocation2 + $0x2c] sm:$0x1] }
  0xad   : > { %1819 = vrot.lane.b32.xlu0 %v1748_v17, %s6058_s15  ;;  %v1157_v45 = vsel %vm6153_vm5, %v972_v58, %v1156_v13  ;;  %v1751_v7 = vrot.slane %v1749_v52, 4  ;;  %v2010_v41 = vrot.slane %v6898_v60, 5  ;;  %1293 = vst.msk [vmem:[#allocation3 + $0xc] sm:$0xf] %vm510_vm0, %v1261_v47  ;;  %v1755_v28 = vshll.u32 %v1371_v49, 16 }
  0xae   : > { %1158 = vst [vmem:[#allocation2 + $0xb0] sm:$0x1] %v1157_v45  ;;  %v2004_v14 = vsel %vm6880_vm13, %v5501_v18, %v2003_v55  ;;  %v2013_v31 = vrot.slane %v1899_v23, 5  ;;  %v1264_v43 = vld [vmem:[#allocation2 + $0x18] sm:$0xf] }
  0xaf   : > { %1857 = vst.msk [vmem:[#allocation3 + $0xc] sm:$0xf] %vm1855_vm14, %v1762_v24  ;;  %v1752_v54 = vor.u32 %v1751_v7, %v6850_v56  ;;  %v2012_v17 = vrot.slane %v2010_v41, 4  ;;  %v1903_v44 = vld [vmem:[#allocation2 + $0x3c] sm:$0xe] }
  0xb0   : > { %1805 = vrot.lane.b32.xlu2 %v1662_v48, %s6058_s15  ;;  %v1260_v48 = vld [vmem:[#allocation2] sm:$0xf]  ;;  %1296 = vst.msk [vmem:[#allocation3 + $0x30] sm:$0xf] %vm510_vm0, %v1264_v43  ;;  %v1892_v25 = vld [vmem:[#allocation2 + $0x10] sm:$0xf] }
  0xb1   : > { %1809 = vrot.lane.b32.xlu1 %v1686_v29, %s6058_s15  ;;  %v1363_v20 = vld [vmem:[#allocation2 + $0x9c] sm:$0xf]  ;;  %v1753_v13 = vrot.slane %v1752_v54, 4  ;;  %1292 = vst.msk [vmem:[#allocation3] sm:$0xf] %vm510_vm0, %v1260_v48  ;;  %v2014_v29 = vsel %vm6880_vm13, %v2012_v17, %v2013_v31  ;;  %v5504_v52 = vrot.slane %v1903_v44, 9 }
  0xb2   : > { %v1688_v30 = vshrl.u32 %v1363_v20, 16  ;;  %v1691_v35 = vshll.u32 %v1363_v20, 16  ;;  %v1366_v42 = vld [vmem:[#allocation2 + $0xa8] sm:$0xf]  ;;  %v6924_v58 = vld [vmem:[#allocation2 + $0x40] sm:$0xf] }
  0xb3   : > { %v1367_v8 = vld [vmem:[#allocation2 + $0xac] sm:$0xf]  ;;  %v1712_v62 = vshrl.u32 %v1366_v42, 16  ;;  %v1715_v38 = vshll.u32 %v1366_v42, 16  ;;  %v1888_v10 = vld [vmem:[#allocation2] sm:$0xe] }
  0xb4   : > { %v1690_v11 = vrot.slane %v1688_v30, 4  ;;  %v1693_v15 = vrot.slane %v1691_v35, 5  ;;  %v1721_v9 = vshll.u32 %v1367_v8, 16  ;;  %v1725_v39 = vshrl.u32 %v1367_v8, 16  ;;  %v6932_v35 = vld [vmem:[#allocation2 + $0x4c] sm:$0xf] }
  0xb5   : > { %2101 = vrot.lane.b32.xlu0 %v1993_v4, %s6059_s20  ;;  %v1368_v27 = vld [vmem:[#allocation2 + $0xb0] sm:$0x1]  ;;  %v1714_v53 = vrot.slane %v1712_v62, 4  ;;  %v1717_v51 = vrot.slane %v1715_v38, 5  ;;  %v1891_v4 = vld [vmem:[#allocation2 + $0xc] sm:$0xe] }
  0xb6   : > { %v1694_v0 = vor.u32 %v1693_v15, %v1690_v11  ;;  %v1723_v26 = vrot.slane %v1721_v9, 5  ;;  %v1727_v6 = vrot.slane %v1725_v39, 4  ;;  %v1731_v57 = vshll.u32 %v1368_v27, 16  ;;  %v1266_v18 = vld [vmem:[#allocation2 + $0x24] sm:$0xf] }
  0xb7   : > { %v1718_v61 = vor.u32 %v1717_v51, %v1714_v53  ;;  %v2024_v20 = vrot.slane %v6924_v58, 5  ;;  %v5499_v30 = vrot.slane %v1888_v10, 9  ;;  %v1265_v8 = vld [vmem:[#allocation2 + $0x1c] sm:$0xf]  ;;  %v5500_v62 = vrot.slane %v1891_v4, 9 }
  0xb8   : > { %v1695_v19 = vrot.slane %v1694_v0, 4  ;;  %v1728_v37 = vor.u32 %v1727_v6, %v1723_v26  ;;  %v1733_v63 = vrot.slane %v1731_v57, 5  ;;  %v1996_v38 = vrot.slane %v1892_v25, 5  ;;  %1298 = vst.msk [vmem:[#allocation3 + $0x48] sm:$0xf] %vm510_vm0, %v1266_v18 }
  0xb9   : > { %v1719_v34 = vrot.slane %v1718_v61, 4  ;;  %v2025_v15 = vsel %vm6880_vm13, %v5504_v52, %v2024_v20  ;;  %v2031_v9 = vrot.slane %v6932_v35, 5  ;;  %v1262_v39 = vld [vmem:[#allocation2 + $0xc] sm:$0xf]  ;;  %v1990_v7 = vsel %vm6880_vm13, %v5499_v30, %v1989_v33  ;;  %v1908_v27 = vld [vmem:[#allocation2 + $0x50] sm:$0x1] }
  0xba   : > { %v1700_v36 = vsel %vm6205_vm8, %v1695_v19, %v6813_v59  ;;  %v1729_v46 = vrot.slane %v1728_v37, 4  ;;  %v1757_v59 = vrot.slane %v1755_v28, 5  ;;  %1297 = vst.msk [vmem:[#allocation3 + $0x3c] sm:$0xf] %vm510_vm0, %v1265_v8  ;;  %v1893_v53 = vld [vmem:[#allocation2 + $0x14] sm:$0x1]  ;;  %v1997_v51 = vsel %vm6880_vm13, %v5500_v62, %v1996_v38 }
  0xbb   : > { %1811 = vrot.lane.b32.xlu2 %v1700_v36, %s6058_s15  ;;  %v1724_v40 = vsel %vm6205_vm8, %v1719_v34, %v1723_v26  ;;  %1294 = vst.msk [vmem:[#allocation3 + $0x18] sm:$0xf] %vm510_vm0, %v1262_v39  ;;  %v2033_v33 = vrot.slane %v2031_v9, 4  ;;  %v2034_v47 = vrot.slane %v1908_v27, 5  ;;  %v1998_v26 = vrot.slane %v1996_v38, 4 }
  0xbc   : > { %1815 = vrot.lane.b32.xlu1 %v1724_v40, %s6058_s15  ;;  %v1734_v22 = vsel %vm6205_vm8, %v1729_v46, %v1733_v63  ;;  %v1758_v45 = vsel %vm6205_vm8, %v1753_v13, %v1757_v59  ;;  %v1269_v6 = vld [vmem:[#allocation2 + $0x34] sm:$0xf]  ;;  %v1268_v24 = vld [vmem:[#allocation2 + $0x30] sm:$0xf]  ;;  %v2005_v61 = vrot.slane %v2003_v55, 4  ;;  %v2006_v19 = vrot.slane %v1896_v16, 5 }
  0xbd   : > { %2107 = vrot.lane.b32.xlu0 %v2004_v14, %s6059_s20  ;;  %v1999_v14 = vrot.slane %v1893_v53, 5  ;;  %v2035_v23 = vsel %vm6880_vm13, %v2033_v33, %v2034_v47  ;;  %1301 = vst.msk [vmem:[#allocation3 + $0x6c] sm:$0xf] %vm510_vm0, %v1269_v6  ;;  %v1263_v37 = vld [vmem:[#allocation2 + $0x10] sm:$0xf]  ;;  %v2026_v39 = vrot.slane %v2024_v20, 4 }
  0xbe   : > { %v1912_v36 = vld [vmem:[#allocation2 + $0x60] sm:$0xe]  ;;  %v6965_v54 = vld [vmem:[#allocation2 + $0x64] sm:$0xf]  ;;  %1300 = vst.msk [vmem:[#allocation3 + $0x60] sm:$0xf] %vm510_vm0, %v1268_v24  ;;  %v2007_v55 = vsel %vm6880_vm13, %v2005_v61, %v2006_v19 }
  0xbf   : > { %v2000_v34 = vsel %vm6880_vm13, %v1998_v26, %v1999_v14  ;;  %v1897_v32 = vld [vmem:[#allocation2 + $0x24] sm:$0xe]  ;;  %v1900_v28 = vld [vmem:[#allocation2 + $0x30] sm:$0xe]  ;;  %1295 = vst.msk [vmem:[#allocation3 + $0x24] sm:$0xf] %vm510_vm0, %v1263_v37 }
  0xc0   : > { %v1901_v31 = vld [vmem:[#allocation2 + $0x34] sm:$0xf]  ;;  %v5507_v40 = vrot.slane %v1912_v36, 9  ;;  %v2045_v46 = vrot.slane %v6965_v54, 5  ;;  %v5502_v63 = vrot.slane %v1897_v32, 9 }
  0xc1   : > { %v1768_v56 = vpop.permute.xlu2 %1767  ;;  %v6976_v48 = vld [vmem:[#allocation2 + $0x70] sm:$0xf]  ;;  %v1272_v13 = vld [vmem:[#allocation2 + $0x48] sm:$0xf]  ;;  %v1271_v59 = vld [vmem:[#allocation2 + $0x40] sm:$0xf] }
  0xc2   : > { %1860 = vst.msk [vmem:[#allocation3 + $0x30] sm:$0xf] %vm1855_vm14, %v1768_v56  ;;  %v5503_v56 = vrot.slane %v1900_v28, 9  ;;  %v2052_v44 = vrot.slane %v6976_v48, 5  ;;  %v2011_v4 = vsel %vm6880_vm13, %v5502_v63, %v2010_v41  ;;  %v1917_v25 = vld [vmem:[#allocation2 + $0x74] sm:$0x1] }
  0xc3   : > { %1817 = vrot.lane.b32.xlu2 %v1734_v22, %s6058_s15  ;;  %v2046_v22 = vsel %vm6880_vm13, %v5507_v40, %v2045_v46  ;;  %1304 = vst.msk [vmem:[#allocation3 + $0x90] sm:$0xf] %vm510_vm0, %v1272_v13  ;;  %v1902_v52 = vld [vmem:[#allocation2 + $0x38] sm:$0x1]  ;;  %v1905_v60 = vld [vmem:[#allocation2 + $0x44] sm:$0x1] }
  0xc4   : > { %1821 = vrot.lane.b32.xlu1 %v1758_v45, %s6058_s15  ;;  %v1267_v45 = vld [vmem:[#allocation2 + $0x28] sm:$0xf]  ;;  %1303 = vst.msk [vmem:[#allocation3 + $0x84] sm:$0xf] %vm510_vm0, %v1271_v59  ;;  %v2054_v41 = vrot.slane %v2052_v44, 4  ;;  %v2055_v18 = vrot.slane %v1917_v25, 5 }
  0xc5   : > { %2113 = vrot.lane.b32.xlu0 %v2014_v29, %s6059_s20  ;;  %v2017_v29 = vrot.slane %v1901_v31, 5  ;;  %1299 = vst.msk [vmem:[#allocation3 + $0x54] sm:$0xf] %vm510_vm0, %v1267_v45  ;;  %v2020_v62 = vrot.slane %v1902_v52, 5  ;;  %v1270_v27 = vld [vmem:[#allocation2 + $0x3c] sm:$0xf] }
  0xc6   : > { %v2056_v53 = vsel %vm6880_vm13, %v2054_v41, %v2055_v18  ;;  %v7009_v16 = vld [vmem:[#allocation2 + $0x88] sm:$0xf]  ;;  %1302 = vst.msk [vmem:[#allocation3 + $0x78] sm:$0xf] %vm510_vm0, %v1270_v27  ;;  %v1909_v47 = vld [vmem:[#allocation2 + $0x54] sm:$0xe] }
  0xc7   : > { %v2018_v30 = vsel %vm6880_vm13, %v5503_v56, %v2017_v29  ;;  %v2019_v8 = vrot.slane %v2017_v29, 4  ;;  %v1906_v33 = vld [vmem:[#allocation2 + $0x48] sm:$0xe]  ;;  %v1910_v14 = vld [vmem:[#allocation2 + $0x58] sm:$0xf]  ;;  %v2066_v6 = vrot.slane %v7009_v16, 5 }
  0xc8   : > { %v1760_v42 = vpop.permute.xlu0 %1759  ;;  %v5505_v24 = vrot.slane %v1906_v33, 9  ;;  %v7020_v61 = vld [vmem:[#allocation2 + $0x94] sm:$0xf]  ;;  %v5506_v37 = vrot.slane %v1909_v47, 9  ;;  %v1273_v36 = vld [vmem:[#allocation2 + $0x4c] sm:$0xf] }
  0xc9   : > { %1856 = vst.msk [vmem:[#allocation3] sm:$0xf] %vm1855_vm14, %v1760_v42  ;;  %v1770_v11 = vpop.permute.xlu2 %1769  ;;  %v1911_v31 = vld [vmem:[#allocation2 + $0x5c] sm:$0x1]  ;;  %v1914_v35 = vld [vmem:[#allocation2 + $0x68] sm:$0x1] }
  0xca   : > { %1861 = vst.msk [vmem:[#allocation3 + $0x3c] sm:$0xf] %vm1855_vm14, %v1770_v11  ;;  %v1275_v11 = vld [vmem:[#allocation2 + $0x58] sm:$0xf]  ;;  %v2032_v28 = vsel %vm6880_vm13, %v5505_v24, %v2031_v9  ;;  %v2041_v56 = vrot.slane %v1911_v31, 5  ;;  %v2047_v45 = vrot.slane %v2045_v46, 4 }
  0xcb   : > { %2099 = vrot.lane.b32.xlu2 %v1990_v7, %s6059_s20  ;;  %v2027_v7 = vrot.slane %v1905_v60, 5  ;;  %1307 = vst.msk [vmem:[#allocation3 + $0xb4] sm:$0xf] %vm510_vm0, %v1275_v11  ;;  %v1276_v25 = vld [vmem:[#allocation2 + $0x60] sm:$0xf] }
  0xcc   : > { %2103 = vrot.lane.b32.xlu1 %v1997_v51, %s6059_s20  ;;  %v2021_v51 = vsel %vm6880_vm13, %v2019_v8, %v2020_v62  ;;  %1305 = vst.msk [vmem:[#allocation3 + $0x9c] sm:$0xf] %vm510_vm0, %v1273_v36  ;;  %v7053_v60 = vld [vmem:[#allocation2 + $0x10] sm:$0xf]  ;;  %v1915_v41 = vld [vmem:[#allocation2 + $0x6c] sm:$0xe] }
  0xcd   : > { %2119 = vrot.lane.b32.xlu0 %v2025_v15, %s6059_s20  ;;  %v1764_v0 = vpop.permute.xlu1 %1763  ;;  %v1274_v15 = vld [vmem:[#allocation2 + $0x54] sm:$0xf]  ;;  %v2028_v20 = vsel %vm6880_vm13, %v2026_v39, %v2027_v7  ;;  %1308 = vst.msk [vmem:[#allocation3 + $0xc0] sm:$0xf] %vm510_vm0, %v1276_v25  ;;  %v1918_v46 = vld [vmem:[#allocation2 + $0x78] sm:$0xe] }
  0xce   : > { %1858 = vst.msk [vmem:[#allocation3 + $0x18] sm:$0xf] %vm1855_vm14, %v1764_v0  ;;  %v1921_v0 = vld [vmem:[#allocation2 + $0x84] sm:$0xe]  ;;  %v1919_v18 = vld [vmem:[#allocation2 + $0x7c] sm:$0xf] }
  0xcf   : > { %1306 = vst.msk [vmem:[#allocation3 + $0xa8] sm:$0xf] %vm510_vm0, %v1274_v15  ;;  %v3015_v62 = vrot.slane %v7053_v60, 5  ;;  %v3446_v11 = vld [vmem:[#allocation2 + $0x18] sm:$0xf]  ;;  %v5509_v27 = vrot.slane %v1918_v46, 9 }
  0xd0   : > { %v1772_v49 = vpop.permute.xlu0 %1771  ;;  %v1284_v39 = vld [vmem:[#allocation2 + $0x90] sm:$0xf]  ;;  %v1283_v7 = vld [vmem:[#allocation2 + $0x88] sm:$0xf]  ;;  %v3495_v33 = vshrl.u32 %v3446_v11, 16 }
  0xd1   : > { %1862 = vst.msk [vmem:[#allocation3 + $0x48] sm:$0xf] %vm1855_vm14, %v1772_v49  ;;  %v5510_v49 = vrot.slane %v1921_v0, 9  ;;  %v1920_v47 = vld [vmem:[#allocation2 + $0x80] sm:$0x1] }
  0xd2   : > { %v1776_v57 = vpop.permute.xlu2 %1775  ;;  %1316 = vst.msk [vmem:[#allocation3 + $0x120] sm:$0xf] %vm510_vm0, %v1284_v39  ;;  %v3497_v48 = vrot.slane %v3495_v33, 4  ;;  %v2922_v46 = vld [vmem:[#allocation2 + $0x20] sm:$0x1] }
  0xd3   : > { %1864 = vst.msk [vmem:[#allocation3 + $0x60] sm:$0xf] %vm1855_vm14, %v1776_v57  ;;  %2105 = vrot.lane.b32.xlu2 %v2000_v34, %s6059_s20  ;;  %v1277_v57 = vld [vmem:[#allocation2 + $0x64] sm:$0xf]  ;;  %v2038_v34 = vrot.slane %v1910_v14, 5  ;;  %v2067_v32 = vsel %vm6880_vm13, %v5510_v49, %v2066_v6 }
  0xd4   : > { %2109 = vrot.lane.b32.xlu1 %v2007_v55, %s6059_s20  ;;  %v2073_v55 = vrot.slane %v7020_v61, 5  ;;  %1309 = vst.msk [vmem:[#allocation3 + $0xcc] sm:$0xf] %vm510_vm0, %v1277_v57  ;;  %v1923_v49 = vld [vmem:[#allocation2 + $0x8c] sm:$0x1] }
  0xd5   : > { %2125 = vrot.lane.b32.xlu0 %v2035_v23, %s6059_s20  ;;  %v1766_v17 = vpop.permute.xlu1 %1765  ;;  %v1278_v23 = vld [vmem:[#allocation2 + $0x6c] sm:$0xf]  ;;  %v2039_v63 = vsel %vm6880_vm13, %v5506_v37, %v2038_v34  ;;  %v2040_v59 = vrot.slane %v2038_v34, 4  ;;  %1315 = vst.msk [vmem:[#allocation3 + $0x114] sm:$0xf] %vm510_vm0, %v1283_v7  ;;  %v2068_v34 = vrot.slane %v2066_v6, 4 }
  0xd6   : > { %1859 = vst.msk [vmem:[#allocation3 + $0x24] sm:$0xf] %vm1855_vm14, %v1766_v17  ;;  %v1926_v17 = vld [vmem:[#allocation2 + $0x98] sm:$0x1]  ;;  %v2075_v9 = vrot.slane %v2073_v55, 4  ;;  %v2069_v36 = vrot.slane %v1923_v49, 5 }
  0xd7   : > { %1310 = vst.msk [vmem:[#allocation3 + $0xd8] sm:$0xf] %vm510_vm0, %v1278_v23  ;;  %v2076_v13 = vrot.slane %v1926_v17, 5  ;;  %v7080_v23 = vld [vmem:[#allocation2 + $0x1c] sm:$0xf] }
  0xd8   : > { %v1778_v43 = vpop.permute.xlu0 %1777  ;;  %v1287_v57 = vld [vmem:[#allocation2 + $0xa0] sm:$0xf]  ;;  %v1286_v37 = vld [vmem:[#allocation2 + $0x9c] sm:$0xf]  ;;  %v3504_v31 = vshll.u32 %v7080_v23, 16  ;;  %v2070_v16 = vsel %vm6880_vm13, %v2068_v34, %v2069_v36 }
  0xd9   : > { %1865 = vst.msk [vmem:[#allocation3 + $0x6c] sm:$0xf] %vm1855_vm14, %v1778_v43  ;;  %v2077_v52 = vsel %vm6880_vm13, %v2075_v9, %v2076_v13  ;;  %v1927_v6 = vld [vmem:[#allocation2 + $0x9c] sm:$0xe]  ;;  %v1928_v13 = vld [vmem:[#allocation2 + $0xa0] sm:$0xf] }
  0xda   : > { %v1782_v10 = vpop.permute.xlu2 %1781  ;;  %1319 = vst.msk [vmem:[#allocation3 + $0x144] sm:$0xf] %vm510_vm0, %v1287_v57  ;;  %v2080_v25 = vrot.slane %v1928_v13, 5  ;;  %v3450_v39 = vld [vmem:[#allocation2 + $0x28] sm:$0xf] }
  0xdb   : > { %1867 = vst.msk [vmem:[#allocation3 + $0x84] sm:$0xf] %vm1855_vm14, %v1782_v10  ;;  %2111 = vrot.lane.b32.xlu2 %v2011_v4, %s6059_s20  ;;  %v1280_v10 = vld [vmem:[#allocation2 + $0x78] sm:$0xf]  ;;  %v2048_v4 = vrot.slane %v1914_v35, 5  ;;  %v3528_v33 = vshll.u32 %v3450_v39, 16 }
  0xdc   : > { %2115 = vrot.lane.b32.xlu1 %v2018_v30, %s6059_s20  ;;  %v2042_v30 = vsel %vm6880_vm13, %v2040_v59, %v2041_v56  ;;  %1312 = vst.msk [vmem:[#allocation3 + $0xf0] sm:$0xf] %vm510_vm0, %v1280_v10  ;;  %v1924_v35 = vld [vmem:[#allocation2 + $0x90] sm:$0xe]  ;;  %v7097_v56 = vrot.slane %v3504_v31, 5 }
  0xdd   : > { %2131 = vrot.lane.b32.xlu0 %v2046_v22, %s6059_s20  ;;  %v1774_v42 = vpop.permute.xlu1 %1773  ;;  %v1281_v22 = vld [vmem:[#allocation2 + $0x7c] sm:$0xf]  ;;  %v2049_v54 = vsel %vm6880_vm13, %v2047_v45, %v2048_v4  ;;  %1318 = vst.msk [vmem:[#allocation3 + $0x138] sm:$0xf] %vm510_vm0, %v1286_v37  ;;  %v1290_v10 = vld [vmem:[#allocation2 + $0xb4] sm:$0xf] }
  0xde   : > { %1863 = vst.msk [vmem:[#allocation3 + $0x54] sm:$0xf] %vm1855_vm14, %v1774_v42  ;;  %v2917_v42 = vld [vmem:[#allocation2 + $0xc] sm:$0xe]  ;;  %v5512_v4 = vrot.slane %v1927_v6, 9 }
  0xdf   : > { %1313 = vst.msk [vmem:[#allocation3 + $0xfc] sm:$0xf] %vm510_vm0, %v1281_v22  ;;  %v5515_v8 = vrot.slane %v2917_v42, 9  ;;  %v7100_v22 = vld [vmem:[#allocation2 + $0x1c] sm:$0xf] }
  0xe0   : > { %v1784_v38 = vpop.permute.xlu0 %1783  ;;  %v1289_v45 = vld [vmem:[#allocation2 + $0xac] sm:$0xf]  ;;  %1322 = vst.msk [vmem:[#allocation3 + $0x168] sm:$0xf] %vm510_vm0, %v1290_v10  ;;  %v1288_v7 = vld [vmem:[#allocation2 + $0xa8] sm:$0xf] }
  0xe1   : > { %1868 = vst.msk [vmem:[#allocation3 + $0x90] sm:$0xf] %vm1855_vm14, %v1784_v38  ;;  %v5508_v38 = vrot.slane %v1915_v41, 9  ;;  %v3016_v0 = vsel %vm6880_vm13, %v5515_v8, %v3015_v62  ;;  %v3022_v41 = vrot.slane %v7100_v22, 5  ;;  %v2081_v8 = vsel %vm6880_vm13, %v5512_v4, %v2080_v25  ;;  %v3254_v34 = vld [vmem:[#allocation2 + $0x18] sm:$0xf] }
  0xe2   : > { %1321 = vst.msk [vmem:[#allocation3 + $0x15c] sm:$0xf] %vm510_vm0, %v1289_v45  ;;  %v2228_v36 = vld [vmem:[#allocation2 + $0xc] sm:$0xf]  ;;  %v2920_v13 = vld [vmem:[#allocation2 + $0x18] sm:$0xe] }
  0xe3   : > { %2117 = vrot.lane.b32.xlu2 %v2021_v51, %s6059_s20  ;;  %v1279_v51 = vld [vmem:[#allocation2 + $0x70] sm:$0xf]  ;;  %v3024_v61 = vrot.slane %v3022_v41, 4  ;;  %1320 = vst.msk [vmem:[#allocation3 + $0x150] sm:$0xf] %vm510_vm0, %v1288_v7 }
  0xe4   : > { %v1788_v58 = vpop.permute.xlu2 %1787  ;;  %2121 = vrot.lane.b32.xlu1 %v2028_v20, %s6059_s20  ;;  %v2053_v20 = vsel %vm6880_vm13, %v5508_v38, %v2052_v44  ;;  %1311 = vst.msk [vmem:[#allocation3 + $0xe4] sm:$0xf] %vm510_vm0, %v1279_v51  ;;  %v2062_v44 = vrot.slane %v1920_v47, 5  ;;  %v2919_v38 = vld [vmem:[#allocation2 + $0x14] sm:$0x1]  ;;  %v3508_v47 = vshrl.u32 %v7080_v23, 16 }
  0xe5   : > { %2137 = vrot.lane.b32.xlu0 %v2056_v53, %s6059_s20  ;;  %1870 = vst.msk [vmem:[#allocation3 + $0xa8] sm:$0xf] %vm1855_vm14, %v1788_v58  ;;  %v1780_v26 = vpop.permute.xlu1 %1779  ;;  %v2059_v53 = vrot.slane %v1919_v18, 5  ;;  %v3498_v58 = vshll.u32 %v3446_v11, 16  ;;  %v1929_v18 = vld [vmem:[#allocation2 + $0xa4] sm:$0x1] }
  0xe6   : > { %1866 = vst.msk [vmem:[#allocation3 + $0x78] sm:$0xf] %vm1855_vm14, %v1780_v26  ;;  %v3025_v11 = vrot.slane %v2922_v46, 5  ;;  %v3449_v45 = vld [vmem:[#allocation2 + $0x24] sm:$0xf] }
  0xe7   : > { %v2060_v26 = vsel %vm6880_vm13, %v5509_v27, %v2059_v53  ;;  %v3500_v24 = vrot.slane %v3498_v58, 5  ;;  %v3017_v27 = vrot.slane %v3015_v62, 4  ;;  %v3532_v58 = vshrl.u32 %v3450_v39, 16  ;;  %v3258_v4 = vld [vmem:[#allocation2 + $0x30] sm:$0xf] }
  0xe8   : > { %v1790_v19 = vpop.permute.xlu0 %1789  ;;  %v7135_v62 = vrot.slane %v3528_v33, 5 }
  0xe9   : > { %1871 = vst.msk [vmem:[#allocation3 + $0xb4] sm:$0xf] %vm1855_vm14, %v1790_v19  ;;  %v2061_v19 = vrot.slane %v2059_v53, 4  ;;  %v3501_v17 = vor.u32 %v3500_v24, %v3497_v48  ;;  %v3018_v53 = vrot.slane %v2919_v38, 5  ;;  %v1291_v48 = vld [vmem:[#allocation2 + $0xb8] sm:$0xf] }
  0xea   : > { %v2230_v24 = vld [vmem:[#allocation2 + $0x18] sm:$0xf]  ;;  %1323 = vst.msk [vmem:[#allocation3 + $0x174] sm:$0xf] %vm510_vm0, %v1291_v48  ;;  %v2233_v38 = vld [vmem:[#allocation2 + $0x28] sm:$0xf] }
  0xeb   : > { %2123 = vrot.lane.b32.xlu2 %v2032_v28, %s6059_s20  ;;  %v3502_v59 = vrot.slane %v3501_v17, 4  ;;  %v3019_v60 = vsel %vm6880_vm13, %v3017_v27, %v3018_v53  ;;  %v7170_v27 = vld [vmem:[#allocation2 + $0x34] sm:$0xf] }
  0xec   : > { %v1794_v40 = vpop.permute.xlu2 %1793  ;;  %2127 = vrot.lane.b32.xlu1 %v2039_v63, %s6059_s20  ;;  %v2063_v63 = vsel %vm6880_vm13, %v2061_v19, %v2062_v44  ;;  %v3510_v19 = vrot.slane %v3508_v47, 4  ;;  %v3448_v44 = vld [vmem:[#allocation2 + $0x20] sm:$0x1]  ;;  %v3452_v47 = vld [vmem:[#allocation2 + $0x30] sm:$0xf] }
  0xed   : > { %2143 = vrot.lane.b32.xlu0 %v2067_v32, %s6059_s20  ;;  %1873 = vst.msk [vmem:[#allocation3 + $0xcc] sm:$0xf] %vm1855_vm14, %v1794_v40  ;;  %v1786_v43 = vpop.permute.xlu1 %1785  ;;  %v3255_v32 = vld [vmem:[#allocation2 + $0x1c] sm:$0xf]  ;;  %v1282_v40 = vld [vmem:[#allocation2 + $0x84] sm:$0xf] }
  0xee   : > { %1869 = vst.msk [vmem:[#allocation3 + $0x9c] sm:$0xf] %vm1855_vm14, %v1786_v43  ;;  %v3543_v48 = vshrl.u32 %v3452_v47, 16 }
  0xef   : > { %1314 = vst.msk [vmem:[#allocation3 + $0x108] sm:$0xf] %vm510_vm0, %v1282_v40 }
  0xf0   : > { %v1796_v29 = vpop.permute.xlu0 %1795 }
  0xf1   : > { %1874 = vst.msk [vmem:[#allocation3 + $0xd8] sm:$0xf] %vm1855_vm14, %v1796_v29  ;;  %v5511_v29 = vrot.slane %v1924_v35, 9 }
  0xf3   : > { %2129 = vrot.lane.b32.xlu2 %v2042_v30, %s6059_s20  ;;  %v3507_v30 = vsel %vm6205_vm8, %v3502_v59, %v7097_v56 }
  0xf4   : > { %2133 = vrot.lane.b32.xlu1 %v2049_v54, %s6059_s20  ;;  %v2074_v54 = vsel %vm6880_vm13, %v5511_v29, %v2073_v55  ;;  %v2082_v55 = vrot.slane %v2080_v25, 4  ;;  %v5516_v29 = vrot.slane %v2920_v13, 9 }
  0xf5   : > { %2149 = vrot.lane.b32.xlu0 %v2077_v52, %s6059_s20  ;;  %v1285_v52 = vld [vmem:[#allocation2 + $0x94] sm:$0xf] }
  0xf6   : > { %1317 = vst.msk [vmem:[#allocation3 + $0x12c] sm:$0xf] %vm510_vm0, %v1285_v52  ;;  %v3023_v25 = vsel %vm6880_vm13, %v5516_v29, %v3022_v41  ;;  %v3519_v52 = vshrl.u32 %v3449_v45, 16  ;;  %v3257_v41 = vld [vmem:[#allocation2 + $0x28] sm:$0xf] }
  0xf8   : > { %v1802_v15 = vpop.permute.xlu0 %1801  ;;  %v3521_v46 = vrot.slane %v3519_v52, 4 }
  0xf9   : > { %1877 = vst.msk [vmem:[#allocation3 + $0xfc] sm:$0xf] %vm1855_vm14, %v1802_v15  ;;  %v2083_v15 = vrot.slane %v1929_v18, 5 }
  0xfb   : > { %2135 = vrot.lane.b32.xlu2 %v2053_v20, %s6059_s20  ;;  %v2084_v20 = vsel %vm6880_vm13, %v2082_v55, %v2083_v15  ;;  %v2923_v55 = vld [vmem:[#allocation2 + $0x24] sm:$0xe]  ;;  %v2924_v15 = vld [vmem:[#allocation2 + $0x28] sm:$0xf] }
  0xfc   : > { %2139 = vrot.lane.b32.xlu1 %v2060_v26, %s6059_s20  ;;  %v3534_v26 = vrot.slane %v3532_v58, 4  ;;  %v2252_v58 = vld [vmem:[#allocation2 + $0x9c] sm:$0xf] }
  0xfd   : > { %3125 = vrot.lane.b32.xlu0 %v3016_v0, %s6058_s15  ;;  %v1792_v14 = vpop.permute.xlu1 %1791  ;;  %v3026_v0 = vsel %vm6880_vm13, %v3024_v61, %v3025_v11  ;;  %v2231_v11 = vld [vmem:[#allocation2 + $0x1c] sm:$0xf] }
  0xfe   : > { %1872 = vst.msk [vmem:[#allocation3 + $0xc0] sm:$0xf] %vm1855_vm14, %v1792_v14  ;;  %v3451_v14 = vld [vmem:[#allocation2 + $0x2c] sm:$0x1]  ;;  %v3535_v23 = vor.u32 %v3534_v26, %v7135_v62  ;;  %v2928_v26 = vld [vmem:[#allocation2 + $0x38] sm:$0x1] }
  0xff   : > { %v3538_v57 = vshll.u32 %v3451_v14, 16  ;;  %v2925_v14 = vld [vmem:[#allocation2 + $0x2c] sm:$0x1] }
 0x100   : > { %v3536_v17 = vrot.slane %v3535_v23, 4 }
 0x101   : > { %v3540_v31 = vrot.slane %v3538_v57, 5 }
 0x102   : > { %v1800_v28 = vpop.permute.xlu2 %1799 }
 0x103   : > { %1876 = vst.msk [vmem:[#allocation3 + $0xf0] sm:$0xf] %vm1855_vm14, %v1800_v28  ;;  %v1808_v43 = vpop.permute.xlu0 %1807  ;;  %2141 = vrot.lane.b32.xlu2 %v2063_v63, %s6059_s20  ;;  %v3514_v28 = vshll.u32 %v3448_v44, 16  ;;  %v3039_v44 = vrot.slane %v2928_v26, 5 }
 0x104   : > { %1880 = vst.msk [vmem:[#allocation3 + $0x120] sm:$0xf] %vm1855_vm14, %v1808_v43  ;;  %2145 = vrot.lane.b32.xlu1 %v2070_v16, %s6059_s20  ;;  %v3541_v16 = vsel %vm6205_vm8, %v3536_v17, %v3540_v31  ;;  %v3453_v31 = vld [vmem:[#allocation2 + $0x34] sm:$0xf] }
 0x105   : > { %3320 = vrot.lane.b32.xlu0 %v3255_v32, %s6059_s20  ;;  %v1798_v9 = vpop.permute.xlu1 %1797  ;;  %v3511_v32 = vor.u32 %v3510_v19, %v7097_v56  ;;  %v3516_v35 = vrot.slane %v3514_v28, 5 }
 0x106   : > { %1875 = vst.msk [vmem:[#allocation3 + $0xe4] sm:$0xf] %vm1855_vm14, %v1798_v9  ;;  %v2229_v9 = vld [vmem:[#allocation2 + $0x10] sm:$0xf] }
 0x107   : > { %v3512_v43 = vrot.slane %v3511_v32, 4 }
 0x109   : > { %v3517_v59 = vsel %vm6205_vm8, %v3512_v43, %v3516_v35  ;;  %v3556_v35 = vshrl.u32 %v3453_v31, 16 }
 0x10a   : > { %v1806_v42 = vpop.permute.xlu2 %1805 }
 0x10b   : > { %1879 = vst.msk [vmem:[#allocation3 + $0x114] sm:$0xf] %vm1855_vm14, %v1806_v42  ;;  %2147 = vrot.lane.b32.xlu2 %v2074_v54, %s6059_s20  ;;  %v3256_v42 = vld [vmem:[#allocation2 + $0x24] sm:$0xf]  ;;  %v3558_v29 = vrot.slane %v3556_v35, 4  ;;  %v5889_v35 = vld [vmem:[%s8489_s5 + $0x38] sm:$0xff] }
 0x10c   : > { %2151 = vrot.lane.b32.xlu1 %v2081_v8, %s6059_s20  ;;  %4775 = vmatpush.bf16.msra.mxu0 %v5889_v35 }
 0x10d   : > { %3878 = vrot.lane.b32.xlu0 %v3507_v30, %s6060_s21  ;;  %v3522_v30 = vshll.u32 %v3449_v45, 16  ;;  %5979 = vmatpush.bf16.msra.mxu3 %v5889_v35 }
 0x10f   : > { %v3524_v18 = vrot.slane %v3522_v30, 5 }
 0x111   : > { %v1814_v51 = vpop.permute.xlu0 %1813  ;;  %v3525_v61 = vor.u32 %v3524_v18, %v3521_v46  ;;  %v2232_v18 = vld [vmem:[#allocation2 + $0x24] sm:$0xf] }
 0x112   : > { %1883 = vst.msk [vmem:[#allocation3 + $0x144] sm:$0xf] %vm1855_vm14, %v1814_v51  ;;  %v5517_v51 = vrot.slane %v2923_v55, 9 }
 0x113   : > { %2153 = vrot.lane.b32.xlu2 %v2084_v20, %s6059_s20  ;;  %v3526_v7 = vrot.slane %v3525_v61, 4  ;;  %v3036_v20 = vrot.slane %v7170_v27, 5 }
 0x114   : > { %3127 = vrot.lane.b32.xlu1 %v3019_v60, %s6058_s15 }
 0x115   : > { %3131 = vrot.lane.b32.xlu0 %v3026_v0, %s6058_s15  ;;  %v1812_v49 = vpop.permute.xlu2 %1811  ;;  %v3029_v0 = vrot.slane %v2924_v15, 5  ;;  %v3531_v60 = vsel %vm6205_vm8, %v3526_v7, %v7135_v62  ;;  %v3038_v19 = vrot.slane %v3036_v20, 4 }
 0x116   : > { %1882 = vst.msk [vmem:[#allocation3 + $0x138] sm:$0xf] %vm1855_vm14, %v1812_v49 }
 0x117   : > { %v3030_v49 = vsel %vm6880_vm13, %v5517_v51, %v3029_v0  ;;  %v3031_v57 = vrot.slane %v3029_v0, 4  ;;  %v3040_v17 = vsel %vm6880_vm13, %v3038_v19, %v3039_v44  ;;  %v2929_v51 = vld [vmem:[#allocation2 + $0x3c] sm:$0xe]  ;;  %v7212_v0 = vld [vmem:[#allocation2 + $0x40] sm:$0xf] }
 0x118   : > { %v3043_v26 = vrot.slane %v7212_v0, 5  ;;  %v2422_v44 = vld [vmem:[#allocation2 + $0x10] sm:$0xf] }
 0x119   : > { %v5884_v0 = vld [vmem:[%s8489_s5 + $0x10] sm:$0xff] }
 0x11b   : > { %v1804_v37 = vpop.permute.xlu1 %1803  ;;  %3318 = vrot.lane.b32.xlu2 %v3254_v34, %s6059_s20  ;;  %v3456_v34 = vld [vmem:[#allocation2 + $0x40] sm:$0xf] }
 0x11c   : > { %1878 = vst.msk [vmem:[#allocation3 + $0x108] sm:$0xf] %vm1855_vm14, %v1804_v37  ;;  %2292 = vrot.lane.b32.xlu1 %v2228_v36, %s6060_s21  ;;  %v3032_v37 = vrot.slane %v2925_v14, 5  ;;  %v3545_v36 = vrot.slane %v3543_v48, 4  ;;  %v3455_v48 = vld [vmem:[#allocation2 + $0x3c] sm:$0xf] }
 0x11d   : > { %2296 = vrot.lane.b32.xlu0 %v2230_v24, %s6060_s21  ;;  %v1818_v63 = vpop.permute.xlu2 %1817  ;;  %v3546_v24 = vshll.u32 %v3452_v47, 16  ;;  %v2253_v47 = vld [vmem:[#allocation2 + $0xa0] sm:$0xf] }
 0x11e   : > { %1885 = vst.msk [vmem:[#allocation3 + $0x15c] sm:$0xf] %vm1855_vm14, %v1818_v63  ;;  %v3580_v63 = vshrl.u32 %v3456_v34, 16  ;;  %v3033_v43 = vsel %vm6880_vm13, %v3031_v57, %v3032_v37 }
 0x11f   : > { %v1820_v40 = vpop.permute.xlu0 %1819  ;;  %v3548_v32 = vrot.slane %v3546_v24, 5  ;;  %v3458_v24 = vld [vmem:[#allocation2 + $0x48] sm:$0xf] }
 0x120   : > { %1886 = vst.msk [vmem:[#allocation3 + $0x168] sm:$0xf] %vm1855_vm14, %v1820_v40  ;;  %v3576_v40 = vshll.u32 %v3456_v34, 16 }
 0x122   : > { %v7196_v13 = vrot.slane %v3576_v40, 5  ;;  %v2479_v40 = vshll.u32 %v2422_v44, 16 }
 0x123   : > { %v1810_v6 = vpop.permute.xlu1 %1809  ;;  %2294 = vrot.lane.b32.xlu2 %v2229_v9, %s6060_s21  ;;  %v3552_v9 = vshll.u32 %v3453_v31, 16 }
 0x124   : > { %1881 = vst.msk [vmem:[#allocation3 + $0x12c] sm:$0xf] %vm1855_vm14, %v1810_v6  ;;  %3880 = vrot.lane.b32.xlu1 %v3517_v59, %s6060_s21  ;;  %v3549_v6 = vor.u32 %v3548_v32, %v3545_v36  ;;  %v3582_v59 = vrot.slane %v3580_v63, 4  ;;  %v3567_v36 = vshrl.u32 %v3455_v48, 16  ;;  %v3570_v32 = vshll.u32 %v3455_v48, 16 }
 0x125   : > { %3884 = vrot.lane.b32.xlu0 %v3541_v16, %s6060_s21  ;;  %v2100_v10 = vpop.permute.xlu2 %2099  ;;  %v3259_v16 = vld [vmem:[#allocation2 + $0x34] sm:$0xf]  ;;  %v3554_v52 = vrot.slane %v3552_v9, 5 }
 0x126   : > { %2196 = vst.msk [vmem:[#allocation3] sm:$0xf] %vm2195_vm15, %v2100_v10  ;;  %v3457_v10 = vld [vmem:[#allocation2 + $0x44] sm:$0x1] }
 0x127   : > { %v2102_v56 = vpop.permute.xlu0 %2101  ;;  %v3586_v46 = vshll.u32 %v3457_v10, 16  ;;  %v2481_v10 = vrot.slane %v2479_v40, 5 }
 0x128   : > { %2197 = vst.msk [vmem:[#allocation3 + $0xc] sm:$0xf] %vm2195_vm15, %v2102_v56 }
 0x129   : > { %v3588_v61 = vrot.slane %v3586_v46, 5 }
 0x12b   : > { %3129 = vrot.lane.b32.xlu2 %v3023_v25, %s6058_s15  ;;  %v3550_v25 = vrot.slane %v3549_v6, 4 }
 0x12c   : > { %3322 = vrot.lane.b32.xlu1 %v3256_v42, %s6059_s20  ;;  %v2234_v42 = vld [vmem:[#allocation2 + $0x30] sm:$0xf] }
 0x12d   : > { %3326 = vrot.lane.b32.xlu0 %v3258_v4, %s6059_s20  ;;  %v2106_v8 = vpop.permute.xlu2 %2105  ;;  %v3454_v4 = vld [vmem:[#allocation2 + $0x38] sm:$0x1] }
 0x12e   : > { %2199 = vst.msk [vmem:[#allocation3 + $0x24] sm:$0xf] %vm2195_vm15, %v2106_v8  ;;  %v1816_v22 = vpop.permute.xlu1 %1815  ;;  %v3559_v8 = vor.u32 %v3558_v29, %v3554_v52  ;;  %v7237_v29 = vld [vmem:[#allocation2 + $0x4c] sm:$0xf] }
 0x12f   : > { %v2108_v54 = vpop.permute.xlu0 %2107  ;;  %1884 = vst.msk [vmem:[#allocation3 + $0x150] sm:$0xf] %vm1855_vm14, %v1816_v22  ;;  %v3562_v22 = vshll.u32 %v3454_v4, 16 }
 0x130   : > { %2200 = vst.msk [vmem:[#allocation3 + $0x30] sm:$0xf] %vm2195_vm15, %v2108_v54  ;;  %v3583_v54 = vor.u32 %v3582_v59, %v7196_v13  ;;  %v3560_v55 = vrot.slane %v3559_v8, 4  ;;  %v3261_v8 = vld [vmem:[#allocation2 + $0x40] sm:$0xf] }
 0x131   : > { %v3564_v15 = vrot.slane %v3562_v22, 5 }
 0x133   : > { %3324 = vrot.lane.b32.xlu2 %v3257_v41, %s6059_s20  ;;  %v3584_v41 = vrot.slane %v3583_v54, 4  ;;  %v3263_v54 = vld [vmem:[#allocation2 + $0x4c] sm:$0xf] }
 0x134   : > { %2298 = vrot.lane.b32.xlu1 %v2231_v11, %s6060_s21 }
 0x135   : > { %2302 = vrot.lane.b32.xlu0 %v2233_v38, %s6060_s21  ;;  %v2112_v53 = vpop.permute.xlu2 %2111  ;;  %v3555_v38 = vsel %vm6205_vm8, %v3550_v25, %v3554_v52  ;;  %v2483_v25 = vshrl.u32 %v2422_v44, 16  ;;  %v5888_v52 = vld [vmem:[%s8489_s5 + $0x30] sm:$0xff] }
 0x136   : > { %2202 = vst.msk [vmem:[#allocation3 + $0x48] sm:$0xf] %vm2195_vm15, %v2112_v53  ;;  %v1822_v33 = vpop.permute.xlu1 %1821  ;;  %v3589_v53 = vsel %vm6205_vm8, %v3584_v41, %v3588_v61  ;;  %4776 = vmatpush.bf16.msra.mxu0 %v5888_v52  ;;  %5980 = vmatpush.bf16.msra.mxu3 %v5888_v52  ;;  %v7256_v41 = vld [vmem:[%s8489_s5 + $0x78] sm:$0xff]  ;;  %v7328_v52 = vld [vmem:[#allocation2 + $0x4c] sm:$0xf] }
 0x137   : > { %v2114_v39 = vpop.permute.xlu0 %2113  ;;  %1887 = vst.msk [vmem:[#allocation3 + $0x174] sm:$0xf] %vm1855_vm14, %v1822_v33  ;;  %v3565_v33 = vsel %vm6205_vm8, %v3560_v55, %v3564_v15  ;;  %v2485_v61 = vrot.slane %v2483_v25, 4  ;;  %4864 = vmatpush.bf16.msra.mxu1 %v7256_v41  ;;  %v2423_v55 = vld [vmem:[#allocation2 + $0x14] sm:$0x1] }
 0x138   : > { %2203 = vst.msk [vmem:[#allocation3 + $0x54] sm:$0xf] %vm2195_vm15, %v2114_v39  ;;  %v2255_v25 = vld [vmem:[#allocation2 + $0xac] sm:$0xf] }
 0x13b   : > { %3882 = vrot.lane.b32.xlu2 %v3531_v60, %s6060_s21  ;;  %v5519_v60 = vrot.slane %v2929_v51, 9 }
 0x13c   : > { %3133 = vrot.lane.b32.xlu1 %v3030_v49, %s6058_s15 }
 0x13d   : > { %2340 = vrot.lane.b32.xlu0 %v2252_v58, %s6060_s21  ;;  %v2118_v62 = vpop.permute.xlu2 %2117  ;;  %v2926_v58 = vld [vmem:[#allocation2 + $0x30] sm:$0xe]  ;;  %v3044_v57 = vsel %vm6880_vm13, %v5519_v60, %v3043_v26 }
 0x13e   : > { %2205 = vst.msk [vmem:[#allocation3 + $0x6c] sm:$0xf] %vm2195_vm15, %v2118_v62  ;;  %v2104_v28 = vpop.permute.xlu1 %2103  ;;  %v5518_v49 = vrot.slane %v2926_v58, 9  ;;  %v7263_v58 = vld [vmem:[#allocation2 + $0xac] sm:$0xf] }
 0x13f   : > { %v2120_v23 = vpop.permute.xlu0 %2119  ;;  %2198 = vst.msk [vmem:[#allocation3 + $0x18] sm:$0xf] %vm2195_vm15, %v2104_v28  ;;  %v3591_v28 = vshrl.u32 %v3458_v24, 16 }
 0x140   : > { %2206 = vst.msk [vmem:[#allocation3 + $0x78] sm:$0xf] %vm2195_vm15, %v2120_v23  ;;  %v2421_v23 = vld [vmem:[#allocation2 + $0xc] sm:$0xf]  ;;  %v3037_v31 = vsel %vm6880_vm13, %v5518_v49, %v3036_v20  ;;  %v3572_v20 = vrot.slane %v3570_v32, 5  ;;  %v7273_v49 = vld [vmem:[%s8489_s5 + $0x70] sm:$0xff] }
 0x141   : > { %v2470_v37 = vshrl.u32 %v2421_v23, 16  ;;  %v2473_v34 = vshll.u32 %v2421_v23, 16  ;;  %v3593_v9 = vrot.slane %v3591_v28, 4  ;;  %4865 = vmatpush.bf16.msra.mxu1 %v7273_v49  ;;  %v1932_v28 = vld [vmem:[#allocation2 + $0xb0] sm:$0x1] }
 0x143   : > { %3135 = vrot.lane.b32.xlu2 %v3033_v43, %s6058_s15  ;;  %v2472_v63 = vrot.slane %v2470_v37, 4  ;;  %v2475_v43 = vrot.slane %v2473_v34, 5  ;;  %v7279_v37 = vld [vmem:[#allocation2 + $0x44] sm:$0x1]  ;;  %v2087_v34 = vrot.slane %v7263_v58, 5 }
 0x144   : > { %3328 = vrot.lane.b32.xlu1 %v3259_v16, %s6059_s20  ;;  %v3260_v16 = vld [vmem:[#allocation2 + $0x3c] sm:$0xf]  ;;  %v2427_v58 = vld [vmem:[#allocation2 + $0x24] sm:$0xf] }
 0x145   : > { %3139 = vrot.lane.b32.xlu0 %v3040_v17, %s6058_s15  ;;  %v2124_v45 = vpop.permute.xlu2 %2123  ;;  %v3594_v17 = vshll.u32 %v3458_v24, 16  ;;  %v2476_v6 = vor.u32 %v2475_v43, %v2472_v63  ;;  %v5885_v63 = vld [vmem:[%s8489_s5 + $0x18] sm:$0xff]  ;;  %v7296_v43 = vld [vmem:[%s8489_s5 + $0x68] sm:$0xff] }
 0x146   : > { %2208 = vst.msk [vmem:[#allocation3 + $0x90] sm:$0xf] %vm2195_vm15, %v2124_v45  ;;  %v2110_v30 = vpop.permute.xlu1 %2109  ;;  %4866 = vmatpush.bf16.msra.mxu1 %v7296_v43 }
 0x147   : > { %v2126_v56 = vpop.permute.xlu0 %2125  ;;  %2201 = vst.msk [vmem:[#allocation3 + $0x3c] sm:$0xf] %vm2195_vm15, %v2110_v30  ;;  %v3596_v59 = vrot.slane %v3594_v17, 5  ;;  %v2477_v45 = vrot.slane %v2476_v6, 4 }
 0x148   : > { %2209 = vst.msk [vmem:[#allocation3 + $0x9c] sm:$0xf] %vm2195_vm15, %v2126_v56  ;;  %v3569_v56 = vrot.slane %v3567_v36, 4 }
 0x149   : > { %v2482_v30 = vsel %vm6205_vm8, %v2477_v45, %v2481_v10  ;;  %v3597_v46 = vor.u32 %v3596_v59, %v3593_v9  ;;  %v2089_v9 = vrot.slane %v2087_v34, 4  ;;  %v2090_v59 = vrot.slane %v1932_v28, 5  ;;  %v7317_v45 = vld [vmem:[#allocation2 + $0x48] sm:$0xe] }
 0x14a   : > { %2885 = vst.msk [vmem:[#allocation3 + $0x4] sm:$0xf] %vm510_vm0, %v2482_v30  ;;  %v3573_v22 = vor.u32 %v3572_v20, %v3569_v56  ;;  %v3046_v56 = vrot.slane %v7279_v37, 5  ;;  %v2425_v30 = vld [vmem:[#allocation2 + $0x1c] sm:$0xf] }
 0x14b   : > { %2300 = vrot.lane.b32.xlu2 %v2232_v18, %s6060_s21  ;;  %v3600_v18 = vshll.u32 %v7237_v29, 16  ;;  %v3598_v15 = vrot.slane %v3597_v46, 4 }
 0x14c   : > { %3886 = vrot.lane.b32.xlu1 %v3555_v38, %s6060_s21  ;;  %v5887_v38 = vld [vmem:[%s8489_s5 + $0x28] sm:$0xff] }
 0x14d   : > { %2304 = vrot.lane.b32.xlu0 %v2234_v42, %s6060_s21  ;;  %v2130_v39 = vpop.permute.xlu2 %2129  ;;  %4777 = vmatpush.bf16.msra.mxu0 %v5887_v38 }
 0x14e   : > { %2211 = vst.msk [vmem:[#allocation3 + $0xb4] sm:$0xf] %vm2195_vm15, %v2130_v39  ;;  %v2116_v7 = vpop.permute.xlu1 %2115  ;;  %v7261_v39 = vrot.slane %v3600_v18, 5  ;;  %5981 = vmatpush.bf16.msra.mxu3 %v5887_v38  ;;  %v3604_v18 = vshrl.u32 %v7237_v29, 16  ;;  %v2507_v38 = vshrl.u32 %v2425_v30, 16  ;;  %v5883_v29 = vld [vmem:[%s8489_s5 + $0x8] sm:$0xff] }
 0x14f   : > { %v2132_v11 = vpop.permute.xlu0 %2131  ;;  %2204 = vst.msk [vmem:[#allocation3 + $0x60] sm:$0xf] %vm2195_vm15, %v2116_v7  ;;  %v2486_v7 = vor.u32 %v2485_v61, %v2481_v10  ;;  %v2426_v61 = vld [vmem:[#allocation2 + $0x20] sm:$0x1] }
 0x150   : > { %2212 = vst.msk [vmem:[#allocation3 + $0xc0] sm:$0xf] %vm2195_vm15, %v2132_v11  ;;  %v2235_v11 = vld [vmem:[#allocation2 + $0x34] sm:$0xf] }
 0x151   : > { %v2487_v48 = vrot.slane %v2486_v7, 4  ;;  %v2513_v7 = vshll.u32 %v2426_v61, 16 }
 0x153   : > { %3888 = vrot.lane.b32.xlu2 %v3565_v33, %s6060_s21  ;;  %v3574_v33 = vrot.slane %v3573_v22, 4  ;;  %v2503_v22 = vshll.u32 %v2425_v30, 16  ;;  %v7384_v30 = vld [vmem:[%s8487_s3] ss:$0 sm:$0xff] }
 0x154   : > { %2342 = vrot.lane.b32.xlu1 %v2253_v47, %s6060_s21  ;;  %v4007_v47 = vld [vmem:[#allocation2 + $0x1c] sm:$0xf] }
 0x155   : > { %3892 = vrot.lane.b32.xlu0 %v3589_v53, %s6060_s21  ;;  %v2136_v19 = vpop.permute.xlu2 %2135  ;;  %v2489_v53 = vshll.u32 %v2423_v55, 16  ;;  %v4104_v44 = vrot.slane %v4007_v47, 5  ;;  %v3579_v32 = vsel %vm6205_vm8, %v3574_v33, %v7196_v13  ;;  %v5899_v13 = vld [vmem:[%s8489_s5 + $0x88] sm:$0xff]  ;;  %v7344_v33 = vld [vmem:[%s8489_s5 + $0x58] sm:$0xff] }
 0x156   : > { %2214 = vst.msk [vmem:[#allocation3 + $0xd8] sm:$0xf] %vm2195_vm15, %v2136_v19  ;;  %v2122_v62 = vpop.permute.xlu1 %2121  ;;  %v4006_v19 = vld [vmem:[#allocation2 + $0x18] sm:$0xe]  ;;  %4959 = vmatpush.bf16.msra.mxu2 %v5899_v13 }
 0x157   : > { %v2138_v14 = vpop.permute.xlu0 %2137  ;;  %2207 = vst.msk [vmem:[#allocation3 + $0x84] sm:$0xf] %vm2195_vm15, %v2122_v62  ;;  %v2491_v24 = vrot.slane %v2489_v53, 5  ;;  %v4008_v62 = vld [vmem:[#allocation2 + $0x20] sm:$0x1]  ;;  %v5531_v36 = vrot.slane %v4006_v19, 9 }
 0x158   : > { %2215 = vst.msk [vmem:[#allocation3 + $0xe4] sm:$0xf] %vm2195_vm15, %v2138_v14  ;;  %v5886_v14 = vld [vmem:[%s8489_s5 + $0x20] sm:$0xff]  ;;  %v4107_v40 = vrot.slane %v4008_v62, 5  ;;  %v2505_v53 = vrot.slane %v2503_v22, 5  ;;  %v3050_v19 = vrot.slane %v7328_v52, 5 }
 0x159   : > { %4778 = vmatpush.bf16.msra.mxu0 %v5886_v14  ;;  %v2492_v17 = vsel %vm6205_vm8, %v2487_v48, %v2491_v24  ;;  %5982 = vmatpush.bf16.msra.mxu3 %v5886_v14  ;;  %v4105_v35 = vsel %vm6880_vm13, %v5531_v36, %v4104_v44  ;;  %v3461_v24 = vld [vmem:[#allocation2 + $0x54] sm:$0xf]  ;;  %v3460_v62 = vld [vmem:[#allocation2 + $0x50] sm:$0x1]  ;;  %v3606_v36 = vrot.slane %v3604_v18, 4  ;;  %v7392_v18 = vld [vmem:[%s8489_s5 + $0x48] sm:$0xff] }
 0x15a   : > { %2886 = vst.msk [vmem:[#allocation3 + $0x10] sm:$0xf] %vm510_vm0, %v2492_v17  ;;  %v4010_v17 = vld [vmem:[#allocation2 + $0x28] sm:$0xf]  ;;  %v3618_v13 = vshll.u32 %v3461_v24, 16 }
 0x15b   : > { %3137 = vrot.lane.b32.xlu2 %v3037_v31, %s6058_s15  ;;  %v4106_v31 = vrot.slane %v4104_v44, 4  ;;  %4246 = vst.msk [vmem:[#allocation3 + $0x8] sm:$0xf] %vm510_vm0, %v4105_v35  ;;  %v5882_v35 = vld [vmem:[%s8489_s5] sm:$0xff]  ;;  %v2236_v22 = vld [vmem:[#allocation2 + $0x3c] sm:$0xf] }
 0x15c   : > { %3330 = vrot.lane.b32.xlu1 %v3260_v16, %s6059_s20  ;;  %v2254_v16 = vld [vmem:[#allocation2 + $0xa8] sm:$0xf]  ;;  %v3620_v61 = vrot.slane %v3618_v13, 5  ;;  %v1166_v13 = vld [vmem:[#allocation2 + $0xc0] sm:$0xf] }
 0x15d   : > { %3141 = vrot.lane.b32.xlu0 %v3044_v57, %s6058_s15  ;;  %v2142_v4 = vpop.permute.xlu2 %2141  ;;  %v3603_v57 = vsel %vm6205_vm8, %v3598_v15, %v7261_v39  ;;  %v4108_v6 = vsel %vm6880_vm13, %v4106_v31, %v4107_v40  ;;  %4779 = vmatpush.bf16.msra.mxu0 %v5885_v63 }
 0x15e   : > { %2217 = vst.msk [vmem:[#allocation3 + $0xfc] sm:$0xf] %vm2195_vm15, %v2142_v4  ;;  %v2128_v42 = vpop.permute.xlu1 %2127  ;;  %v2424_v4 = vld [vmem:[#allocation2 + $0x18] sm:$0xf]  ;;  %5983 = vmatpush.bf16.msra.mxu3 %v5885_v63  ;;  %v3615_v63 = vshrl.u32 %v3461_v24, 16 }
 0x15f   : > { %v2144_v27 = vpop.permute.xlu0 %2143  ;;  %2210 = vst.msk [vmem:[#allocation3 + $0xa8] sm:$0xf] %vm2195_vm15, %v2128_v42  ;;  %v2494_v42 = vshrl.u32 %v2424_v4, 16 }
 0x160   : > { %2218 = vst.msk [vmem:[#allocation3 + $0x108] sm:$0xf] %vm2195_vm15, %v2144_v27  ;;  %v3045_v27 = vrot.slane %v3043_v26, 4  ;;  %v7325_v26 = vld [vmem:[%s8489_s5 + $0x60] sm:$0xff] }
 0x161   : > { %4247 = vst.msk [vmem:[#allocation3 + $0x14] sm:$0xf] %vm510_vm0, %v4108_v6  ;;  %4780 = vmatpush.bf16.msra.mxu0 %v5884_v0  ;;  %4867 = vmatpush.bf16.msra.mxu1 %v7325_v26  ;;  %v2496_v55 = vrot.slane %v2494_v42, 4  ;;  %v7365_v6 = vld [vmem:[%s6182_s10 + $0x78] sm:$0xff]   ;;  %s506_s10 = scalar_lea.vmem %s8492_s8, %s8508_s26 }
 0x162   : > { %5984 = vmatpush.bf16.msra.mxu3 %v5884_v0  ;;  %v3047_v47 = vsel %vm6880_vm13, %v3045_v27, %v3046_v56  ;;  %v5557_v48 = vld [vmem:[#allocation3 + $0x8] sm:$0xf]  ;;  %v4011_v27 = vld [vmem:[#allocation2 + $0x2c] sm:$0x1]  ;;  %v5962_v56 = vunpack.c.l.bf16 %v7365_v6 }
 0x163   : > { %3332 = vrot.lane.b32.xlu2 %v3261_v8, %s6059_s20  ;;  %v2091_v8 = vsel %vm6880_vm13, %v2089_v9, %v2090_v59  ;;  %v4009_v59 = vld [vmem:[#allocation2 + $0x24] sm:$0xe] }
 0x164   : > { %2306 = vrot.lane.b32.xlu1 %v2235_v11, %s6060_s21  ;;  %v5898_v11 = vld [vmem:[%s8489_s5 + $0x80] sm:$0xff]  ;;  %v5532_v0 = vrot.slane %v4009_v59, 9  ;;  %v663_v42 = vmul.f32 %v7384_v30, %v5962_v56  ;;  %v7436_v59 = vld [vmem:[#allocation2 + $0xbc] sm:$0x1] }
 0x165   : > { %3336 = vrot.lane.b32.xlu0 %v3263_v54, %s6059_s20  ;;  %v2148_v60 = vpop.permute.xlu2 %2147  ;;  %v2497_v54 = vshll.u32 %v2424_v4, 16  ;;  %4960 = vmatpush.bf16.msra.mxu2 %v5898_v11  ;;  %v3262_v4 = vld [vmem:[#allocation2 + $0x48] sm:$0xf] }
 0x166   : > { %2220 = vst.msk [vmem:[#allocation3 + $0x120] sm:$0xf] %vm2195_vm15, %v2148_v60  ;;  %v2134_v23 = vpop.permute.xlu1 %2133  ;;  %v5520_v60 = vrot.slane %v7317_v45, 9  ;;  %4781 = vmatpush.bf16.msra.mxu0 %v5883_v29  ;;  %4868 = vmatpush.bf16.msra.mxu1 %v7344_v33 }
 0x167   : > { %v2150_v51 = vpop.permute.xlu0 %2149  ;;  %2213 = vst.msk [vmem:[#allocation3 + $0xcc] sm:$0xf] %vm2195_vm15, %v2134_v23  ;;  %v2499_v15 = vrot.slane %v2497_v54, 5  ;;  %v2515_v23 = vrot.slane %v2513_v7, 5  ;;  %5985 = vmatpush.bf16.msra.mxu3 %v5883_v29  ;;  %v3607_v54 = vor.u32 %v3606_v36, %v7261_v39  ;;  %v7400_v39 = vld [vmem:[%s8488_s4] ss:$0 sm:$0xff] }
 0x168   : > { %2221 = vst.msk [vmem:[#allocation3 + $0x12c] sm:$0xf] %vm2195_vm15, %v2150_v51  ;;  %v2509_v51 = vrot.slane %v2507_v38, 4  ;;  %v3617_v38 = vrot.slane %v3615_v63, 4 }
 0x169   : > { %v2500_v14 = vor.u32 %v2499_v15, %v2496_v55  ;;  %v698_v55 = vadd.f32 %v7400_v39, %v663_v42  ;;  %v7405_v15 = vld [vmem:[#allocation2 + $0x58] sm:$0xf]  ;;  %v5963_v42 = vunpack.c.h.bf16 %v7365_v6  ;;  %v2097_v6 = vrot.slane %v7436_v59, 5 }
 0x16a   : > { %v2510_v44 = vor.u32 %v2509_v51, %v2505_v53  ;;  %4782 = vmatpush.bf16.msra.mxu0 %v5882_v35  ;;  %v3608_v51 = vrot.slane %v3607_v54, 4  ;;  %v3624_v24 = vshll.u32 %v7405_v15, 16 }
 0x16b   : > { %3890 = vrot.lane.b32.xlu2 %v3579_v32, %s6060_s21  ;;  %v2501_v32 = vrot.slane %v2500_v14, 4  ;;  %5986 = vmatpush.bf16.msra.mxu3 %v5882_v35 }
 0x16c   : > { %2344 = vrot.lane.b32.xlu1 %v2254_v16, %s6060_s21  ;;  %v2511_v40 = vrot.slane %v2510_v44, 4  ;;  %v7362_v16 = vld [vmem:[%s8489_s5 + $0x50] sm:$0xff] }
 0x16d   : > { %3894 = vrot.lane.b32.xlu0 %v3603_v57, %s6060_s21  ;;  %v2154_v10 = vpop.permute.xlu2 %2153  ;;  %v5836_v57 = vld [vmem:[#allocation3 + $0x10] sm:$0xf0]  ;;  %v2506_v9 = vsel %vm6205_vm8, %v2501_v32, %v2505_v53  ;;  %4869 = vmatpush.bf16.msra.mxu1 %v7362_v16  ;;  %v730_v53 = vpack.c.bf16 %v698_v55, %v698_v55 }
 0x16e   : > { %2223 = vst.msk [vmem:[#allocation3 + $0x144] sm:$0xf] %vm2195_vm15, %v2154_v10  ;;  %v2140_v46 = vpop.permute.xlu1 %2139  ;;  %v5558_v28 = vor.u32 %v5836_v57, %v5557_v48  ;;  %v3051_v10 = vsel %vm6880_vm13, %v5520_v60, %v3050_v19  ;;  %v2516_v45 = vsel %vm6205_vm8, %v2511_v40, %v2515_v23  ;;  %v3621_v48 = vor.u32 %v3620_v61, %v3617_v38  ;;  %v3265_v57 = vld [vmem:[#allocation2 + $0x58] sm:$0xf]  ;;  %v2256_v61 = vld [vmem:[#allocation2 + $0xb4] sm:$0xf] }
 0x16f   : > { %v3126_v20 = vpop.permute.xlu0 %3125  ;;  %2216 = vst.msk [vmem:[#allocation3 + $0xf0] sm:$0xf] %vm2195_vm15, %v2140_v46  ;;  %v3610_v46 = vshll.u32 %v3460_v62, 16  ;;  %5987 = vmatpush.bf16.msrb.mxu3 %v7256_v41  ;;  %v7414_v41 = vld [vmem:[%s8489_s5 + $0x40] sm:$0xff]  ;;  %v991_v44 = vshrl.u32 %v730_v53, 16  ;;  %v994_v32 = vshll.u32 %v730_v53, 16 }
 0x170   : > { %3221 = vst.msk [vmem:[#allocation3 + $0x4] sm:$0xf] %vm1855_vm14, %v3126_v20  ;;  %5811 = vmatmul.msk.bf16.vlgmr.msra.gmra.mxu2 %vm4726_vm2, %v5558_v28  ;;  %v2237_v62 = vld [vmem:[#allocation2 + $0x40] sm:$0xf]  ;;  %v1930_v28 = vld [vmem:[#allocation2 + $0xa8] sm:$0xe] }
 0x171   : > { %2887 = vst.msk [vmem:[#allocation3 + $0x1c] sm:$0xf] %vm510_vm0, %v2506_v9  ;;  %4870 = vmatpush.bf16.msra.mxu1 %v7392_v18  ;;  %v3612_v14 = vrot.slane %v3610_v46, 5  ;;  %v7424_v36 = vrot.slane %v991_v44, 7  ;;  %v7431_v40 = vrot.slane %v3624_v24, 5  ;;  %v5513_v9 = vrot.slane %v1930_v28, 9 }
 0x172   : > { %2888 = vst.msk [vmem:[#allocation3 + $0x28] sm:$0xf] %vm510_vm0, %v2516_v45  ;;  %v2428_v45 = vld [vmem:[#allocation2 + $0x28] sm:$0xf] }
 0x173   : > { %2346 = vrot.lane.b32.xlu2 %v2255_v25, %s6060_s21  ;;  %v4111_v25 = vrot.slane %v4010_v17, 5  ;;  %5988 = vmatpush.bf16.msrb.mxu3 %v7273_v49  ;;  %v7426_v17 = vld [vmem:[#allocation2 + $0xb8] sm:$0xf]  ;;  %v3622_v49 = vrot.slane %v3621_v48, 4  ;;  %v996_v63 = vor.u32 %v994_v32, %v7424_v36  ;;  %v2521_v48 = vshll.u32 %v2427_v58, 16 }
 0x174   : > { %3143 = vrot.lane.b32.xlu1 %v3047_v47, %s6058_s15 }
 0x175   : > { %2157 = vrot.lane.b32.xlu0 %v2091_v8, %s6059_s20  ;;  %v3319_v31 = vpop.permute.xlu2 %3318  ;;  %v4114_v8 = vrot.slane %v4011_v27, 5  ;;  %v4112_v11 = vsel %vm6880_vm13, %v5532_v0, %v4111_v25  ;;  %v4113_v7 = vrot.slane %v4111_v25, 4  ;;  %4871 = vmatpush.bf16.msra.mxu1 %v7414_v41  ;;  %v2094_v27 = vrot.slane %v7426_v17, 5  ;;  %v2429_v25 = vld [vmem:[#allocation2 + $0x2c] sm:$0x1] }
 0x176   : > { %3414 = vst.msk [vmem:[#allocation3 + $0x4] sm:$0xf] %vm2195_vm15, %v3319_v31  ;;  %v2146_v20 = vpop.permute.xlu1 %2145  ;;  %v3613_v31 = vsel %vm6205_vm8, %v3608_v51, %v3612_v14  ;;  %v3627_v0 = vsel %vm6205_vm8, %v3622_v49, %v7431_v40  ;;  %v2537_v38 = vshll.u32 %v2429_v25, 16  ;;  %v3052_v49 = vrot.slane %v3050_v19, 4  ;;  %v7482_v19 = vld [vmem:[#allocation2 + $0x58] sm:$0xf] }
 0x177   : > { %v7352_v37 = vpop.permute.xlu0 %3320  ;;  %2219 = vst.msk [vmem:[#allocation3 + $0x114] sm:$0xf] %vm2195_vm15, %v2146_v20  ;;  %v4115_v60 = vsel %vm6880_vm13, %v4113_v7, %v4114_v8  ;;  %5989 = vmatpush.bf16.msrb.mxu3 %v7296_v43  ;;  %v1167_v20 = vsel %vm6279_vm10, %v996_v63, %v1166_v13  ;;  %v4013_v43 = vld [vmem:[#allocation2 + $0x34] sm:$0xf]  ;;  %v2527_v8 = vshll.u32 %v2428_v45, 16  ;;  %v2096_v55 = vrot.slane %v2094_v27, 4 }
 0x178   : > { %4248 = vst.msk [vmem:[#allocation3 + $0x20] sm:$0xf] %vm510_vm0, %v4112_v11  ;;  %v2088_v11 = vsel %vm6880_vm13, %v5513_v9, %v2087_v34  ;;  %v2539_v53 = vrot.slane %v2537_v38, 5  ;;  %v4118_v51 = vrot.slane %v4013_v43, 5  ;;  %v4012_v34 = vld [vmem:[#allocation2 + $0x30] sm:$0xe] }
 0x179   : > { %4249 = vst.msk [vmem:[#allocation3 + $0x2c] sm:$0xf] %vm510_vm0, %v4115_v60  ;;  %v2529_v7 = vrot.slane %v2527_v8, 5  ;;  %v5533_v24 = vrot.slane %v4012_v34, 9  ;;  %v2257_v9 = vld [vmem:[#allocation2 + $0xb8] sm:$0xf]  ;;  %v2098_v59 = vsel %vm6880_vm13, %v2096_v55, %v2097_v6 }
 0x17a   : > { %1168 = vst [vmem:[#allocation2 + $0xc0] sm:$0xf] %v1167_v20  ;;  %v997_v8 = vrot.slane %v7424_v36, 4  ;;  %v4015_v36 = vld [vmem:[#allocation2 + $0x3c] sm:$0xe] }
 0x17b   : > { %3334 = vrot.lane.b32.xlu2 %v3262_v4, %s6059_s20  ;;  %5990 = vmatpush.bf16.msrb.mxu3 %v7325_v26  ;;  %v664_v26 = vmul.f32 %v7384_v30, %v5963_v42  ;;  %v2934_v30 = vld [vmem:[#allocation2 + $0x50] sm:$0x1]  ;;  %v3057_v42 = vrot.slane %v7482_v19, 5  ;;  %v7579_v19 = vld [vmem:[#allocation2 + $0x64] sm:$0xf] }
 0x17c   : > { %2308 = vrot.lane.b32.xlu1 %v2236_v22, %s6060_s21  ;;  %v2531_v22 = vshrl.u32 %v2428_v45, 16  ;;  %v3053_v63 = vrot.slane %v2934_v30, 5  ;;  %v3464_v45 = vld [vmem:[#allocation2 + $0x60] sm:$0xf]  ;;  %v5534_v30 = vrot.slane %v4015_v36, 9 }
 0x17d   : > { %3145 = vrot.lane.b32.xlu0 %v3051_v10, %s6058_s15  ;;  %v2295_v47 = vpop.permute.xlu2 %2294  ;;  %v699_v60 = vadd.f32 %v7400_v39, %v664_v26  ;;  %v2523_v39 = vrot.slane %v2521_v48, 5  ;;  %v3642_v55 = vshll.u32 %v3464_v45, 16  ;;  %v4016_v26 = vld [vmem:[#allocation2 + $0x40] sm:$0xf] }
 0x17e   : > { %2390 = vst.msk [vmem:[#allocation3 + $0xc] sm:$0xf] %vm2388_vm3, %v2295_v47  ;;  %v2152_v23 = vpop.permute.xlu1 %2151  ;;  %v4014_v47 = vld [vmem:[#allocation2 + $0x38] sm:$0x1] }
 0x17f   : > { %v3879_v29 = vpop.permute.xlu0 %3878  ;;  %2222 = vst.msk [vmem:[#allocation3 + $0x138] sm:$0xf] %vm2195_vm15, %v2152_v23  ;;  %v5569_v56 = vld [vmem:[#allocation3 + $0x20] sm:$0xf]  ;;  %5991 = vmatpush.bf16.msrb.mxu3 %v7344_v33  ;;  %v4120_v23 = vrot.slane %v4118_v51, 4  ;;  %v4119_v33 = vsel %vm6880_vm13, %v5533_v24, %v4118_v51  ;;  %v731_v13 = vpack.c.bf16 %v699_v60, %v699_v60 }
 0x180   : > { %3974 = vst.msk [vmem:[#allocation3 + $0x4] sm:$0xf] %vm2388_vm3, %v3879_v29  ;;  %v5839_v4 = vld [vmem:[#allocation3 + $0x28] sm:$0xf0]  ;;  %v2533_v29 = vrot.slane %v2531_v22, 4 }
 0x181   : > { %v5570_v46 = vor.u32 %v5839_v4, %v5569_v56  ;;  %v2935_v56 = vld [vmem:[#allocation2 + $0x54] sm:$0xe]  ;;  %4250 = vst.msk [vmem:[#allocation3 + $0x38] sm:$0xf] %vm510_vm0, %v4119_v33  ;;  %v1002_v43 = vshll.u32 %v731_v13, 16 }
 0x182   : > { %v2534_v14 = vor.u32 %v2533_v29, %v2529_v7  ;;  %v5521_v4 = vrot.slane %v2935_v56, 9 }
 0x183   : > { %2310 = vrot.lane.b32.xlu2 %v2237_v62, %s6060_s21  ;;  %5812 = vmatmul.msk.bf16.gmra.mxu2 %vm4726_vm2, %v5570_v46 }
 0x184   : > { %3896 = vrot.lane.b32.xlu1 %v3613_v31, %s6060_s21  ;;  %v2535_v32 = vrot.slane %v2534_v14, 4  ;;  %v3628_v31 = vshrl.u32 %v7405_v15, 16  ;;  %5992 = vmatpush.bf16.msrb.mxu3 %v7362_v16  ;;  %v999_v16 = vshrl.u32 %v731_v13, 16  ;;  %v3058_v34 = vsel %vm6880_vm13, %v5521_v4, %v3057_v42 }
 0x185   : > { %3340 = vrot.lane.b32.xlu0 %v3265_v57, %s6059_s20  ;;  %v3130_v10 = vpop.permute.xlu2 %3129  ;;  %v4121_v57 = vrot.slane %v4014_v47, 5  ;;  %v5835_v38 = vld [vmem:[#allocation3 + $0x8] sm:$0xf0]  ;;  %v4125_v14 = vrot.slane %v4016_v26, 5 }
 0x186   : > { %3223 = vst.msk [vmem:[#allocation3 + $0x1c] sm:$0xf] %vm1855_vm14, %v3130_v10  ;;  %v3128_v54 = vpop.permute.xlu1 %3127  ;;  %v2540_v20 = vsel %vm6205_vm8, %v2535_v32, %v2539_v53  ;;  %v3630_v25 = vrot.slane %v3628_v31, 4  ;;  %v7495_v22 = vrot.slane %v999_v16, 7  ;;  %v4017_v53 = vld [vmem:[#allocation2 + $0x44] sm:$0x1] }
 0x187   : > { %v3132_v35 = vpop.permute.xlu0 %3131  ;;  %3222 = vst.msk [vmem:[#allocation3 + $0x10] sm:$0xf] %vm1855_vm14, %v3128_v54  ;;  %v4122_v52 = vsel %vm6880_vm13, %v4120_v23, %v4121_v57  ;;  %v3463_v54 = vld [vmem:[#allocation2 + $0x5c] sm:$0x1]  ;;  %v4128_v24 = vrot.slane %v4017_v53, 5  ;;  %v4126_v23 = vsel %vm6880_vm13, %v5534_v30, %v4125_v14  ;;  %v4127_v57 = vrot.slane %v4125_v14, 4 }
 0x188   : > { %3224 = vst.msk [vmem:[#allocation3 + $0x28] sm:$0xf] %vm1855_vm14, %v3132_v35  ;;  %5993 = vmatpush.bf16.msrb.mxu3 %v7392_v18  ;;  %v1004_v6 = vor.u32 %v1002_v43, %v7495_v22  ;;  %v3634_v29 = vshll.u32 %v3463_v54, 16  ;;  %v5581_v47 = vld [vmem:[#allocation3 + $0x38] sm:$0xf] }
 0x189   : > { %3415 = vst.msk [vmem:[#allocation3 + $0x10] sm:$0xf] %vm2195_vm15, %v7352_v37  ;;  %v2518_v37 = vshrl.u32 %v2427_v58, 16  ;;  %v5834_v33 = vld [vmem:[#allocation3 + $0x4] sm:$0xf] }
 0x18a   : > { %2890 = vst.msk [vmem:[#allocation3 + $0x40] sm:$0xf] %vm510_vm0, %v2540_v20  ;;  %v1005_v60 = vsel %vm6131_vm4, %v997_v8, %v1004_v6  ;;  %v1933_v8 = vld [vmem:[#allocation2 + $0xb4] sm:$0xe] }
 0x18b   : > { %2155 = vrot.lane.b32.xlu2 %v2088_v11, %s6059_s20  ;;  %v2520_v28 = vrot.slane %v2518_v37, 4  ;;  %4251 = vst.msk [vmem:[#allocation3 + $0x44] sm:$0xf] %vm510_vm0, %v4122_v52  ;;  %v3639_v11 = vshrl.u32 %v3464_v45, 16  ;;  %v3264_v37 = vld [vmem:[#allocation2 + $0x54] sm:$0xf] }
 0x18c   : > { %2348 = vrot.lane.b32.xlu1 %v2256_v61, %s6060_s21  ;;  %5994 = vmatpush.bf16.msrb.mxu3 %v7414_v41  ;;  %1169 = vst.msk [vmem:[#allocation2 + $0xc4] sm:$0xf] %vm510_vm0, %v1005_v60  ;;  %v3267_v45 = vld [vmem:[#allocation2 + $0x64] sm:$0xf] }
 0x18d   : > { %3898 = vrot.lane.b32.xlu0 %v3627_v0, %s6060_s21  ;;  %v3325_v62 = vpop.permute.xlu2 %3324  ;;  %v2524_v10 = vor.u32 %v2523_v39, %v2520_v28  ;;  %v3054_v0 = vsel %vm6880_vm13, %v3052_v49, %v3053_v63  ;;  %v3641_v48 = vrot.slane %v3639_v11, 4  ;;  %v3636_v28 = vrot.slane %v3634_v29, 5  ;;  %4252 = vst.msk [vmem:[#allocation3 + $0x50] sm:$0xf] %vm510_vm0, %v4126_v23  ;;  %v7521_v49 = vld [vmem:[#allocation2 + $0x64] sm:$0xf] }
 0x18e   : > { %3417 = vst.msk [vmem:[#allocation3 + $0x28] sm:$0xf] %vm2195_vm15, %v3325_v62  ;;  %v2293_v35 = vpop.permute.xlu1 %2292  ;;  %v2238_v62 = vld [vmem:[#allocation2 + $0x48] sm:$0xf]  ;;  %v4129_v39 = vsel %vm6880_vm13, %v4127_v57, %v4128_v24  ;;  %v3648_v43 = vshll.u32 %v7521_v49, 16 }
 0x18f   : > { %v2297_v44 = vpop.permute.xlu0 %2296  ;;  %2389 = vst.msk [vmem:[#allocation3] sm:$0xf] %vm2388_vm3, %v2293_v35  ;;  %v2525_v15 = vrot.slane %v2524_v10, 4  ;;  %v2430_v35 = vld [vmem:[#allocation2 + $0x30] sm:$0xf] }
 0x190   : > { %2391 = vst.msk [vmem:[#allocation3 + $0x18] sm:$0xf] %vm2388_vm3, %v2297_v44  ;;  %v3644_v44 = vrot.slane %v3642_v55, 5  ;;  %v2542_v56 = vshrl.u32 %v2430_v35, 16  ;;  %v2545_v20 = vshll.u32 %v2430_v35, 16  ;;  %v7533_v26 = vrot.slane %v3648_v43, 5 }
 0x191   : > { %v2530_v46 = vsel %vm6205_vm8, %v2525_v15, %v2529_v7  ;;  %v3631_v7 = vor.u32 %v3630_v25, %v7431_v40  ;;  %4253 = vst.msk [vmem:[#allocation3 + $0x5c] sm:$0xf] %vm510_vm0, %v4129_v39  ;;  %v2239_v25 = vld [vmem:[#allocation2 + $0x4c] sm:$0xf]  ;;  %v4018_v24 = vld [vmem:[#allocation2 + $0x48] sm:$0xe] }
 0x192   : > { %2889 = vst.msk [vmem:[#allocation3 + $0x34] sm:$0xf] %vm510_vm0, %v2530_v46  ;;  %v5842_v41 = vld [vmem:[#allocation3 + $0x40] sm:$0xf0]  ;;  %v3645_v13 = vor.u32 %v3644_v44, %v3641_v48  ;;  %v2544_v54 = vrot.slane %v2542_v56, 4  ;;  %v2547_v46 = vrot.slane %v2545_v20, 5 }
 0x193   : > { %2350 = vrot.lane.b32.xlu2 %v2257_v9, %s6060_s21  ;;  %v5582_v2 = vor.u32 %v5842_v41, %v5581_v47  ;;  %v3632_v32 = vrot.slane %v3631_v7, 4  ;;  %v2431_v9 = vld [vmem:[#allocation2 + $0x34] sm:$0xf]  ;;  %v7535_v7 = vld [vmem:[#allocation2 + $0xa0] sm:$0xf] }
 0x194   : > { %3147 = vrot.lane.b32.xlu1 %v3054_v0, %s6058_s15  ;;  %v2551_v10 = vshll.u32 %v2431_v9, 16  ;;  %v2555_v52 = vshrl.u32 %v2431_v9, 16  ;;  %v3646_v55 = vrot.slane %v3645_v13, 4  ;;  %v2548_v6 = vor.u32 %v2547_v46, %v2544_v54  ;;  %v4019_v47 = vld [vmem:[#allocation2 + $0x4c] sm:$0xf] }
 0x195   : > { %2161 = vrot.lane.b32.xlu0 %v2098_v59, %s6059_s20  ;;  %v3883_v18 = vpop.permute.xlu2 %3882  ;;  %5813 = vmatmul.msk.bf16.gmra.mxu2 %vm4726_vm2, %v5582_v2  ;;  %v2432_v59 = vld [vmem:[#allocation2 + $0x38] sm:$0x1]  ;;  %v3637_v11 = vsel %vm6205_vm8, %v3632_v32, %v3636_v28  ;;  %v2258_v2 = vld [vmem:[#allocation2 + $0xc0] sm:$0xf]  ;;  %v2955_v28 = vld [vmem:[#allocation2 + $0xa4] sm:$0x1] }
 0x196   : > { %v3881_v51 = vpop.permute.xlu1 %3880  ;;  %v5549_v58 = vld [vmem:[#allocation3] sm:$0xf]  ;;  %v2561_v0 = vshll.u32 %v2432_v59, 16  ;;  %v3651_v44 = vsel %vm6205_vm8, %v3646_v55, %v7533_v26  ;;  %v3099_v39 = vrot.slane %v7535_v7, 5  ;;  %v2937_v59 = vld [vmem:[#allocation2 + $0x5c] sm:$0x1] }
 0x197   : > { %v3885_v61 = vpop.permute.xlu0 %3884  ;;  %3975 = vst.msk [vmem:[#allocation3 + $0x10] sm:$0xf] %vm2388_vm3, %v3881_v51  ;;  %v5550_v40 = vor.u32 %v5835_v38, %v5549_v58  ;;  %v2553_v38 = vrot.slane %v2551_v10, 5  ;;  %v5514_v51 = vrot.slane %v1933_v8, 9  ;;  %v2549_v58 = vrot.slane %v2548_v6, 4 }
 0x198   : > { %3977 = vst.msk [vmem:[#allocation3 + $0x28] sm:$0xf] %vm2388_vm3, %v3885_v61  ;;  %v2557_v61 = vrot.slane %v2555_v52, 4  ;;  %v2563_v36 = vrot.slane %v2561_v0, 5  ;;  %v5845_v14 = vld [vmem:[#allocation3 + $0x58] sm:$0xf0] }
 0x199   : > { %4783 = vmatmul.bf16.vlgmr.msra.gmra.mxu0 %v5550_v40  ;;  %v4132_v40 = vrot.slane %v4019_v47, 5  ;;  %v2095_v32 = vsel %vm6880_vm13, %v5514_v51, %v2094_v27  ;;  %v3101_v52 = vrot.slane %v3099_v39, 4  ;;  %v3060_v54 = vrot.slane %v2937_v59, 5  ;;  %v2259_v6 = vld [vmem:[#allocation2 + $0xc4] sm:$0xf] }
 0x19a   : > { %v2558_v29 = vor.u32 %v2557_v61, %v2553_v38  ;;  %v3652_v55 = vshrl.u32 %v7521_v49, 16  ;;  %v4023_v59 = vld [vmem:[#allocation2 + $0x5c] sm:$0x1]  ;;  %v7842_v12 = vld [vmem:[#allocation2 + $0xc4] sm:$0xf] }
 0x19b   : > { %3338 = vrot.lane.b32.xlu2 %v3264_v37, %s6059_s20  ;;  %v2554_v37 = vsel %vm6205_vm8, %v2549_v58, %v2553_v38  ;;  %v4134_v35 = vrot.slane %v4132_v40, 4  ;;  %v3064_v58 = vrot.slane %v7579_v19, 5 }
 0x19c   : > { %2312 = vrot.lane.b32.xlu1 %v2238_v62, %s6060_s21  ;;  %v2559_v30 = vrot.slane %v2558_v29, 4  ;;  %2891 = vst.msk [vmem:[#allocation3 + $0x4c] sm:$0xf] %vm510_vm0, %v2554_v37  ;;  %v5535_v62 = vrot.slane %v4018_v24, 9  ;;  %v3654_v51 = vrot.slane %v3652_v55, 4 }
 0x19d   : > { %3149 = vrot.lane.b32.xlu0 %v3058_v34, %s6058_s15  ;;  %v3136_v63 = vpop.permute.xlu2 %3135  ;;  %v5593_v34 = vld [vmem:[#allocation3 + $0x50] sm:$0xf]  ;;  %v3266_v24 = vld [vmem:[#allocation2 + $0x60] sm:$0xf]  ;;  %v2241_v55 = vld [vmem:[#allocation2 + $0x58] sm:$0xf] }
 0x19e   : > { %3226 = vst.msk [vmem:[#allocation3 + $0x40] sm:$0xf] %vm1855_vm14, %v3136_v63  ;;  %v3323_v16 = vpop.permute.xlu1 %3322  ;;  %v5551_v15 = vld [vmem:[#allocation3 + $0xc] sm:$0xf0]  ;;  %v2564_v23 = vsel %vm6205_vm8, %v2559_v30, %v2563_v36  ;;  %v4020_v63 = vld [vmem:[#allocation2 + $0x50] sm:$0x1]  ;;  %v4133_v13 = vsel %vm6880_vm13, %v5535_v62, %v4132_v40 }
 0x19f   : > { %v7518_v31 = vpop.permute.xlu0 %3326  ;;  %3416 = vst.msk [vmem:[#allocation3 + $0x1c] sm:$0xf] %vm2195_vm15, %v3323_v16  ;;  %v5554_v4 = vor.u32 %v5834_v33, %v5551_v15  ;;  %v5594_v33 = vor.u32 %v5845_v14, %v5593_v34  ;;  %v5563_v9 = vld [vmem:[#allocation3 + $0x24] sm:$0xf0]  ;;  %v4135_v20 = vrot.slane %v4020_v63, 5  ;;  %v3102_v16 = vrot.slane %v2955_v28, 5 }
 0x1a0   : > { %3976 = vst.msk [vmem:[#allocation3 + $0x1c] sm:$0xf] %vm2388_vm3, %v3883_v18  ;;  %v3482_v18 = vld [vmem:[#allocation2 + $0xa8] sm:$0xf]  ;;  %v7563_v15 = vld [vmem:[#allocation2 + $0xac] sm:$0xf] }
 0x1a1   : > { %4872 = vmatmul.bf16.vlgmr.msra.gmra.mxu1 %v5554_v4  ;;  %v3783_v48 = vshrl.u32 %v3482_v18, 16  ;;  %v3786_v57 = vshll.u32 %v3482_v18, 16  ;;  %2892 = vst.msk [vmem:[#allocation3 + $0x58] sm:$0xf] %vm510_vm0, %v2564_v23  ;;  %v4136_v0 = vsel %vm6880_vm13, %v4134_v35, %v4135_v20  ;;  %v3792_v61 = vshll.u32 %v7563_v15, 16 }
 0x1a2   : > { %4254 = vst.msk [vmem:[#allocation3 + $0x68] sm:$0xf] %vm510_vm0, %v4133_v13  ;;  %v3103_v29 = vsel %vm6880_vm13, %v3101_v52, %v3102_v16  ;;  %v3466_v18 = vld [vmem:[#allocation2 + $0x68] sm:$0x1]  ;;  %v4022_v34 = vld [vmem:[#allocation2 + $0x58] sm:$0xf]  ;;  %v3655_v13 = vor.u32 %v3654_v51, %v7533_v26 }
 0x1a3   : > { %2314 = vrot.lane.b32.xlu2 %v2239_v25, %s6060_s21  ;;  %v3785_v56 = vrot.slane %v3783_v48, 4  ;;  %v3788_v27 = vrot.slane %v3786_v57, 5  ;;  %v3059_v25 = vrot.slane %v3057_v42, 4  ;;  %4255 = vst.msk [vmem:[#allocation3 + $0x74] sm:$0xf] %vm510_vm0, %v4136_v0  ;;  %v7585_v49 = vrot.slane %v3792_v61, 5 }
 0x1a4   : > { %3900 = vrot.lane.b32.xlu1 %v3637_v11, %s6060_s21  ;;  %v2433_v30 = vld [vmem:[#allocation2 + $0x3c] sm:$0xf]  ;;  %v2434_v14 = vld [vmem:[#allocation2 + $0x40] sm:$0xf]  ;;  %v2940_v28 = vld [vmem:[#allocation2 + $0x68] sm:$0x1] }
 0x1a5   : > { %3344 = vrot.lane.b32.xlu0 %v3267_v45, %s6059_s20  ;;  %v2301_v60 = vpop.permute.xlu2 %2300  ;;  %5814 = vmatmul.msk.bf16.gmra.mxu2 %vm4726_vm2, %v5594_v33  ;;  %v5561_v45 = vld [vmem:[#allocation3 + $0x18] sm:$0xf]  ;;  %v3789_v38 = vor.u32 %v3788_v27, %v3785_v56  ;;  %v3061_v42 = vsel %vm6880_vm13, %v3059_v25, %v3060_v54  ;;  %v2566_v40 = vshrl.u32 %v2433_v30, 16  ;;  %v2569_v37 = vshll.u32 %v2433_v30, 16  ;;  %v4021_v33 = vld [vmem:[#allocation2 + $0x54] sm:$0xe] }
 0x1a6   : > { %2393 = vst.msk [vmem:[#allocation3 + $0x30] sm:$0xf] %vm2388_vm3, %v2301_v60  ;;  %v2299_v41 = vpop.permute.xlu1 %2298  ;;  %v2240_v63 = vld [vmem:[#allocation2 + $0x54] sm:$0xf]  ;;  %v3066_v35 = vrot.slane %v3064_v58, 4  ;;  %v5536_v56 = vrot.slane %v4021_v33, 9 }
 0x1a7   : > { %v2303_v53 = vpop.permute.xlu0 %2302  ;;  %2392 = vst.msk [vmem:[#allocation3 + $0x24] sm:$0xf] %vm2388_vm3, %v2299_v41  ;;  %v5837_v17 = vld [vmem:[#allocation3 + $0x1c] sm:$0xf]  ;;  %v3790_v36 = vrot.slane %v3789_v38, 4  ;;  %v2568_v57 = vrot.slane %v2566_v40, 4 }
 0x1a8   : > { %2394 = vst.msk [vmem:[#allocation3 + $0x3c] sm:$0xf] %vm2388_vm3, %v2303_v53  ;;  %v5566_v4 = vor.u32 %v5837_v17, %v5563_v9  ;;  %v2571_v62 = vrot.slane %v2569_v37, 5  ;;  %v3067_v16 = vrot.slane %v2940_v28, 5  ;;  %v3796_v0 = vshrl.u32 %v7563_v15, 16 }
 0x1a9   : > { %v3795_v41 = vsel %vm6205_vm8, %v3790_v36, %v7585_v49  ;;  %v3468_v54 = vld [vmem:[#allocation2 + $0x70] sm:$0xf] }
 0x1aa   : > { %v5848_v60 = vld [vmem:[#allocation3 + $0x70] sm:$0xf0]  ;;  %v2572_v9 = vor.u32 %v2571_v62, %v2568_v57  ;;  %v3676_v36 = vshrl.u32 %v3468_v54, 16  ;;  %v2242_v57 = vld [vmem:[#allocation2 + $0x60] sm:$0xf] }
 0x1ab   : > { %2159 = vrot.lane.b32.xlu2 %v2095_v32, %s6059_s20  ;;  %v4139_v32 = vrot.slane %v4022_v34, 5  ;;  %v3484_v62 = vld [vmem:[#allocation2 + $0xb0] sm:$0x1] }
 0x1ac   : > { %2352 = vrot.lane.b32.xlu1 %v2258_v2, %s6060_s21  ;;  %v2575_v2 = vshll.u32 %v2434_v14, 16  ;;  %v3678_v37 = vrot.slane %v3676_v36, 4 }
 0x1ad   : > { %3902 = vrot.lane.b32.xlu0 %v3651_v44, %s6060_s21  ;;  %v3889_v43 = vpop.permute.xlu2 %3888  ;;  %v3658_v44 = vshll.u32 %v3466_v18, 16  ;;  %v5573_v17 = vld [vmem:[#allocation3 + $0x30] sm:$0xf]  ;;  %v4141_v20 = vrot.slane %v4139_v32, 4  ;;  %v4140_v61 = vsel %vm6880_vm13, %v5536_v56, %v4139_v32  ;;  %v4024_v32 = vld [vmem:[#allocation2 + $0x60] sm:$0xe] }
 0x1ae   : > { %v3134_v46 = vpop.permute.xlu1 %3133  ;;  %v5838_v8 = vld [vmem:[#allocation3 + $0x20] sm:$0xf0]  ;;  %v2577_v26 = vrot.slane %v2575_v2, 5  ;;  %4256 = vst.msk [vmem:[#allocation3 + $0x80] sm:$0xf] %vm510_vm0, %v4140_v61 }
 0x1af   : > { %v2341_v10 = vpop.permute.xlu0 %2340  ;;  %3225 = vst.msk [vmem:[#allocation3 + $0x34] sm:$0xf] %vm1855_vm14, %v3134_v46  ;;  %v5562_v11 = vor.u32 %v5838_v8, %v5561_v45  ;;  %v5841_v27 = vld [vmem:[#allocation3 + $0x38] sm:$0xf0]  ;;  %v2573_v45 = vrot.slane %v2572_v9, 4  ;;  %v3656_v8 = vrot.slane %v3655_v13, 4 }
 0x1b0   : > { %2413 = vst.msk [vmem:[#allocation3 + $0x120] sm:$0xf] %vm2388_vm3, %v2341_v10  ;;  %v4142_v10 = vrot.slane %v4023_v59, 5  ;;  %v5574_v46 = vor.u32 %v5841_v27, %v5573_v17  ;;  %v4026_v17 = vld [vmem:[#allocation2 + $0x68] sm:$0x1] }
 0x1b1   : > { %3418 = vst.msk [vmem:[#allocation3 + $0x34] sm:$0xf] %vm2195_vm15, %v7518_v31  ;;  %4788 = vmatmul.bf16.gmra.mxu0 %v5562_v11  ;;  %4877 = vmatmul.bf16.gmra.mxu1 %v5566_v4  ;;  %v5605_v31 = vld [vmem:[#allocation3 + $0x68] sm:$0xf]  ;;  %v3660_v4 = vrot.slane %v3658_v44, 5  ;;  %v2578_v38 = vsel %vm6205_vm8, %v2573_v45, %v2577_v26  ;;  %v5537_v45 = vrot.slane %v4024_v32, 9 }
 0x1b2   : > { %v5606_v23 = vor.u32 %v5848_v60, %v5605_v31  ;;  %2893 = vst.msk [vmem:[#allocation3 + $0x64] sm:$0xf] %vm510_vm0, %v2578_v38  ;;  %v4143_v15 = vsel %vm6880_vm13, %v4141_v20, %v4142_v10  ;;  %v3798_v60 = vrot.slane %v3796_v0, 4  ;;  %v3278_v20 = vld [vmem:[#allocation2 + $0xa8] sm:$0xf] }
 0x1b3   : > { %2354 = vrot.lane.b32.xlu2 %v2259_v6, %s6060_s21  ;;  %v2953_v6 = vld [vmem:[#allocation2 + $0x9c] sm:$0xe]  ;;  %v3661_v51 = vsel %vm6205_vm8, %v3656_v8, %v3660_v4  ;;  %4257 = vst.msk [vmem:[#allocation3 + $0x8c] sm:$0xf] %vm510_vm0, %v4143_v15 }
 0x1b4   : > { %3151 = vrot.lane.b32.xlu1 %v3061_v42, %s6058_s15  ;;  %v3672_v42 = vshll.u32 %v3468_v54, 16  ;;  %v3799_v10 = vor.u32 %v3798_v60, %v7585_v49  ;;  %v3486_v49 = vld [vmem:[#allocation2 + $0xb8] sm:$0xf] }
 0x1b5   : > { %3175 = vrot.lane.b32.xlu0 %v3103_v29, %s6058_s15  ;;  %v3138_v47 = vpop.permute.xlu2 %3137  ;;  %5815 = vmatmul.msk.bf16.gmra.mxu2 %vm4726_vm2, %v5606_v23  ;;  %v3068_v29 = vsel %vm6880_vm13, %v3066_v35, %v3067_v16  ;;  %v4025_v23 = vld [vmem:[#allocation2 + $0x64] sm:$0xf]  ;;  %v5617_v56 = vld [vmem:[#allocation3 + $0x80] sm:$0xf]  ;;  %v3820_v36 = vshrl.u32 %v3486_v49, 16 }
 0x1b6   : > { %3227 = vst.msk [vmem:[#allocation3 + $0x4c] sm:$0xf] %vm1855_vm14, %v3138_v47  ;;  %v3329_v48 = vpop.permute.xlu1 %3328  ;;  %v5527_v47 = vrot.slane %v2953_v6, 9  ;;  %v7622_v40 = vrot.slane %v3672_v42, 5  ;;  %v4146_v13 = vrot.slane %v4025_v23, 5 }
 0x1b7   : > { %v3140_v53 = vpop.permute.xlu0 %3139  ;;  %3419 = vst.msk [vmem:[#allocation3 + $0x40] sm:$0xf] %vm2195_vm15, %v3329_v48  ;;  %v5693_v4 = vld [vmem:[#allocation3 + $0x120] sm:$0xf]  ;;  %v3279_v6 = vld [vmem:[#allocation2 + $0xac] sm:$0xf] }
 0x1b8   : > { %3228 = vst.msk [vmem:[#allocation3 + $0x58] sm:$0xf] %vm1855_vm14, %v3140_v53  ;;  %v2435_v53 = vld [vmem:[#allocation2 + $0x44] sm:$0x1]  ;;  %v3100_v9 = vsel %vm6880_vm13, %v5527_v47, %v3099_v39  ;;  %v3679_v59 = vor.u32 %v3678_v37, %v7622_v40  ;;  %v4148_v7 = vrot.slane %v4146_v13, 4  ;;  %v4147_v54 = vsel %vm6880_vm13, %v5537_v45, %v4146_v13 }
 0x1b9   : > { %3979 = vst.msk [vmem:[#allocation3 + $0x40] sm:$0xf] %vm2388_vm3, %v3889_v43  ;;  %v2579_v43 = vshrl.u32 %v2434_v14, 16  ;;  %v2585_v34 = vshll.u32 %v2435_v53, 16  ;;  %v3469_v14 = vld [vmem:[#allocation2 + $0x74] sm:$0x1] }
 0x1ba   : > { %v5851_v27 = vld [vmem:[#allocation3 + $0x88] sm:$0xf0]  ;;  %v3680_v39 = vrot.slane %v3679_v59, 4  ;;  %4258 = vst.msk [vmem:[#allocation3 + $0x98] sm:$0xf] %vm510_vm0, %v4147_v54  ;;  %v3822_v37 = vrot.slane %v3820_v36, 4 }
 0x1bb   : > { %3342 = vrot.lane.b32.xlu2 %v3266_v24, %s6059_s20  ;;  %v2581_v18 = vrot.slane %v2579_v43, 4  ;;  %v2587_v24 = vrot.slane %v2585_v34, 5  ;;  %v5618_v16 = vor.u32 %v5851_v27, %v5617_v56  ;;  %v2938_v42 = vld [vmem:[#allocation2 + $0x60] sm:$0xe]  ;;  %v3467_v53 = vld [vmem:[#allocation2 + $0x6c] sm:$0xf] }
 0x1bc   : > { %2316 = vrot.lane.b32.xlu1 %v2240_v63, %s6060_s21  ;;  %v3682_v63 = vshll.u32 %v3469_v14, 16  ;;  %v5522_v34 = vrot.slane %v2938_v42, 9  ;;  %v3487_v47 = vld [vmem:[#allocation2 + $0xbc] sm:$0x1]  ;;  %v3666_v32 = vshll.u32 %v3467_v53, 16  ;;  %v6032_v56 = vld [vmem:[%s8489_s5 + $0x80] sm:$0xff] }
 0x1bd   : > { %3926 = vrot.lane.b32.xlu0 %v3795_v41, %s6060_s21  ;;  %v3333_v25 = vpop.permute.xlu2 %3332  ;;  %v2582_v31 = vor.u32 %v2581_v18, %v2577_v26  ;;  %v4149_v26 = vrot.slane %v4026_v17, 5  ;;  %v3280_v27 = vld [vmem:[#allocation2 + $0xb4] sm:$0xf]  ;;  %v3269_v36 = vld [vmem:[#allocation2 + $0x70] sm:$0xf] }
 0x1be   : > { %3421 = vst.msk [vmem:[#allocation3 + $0x58] sm:$0xf] %vm2195_vm15, %v3333_v25  ;;  %v3887_v11 = vpop.permute.xlu1 %3886  ;;  %v3684_v0 = vrot.slane %v3682_v63, 5  ;;  %v4029_v63 = vld [vmem:[#allocation2 + $0x74] sm:$0x1] }
 0x1bf   : > { %v2305_v52 = vpop.permute.xlu0 %2304  ;;  %3978 = vst.msk [vmem:[#allocation3 + $0x34] sm:$0xf] %vm2388_vm3, %v3887_v11  ;;  %v2583_v48 = vrot.slane %v2582_v31, 4  ;;  %v4150_v11 = vsel %vm6880_vm13, %v4148_v7, %v4149_v26 }
 0x1c0   : > { %2395 = vst.msk [vmem:[#allocation3 + $0x48] sm:$0xf] %vm2388_vm3, %v2305_v52  ;;  %v5575_v41 = vld [vmem:[#allocation3 + $0x3c] sm:$0xf0]  ;;  %v3802_v52 = vshll.u32 %v3484_v62, 16  ;;  %v3685_v15 = vsel %vm6205_vm8, %v3680_v39, %v3684_v0 }
 0x1c1   : > { %4793 = vmatmul.bf16.gmra.mxu0 %v5574_v46  ;;  %v2588_v2 = vsel %vm6205_vm8, %v2583_v48, %v2587_v24  ;;  %v3800_v46 = vrot.slane %v3799_v10, 4  ;;  %4259 = vst.msk [vmem:[#allocation3 + $0xa4] sm:$0xf] %vm510_vm0, %v4150_v11  ;;  %v3663_v48 = vshrl.u32 %v3467_v53, 16  ;;  %v2436_v24 = vld [vmem:[#allocation2 + $0x48] sm:$0xf] }
 0x1c2   : > { %2894 = vst.msk [vmem:[#allocation3 + $0x70] sm:$0xf] %vm510_vm0, %v2588_v2  ;;  %v3804_v8 = vrot.slane %v3802_v52, 5  ;;  %v2590_v23 = vshrl.u32 %v2436_v24, 16  ;;  %v4028_v62 = vld [vmem:[#allocation2 + $0x70] sm:$0xf] }
 0x1c3   : > { %2318 = vrot.lane.b32.xlu2 %v2241_v55, %s6060_s21  ;;  %v3826_v10 = vshll.u32 %v3487_v47, 16  ;;  %v4153_v26 = vrot.slane %v4028_v62, 5  ;;  %v2243_v47 = vld [vmem:[#allocation2 + $0x64] sm:$0xf]  ;;  %v3485_v62 = vld [vmem:[#allocation2 + $0xb4] sm:$0xf] }
 0x1c4   : > { %3904 = vrot.lane.b32.xlu1 %v3661_v51, %s6060_s21  ;;  %v3805_v18 = vsel %vm6205_vm8, %v3800_v46, %v3804_v8 }
 0x1c5   : > { %3155 = vrot.lane.b32.xlu0 %v3068_v29, %s6058_s15  ;;  %v3891_v44 = vpop.permute.xlu2 %3890  ;;  %5816 = vmatmul.msk.bf16.gmra.mxu2 %vm4726_vm2, %v5618_v16  ;;  %v3816_v29 = vshll.u32 %v3486_v49, 16  ;;  %v3268_v16 = vld [vmem:[#allocation2 + $0x6c] sm:$0xf] }
 0x1c6   : > { %v2343_v28 = vpop.permute.xlu1 %2342  ;;  %v5840_v33 = vld [vmem:[#allocation3 + $0x34] sm:$0xf] }
 0x1c7   : > { %v3893_v30 = vpop.permute.xlu0 %3892  ;;  %2414 = vst.msk [vmem:[#allocation3 + $0x12c] sm:$0xf] %vm2388_vm3, %v2343_v28  ;;  %v5578_v35 = vor.u32 %v5840_v33, %v5575_v41  ;;  %v7658_v60 = vrot.slane %v3816_v29, 5  ;;  %v2437_v41 = vld [vmem:[#allocation2 + $0x4c] sm:$0xf] }
 0x1c8   : > { %3981 = vst.msk [vmem:[#allocation3 + $0x58] sm:$0xf] %vm2388_vm3, %v3893_v30  ;;  %v6031_v30 = vld [vmem:[%s8489_s5 + $0x88] sm:$0xff]  ;;  %v2599_v28 = vshll.u32 %v2437_v41, 16  ;;  %v5854_v52 = vld [vmem:[#allocation3 + $0xa0] sm:$0xf0] }
 0x1c9   : > { %4882 = vmatmul.bf16.gmra.mxu1 %v5578_v35  ;;  %v4027_v33 = vld [vmem:[#allocation2 + $0x6c] sm:$0xe]  ;;  %v3065_v35 = vsel %vm6880_vm13, %v5522_v34, %v3064_v58  ;;  %v3665_v58 = vrot.slane %v3663_v48, 4  ;;  %v5585_v39 = vld [vmem:[#allocation3 + $0x48] sm:$0xf]  ;;  %v2603_v54 = vshrl.u32 %v2437_v41, 16 }
 0x1ca   : > { %v5538_v19 = vrot.slane %v4027_v33, 9  ;;  %v2601_v49 = vrot.slane %v2599_v28, 5  ;;  %v2438_v34 = vld [vmem:[#allocation2 + $0x50] sm:$0x1]  ;;  %v4030_v33 = vld [vmem:[#allocation2 + $0x78] sm:$0xe] }
 0x1cb   : > { %3173 = vrot.lane.b32.xlu2 %v3100_v9, %s6058_s15  ;;  %v2592_v9 = vrot.slane %v2590_v23, 4  ;;  %v2605_v53 = vrot.slane %v2603_v54, 4  ;;  %v2609_v48 = vshll.u32 %v2438_v34, 16 }
 0x1cc   : > { %3366 = vrot.lane.b32.xlu1 %v3278_v20, %s6059_s20  ;;  %v3823_v20 = vor.u32 %v3822_v37, %v7658_v60  ;;  %v2957_v37 = vld [vmem:[#allocation2 + $0xac] sm:$0xf] }
 0x1cd   : > { %2320 = vrot.lane.b32.xlu0 %v2242_v57, %s6060_s21  ;;  %v2347_v25 = vpop.permute.xlu2 %2346  ;;  %v2593_v57 = vshll.u32 %v2436_v24, 16  ;;  %v3106_v28 = vrot.slane %v2957_v37, 5 }
 0x1ce   : > { %2416 = vst.msk [vmem:[#allocation3 + $0x144] sm:$0xf] %vm2388_vm3, %v2347_v25  ;;  %v3331_v38 = vpop.permute.xlu1 %3330  ;;  %v5871_v61 = vld [vmem:[#allocation3 + $0x128] sm:$0xf0]  ;;  %v3824_v8 = vrot.slane %v3823_v20, 4  ;;  %v3807_v20 = vshrl.u32 %v3485_v62, 16 }
 0x1cf   : > { %v3142_v43 = vpop.permute.xlu0 %3141  ;;  %3420 = vst.msk [vmem:[#allocation3 + $0x4c] sm:$0xf] %vm2195_vm15, %v3331_v38  ;;  %v5694_v55 = vor.u32 %v5871_v61, %v5693_v4  ;;  %v5587_v51 = vld [vmem:[#allocation3 + $0x54] sm:$0xf0]  ;;  %v2595_v59 = vrot.slane %v2593_v57, 5  ;;  %v3668_v4 = vrot.slane %v3666_v32, 5 }
 0x1d0   : > { %3229 = vst.msk [vmem:[#allocation3 + $0x64] sm:$0xf] %vm1855_vm14, %v3142_v43  ;;  %v4156_v43 = vrot.slane %v4029_v63, 5  ;;  %v3828_v38 = vrot.slane %v3826_v10, 5  ;;  %v4155_v61 = vrot.slane %v4153_v26, 4  ;;  %v3810_v10 = vshll.u32 %v3485_v62, 16 }
 0x1d1   : > { %3980 = vst.msk [vmem:[#allocation3 + $0x4c] sm:$0xf] %vm2388_vm3, %v3891_v44  ;;  %4843 = vmatmul.bf16.vlgmr.msra.gmra.mxu3 %v5694_v55  ;;  %v5629_v44 = vld [vmem:[#allocation3 + $0x98] sm:$0xf]  ;;  %v2596_v7 = vor.u32 %v2595_v59, %v2592_v9  ;;  %v4154_v55 = vsel %vm6880_vm13, %v5538_v19, %v4153_v26  ;;  %v4031_v19 = vld [vmem:[#allocation2 + $0x7c] sm:$0xf] }
 0x1d2   : > { %5995 = vmatpush.bf16.msra.mxu3 %v6031_v30  ;;  %v5630_v45 = vor.u32 %v5854_v52, %v5629_v44  ;;  %v4157_v29 = vsel %vm6880_vm13, %v4155_v61, %v4156_v43  ;;  %4260 = vst.msk [vmem:[#allocation3 + $0xb0] sm:$0xf] %vm510_vm0, %v4154_v55  ;;  %v2606_v30 = vor.u32 %v2605_v53, %v2601_v49  ;;  %v2958_v9 = vld [vmem:[#allocation2 + $0xb0] sm:$0x1]  ;;  %v4160_v26 = vrot.slane %v4031_v19, 5 }
 0x1d3   : > { %3368 = vrot.lane.b32.xlu2 %v3279_v6, %s6059_s20  ;;  %v2597_v25 = vrot.slane %v2596_v7, 4  ;;  %4261 = vst.msk [vmem:[#allocation3 + $0xbc] sm:$0xf] %vm510_vm0, %v4157_v29  ;;  %v2942_v55 = vld [vmem:[#allocation2 + $0x70] sm:$0xf] }
 0x1d4   : > { %3928 = vrot.lane.b32.xlu1 %v3805_v18, %s6060_s21  ;;  %v3669_v18 = vor.u32 %v3668_v4, %v3665_v58  ;;  %v2607_v23 = vrot.slane %v2606_v30, 4  ;;  %v3108_v58 = vrot.slane %v3106_v28, 4  ;;  %v4162_v54 = vrot.slane %v4160_v26, 4  ;;  %v7722_v29 = vld [vmem:[#allocation2 + $0xb8] sm:$0xf] }
 0x1d5   : > { %3908 = vrot.lane.b32.xlu0 %v3685_v15, %s6060_s21  ;;  %v3335_v14 = vpop.permute.xlu2 %3334  ;;  %5817 = vmatmul.msk.bf16.gmra.mxu2 %vm4726_vm2, %v5630_v45  ;;  %v2602_v11 = vsel %vm6205_vm8, %v2597_v25, %v2601_v49  ;;  %v5874_v24 = vld [vmem:[#allocation3 + $0x140] sm:$0xf0] }
 0x1d6   : > { %3422 = vst.msk [vmem:[#allocation3 + $0x64] sm:$0xf] %vm2195_vm15, %v3335_v14  ;;  %v2307_v2 = vpop.permute.xlu1 %2306  ;;  %5996 = vmatpush.bf16.msra.mxu3 %v6032_v56  ;;  %v2956_v14 = vld [vmem:[#allocation2 + $0xa8] sm:$0xe]  ;;  %v3670_v44 = vrot.slane %v3669_v18, 4 }
 0x1d7   : > { %v7656_v31 = vpop.permute.xlu0 %3336  ;;  %2396 = vst.msk [vmem:[#allocation3 + $0x54] sm:$0xf] %vm2388_vm3, %v2307_v2  ;;  %v2611_v2 = vrot.slane %v2609_v48, 5  ;;  %v5528_v32 = vrot.slane %v2956_v14, 9  ;;  %v3113_v14 = vrot.slane %v7722_v29, 5 }
 0x1d8   : > { %v5843_v13 = vld [vmem:[#allocation3 + $0x4c] sm:$0xf]  ;;  %2895 = vst.msk [vmem:[#allocation3 + $0x7c] sm:$0xf] %vm510_vm0, %v2602_v11  ;;  %v2941_v11 = vld [vmem:[#allocation2 + $0x6c] sm:$0xe] }
 0x1d9   : > { %v5590_v17 = vor.u32 %v5843_v13, %v5587_v51  ;;  %v3829_v51 = vsel %vm6205_vm8, %v3824_v8, %v3828_v38  ;;  %v2612_v59 = vsel %vm6205_vm8, %v2607_v23, %v2611_v2  ;;  %v3107_v45 = vsel %vm6880_vm13, %v5528_v32, %v3106_v28  ;;  %v2245_v8 = vld [vmem:[#allocation2 + $0x70] sm:$0xf]  ;;  %v7734_v28 = vld [vmem:[#allocation2 + $0x7c] sm:$0xf] }
 0x1da   : > { %v5857_v52 = vld [vmem:[#allocation3 + $0xb8] sm:$0xf0]  ;;  %2896 = vst.msk [vmem:[#allocation3 + $0x88] sm:$0xf] %vm510_vm0, %v2612_v59  ;;  %v5523_v18 = vrot.slane %v2941_v11, 9 }
 0x1db   : > { %4887 = vmatmul.bf16.gmra.mxu1 %v5590_v17  ;;  %3153 = vrot.lane.b32.xlu2 %v3065_v35, %s6058_s15  ;;  %v3270_v35 = vld [vmem:[#allocation2 + $0x78] sm:$0xf]  ;;  %v3675_v17 = vsel %vm6205_vm8, %v3670_v44, %v7622_v40  ;;  %v4032_v40 = vld [vmem:[#allocation2 + $0x80] sm:$0x1] }
 0x1dc   : > { %3346 = vrot.lane.b32.xlu1 %v3268_v16, %s6059_s20  ;;  %v5539_v16 = vrot.slane %v4030_v33, 9  ;;  %v4163_v4 = vrot.slane %v4032_v40, 5  ;;  %v7731_v44 = vld [vmem:[#allocation2 + $0x58] sm:$0xf] }
 0x1dd   : > { %3370 = vrot.lane.b32.xlu0 %v3280_v27, %s6059_s20  ;;  %v2311_v46 = vpop.permute.xlu2 %2310  ;;  %v5641_v27 = vld [vmem:[#allocation3 + $0xb0] sm:$0xf]  ;;  %v2623_v33 = vshll.u32 %v7731_v44, 16 }
 0x1de   : > { %2398 = vst.msk [vmem:[#allocation3 + $0x6c] sm:$0xf] %vm2388_vm3, %v2311_v46  ;;  %v2345_v6 = vpop.permute.xlu1 %2344  ;;  %v5844_v15 = vld [vmem:[#allocation3 + $0x50] sm:$0xf0]  ;;  %v5642_v7 = vor.u32 %v5857_v52, %v5641_v27  ;;  %v4161_v49 = vsel %vm6880_vm13, %v5539_v16, %v4160_v26  ;;  %v4164_v38 = vsel %vm6880_vm13, %v4162_v54, %v4163_v4 }
 0x1df   : > { %v3895_v0 = vpop.permute.xlu0 %3894  ;;  %2415 = vst.msk [vmem:[#allocation3 + $0x138] sm:$0xf] %vm2388_vm3, %v2345_v6  ;;  %v5586_v42 = vor.u32 %v5844_v15, %v5585_v39  ;;  %v3109_v39 = vrot.slane %v2958_v9, 5  ;;  %v2959_v15 = vld [vmem:[#allocation2 + $0xb4] sm:$0xe] }
 0x1e0   : > { %3982 = vst.msk [vmem:[#allocation3 + $0x64] sm:$0xf] %vm2388_vm3, %v3895_v0  ;;  %v3812_v0 = vrot.slane %v3810_v10, 5  ;;  %v5529_v30 = vrot.slane %v2959_v15, 9  ;;  %v3700_v15 = vshrl.u32 %v7734_v28, 16 }
 0x1e1   : > { %4798 = vmatmul.bf16.gmra.mxu0 %v5586_v42  ;;  %4262 = vst.msk [vmem:[#allocation3 + $0xc8] sm:$0xf] %vm510_vm0, %v4161_v49  ;;  %v3110_v61 = vsel %vm6880_vm13, %v3108_v58, %v3109_v39  ;;  %v3281_v42 = vld [vmem:[#allocation2 + $0xb8] sm:$0xf]  ;;  %v4034_v58 = vld [vmem:[#allocation2 + $0x88] sm:$0xf] }
 0x1e2   : > { %4263 = vst.msk [vmem:[#allocation3 + $0xd4] sm:$0xf] %vm510_vm0, %v4164_v38  ;;  %v4167_v4 = vrot.slane %v4034_v58, 5 }
 0x1e3   : > { %3348 = vrot.lane.b32.xlu2 %v3269_v36, %s6059_s20  ;;  %v3470_v36 = vld [vmem:[#allocation2 + $0x78] sm:$0xf] }
 0x1e4   : > { %2322 = vrot.lane.b32.xlu1 %v2243_v47, %s6060_s21  ;;  %v3687_v48 = vshrl.u32 %v3470_v36, 16 }
 0x1e5   : > { %3932 = vrot.lane.b32.xlu0 %v3829_v51, %s6060_s21  ;;  %v2156_v57 = vpop.permute.xlu2 %2155  ;;  %5818 = vmatmul.msk.bf16.gmra.mxu2 %vm4726_vm2, %v5642_v7  ;;  %v5847_v53 = vld [vmem:[#allocation3 + $0x68] sm:$0xf0]  ;;  %v3071_v51 = vrot.slane %v2942_v55, 5 }
 0x1e6   : > { %2224 = vst.msk [vmem:[#allocation3 + $0x150] sm:$0xf] %vm2195_vm15, %v2156_v57  ;;  %v3144_v63 = vpop.permute.xlu1 %3143  ;;  %v5705_v13 = vld [vmem:[#allocation3 + $0x138] sm:$0xf]  ;;  %v3689_v27 = vrot.slane %v3687_v48, 4 }
 0x1e7   : > { %v2158_v41 = vpop.permute.xlu0 %2157  ;;  %3230 = vst.msk [vmem:[#allocation3 + $0x70] sm:$0xf] %vm1855_vm14, %v3144_v63  ;;  %v5706_v56 = vor.u32 %v5874_v24, %v5705_v13  ;;  %v3690_v24 = vshll.u32 %v3470_v36, 16  ;;  %v3072_v16 = vsel %vm6880_vm13, %v5523_v18, %v3071_v51  ;;  %v4033_v7 = vld [vmem:[#allocation2 + $0x84] sm:$0xe]  ;;  %v3073_v19 = vrot.slane %v3071_v51, 4 }
 0x1e8   : > { %2225 = vst.msk [vmem:[#allocation3 + $0x15c] sm:$0xf] %vm2195_vm15, %v2158_v41  ;;  %v2439_v41 = vld [vmem:[#allocation2 + $0x54] sm:$0xf]  ;;  %v5653_v23 = vld [vmem:[#allocation3 + $0xc8] sm:$0xf] }
 0x1e9   : > { %3423 = vst.msk [vmem:[#allocation3 + $0x70] sm:$0xf] %vm2195_vm15, %v7656_v31  ;;  %4848 = vmatmul.bf16.gmra.mxu3 %v5706_v56  ;;  %v3809_v31 = vrot.slane %v3807_v20, 4  ;;  %v2614_v57 = vshrl.u32 %v2439_v41, 16  ;;  %v2617_v62 = vshll.u32 %v2439_v41, 16  ;;  %v3114_v56 = vsel %vm6880_vm13, %v5529_v30, %v3113_v14 }
 0x1ea   : > { %v3692_v20 = vrot.slane %v3690_v24, 5  ;;  %v5540_v40 = vrot.slane %v4033_v7, 9  ;;  %v5846_v49 = vld [vmem:[#allocation3 + $0x64] sm:$0xf]  ;;  %v3283_v51 = vld [vmem:[#allocation2 + $0xc4] sm:$0xf] }
 0x1eb   : > { %3906 = vrot.lane.b32.xlu2 %v3675_v17, %s6060_s21  ;;  %v3813_v6 = vor.u32 %v3812_v0, %v3809_v31  ;;  %v2616_v9 = vrot.slane %v2614_v57, 4  ;;  %v2619_v59 = vrot.slane %v2617_v62, 5  ;;  %v2943_v17 = vld [vmem:[#allocation2 + $0x74] sm:$0x1]  ;;  %v2625_v31 = vrot.slane %v2623_v33, 5 }
 0x1ec   : > { %3177 = vrot.lane.b32.xlu1 %v3107_v45, %s6058_s15  ;;  %v4035_v0 = vld [vmem:[#allocation2 + $0x8c] sm:$0x1]  ;;  %v4168_v11 = vsel %vm6880_vm13, %v5540_v40, %v4167_v4  ;;  %v3271_v18 = vld [vmem:[#allocation2 + $0x7c] sm:$0xf]  ;;  %v4036_v40 = vld [vmem:[#allocation2 + $0x90] sm:$0xe] }
 0x1ed   : > { %3350 = vrot.lane.b32.xlu0 %v3270_v35, %s6059_s20  ;;  %v2351_v25 = vpop.permute.xlu2 %2350  ;;  %v3814_v47 = vrot.slane %v3813_v6, 4  ;;  %v5860_v35 = vld [vmem:[#allocation3 + $0xd0] sm:$0xf0]  ;;  %v2620_v45 = vor.u32 %v2619_v59, %v2616_v9  ;;  %4264 = vst.msk [vmem:[#allocation3 + $0xe0] sm:$0xf] %vm510_vm0, %v4168_v11  ;;  %v5541_v11 = vrot.slane %v4036_v40, 9 }
 0x1ee   : > { %2418 = vst.msk [vmem:[#allocation3 + $0x15c] sm:$0xf] %vm2388_vm3, %v2351_v25  ;;  %v2309_v46 = vpop.permute.xlu1 %2308  ;;  %v5654_v10 = vor.u32 %v5860_v35, %v5653_v23  ;;  %v1006_v25 = vrot.slane %v7495_v22, 4  ;;  %v4169_v22 = vrot.slane %v4167_v4, 4  ;;  %v3488_v23 = vld [vmem:[#allocation2 + $0xc0] sm:$0xf] }
 0x1ef   : > { %v3146_v43 = vpop.permute.xlu0 %3145  ;;  %2397 = vst.msk [vmem:[#allocation3 + $0x60] sm:$0xf] %vm2388_vm3, %v2309_v46  ;;  %v3819_v13 = vsel %vm6205_vm8, %v3814_v47, %v7658_v60  ;;  %v3696_v60 = vshll.u32 %v7734_v28, 16  ;;  %v2621_v39 = vrot.slane %v2620_v45, 4  ;;  %v3693_v46 = vor.u32 %v3692_v20, %v3689_v27  ;;  %v1170_v47 = vld [vmem:[#allocation2 + $0xc8] sm:$0x1] }
 0x1f0   : > { %3231 = vst.msk [vmem:[#allocation3 + $0x7c] sm:$0xf] %vm1855_vm14, %v3146_v43  ;;  %v3074_v43 = vrot.slane %v2943_v17, 5  ;;  %v1171_v41 = vsel %vm6153_vm5, %v1006_v25, %v1170_v47  ;;  %v7782_v62 = vld [vmem:[#allocation2 + $0xbc] sm:$0x1]  ;;  %v3831_v20 = vshrl.u32 %v3488_v23, 16 }
 0x1f1   : > { %v7758_v38 = vrot.slane %v3696_v60, 5  ;;  %v7769_v30 = vrot.slane %v3693_v46, 4  ;;  %v2441_v28 = vld [vmem:[#allocation2 + $0x5c] sm:$0x1]  ;;  %1172 = vst [vmem:[#allocation2 + $0xc8] sm:$0x1] %v1171_v41 }
 0x1f2   : > { %v3472_v9 = vld [vmem:[#allocation2 + $0x80] sm:$0x1]  ;;  %v2633_v59 = vshll.u32 %v2441_v28, 16  ;;  %v2244_v27 = vld [vmem:[#allocation2 + $0x6c] sm:$0xf] }
 0x1f3   : > { %3179 = vrot.lane.b32.xlu2 %v3110_v61, %s6058_s15  ;;  %v7745_v52 = vpop.f32.mrf.mxu2  ;;  %v2626_v61 = vsel %vm6205_vm8, %v2621_v39, %v2625_v31  ;;  %v3116_v39 = vrot.slane %v7782_v62, 5  ;;  %v2457_v62 = vld [vmem:[#allocation2 + $0x9c] sm:$0xf] }
 0x1f4   : > { %3372 = vrot.lane.b32.xlu1 %v3281_v42, %s6059_s20  ;;  %2897 = vst.msk [vmem:[#allocation3 + $0x94] sm:$0xf] %vm510_vm0, %v2626_v61  ;;  %v4170_v42 = vrot.slane %v4035_v0, 5  ;;  %v2635_v58 = vrot.slane %v2633_v59, 5  ;;  %v5665_v0 = vld [vmem:[#allocation3 + $0xe0] sm:$0xf] }
 0x1f5   : > { %2326 = vrot.lane.b32.xlu0 %v2245_v8, %s6060_s21  ;;  %v3339_v37 = vpop.permute.xlu2 %3338  ;;  %5819 = vmatmul.msk.bf16.gmra.mxu2 %vm4726_vm2, %v5654_v10  ;;  %v2627_v8 = vshrl.u32 %v7731_v44, 16  ;;  %v7776_v44 = vld [vmem:[#allocation2 + $0x7c] sm:$0xf]  ;;  %v3834_v10 = vshll.u32 %v3488_v23, 16  ;;  %v2758_v59 = vshrl.u32 %v2457_v62, 16 }
 0x1f6   : > { %3424 = vst.msk [vmem:[#allocation3 + $0x7c] sm:$0xf] %vm2195_vm15, %v3339_v37  ;;  %v3897_v2 = vpop.permute.xlu1 %3896  ;;  %v5597_v32 = vld [vmem:[#allocation3 + $0x60] sm:$0xf]  ;;  %v4171_v48 = vsel %vm6880_vm13, %v4169_v22, %v4170_v42  ;;  %v3078_v29 = vrot.slane %v7776_v44, 5 }
 0x1f7   : > { %v7727_v34 = vpop.permute.xlu0 %3340  ;;  %3983 = vst.msk [vmem:[#allocation3 + $0x70] sm:$0xf] %vm2388_vm3, %v3897_v2  ;;  %v5598_v63 = vor.u32 %v5847_v53, %v5597_v32  ;;  %v3075_v53 = vsel %vm6880_vm13, %v3073_v19, %v3074_v43  ;;  %v2944_v37 = vld [vmem:[#allocation2 + $0x78] sm:$0xe]  ;;  %v2629_v24 = vrot.slane %v2627_v8, 4  ;;  %v7786_v2 = vrot.slane %v3113_v14, 4 }
 0x1f8   : > { %4265 = vst.msk [vmem:[#allocation3 + $0xec] sm:$0xf] %vm510_vm0, %v4171_v48  ;;  %v3702_v32 = vrot.slane %v3700_v15, 4  ;;  %v5524_v35 = vrot.slane %v2944_v37, 9  ;;  %v7792_v14 = vld [vmem:[#allocation2 + $0xc4] sm:$0xf]  ;;  %v3699_v43 = vsel %vm6205_vm8, %v7769_v30, %v7758_v38 }
 0x1f9   : > { %4803 = vmatmul.bf16.gmra.mxu0 %v5598_v63  ;;  %v2630_v33 = vor.u32 %v2629_v24, %v2625_v31  ;;  %v5877_v63 = vld [vmem:[#allocation3 + $0x158] sm:$0xf0]  ;;  %v3706_v19 = vshll.u32 %v3472_v9, 16  ;;  %v3840_v31 = vshll.u32 %v7792_v14, 16  ;;  %v3833_v8 = vrot.slane %v3831_v20, 4 }
 0x1fa   : > { %v3703_v7 = vor.u32 %v3702_v32, %v7758_v38  ;;  %v3079_v4 = vsel %vm6880_vm13, %v5524_v35, %v3078_v29  ;;  %v3836_v38 = vrot.slane %v3834_v10, 5  ;;  %v3844_v42 = vshrl.u32 %v7792_v14, 16  ;;  %v7830_v35 = vld [vmem:[#allocation2 + $0x80] sm:$0x1]  ;;  %v2459_v14 = vld [vmem:[#allocation2 + $0xa4] sm:$0x1] }
 0x1fb   : > { %3930 = vrot.lane.b32.xlu2 %v3819_v13, %s6060_s21  ;;  %v7778_v57 = vpop.f32.mrf.mxu2  ;;  %v2631_v17 = vrot.slane %v2630_v33, 4  ;;  %v3708_v22 = vrot.slane %v3706_v19, 5  ;;  %v7822_v30 = vrot.slane %v3840_v31, 5  ;;  %v2458_v9 = vld [vmem:[#allocation2 + $0xa0] sm:$0xf]  ;;  %v2777_v10 = vshll.u32 %v2459_v14, 16 }
 0x1fc   : > { %3157 = vrot.lane.b32.xlu1 %v3072_v16, %s6058_s15  ;;  %v3473_v16 = vld [vmem:[#allocation2 + $0x84] sm:$0xf]  ;;  %v3837_v41 = vor.u32 %v3836_v38, %v3833_v8  ;;  %v2771_v20 = vshrl.u32 %v2458_v9, 16  ;;  %v3490_v31 = vld [vmem:[#allocation2 + $0xc8] sm:$0x1]  ;;  %v3120_v8 = vrot.slane %v7842_v12, 5 }
 0x1fd   : > { %3181 = vrot.lane.b32.xlu0 %v3114_v56, %s6058_s15  ;;  %v2315_v54 = vpop.permute.xlu2 %2314  ;;  %v2636_v46 = vsel %vm6205_vm8, %v2631_v17, %v2635_v58  ;;  %v3117_v58 = vsel %vm6880_vm13, %v7786_v2, %v3116_v39  ;;  %v3081_v2 = vrot.slane %v7830_v35, 5 }
 0x1fe   : > { %2400 = vst.msk [vmem:[#allocation3 + $0x84] sm:$0xf] %vm2388_vm3, %v2315_v54  ;;  %v2349_v55 = vpop.permute.xlu1 %2348  ;;  %v5599_v6 = vld [vmem:[#allocation3 + $0x6c] sm:$0xf0]  ;;  %v3714_v54 = vshll.u32 %v3473_v16, 16  ;;  %v2773_v40 = vrot.slane %v2771_v20, 4 }
 0x1ff   : > { %v3899_v26 = vpop.permute.xlu0 %3898  ;;  %2417 = vst.msk [vmem:[#allocation3 + $0x150] sm:$0xf] %vm2388_vm3, %v2349_v55  ;;  %v5602_v36 = vor.u32 %v5846_v49, %v5599_v6  ;;  %v5863_v25 = vld [vmem:[#allocation3 + $0xe8] sm:$0xf0]  ;;  %v3711_v49 = vshrl.u32 %v3473_v16, 16 }
 0x200   : > { %3984 = vst.msk [vmem:[#allocation3 + $0x7c] sm:$0xf] %vm2388_vm3, %v3899_v26  ;;  %v5666_v61 = vor.u32 %v5863_v25, %v5665_v0  ;;  %v7813_v55 = vld [vmem:[#allocation2 + $0x88] sm:$0xf]  ;;  %v4037_v6 = vld [vmem:[#allocation2 + $0x94] sm:$0xf] }
 0x201   : > { %4892 = vmatmul.bf16.gmra.mxu1 %v5602_v36  ;;  %2898 = vst.msk [vmem:[#allocation3 + $0xa0] sm:$0xf] %vm510_vm0, %v2636_v46  ;;  %v3713_v37 = vrot.slane %v3711_v49, 4  ;;  %v3716_v48 = vrot.slane %v3714_v54, 5  ;;  %v3720_v23 = vshll.u32 %v7813_v55, 16  ;;  %v2779_v49 = vrot.slane %v2777_v10, 5 }
 0x203   : > { %3159 = vrot.lane.b32.xlu2 %v3075_v53, %s6058_s15  ;;  %v4174_v53 = vrot.slane %v4037_v6, 5  ;;  %v7854_v39 = vrot.slane %v3720_v23, 5  ;;  %v3122_v23 = vrot.slane %v3120_v8, 4 }
 0x204   : > { %3352 = vrot.lane.b32.xlu1 %v3271_v18, %s6059_s20  ;;  %v4038_v18 = vld [vmem:[#allocation2 + $0x98] sm:$0x1] }
 0x205   : > { %3376 = vrot.lane.b32.xlu0 %v3283_v51, %s6059_s20  ;;  %v2160_v56 = vpop.permute.xlu2 %2159  ;;  %5820 = vmatmul.msk.bf16.gmra.mxu2 %vm4726_vm2, %v5666_v61  ;;  %v1253_v51 = vld [vmem:[#allocation2 + $0xcc] sm:$0xf]  ;;  %v4177_v24 = vrot.slane %v4038_v18, 5  ;;  %v4175_v32 = vsel %vm6880_vm13, %v5541_v11, %v4174_v53  ;;  %v4176_v28 = vrot.slane %v4174_v53, 4  ;;  %v5850_v54 = vld [vmem:[#allocation3 + $0x80] sm:$0xf0] }
 0x206   : > { %2226 = vst.msk [vmem:[#allocation3 + $0x168] sm:$0xf] %vm2195_vm15, %v2160_v56  ;;  %v3148_v60 = vpop.permute.xlu1 %3147  ;;  %v5717_v45 = vld [vmem:[#allocation3 + $0x150] sm:$0xf]  ;;  %v7818_v36 = vpop.f32.mrf.mxu2  ;;  %v2761_v56 = vshll.u32 %v2457_v62, 16  ;;  %v1254_v17 = vsel %vm6279_vm10, %v6127_v1, %v1253_v51  ;;  %v3850_v11 = vshll.u32 %v3490_v31, 16 }
 0x207   : > { %v2162_v13 = vpop.permute.xlu0 %2161  ;;  %3232 = vst.msk [vmem:[#allocation3 + $0x88] sm:$0xf] %vm1855_vm14, %v3148_v60  ;;  %v5718_v26 = vor.u32 %v5877_v63, %v5717_v45  ;;  %v4178_v16 = vsel %vm6880_vm13, %v4176_v28, %v4177_v24  ;;  %v3717_v60 = vor.u32 %v3716_v48, %v3713_v37  ;;  %v3846_v45 = vrot.slane %v3844_v42, 4  ;;  %v3282_v61 = vld [vmem:[#allocation2 + $0xc0] sm:$0xf] }
 0x208   : > { %2227 = vst.msk [vmem:[#allocation3 + $0x174] sm:$0xf] %vm2195_vm15, %v2162_v13  ;;  %v3273_v13 = vld [vmem:[#allocation2 + $0x88] sm:$0xf]  ;;  %v2763_v19 = vrot.slane %v2761_v56, 5  ;;  %v3852_v35 = vrot.slane %v3850_v11, 5 }
 0x209   : > { %3425 = vst.msk [vmem:[#allocation3 + $0x88] sm:$0xf] %vm2195_vm15, %v7727_v34  ;;  %4853 = vmatmul.bf16.gmra.mxu3 %v5718_v26  ;;  %v3704_v34 = vrot.slane %v3703_v7, 4  ;;  %v2760_v7 = vrot.slane %v2758_v59, 4  ;;  %v3838_v26 = vrot.slane %v3837_v41, 4  ;;  %v3718_v44 = vrot.slane %v3717_v60, 4 }
 0x20a   : > { %4266 = vst.msk [vmem:[#allocation3 + $0xf8] sm:$0xf] %vm510_vm0, %v4175_v32  ;;  %v2964_v42 = vld [vmem:[#allocation2 + $0xc8] sm:$0x1]  ;;  %v4039_v53 = vld [vmem:[#allocation2 + $0x9c] sm:$0xe] }
 0x20b   : > { %2324 = vrot.lane.b32.xlu2 %v2244_v27, %s6060_s21  ;;  %v3709_v63 = vsel %vm6205_vm8, %v3704_v34, %v3708_v22  ;;  %v2767_v27 = vshll.u32 %v2458_v9, 16  ;;  %4267 = vst.msk [vmem:[#allocation3 + $0x104] sm:$0xf] %vm510_vm0, %v4178_v16  ;;  %v2764_v0 = vor.u32 %v2763_v19, %v2760_v7  ;;  %v7867_v48 = vld [vmem:[#allocation2 + $0xa0] sm:$0xf]  ;;  %v3723_v24 = vsel %vm6205_vm8, %v3718_v44, %v7854_v39 }
 0x20c   : > { %3910 = vrot.lane.b32.xlu1 %v3699_v43, %s6060_s21  ;;  %v7848_v43 = vrot.slane %v3078_v29, 4  ;;  %1255 = vst [vmem:[#allocation2 + $0xcc] sm:$0xf] %v1254_v17  ;;  %v3847_v29 = vor.u32 %v3846_v45, %v7822_v30  ;;  %v3843_v32 = vsel %vm6205_vm8, %v3838_v26, %v7822_v30  ;;  %v3123_v28 = vrot.slane %v2964_v42, 5  ;;  %v7882_v9 = vld [vmem:[#allocation2 + $0xd0] sm:$0xf] }
 0x20d   : > { %3161 = vrot.lane.b32.xlu0 %v3079_v4, %s6058_s15  ;;  %v2355_v47 = vpop.permute.xlu2 %2354  ;;  %v2769_v1 = vrot.slane %v2767_v27, 5  ;;  %v2765_v38 = vrot.slane %v2764_v0, 4  ;;  %v4181_v14 = vrot.slane %v7867_v48, 5  ;;  %v1257_v30 = vld [vmem:[#allocation2 + $0xd4] sm:$0x1]  ;;  %v3724_v19 = vshrl.u32 %v7813_v55, 16 }
 0x20e   : > { %2420 = vst.msk [vmem:[#allocation3 + $0x174] sm:$0xf] %vm2388_vm3, %v2355_v47  ;;  %v2313_v33 = vpop.permute.xlu1 %2312  ;;  %v7860_v34 = vpop.f32.mrf.mxu2  ;;  %v7872_v41 = vrot.slane %v3847_v29, 4  ;;  %v5849_v20 = vld [vmem:[#allocation3 + $0x7c] sm:$0xf]  ;;  %v3082_v7 = vsel %vm6880_vm13, %v7848_v43, %v3081_v2  ;;  %v1258_v55 = vsel %vm6153_vm5, %v6136_v3, %v1257_v30 }
 0x20f   : > { %v3150_v15 = vpop.permute.xlu0 %3149  ;;  %2399 = vst.msk [vmem:[#allocation3 + $0x78] sm:$0xf] %vm2388_vm3, %v2313_v33  ;;  %v2774_v25 = vor.u32 %v2773_v40, %v2769_v1  ;;  %v2770_v18 = vsel %vm6205_vm8, %v2765_v38, %v2769_v1  ;;  %v3475_v1 = vld [vmem:[#allocation2 + $0x8c] sm:$0x1]  ;;  %v3864_v40 = vshll.u32 %v7882_v9, 16  ;;  %v3726_v3 = vrot.slane %v3724_v19, 4 }
 0x210   : > { %3233 = vst.msk [vmem:[#allocation3 + $0x94] sm:$0xf] %vm1855_vm14, %v3150_v15  ;;  %v2442_v26 = vld [vmem:[#allocation2 + $0x60] sm:$0xf]  ;;  %v2444_v11 = vld [vmem:[#allocation2 + $0x68] sm:$0x1] }
 0x211   : > { %v2775_v22 = vrot.slane %v2774_v25, 4  ;;  %v5677_v37 = vld [vmem:[#allocation3 + $0xf8] sm:$0xf]  ;;  %2909 = vst.msk [vmem:[#allocation3 + $0x124] sm:$0xf] %vm510_vm0, %v2770_v18  ;;  %v3853_v25 = vsel %vm6205_vm8, %v7872_v41, %v3852_v35  ;;  %v2641_v43 = vshll.u32 %v2442_v26, 16  ;;  %v3727_v35 = vor.u32 %v3726_v3, %v7854_v39 }
 0x212   : > { %v5866_v62 = vld [vmem:[#allocation3 + $0x100] sm:$0xf0]  ;;  %v2657_v42 = vshll.u32 %v2444_v11, 16  ;;  %1259 = vst [vmem:[#allocation2 + $0xd4] sm:$0x1] %v1258_v55 }
 0x213   : > { %3912 = vrot.lane.b32.xlu2 %v3709_v63, %s6060_s21  ;;  %v2780_v47 = vsel %vm6205_vm8, %v2775_v22, %v2779_v49  ;;  %v5678_v33 = vor.u32 %v5866_v62, %v5677_v37  ;;  %v3491_v63 = vld [vmem:[#allocation2 + $0xcc] sm:$0xf]  ;;  %v2443_v49 = vld [vmem:[#allocation2 + $0x64] sm:$0xf] }
 0x214   : > { %3183 = vrot.lane.b32.xlu1 %v3117_v58, %s6058_s15  ;;  %2910 = vst.msk [vmem:[#allocation3 + $0x130] sm:$0xf] %vm510_vm0, %v2780_v47  ;;  %v3855_v59 = vshrl.u32 %v3491_v63, 16  ;;  %v3858_v56 = vshll.u32 %v3491_v63, 16  ;;  %v3124_v58 = vsel %vm6880_vm13, %v3122_v23, %v3123_v28  ;;  %v2647_v38 = vshll.u32 %v2443_v49, 16 }
 0x215   : > { %3356 = vrot.lane.b32.xlu0 %v3273_v13, %s6059_s20  ;;  %v3343_v46 = vpop.permute.xlu2 %3342  ;;  %v5542_v13 = vrot.slane %v4039_v53, 9  ;;  %5821 = vmatmul.msk.bf16.gmra.mxu2 %vm4726_vm2, %v5678_v33  ;;  %v4041_v37 = vld [vmem:[#allocation2 + $0xa4] sm:$0x1]  ;;  %v5880_v41 = vld [vmem:[#allocation3 + $0x170] sm:$0xf0]  ;;  %v7922_v28 = vrot.slane %v3864_v40, 5 }
 0x216   : > { %3426 = vst.msk [vmem:[#allocation3 + $0x94] sm:$0xf] %vm2195_vm15, %v3343_v46  ;;  %v3901_v6 = vpop.permute.xlu1 %3900  ;;  %v5609_v15 = vld [vmem:[#allocation3 + $0x78] sm:$0xf]  ;;  %v4784_v27 = vpop.f32.mrf.mxu0  ;;  %v3857_v16 = vrot.slane %v3855_v59, 4  ;;  %v3860_v60 = vrot.slane %v3858_v56, 5 }
 0x217   : > { %v7851_v4 = vpop.permute.xlu0 %3344  ;;  %3985 = vst.msk [vmem:[#allocation3 + $0x88] sm:$0xf] %vm2388_vm3, %v3901_v6  ;;  %v5610_v51 = vor.u32 %v5850_v54, %v5609_v15  ;;  %v4182_v45 = vsel %vm6880_vm13, %v5542_v13, %v4181_v14  ;;  %v2638_v54 = vshrl.u32 %v2442_v26, 16  ;;  %v2643_v15 = vrot.slane %v2641_v43, 5  ;;  %v7924_v33 = vld [vmem:[#allocation2 + $0x88] sm:$0xf] }
 0x218   : > { %v7907_v29 = vpop.f32.mrf.mxu2  ;;  %4268 = vst.msk [vmem:[#allocation3 + $0x110] sm:$0xf] %vm510_vm0, %v4182_v45  ;;  %v3861_v22 = vor.u32 %v3860_v60, %v3857_v16  ;;  %v2649_v18 = vrot.slane %v2647_v38, 5  ;;  %v2659_v13 = vrot.slane %v2657_v42, 5  ;;  %v4183_v56 = vrot.slane %v4181_v14, 4 }
 0x219   : > { %4808 = vmatmul.bf16.gmra.mxu0 %v5610_v51  ;;  %v2640_v6 = vrot.slane %v2638_v54, 4  ;;  %v3730_v51 = vshll.u32 %v3475_v1, 16  ;;  %v3272_v45 = vld [vmem:[#allocation2 + $0x84] sm:$0xf]  ;;  %v2246_v14 = vld [vmem:[#allocation2 + $0x78] sm:$0xf] }
 0x21a   : > { %v4042_v54 = vld [vmem:[#allocation2 + $0xa8] sm:$0xe]  ;;  %v3868_v42 = vshrl.u32 %v7882_v9, 16 }
 0x21b   : > { %3374 = vrot.lane.b32.xlu2 %v3282_v61, %s6059_s20  ;;  %v2651_v61 = vshrl.u32 %v2443_v49, 16  ;;  %v2644_v47 = vor.u32 %v2643_v15, %v2640_v6  ;;  %v3477_v49 = vld [vmem:[#allocation2 + $0x94] sm:$0xf] }
 0x21c   : > { %3934 = vrot.lane.b32.xlu1 %v3843_v32, %s6060_s21  ;;  %v3862_v32 = vrot.slane %v3861_v22, 4  ;;  %v5543_v22 = vrot.slane %v4042_v54, 9 }
 0x21d   : > { %3914 = vrot.lane.b32.xlu0 %v3723_v24, %s6060_s21  ;;  %v2319_v10 = vpop.permute.xlu2 %2318  ;;  %v2653_v53 = vrot.slane %v2651_v61, 4  ;;  %v2645_v63 = vrot.slane %v2644_v47, 4  ;;  %v3748_v47 = vshrl.u32 %v3477_v49, 16 }
 0x21e   : > { %2402 = vst.msk [vmem:[#allocation3 + $0x9c] sm:$0xf] %vm2388_vm3, %v2319_v10  ;;  %v4873_v31 = vpop.f32.mrf.mxu1  ;;  %v5611_v0 = vld [vmem:[#allocation3 + $0x84] sm:$0xf0]  ;;  %v2353_v46 = vpop.permute.xlu1 %2352  ;;  %v3867_v19 = vsel %vm6205_vm8, %v3862_v32, %v7922_v28 }
 0x21f   : > { %v3903_v17 = vpop.permute.xlu0 %3902  ;;  %v4874_v2 = vadd.f32 %v4873_v31, %v4784_v27  ;;  %v5614_v44 = vor.u32 %v5849_v20, %v5611_v0  ;;  %2419 = vst.msk [vmem:[#allocation3 + $0x168] sm:$0xf] %vm2388_vm3, %v2353_v46  ;;  %v4786_v30 = vpop.f32.mrf.mxu0  ;;  %v7932_v20 = vrot.slane %v3730_v51, 5  ;;  %v2650_v39 = vsel %vm6205_vm8, %v2645_v63, %v2649_v18  ;;  %v2949_v0 = vld [vmem:[#allocation2 + $0x8c] sm:$0x1] }
 0x220   : > { %3986 = vst.msk [vmem:[#allocation3 + $0x94] sm:$0xf] %vm2388_vm3, %v3903_v17  ;;  %v4184_v17 = vrot.slane %v4041_v37, 5  ;;  %v7949_v31 = vrot.slane %v3727_v35, 4  ;;  %v3088_v11 = vrot.slane %v2949_v0, 5  ;;  %v3744_v51 = vshll.u32 %v3477_v49, 16 }
 0x221   : > { %v4963_v5 = vadd.f32 %v7745_v52, %v4874_v2  ;;  %4897 = vmatmul.bf16.gmra.mxu1 %v5614_v44  ;;  %v2654_v52 = vor.u32 %v2653_v53, %v2649_v18  ;;  %2899 = vst.msk [vmem:[#allocation3 + $0xac] sm:$0xf] %vm510_vm0, %v2650_v39  ;;  %v4043_v2 = vld [vmem:[#allocation2 + $0xac] sm:$0xf]  ;;  %v4044_v37 = vld [vmem:[#allocation2 + $0xb0] sm:$0x1] }
 0x222   : > { %v4191_v63 = vrot.slane %v4044_v37, 5  ;;  %v2461_v49 = vld [vmem:[#allocation2 + $0xac] sm:$0xf] }
 0x223   : > { %3936 = vrot.lane.b32.xlu2 %v3853_v25, %s6060_s21  ;;  %v5042_v24 = vpack.c.bf16 %v4963_v5, %v4963_v5  ;;  %v2655_v59 = vrot.slane %v2654_v52, 4  ;;  %v5176_v40 = vmul.f32 %v4963_v5, %v4963_v5  ;;  %v4185_v25 = vsel %vm6880_vm13, %v4183_v56, %v4184_v17  ;;  %v2247_v52 = vld [vmem:[#allocation2 + $0x7c] sm:$0xf]  ;;  %v5689_v56 = vld [vmem:[#allocation3 + $0x110] sm:$0xf] }
 0x224   : > { %3163 = vrot.lane.b32.xlu1 %v3082_v7, %s6058_s15  ;;  %v7935_v7 = vpop.f32.mrf.mxu2  ;;  %v5106_v43 = vsel %vm4726_vm2, %v4963_v5, 0.0  ;;  %4269 = vst.msk [vmem:[#allocation3 + $0x11c] sm:$0xf] %vm510_vm0, %v4185_v25  ;;  %v4188_v5 = vrot.slane %v4043_v2, 5  ;;  %v3870_v17 = vrot.slane %v3868_v42, 4  ;;  %v2791_v2 = vshll.u32 %v2461_v49, 16 }
 0x225   : > { %3187 = vrot.lane.b32.xlu0 %v3124_v58, %s6058_s15  ;;  %v3174_v23 = vpop.permute.xlu2 %3173  ;;  %5074 = vst.msk [vmem:[%s7917_s22] sm:$0xf] %vm510_vm0, %v5042_v24  ;;  %v3085_v58 = vrot.slane %v7924_v33, 5  ;;  %v2660_v1 = vsel %vm6205_vm8, %v2655_v59, %v2659_v13  ;;  %v5208_v6 = vsel %vm4726_vm2, %v5176_v40, 0.0  ;;  %v2962_v13 = vld [vmem:[#allocation2 + $0xc0] sm:$0xe]  ;;  %v3733_v59 = vsel %vm6205_vm8, %v7949_v31, %v7932_v20 }
 0x226   : > { %v4875_v27 = vpop.f32.mrf.mxu1  ;;  %3245 = vst.msk [vmem:[#allocation3 + $0x124] sm:$0xf] %vm1855_vm14, %v3174_v23  ;;  %v3152_v16 = vpop.permute.xlu1 %3151  ;;  %v5729_v60 = vld [vmem:[#allocation3 + $0x168] sm:$0xf]  ;;  %v4190_v32 = vrot.slane %v4188_v5, 4  ;;  %v5530_v39 = vrot.slane %v2962_v13, 9  ;;  %v3871_v0 = vor.u32 %v3870_v17, %v7922_v28 }
 0x227   : > { %v3176_v62 = vpop.permute.xlu0 %3175  ;;  %v4876_v10 = vadd.f32 %v4875_v27, %v4786_v30  ;;  %3234 = vst.msk [vmem:[#allocation3 + $0xa0] sm:$0xf] %vm1855_vm14, %v3152_v16  ;;  %v5730_v48 = vor.u32 %v5880_v41, %v5729_v60  ;;  %v3087_v61 = vrot.slane %v3085_v58, 4  ;;  %v3478_v27 = vld [vmem:[#allocation2 + $0x98] sm:$0x1]  ;;  %v3750_v16 = vrot.slane %v3748_v47, 4 }
 0x228   : > { %3246 = vst.msk [vmem:[#allocation3 + $0x130] sm:$0xf] %vm1855_vm14, %v3176_v62  ;;  %v4189_v62 = vsel %vm6880_vm13, %v5543_v22, %v4188_v5  ;;  %v4192_v30 = vsel %vm6880_vm13, %v4190_v32, %v4191_v63  ;;  %v3754_v25 = vshll.u32 %v3478_v27, 16  ;;  %v3121_v28 = vsel %vm6880_vm13, %v5530_v39, %v3120_v8  ;;  %v2248_v42 = vld [vmem:[#allocation2 + $0x84] sm:$0xf] }
 0x229   : > { %v4965_v26 = vadd.f32 %v7778_v57, %v4876_v10  ;;  %3427 = vst.msk [vmem:[#allocation3 + $0xa0] sm:$0xf] %vm2195_vm15, %v7851_v4  ;;  %4858 = vmatmul.bf16.gmra.mxu3 %v5730_v48  ;;  %v3089_v9 = vsel %vm6880_vm13, %v3087_v61, %v3088_v11  ;;  %v7987_v10 = vrot.slane %v3744_v51, 5  ;;  %v8008_v5 = vrot.slane %v2791_v2, 5  ;;  %v5852_v63 = vld [vmem:[#allocation3 + $0x94] sm:$0xf] }
 0x22a   : > { %2900 = vst.msk [vmem:[#allocation3 + $0xb8] sm:$0xf] %vm510_vm0, %v2660_v1  ;;  %v3872_v47 = vrot.slane %v3871_v0, 4  ;;  %v3756_v8 = vrot.slane %v3754_v25, 5  ;;  %v3285_v27 = vld [vmem:[#allocation2 + $0xd0] sm:$0xf] }
 0x22b   : > { %3354 = vrot.lane.b32.xlu2 %v3272_v45, %s6059_s20  ;;  %v5043_v57 = vpack.c.bf16 %v4965_v26, %v4965_v26  ;;  %v5107_v55 = vsel %vm4726_vm2, %v4965_v26, 0.0  ;;  %v5177_v4 = vmul.f32 %v4965_v26, %v4965_v26  ;;  %4270 = vst.msk [vmem:[#allocation3 + $0x128] sm:$0xf] %vm510_vm0, %v4189_v62  ;;  %v5869_v45 = vld [vmem:[#allocation3 + $0x118] sm:$0xf0] }
 0x22c   : > { %v5108_v46 = vadd.f32 %v5107_v55, %v5106_v43  ;;  %2328 = vrot.lane.b32.xlu1 %v2246_v14, %s6060_s21  ;;  %v7971_v23 = vpop.f32.mrf.mxu2  ;;  %4271 = vst.msk [vmem:[#allocation3 + $0x134] sm:$0xf] %vm510_vm0, %v4192_v30  ;;  %v5853_v14 = vld [vmem:[#allocation3 + $0x98] sm:$0xf0]  ;;  %v5690_v40 = vor.u32 %v5869_v45, %v5689_v56  ;;  %v3751_v55 = vor.u32 %v3750_v16, %v7987_v10 }
 0x22d   : > { %3938 = vrot.lane.b32.xlu0 %v3867_v19, %s6060_s21  ;;  %v3369_v44 = vpop.permute.xlu2 %3368  ;;  %5075 = vst.msk [vmem:[%s7917_s22 + $0x4] sm:$0xf] %vm510_vm0, %v5043_v57  ;;  %v5209_v15 = vsel %vm4726_vm2, %v5177_v4, 0.0  ;;  %v3493_v26 = vld [vmem:[#allocation2 + $0xd4] sm:$0x1] }
 0x22e   : > { %v5210_v3 = vadd.f32 %v5209_v15, %v5208_v6  ;;  %v4878_v18 = vpop.f32.mrf.mxu1  ;;  %v4789_v53 = vpop.f32.mrf.mxu0  ;;  %3439 = vst.msk [vmem:[#allocation3 + $0x130] sm:$0xf] %vm2195_vm15, %v3369_v44  ;;  %5822 = vmatmul.msk.bf16.gmra.mxu2 %vm4726_vm2, %v5690_v40  ;;  %v2462_v4 = vld [vmem:[#allocation2 + $0xb0] sm:$0x1]  ;;  %v3874_v51 = vshll.u32 %v3493_v26, 16  ;;  %v3752_v12 = vrot.slane %v3751_v55, 4 }
 0x22f   : > { %v7960_v38 = vpop.permute.xlu0 %3926  ;;  %v2317_v24 = vpop.permute.xlu1 %2316  ;;  %v4879_v41 = vadd.f32 %v4878_v18, %v4789_v53  ;;  %v2801_v6 = vshll.u32 %v2462_v4, 16  ;;  %v3284_v53 = vld [vmem:[#allocation2 + $0xcc] sm:$0xf]  ;;  %v2947_v26 = vld [vmem:[#allocation2 + $0x84] sm:$0xe] }
 0x230   : > { %2401 = vst.msk [vmem:[#allocation3 + $0x90] sm:$0xf] %vm2388_vm3, %v2317_v24  ;;  %v2460_v24 = vld [vmem:[#allocation2 + $0xa8] sm:$0xf]  ;;  %v3876_v30 = vrot.slane %v3874_v51, 5  ;;  %v3757_v40 = vsel %vm6205_vm8, %v3752_v12, %v3756_v8 }
 0x231   : > { %v4968_v35 = vadd.f32 %v7818_v36, %v4879_v41  ;;  %v2803_v32 = vrot.slane %v2801_v6, 5  ;;  %v2785_v56 = vshll.u32 %v2460_v24, 16  ;;  %v3274_v12 = vld [vmem:[#allocation2 + $0x90] sm:$0xf] }
 0x232   : > { %v3877_v0 = vsel %vm6205_vm8, %v3872_v47, %v3876_v30  ;;  %v4047_v30 = vld [vmem:[#allocation2 + $0xbc] sm:$0x1] }
 0x233   : > { %2330 = vrot.lane.b32.xlu2 %v2247_v52, %s6060_s21  ;;  %v5044_v36 = vpack.c.bf16 %v4968_v35, %v4968_v35  ;;  %v5109_v60 = vsel %vm4726_vm2, %v4968_v35, 0.0  ;;  %v5178_v20 = vmul.f32 %v4968_v35, %v4968_v35 }
 0x234   : > { %v5110_v48 = vadd.f32 %v5109_v60, %v5108_v46  ;;  %3916 = vrot.lane.b32.xlu1 %v3733_v59, %s6060_s21  ;;  %v2795_v46 = vshrl.u32 %v2461_v49, 16  ;;  %v8005_v22 = vpop.f32.mrf.mxu2  ;;  %v2782_v59 = vshrl.u32 %v2460_v24, 16 }
 0x235   : > { %3167 = vrot.lane.b32.xlu0 %v3089_v9, %s6058_s15  ;;  %v3154_v19 = vpop.permute.xlu2 %3153  ;;  %5076 = vst.msk [vmem:[%s7917_s22 + $0x8] sm:$0xf] %vm510_vm0, %v5044_v36  ;;  %v5211_v31 = vsel %vm4726_vm2, %v5178_v20, 0.0  ;;  %v5701_v36 = vld [vmem:[#allocation3 + $0x128] sm:$0xf]  ;;  %v2787_v20 = vrot.slane %v2785_v56, 5 }
 0x236   : > { %v5212_v54 = vadd.f32 %v5211_v31, %v5210_v3  ;;  %v4880_v43 = vpop.f32.mrf.mxu1  ;;  %v4791_v57 = vpop.f32.mrf.mxu0  ;;  %3235 = vst.msk [vmem:[#allocation3 + $0xac] sm:$0xf] %vm1855_vm14, %v3154_v19  ;;  %v2797_v3 = vrot.slane %v2795_v46, 4  ;;  %v2784_v60 = vrot.slane %v2782_v59, 4  ;;  %v2446_v46 = vld [vmem:[#allocation2 + $0x70] sm:$0xf] }
 0x237   : > { %v3156_v1 = vpop.permute.xlu0 %3155  ;;  %v3905_v44 = vpop.permute.xlu1 %3904  ;;  %v4881_v61 = vadd.f32 %v4880_v43, %v4791_v57  ;;  %v5621_v11 = vld [vmem:[#allocation3 + $0x90] sm:$0xf]  ;;  %v5525_v57 = vrot.slane %v2947_v26, 9 }
 0x238   : > { %3236 = vst.msk [vmem:[#allocation3 + $0xb8] sm:$0xf] %vm1855_vm14, %v3156_v1  ;;  %v5622_v15 = vor.u32 %v5853_v14, %v5621_v11  ;;  %v2798_v37 = vor.u32 %v2797_v3, %v8008_v5  ;;  %v2788_v31 = vor.u32 %v2787_v20, %v2784_v60  ;;  %v2447_v11 = vld [vmem:[#allocation2 + $0x74] sm:$0x1]  ;;  %v2675_v3 = vshrl.u32 %v2446_v46, 16 }
 0x239   : > { %3987 = vst.msk [vmem:[#allocation3 + $0xa0] sm:$0xf] %vm2388_vm3, %v3905_v44  ;;  %v4970_v18 = vadd.f32 %v7860_v34, %v4881_v61  ;;  %v2681_v51 = vshll.u32 %v2447_v11, 16  ;;  %v2951_v11 = vld [vmem:[#allocation2 + $0x94] sm:$0xf] }
 0x23a   : > { %4813 = vmatmul.bf16.gmra.mxu0 %v5622_v15  ;;  %v2799_v35 = vrot.slane %v2798_v37, 4  ;;  %v2789_v49 = vrot.slane %v2788_v31, 4  ;;  %v3086_v15 = vsel %vm6880_vm13, %v5525_v57, %v3085_v58  ;;  %v2677_v24 = vrot.slane %v2675_v3, 4 }
 0x23b   : > { %3185 = vrot.lane.b32.xlu2 %v3121_v28, %s6058_s15  ;;  %v5045_v41 = vpack.c.bf16 %v4970_v18, %v4970_v18  ;;  %v5111_v52 = vsel %vm4726_vm2, %v4970_v18, 0.0  ;;  %v5179_v62 = vmul.f32 %v4970_v18, %v4970_v18  ;;  %v2445_v18 = vld [vmem:[#allocation2 + $0x6c] sm:$0xf]  ;;  %v2683_v58 = vrot.slane %v2681_v51, 5 }
 0x23c   : > { %v8015_v34 = vadd.f32 %v5111_v52, %v5110_v48  ;;  %3378 = vrot.lane.b32.xlu1 %v3284_v53, %s6059_s20  ;;  %v5872_v48 = vld [vmem:[#allocation3 + $0x130] sm:$0xf0]  ;;  %v8025_v14 = vpop.f32.mrf.mxu2  ;;  %v2804_v19 = vsel %vm6205_vm8, %v2799_v35, %v2803_v32  ;;  %v2794_v4 = vsel %vm6205_vm8, %v2789_v49, %v8008_v5  ;;  %v2671_v5 = vshll.u32 %v2446_v46, 16  ;;  %v3276_v53 = vld [vmem:[#allocation2 + $0x9c] sm:$0xf] }
 0x23d   : > { %2332 = vrot.lane.b32.xlu0 %v2248_v42, %s6060_s21  ;;  %v3349_v9 = vpop.permute.xlu2 %3348  ;;  %5077 = vst.msk [vmem:[%s7917_s22 + $0xc] sm:$0xf] %vm510_vm0, %v5045_v41  ;;  %v5213_v17 = vsel %vm4726_vm2, %v5179_v62, 0.0  ;;  %v5702_v25 = vor.u32 %v5872_v48, %v5701_v36  ;;  %v2662_v41 = vshrl.u32 %v2445_v18, 16  ;;  %v2665_v52 = vshll.u32 %v2445_v18, 16 }
 0x23e   : > { %v8021_v16 = vadd.f32 %v5213_v17, %v5212_v54  ;;  %3429 = vst.msk [vmem:[#allocation3 + $0xb8] sm:$0xf] %vm2195_vm15, %v3349_v9  ;;  %v3476_v54 = vld [vmem:[#allocation2 + $0x90] sm:$0xf]  ;;  %v4794_v43 = vpop.f32.mrf.mxu0  ;;  %v8056_v37 = vrot.slane %v2671_v5, 5  ;;  %v4198_v57 = vrot.slane %v4047_v30, 5 }
 0x23f   : > { %v2321_v13 = vpop.permute.xlu0 %2320  ;;  %v3367_v45 = vpop.permute.xlu1 %3366  ;;  %2912 = vst.msk [vmem:[#allocation3 + $0x148] sm:$0xf] %vm510_vm0, %v2804_v19  ;;  %v3735_v2 = vshrl.u32 %v3476_v54, 16  ;;  %5823 = vmatmul.msk.bf16.gmra.mxu2 %vm4726_vm2, %v5702_v25  ;;  %v3738_v61 = vshll.u32 %v3476_v54, 16  ;;  %v4045_v62 = vld [vmem:[#allocation2 + $0xb4] sm:$0xe] }
 0x240   : > { %v5623_v39 = vld [vmem:[#allocation3 + $0x9c] sm:$0xf0]  ;;  %2403 = vst.msk [vmem:[#allocation3 + $0xa8] sm:$0xf] %vm2388_vm3, %v2321_v13  ;;  %v2664_v17 = vrot.slane %v2662_v41, 4  ;;  %v2667_v20 = vrot.slane %v2665_v52, 5 }
 0x241   : > { %3438 = vst.msk [vmem:[#allocation3 + $0x124] sm:$0xf] %vm2195_vm15, %v3367_v45  ;;  %v5626_v1 = vor.u32 %v5852_v63, %v5623_v39  ;;  %v3737_v8 = vrot.slane %v3735_v2, 4  ;;  %v3740_v33 = vrot.slane %v3738_v61, 5  ;;  %v4046_v13 = vld [vmem:[#allocation2 + $0xb8] sm:$0xf] }
 0x242   : > { %3998 = vst.msk [vmem:[#allocation3 + $0x124] sm:$0xf] %vm2388_vm3, %v7960_v38  ;;  %v5544_v45 = vrot.slane %v4045_v62, 9  ;;  %v3275_v25 = vld [vmem:[#allocation2 + $0x94] sm:$0xf] }
 0x243   : > { %4902 = vmatmul.bf16.gmra.mxu1 %v5626_v1  ;;  %3380 = vrot.lane.b32.xlu2 %v3285_v27, %s6059_s20  ;;  %2911 = vst.msk [vmem:[#allocation3 + $0x13c] sm:$0xf] %vm510_vm0, %v2794_v4  ;;  %v4195_v1 = vrot.slane %v4046_v13, 5  ;;  %v2463_v13 = vld [vmem:[#allocation2 + $0xb4] sm:$0xf] }
 0x244   : > { %3940 = vrot.lane.b32.xlu1 %v3877_v0, %s6060_s21  ;;  %v8052_v42 = vpop.f32.mrf.mxu2  ;;  %v2249_v0 = vld [vmem:[#allocation2 + $0x88] sm:$0xf] }
 0x245   : > { %3920 = vrot.lane.b32.xlu0 %v3757_v40, %s6060_s21  ;;  %v8040_v55 = vpop.permute.xlu2 %3906  ;;  %v4196_v4 = vsel %vm6880_vm13, %v5544_v45, %v4195_v1  ;;  %v4197_v2 = vrot.slane %v4195_v1, 4 }
 0x246   : > { %v4883_v44 = vpop.f32.mrf.mxu1  ;;  %v4796_v48 = vpop.f32.mrf.mxu0  ;;  %4272 = vst.msk [vmem:[#allocation3 + $0x140] sm:$0xf] %vm510_vm0, %v4196_v4 }
 0x247   : > { %v3909_v38 = vpop.permute.xlu0 %3908  ;;  %v4884_v28 = vadd.f32 %v4883_v44, %v4794_v43  ;;  %v3929_v6 = vpop.permute.xlu1 %3928  ;;  %v2668_v43 = vor.u32 %v2667_v20, %v2664_v17  ;;  %v2950_v44 = vld [vmem:[#allocation2 + $0x90] sm:$0xe] }
 0x248   : > { %3989 = vst.msk [vmem:[#allocation3 + $0xb8] sm:$0xf] %vm2388_vm3, %v3909_v38  ;;  %v2251_v38 = vld [vmem:[#allocation2 + $0x94] sm:$0xf] }
 0x249   : > { %3999 = vst.msk [vmem:[#allocation3 + $0x130] sm:$0xf] %vm2388_vm3, %v3929_v6  ;;  %v4973_v47 = vadd.f32 %v7907_v29, %v4884_v28  ;;  %v2678_v29 = vor.u32 %v2677_v24, %v8056_v37  ;;  %v5870_v59 = vld [vmem:[#allocation3 + $0x124] sm:$0xf]  ;;  %v2669_v61 = vrot.slane %v2668_v43, 4  ;;  %v4199_v6 = vsel %vm6880_vm13, %v4197_v2, %v4198_v57 }
 0x24a   : > { %4273 = vst.msk [vmem:[#allocation3 + $0x14c] sm:$0xf] %vm510_vm0, %v4199_v6 }
 0x24b   : > { %3165 = vrot.lane.b32.xlu2 %v3086_v15, %s6058_s15  ;;  %v5046_v32 = vpack.c.bf16 %v4973_v47, %v4973_v47  ;;  %v5113_v63 = vsel %vm4726_vm2, %v4973_v47, 0.0  ;;  %v5180_v9 = vmul.f32 %v4973_v47, %v4973_v47  ;;  %v2679_v60 = vrot.slane %v2678_v29, 4 }
 0x24c   : > { %v5114_v35 = vadd.f32 %v5113_v63, %v8015_v34  ;;  %3358 = vrot.lane.b32.xlu1 %v3274_v12, %s6059_s20  ;;  %v3741_v34 = vor.u32 %v3740_v33, %v3737_v8  ;;  %v8071_v49 = vpop.f32.mrf.mxu2  ;;  %v5526_v47 = vrot.slane %v2950_v44, 9  ;;  %v3092_v12 = vrot.slane %v2951_v11, 5  ;;  %v3277_v44 = vld [vmem:[#allocation2 + $0xa0] sm:$0xf] }
 0x24d   : > { %3362 = vrot.lane.b32.xlu0 %v3276_v53, %s6059_s20  ;;  %v3180_v56 = vpop.permute.xlu2 %3179  ;;  %5078 = vst.msk [vmem:[%s7917_s22 + $0x10] sm:$0xf] %vm510_vm0, %v5046_v32  ;;  %v5215_v27 = vsel %vm4726_vm2, %v5180_v9, 0.0  ;;  %v2684_v54 = vsel %vm6205_vm8, %v2679_v60, %v2683_v58  ;;  %v3479_v53 = vld [vmem:[#allocation2 + $0x9c] sm:$0xf] }
 0x24e   : > { %v5216_v39 = vadd.f32 %v5215_v27, %v8021_v16  ;;  %v4885_v19 = vpop.f32.mrf.mxu1  ;;  %3248 = vst.msk [vmem:[#allocation3 + $0x148] sm:$0xf] %vm1855_vm14, %v3180_v56  ;;  %v3742_v28 = vrot.slane %v3741_v34, 4  ;;  %v3759_v41 = vshrl.u32 %v3479_v53, 16  ;;  %v2952_v32 = vld [vmem:[#allocation2 + $0x98] sm:$0x1]  ;;  %v3093_v9 = vsel %vm6880_vm13, %v5526_v47, %v3092_v12 }
 0x24f   : > { %v8067_v36 = vpop.permute.xlu0 %3370  ;;  %v4886_v40 = vadd.f32 %v4885_v19, %v4796_v48  ;;  %v3347_v26 = vpop.permute.xlu1 %3346  ;;  %2902 = vst.msk [vmem:[#allocation3 + $0xd0] sm:$0xf] %vm510_vm0, %v2684_v54  ;;  %v5635_v24 = vld [vmem:[#allocation3 + $0xb4] sm:$0xf0]  ;;  %v3762_v29 = vshll.u32 %v3479_v53, 16  ;;  %v2809_v56 = vshll.u32 %v2463_v13, 16 }
 0x250   : > { %v5695_v31 = vld [vmem:[#allocation3 + $0x12c] sm:$0xf0]  ;;  %3428 = vst.msk [vmem:[#allocation3 + $0xac] sm:$0xf] %vm2195_vm15, %v3347_v26  ;;  %v3747_v58 = vsel %vm6205_vm8, %v3742_v28, %v7987_v10  ;;  %v5633_v10 = vld [vmem:[#allocation3 + $0xa8] sm:$0xf] }
 0x251   : > { %v5698_v16 = vor.u32 %v5870_v59, %v5695_v31  ;;  %v4975_v46 = vadd.f32 %v7935_v7, %v4886_v40  ;;  %3988 = vst.msk [vmem:[#allocation3 + $0xac] sm:$0xf] %vm2388_vm3, %v8040_v55  ;;  %v2674_v55 = vsel %vm6205_vm8, %v2669_v61, %v8056_v37  ;;  %v2806_v59 = vshrl.u32 %v2463_v13, 16  ;;  %v5713_v17 = vld [vmem:[#allocation3 + $0x140] sm:$0xf] }
 0x252   : > { %2901 = vst.msk [vmem:[#allocation3 + $0xc4] sm:$0xf] %vm510_vm0, %v2674_v55  ;;  %v3094_v30 = vrot.slane %v3092_v12, 4  ;;  %v3095_v27 = vrot.slane %v2952_v32, 5  ;;  %v3761_v48 = vrot.slane %v3759_v41, 4  ;;  %v2811_v34 = vrot.slane %v2809_v56, 5 }
 0x253   : > { %4932 = vmatmul.bf16.vlgmr.msrb.gmra.mxu3 %v5698_v16  ;;  %3360 = vrot.lane.b32.xlu2 %v3275_v25, %s6059_s20  ;;  %v5047_v15 = vpack.c.bf16 %v4975_v46, %v4975_v46  ;;  %v5115_v5 = vsel %vm4726_vm2, %v4975_v46, 0.0  ;;  %v5181_v7 = vmul.f32 %v4975_v46, %v4975_v46  ;;  %v2808_v19 = vrot.slane %v2806_v59, 4  ;;  %v5875_v26 = vld [vmem:[#allocation3 + $0x148] sm:$0xf0] }
 0x254   : > { %v8091_v3 = vadd.f32 %v5115_v5, %v5114_v35  ;;  %2334 = vrot.lane.b32.xlu1 %v2249_v0, %s6060_s21  ;;  %v8109_v62 = vpop.f32.mrf.mxu2  ;;  %v2464_v35 = vld [vmem:[#allocation2 + $0xb8] sm:$0xf]  ;;  %v3764_v40 = vrot.slane %v3762_v29, 5  ;;  %v5714_v54 = vor.u32 %v5875_v26, %v5713_v17  ;;  %v3096_v4 = vsel %vm6880_vm13, %v3094_v30, %v3095_v27  ;;  %v2465_v5 = vld [vmem:[#allocation2 + $0xbc] sm:$0x1] }
 0x255   : > { %2338 = vrot.lane.b32.xlu0 %v2251_v38, %s6060_s21  ;;  %v8094_v18 = vpop.permute.xlu2 %3930  ;;  %5079 = vst.msk [vmem:[%s7917_s22 + $0x14] sm:$0xf] %vm510_vm0, %v5047_v15  ;;  %v5217_v51 = vsel %vm4726_vm2, %v5181_v7, 0.0  ;;  %v2815_v60 = vshll.u32 %v2464_v35, 16  ;;  %v2819_v31 = vshrl.u32 %v2464_v35, 16  ;;  %v2812_v43 = vor.u32 %v2811_v34, %v2808_v19 }
 0x256   : > { %v8102_v37 = vadd.f32 %v5217_v51, %v5216_v39  ;;  %v3480_v39 = vld [vmem:[#allocation2 + $0xa0] sm:$0xf]  ;;  %5824 = vmatmul.msk.bf16.gmra.mxu2 %vm4726_vm2, %v5714_v54  ;;  %v3765_v15 = vor.u32 %v3764_v40, %v3761_v48  ;;  %v2825_v51 = vshll.u32 %v2465_v5, 16  ;;  %v2250_v17 = vld [vmem:[#allocation2 + $0x90] sm:$0xf] }
 0x257   : > { %v8100_v8 = vpop.permute.xlu0 %3932  ;;  %v2323_v33 = vpop.permute.xlu1 %2322  ;;  %v3772_v25 = vshrl.u32 %v3480_v39, 16  ;;  %v2817_v2 = vrot.slane %v2815_v60, 5  ;;  %v3768_v61 = vshll.u32 %v3480_v39, 16  ;;  %v2813_v28 = vrot.slane %v2812_v43, 4 }
 0x258   : > { %2404 = vst.msk [vmem:[#allocation3 + $0xb4] sm:$0xf] %vm2388_vm3, %v2323_v33  ;;  %v5855_v52 = vld [vmem:[#allocation3 + $0xac] sm:$0xf]  ;;  %v4888_v20 = vpop.f32.mrf.mxu1  ;;  %v2821_v7 = vrot.slane %v2819_v31, 4  ;;  %v2827_v41 = vrot.slane %v2825_v51, 5 }
 0x259   : > { %v5638_v63 = vor.u32 %v5855_v52, %v5635_v24  ;;  %v2818_v55 = vsel %vm6205_vm8, %v2813_v28, %v2817_v2  ;;  %v3774_v53 = vrot.slane %v3772_v25, 4  ;;  %v3766_v32 = vrot.slane %v3765_v15, 4 }
 0x25a   : > { %2913 = vst.msk [vmem:[#allocation3 + $0x154] sm:$0xf] %vm510_vm0, %v2818_v55  ;;  %v2822_v24 = vor.u32 %v2821_v7, %v2817_v2  ;;  %v2450_v55 = vld [vmem:[#allocation2 + $0x80] sm:$0x1] }
 0x25b   : > { %3918 = vrot.lane.b32.xlu2 %v3747_v58, %s6060_s21  ;;  %4907 = vmatmul.bf16.gmra.mxu1 %v5638_v63  ;;  %v2705_v51 = vshll.u32 %v2450_v55, 16 }
 0x25c   : > { %3169 = vrot.lane.b32.xlu1 %v3093_v9, %s6058_s15  ;;  %v8122_v11 = vpop.f32.mrf.mxu2  ;;  %v2823_v9 = vrot.slane %v2822_v24, 4 }
 0x25d   : > { %v3160_v45 = vpop.permute.xlu2 %3159 }
 0x25e   : > { %3238 = vst.msk [vmem:[#allocation3 + $0xd0] sm:$0xf] %vm1855_vm14, %v3160_v45  ;;  %v4799_v0 = vpop.f32.mrf.mxu0  ;;  %v2828_v30 = vsel %vm6205_vm8, %v2823_v9, %v2827_v41 }
 0x25f   : > { %v8116_v1 = vpop.permute.xlu0 %3350  ;;  %v3178_v57 = vpop.permute.xlu1 %3177  ;;  %v4889_v16 = vadd.f32 %v4888_v20, %v4799_v0  ;;  %v5856_v38 = vld [vmem:[#allocation3 + $0xb0] sm:$0xf0]  ;;  %2914 = vst.msk [vmem:[#allocation3 + $0x160] sm:$0xf] %vm510_vm0, %v2828_v30 }
 0x260   : > { %3247 = vst.msk [vmem:[#allocation3 + $0x13c] sm:$0xf] %vm1855_vm14, %v3178_v57  ;;  %v5634_v46 = vor.u32 %v5856_v38, %v5633_v10  ;;  %v4890_v13 = vpop.f32.mrf.mxu1 }
 0x261   : > { %3440 = vst.msk [vmem:[#allocation3 + $0x13c] sm:$0xf] %vm2195_vm15, %v8067_v36  ;;  %v4978_v6 = vadd.f32 %v7971_v23, %v4889_v16  ;;  %v3481_v23 = vld [vmem:[#allocation2 + $0xa4] sm:$0x1]  ;;  %v2449_v16 = vld [vmem:[#allocation2 + $0x7c] sm:$0xf] }
 0x262   : > { %4000 = vst.msk [vmem:[#allocation3 + $0x13c] sm:$0xf] %vm2388_vm3, %v8094_v18  ;;  %4818 = vmatmul.bf16.gmra.mxu0 %v5634_v46  ;;  %v3770_v18 = vrot.slane %v3768_v61, 5 }
 0x263   : > { %3171 = vrot.lane.b32.xlu2 %v3096_v4, %s6058_s15  ;;  %v5048_v47 = vpack.c.bf16 %v4978_v6, %v4978_v6  ;;  %v5117_v36 = vsel %vm4726_vm2, %v4978_v6, 0.0  ;;  %v5182_v12 = vmul.f32 %v4978_v6, %v4978_v6  ;;  %v2699_v6 = vshrl.u32 %v2449_v16, 16 }
 0x264   : > { %v5118_v33 = vadd.f32 %v5117_v36, %v8091_v3  ;;  %3364 = vrot.lane.b32.xlu1 %v3277_v44, %s6059_s20  ;;  %v3775_v59 = vor.u32 %v3774_v53, %v3770_v18  ;;  %v3778_v3 = vshll.u32 %v3481_v23, 16  ;;  %v8145_v27 = vpop.f32.mrf.mxu2  ;;  %v3771_v60 = vsel %vm6205_vm8, %v3766_v32, %v3770_v18  ;;  %s500_s20 = scalar_lea.vmem %s8491_s7, %s8508_s26 }
 0x265   : > { %v2325_v58 = vpop.permute.xlu2 %2324  ;;  %5080 = vst.msk [vmem:[%s7917_s22 + $0x18] sm:$0xf] %vm510_vm0, %v5048_v47  ;;  %v5219_v52 = vsel %vm4726_vm2, %v5182_v12, 0.0  ;;  %v2695_v44 = vshll.u32 %v2449_v16, 16  ;;  %v2701_v53 = vrot.slane %v2699_v6, 4  ;;  %v2707_v23 = vrot.slane %v2705_v51, 5 }
 0x266   : > { %v5220_v29 = vadd.f32 %v5219_v52, %v8102_v37  ;;  %v4801_v35 = vpop.f32.mrf.mxu0  ;;  %2405 = vst.msk [vmem:[#allocation3 + $0xc0] sm:$0xf] %vm2388_vm3, %v2325_v58  ;;  %v3776_v20 = vrot.slane %v3775_v59, 4  ;;  %v3780_v45 = vrot.slane %v3778_v3, 5 }
 0x267   : > { %v2327_v63 = vpop.permute.xlu0 %2326  ;;  %v3373_v56 = vpop.permute.xlu1 %3372  ;;  %v4891_v10 = vadd.f32 %v4890_v13, %v4801_v35  ;;  %v2697_v7 = vrot.slane %v2695_v44, 5 }
 0x268   : > { %2406 = vst.msk [vmem:[#allocation3 + $0xcc] sm:$0xf] %vm2388_vm3, %v2327_v63  ;;  %v3781_v57 = vsel %vm6205_vm8, %v3776_v20, %v3780_v45 }
 0x269   : > { %3441 = vst.msk [vmem:[#allocation3 + $0x148] sm:$0xf] %vm2195_vm15, %v3373_v56  ;;  %v4980_v37 = vadd.f32 %v8005_v22, %v4891_v10  ;;  %v2448_v22 = vld [vmem:[#allocation2 + $0x78] sm:$0xf]  ;;  %v2702_v12 = vor.u32 %v2701_v53, %v2697_v7 }
 0x26a   : > { %4001 = vst.msk [vmem:[#allocation3 + $0x148] sm:$0xf] %vm2388_vm3, %v8100_v8  ;;  %v5873_v8 = vld [vmem:[#allocation3 + $0x13c] sm:$0xf]  ;;  %v2686_v25 = vshrl.u32 %v2448_v22, 16  ;;  %v2689_v46 = vshll.u32 %v2448_v22, 16 }
 0x26b   : > { %2336 = vrot.lane.b32.xlu2 %v2250_v17, %s6060_s21  ;;  %v5049_v39 = vpack.c.bf16 %v4980_v37, %v4980_v37  ;;  %v5119_v48 = vsel %vm4726_vm2, %v4980_v37, 0.0  ;;  %v5183_v19 = vmul.f32 %v4980_v37, %v4980_v37  ;;  %v2703_v18 = vrot.slane %v2702_v12, 4  ;;  %v2467_v37 = vld [vmem:[#allocation2 + $0xc4] sm:$0xf] }
 0x26c   : > { %v8155_v34 = vadd.f32 %v5119_v48, %v5118_v33  ;;  %3922 = vrot.lane.b32.xlu1 %v3771_v60, %s6060_s21  ;;  %v2688_v2 = vrot.slane %v2686_v25, 4  ;;  %v8167_v28 = vpop.f32.mrf.mxu2  ;;  %v2691_v5 = vrot.slane %v2689_v46, 5  ;;  %v2839_v45 = vshll.u32 %v2467_v37, 16 }
 0x26d   : > { %v3913_v40 = vpop.permute.xlu2 %3912  ;;  %5081 = vst.msk [vmem:[%s7917_s22 + $0x1c] sm:$0xf] %vm510_vm0, %v5049_v39  ;;  %v5221_v26 = vsel %vm4726_vm2, %v5183_v19, 0.0  ;;  %v5645_v0 = vld [vmem:[#allocation3 + $0xc0] sm:$0xf]  ;;  %v2708_v52 = vsel %vm6205_vm8, %v2703_v18, %v2707_v23  ;;  %v2843_v25 = vshrl.u32 %v2467_v37, 16  ;;  %v8207_v23 = vpop.f32.mrf.mxu3 }
 0x26e   : > { %v8161_v54 = vadd.f32 %v5221_v26, %v5220_v29  ;;  %v2692_v47 = vor.u32 %v2691_v5, %v2688_v2  ;;  %2904 = vst.msk [vmem:[#allocation3 + $0xe8] sm:$0xf] %vm510_vm0, %v2708_v52  ;;  %v2466_v29 = vld [vmem:[#allocation2 + $0xc0] sm:$0xf]  ;;  %v2841_v26 = vrot.slane %v2839_v45, 5 }
 0x26f   : > { %v3182_v31 = vpop.permute.xlu0 %3181  ;;  %v5859_v43 = vld [vmem:[#allocation3 + $0xc8] sm:$0xf0]  ;;  %v3158_v38 = vpop.permute.xlu1 %3157  ;;  %v2830_v35 = vshrl.u32 %v2466_v29, 16  ;;  %v2833_v59 = vshll.u32 %v2466_v29, 16  ;;  %v2845_v44 = vrot.slane %v2843_v25, 4 }
 0x270   : > { %3249 = vst.msk [vmem:[#allocation3 + $0x154] sm:$0xf] %vm1855_vm14, %v3182_v31  ;;  %v5646_v4 = vor.u32 %v5859_v43, %v5645_v0  ;;  %v2693_v33 = vrot.slane %v2692_v47, 4  ;;  %v2452_v29 = vld [vmem:[#allocation2 + $0x88] sm:$0xf] }
 0x271   : > { %3237 = vst.msk [vmem:[#allocation3 + $0xc4] sm:$0xf] %vm1855_vm14, %v3158_v38  ;;  %v5707_v61 = vld [vmem:[#allocation3 + $0x144] sm:$0xf0]  ;;  %v2832_v10 = vrot.slane %v2830_v35, 4  ;;  %v2835_v17 = vrot.slane %v2833_v59, 5 }
 0x272   : > { %3430 = vst.msk [vmem:[#allocation3 + $0xc4] sm:$0xf] %vm2195_vm15, %v8116_v1  ;;  %v5710_v15 = vor.u32 %v5873_v8, %v5707_v61  ;;  %4823 = vmatmul.bf16.gmra.mxu0 %v5646_v4  ;;  %v2698_v58 = vsel %vm6205_vm8, %v2693_v33, %v2697_v7  ;;  %v2468_v38 = vld [vmem:[#allocation2 + $0xc8] sm:$0x1]  ;;  %v2451_v33 = vld [vmem:[#allocation2 + $0x84] sm:$0xf] }
 0x273   : > { %3924 = vrot.lane.b32.xlu2 %v3781_v57, %s6060_s21  ;;  %2903 = vst.msk [vmem:[#allocation3 + $0xdc] sm:$0xf] %vm510_vm0, %v2698_v58  ;;  %v2836_v20 = vor.u32 %v2835_v17, %v2832_v10  ;;  %v2849_v61 = vshll.u32 %v2468_v38, 16  ;;  %v2710_v58 = vshrl.u32 %v2451_v33, 16  ;;  %v2713_v52 = vshll.u32 %v2451_v33, 16 }
 0x274   : > { %4937 = vmatmul.bf16.gmra.mxu3 %v5710_v15  ;;  %v8176_v41 = vpop.f32.mrf.mxu2  ;;  %v2846_v15 = vor.u32 %v2845_v44, %v2841_v26  ;;  %v2719_v35 = vshll.u32 %v2452_v29, 16  ;;  %v2723_v59 = vshrl.u32 %v2452_v29, 16 }
 0x275   : > { %v3375_v36 = vpop.permute.xlu2 %3374  ;;  %v2837_v22 = vrot.slane %v2836_v20, 4  ;;  %v2851_v5 = vrot.slane %v2849_v61, 5 }
 0x276   : > { %3442 = vst.msk [vmem:[#allocation3 + $0x154] sm:$0xf] %vm2195_vm15, %v3375_v36  ;;  %v4804_v32 = vpop.f32.mrf.mxu0  ;;  %v2847_v51 = vrot.slane %v2846_v15, 4  ;;  %v2725_v37 = vrot.slane %v2723_v59, 4 }
 0x277   : > { %v3377_v24 = vpop.permute.xlu0 %3376  ;;  %v3353_v1 = vpop.permute.xlu1 %3352 }
 0x278   : > { %3431 = vst.msk [vmem:[#allocation3 + $0xd0] sm:$0xf] %vm2195_vm15, %v3353_v1  ;;  %v2852_v1 = vsel %vm6205_vm8, %v2847_v51, %v2851_v5 }
 0x279   : > { %3991 = vst.msk [vmem:[#allocation3 + $0xd0] sm:$0xf] %vm2388_vm3, %v3913_v40 }
 0x27a   : > { %2916 = vst.msk [vmem:[#allocation3 + $0x178] sm:$0xf] %vm510_vm0, %v2852_v1 }
 0x27c   : > { %v8186_v60 = vpop.f32.mrf.mxu2 }
 0x27d   : > { %v3937_v63 = vpop.permute.xlu2 %3936 }
 0x27e   : > { %v4893_v13 = vpop.f32.mrf.mxu1  ;;  %v4806_v57 = vpop.f32.mrf.mxu0 }
 0x27f   : > { %v3162_v9 = vpop.permute.xlu0 %3161  ;;  %v4894_v3 = vadd.f32 %v4893_v13, %v4804_v32  ;;  %v3911_v56 = vpop.permute.xlu1 %3910 }
 0x280   : > { %3239 = vst.msk [vmem:[#allocation3 + $0xdc] sm:$0xf] %vm1855_vm14, %v3162_v9  ;;  %v5647_v0 = vld [vmem:[#allocation3 + $0xcc] sm:$0xf0]  ;;  %v2715_v9 = vrot.slane %v2713_v52, 5 }
 0x281   : > { %3990 = vst.msk [vmem:[#allocation3 + $0xc4] sm:$0xf] %vm2388_vm3, %v3911_v56  ;;  %v4983_v30 = vadd.f32 %v8025_v14, %v4894_v3  ;;  %v2453_v3 = vld [vmem:[#allocation2 + $0x8c] sm:$0x1] }
 0x282   : > { %v2729_v56 = vshll.u32 %v2453_v3, 16 }
 0x283   : > { %v5050_v39 = vpack.c.bf16 %v4983_v30, %v4983_v30  ;;  %v5121_v48 = vsel %vm4726_vm2, %v4983_v30, 0.0  ;;  %v5184_v19 = vmul.f32 %v4983_v30, %v4983_v30  ;;  %v2721_v30 = vrot.slane %v2719_v35, 5 }
 0x284   : > { %v5122_v8 = vadd.f32 %v5121_v48, %v8155_v34  ;;  %v2842_v34 = vsel %vm6205_vm8, %v2837_v22, %v2841_v26  ;;  %v8205_v12 = vpop.f32.mrf.mxu2 }
 0x285   : > { %v3355_v40 = vpop.permute.xlu2 %3354  ;;  %5082 = vst.msk [vmem:[%s7917_s22 + $0x20] sm:$0xf] %vm510_vm0, %v5050_v39  ;;  %v5223_v31 = vsel %vm4726_vm2, %v5184_v19, 0.0  ;;  %v2726_v19 = vor.u32 %v2725_v37, %v2721_v30 }
 0x286   : > { %v5224_v43 = vadd.f32 %v5223_v31, %v8161_v54  ;;  %v4895_v16 = vpop.f32.mrf.mxu1  ;;  %3432 = vst.msk [vmem:[#allocation3 + $0xdc] sm:$0xf] %vm2195_vm15, %v3355_v40  ;;  %v8224_v40 = vpop.f32.mrf.mxu3 }
 0x287   : > { %v8193_v14 = vpop.permute.xlu0 %3356  ;;  %v4896_v4 = vadd.f32 %v4895_v16, %v4806_v57  ;;  %v3184_v2 = vpop.permute.xlu1 %3183  ;;  %2915 = vst.msk [vmem:[#allocation3 + $0x16c] sm:$0xf] %vm510_vm0, %v2842_v34 }
 0x288   : > { %v5858_v46 = vld [vmem:[#allocation3 + $0xc4] sm:$0xf]  ;;  %3250 = vst.msk [vmem:[#allocation3 + $0x160] sm:$0xf] %vm1855_vm14, %v3184_v2 }
 0x289   : > { %v5650_v6 = vor.u32 %v5858_v46, %v5647_v0  ;;  %v4985_v54 = vadd.f32 %v8052_v42, %v4896_v4  ;;  %3443 = vst.msk [vmem:[#allocation3 + $0x160] sm:$0xf] %vm2195_vm15, %v3377_v24  ;;  %v2727_v0 = vrot.slane %v2726_v19, 4  ;;  %v4050_v19 = vld [vmem:[#allocation2 + $0xc8] sm:$0x1] }
 0x28a   : > { %4003 = vst.msk [vmem:[#allocation3 + $0x160] sm:$0xf] %vm2388_vm3, %v3937_v63  ;;  %v2712_v63 = vrot.slane %v2710_v58, 4 }
 0x28b   : > { %4912 = vmatmul.bf16.gmra.mxu1 %v5650_v6  ;;  %v5051_v7 = vpack.c.bf16 %v4985_v54, %v4985_v54  ;;  %v5123_v55 = vsel %vm4726_vm2, %v4985_v54, 0.0  ;;  %v5185_v53 = vmul.f32 %v4985_v54, %v4985_v54 }
 0x28c   : > { %v5124_v47 = vadd.f32 %v5123_v55, %v5122_v8  ;;  %v2716_v13 = vor.u32 %v2715_v9, %v2712_v63  ;;  %v8220_v39 = vpop.f32.mrf.mxu2  ;;  %v2731_v8 = vrot.slane %v2729_v56, 5  ;;  %v2456_v56 = vld [vmem:[#allocation2 + $0x98] sm:$0x1] }
 0x28d   : > { %v2331_v36 = vpop.permute.xlu2 %2330  ;;  %5083 = vst.msk [vmem:[%s7917_s22 + $0x24] sm:$0xf] %vm510_vm0, %v5051_v7  ;;  %v5225_v42 = vsel %vm4726_vm2, %v5185_v53, 0.0  ;;  %v4049_v53 = vld [vmem:[#allocation2 + $0xc4] sm:$0xf] }
 0x28e   : > { %v5226_v18 = vadd.f32 %v5225_v42, %v5224_v43  ;;  %2408 = vst.msk [vmem:[#allocation3 + $0xe4] sm:$0xf] %vm2388_vm3, %v2331_v36  ;;  %v2717_v17 = vrot.slane %v2716_v13, 4  ;;  %v2732_v25 = vsel %vm6205_vm8, %v2727_v0, %v2731_v8  ;;  %v8236_v38 = vpop.f32.mrf.mxu3  ;;  %v4202_v59 = vrot.slane %v4049_v53, 5 }
 0x28f   : > { %v3915_v24 = vpop.permute.xlu0 %3914  ;;  %v3935_v32 = vpop.permute.xlu1 %3934  ;;  %2906 = vst.msk [vmem:[#allocation3 + $0x100] sm:$0xf] %vm510_vm0, %v2732_v25 }
 0x290   : > { %3992 = vst.msk [vmem:[#allocation3 + $0xdc] sm:$0xf] %vm2388_vm3, %v3915_v24  ;;  %v2722_v48 = vsel %vm6205_vm8, %v2717_v17, %v2721_v30  ;;  %v2455_v24 = vld [vmem:[#allocation2 + $0x94] sm:$0xf]  ;;  %v4048_v30 = vld [vmem:[#allocation2 + $0xc0] sm:$0xe] }
 0x291   : > { %4002 = vst.msk [vmem:[#allocation3 + $0x154] sm:$0xf] %vm2388_vm3, %v3935_v32  ;;  %v5719_v20 = vld [vmem:[#allocation3 + $0x15c] sm:$0xf0]  ;;  %v2747_v52 = vshrl.u32 %v2455_v24, 16 }
 0x292   : > { %2905 = vst.msk [vmem:[#allocation3 + $0xf4] sm:$0xf] %vm510_vm0, %v2722_v48 }
 0x293   : > { %v2749_v35 = vrot.slane %v2747_v52, 4 }
 0x295   : > { %v3186_v10 = vpop.permute.xlu2 %3185  ;;  %v5862_v15 = vld [vmem:[#allocation3 + $0xe0] sm:$0xf0] }
 0x296   : > { %3251 = vst.msk [vmem:[#allocation3 + $0x16c] sm:$0xf] %vm1855_vm14, %v3186_v10  ;;  %v4809_v43 = vpop.f32.mrf.mxu0  ;;  %v8249_v29 = vpop.f32.mrf.mxu3 }
 0x297   : > { %v3188_v45 = vpop.permute.xlu0 %3187  ;;  %v3164_v22 = vpop.permute.xlu1 %3163 }
 0x298   : > { %3252 = vst.msk [vmem:[#allocation3 + $0x178] sm:$0xf] %vm1855_vm14, %v3188_v45  ;;  %v5876_v26 = vld [vmem:[#allocation3 + $0x154] sm:$0xf] }
 0x299   : > { %3240 = vst.msk [vmem:[#allocation3 + $0xe8] sm:$0xf] %vm1855_vm14, %v3164_v22  ;;  %v5722_v31 = vor.u32 %v5876_v26, %v5719_v20  ;;  %v2753_v26 = vshll.u32 %v2456_v56, 16 }
 0x29a   : > { %3433 = vst.msk [vmem:[#allocation3 + $0xe8] sm:$0xf] %vm2195_vm15, %v8193_v14  ;;  %v8239_v14 = vpop.f32.mrf.mxu2 }
 0x29b   : > { %4942 = vmatmul.bf16.gmra.mxu3 %v5722_v31 }
 0x29d   : > { %v3381_v57 = vpop.permute.xlu2 %3380 }
 0x29e   : > { %3445 = vst.msk [vmem:[#allocation3 + $0x178] sm:$0xf] %vm2195_vm15, %v3381_v57  ;;  %v4898_v34 = vpop.f32.mrf.mxu1  ;;  %v4811_v36 = vpop.f32.mrf.mxu0  ;;  %v5545_v57 = vrot.slane %v4048_v30, 9 }
 0x29f   : > { %v8234_v16 = vpop.permute.xlu0 %3938  ;;  %v4899_v4 = vadd.f32 %v4898_v34, %v4809_v43  ;;  %v2329_v2 = vpop.permute.xlu1 %2328  ;;  %v4204_v34 = vrot.slane %v4202_v59, 4 }
 0x2a0   : > { %2407 = vst.msk [vmem:[#allocation3 + $0xd8] sm:$0xf] %vm2388_vm3, %v2329_v2  ;;  %v2755_v2 = vrot.slane %v2753_v26, 5 }
 0x2a1   : > { %v4988_v46 = vadd.f32 %v8071_v49, %v4899_v4  ;;  %v2454_v49 = vld [vmem:[#allocation2 + $0x90] sm:$0xf] }
 0x2a2   : > { %v2734_v63 = vshrl.u32 %v2454_v49, 16  ;;  %v2737_v9 = vshll.u32 %v2454_v49, 16  ;;  %v8252_v3 = vpop.f32.mrf.mxu2  ;;  %v4053_v49 = vld [vmem:[#allocation2 + $0xd4] sm:$0x1] }
 0x2a3   : > { %v5052_v44 = vpack.c.bf16 %v4988_v46, %v4988_v46  ;;  %v5125_v61 = vsel %vm4726_vm2, %v4988_v46, 0.0  ;;  %v5186_v6 = vmul.f32 %v4988_v46, %v4988_v46 }
 0x2a4   : > { %v5126_v54 = vadd.f32 %v5125_v61, %v5124_v47  ;;  %v2743_v47 = vshll.u32 %v2455_v24, 16  ;;  %v2736_v10 = vrot.slane %v2734_v63, 4  ;;  %v2739_v17 = vrot.slane %v2737_v9, 5 }
 0x2a5   : > { %v3166_v5 = vpop.permute.xlu2 %3165  ;;  %5084 = vst.msk [vmem:[%s7917_s22 + $0x28] sm:$0xf] %vm510_vm0, %v5052_v44  ;;  %v5227_v7 = vsel %vm4726_vm2, %v5186_v6, 0.0  ;;  %v4205_v44 = vrot.slane %v4050_v19, 5 }
 0x2a6   : > { %v5228_v51 = vadd.f32 %v5227_v7, %v5226_v18  ;;  %v4900_v42 = vpop.f32.mrf.mxu1  ;;  %3241 = vst.msk [vmem:[#allocation3 + $0xf4] sm:$0xf] %vm1855_vm14, %v3166_v5  ;;  %v2745_v13 = vrot.slane %v2743_v47, 5  ;;  %v2740_v31 = vor.u32 %v2739_v17, %v2736_v10  ;;  %v8269_v7 = vpop.f32.mrf.mxu3  ;;  %v4212_v47 = vrot.slane %v4053_v49, 5 }
 0x2a7   : > { %v3168_v55 = vpop.permute.xlu0 %3167  ;;  %v4901_v33 = vadd.f32 %v4900_v42, %v4811_v36  ;;  %v3917_v1 = vpop.permute.xlu1 %3916  ;;  %v5657_v58 = vld [vmem:[#allocation3 + $0xd8] sm:$0xf]  ;;  %v4206_v53 = vsel %vm6880_vm13, %v4204_v34, %v4205_v44 }
 0x2a8   : > { %3242 = vst.msk [vmem:[#allocation3 + $0x100] sm:$0xf] %vm1855_vm14, %v3168_v55  ;;  %v5658_v32 = vor.u32 %v5862_v15, %v5657_v58  ;;  %v2750_v48 = vor.u32 %v2749_v35, %v2745_v13  ;;  %v2741_v46 = vrot.slane %v2740_v31, 4  ;;  %v4203_v55 = vsel %vm6880_vm13, %v5545_v57, %v4202_v59 }
 0x2a9   : > { %3993 = vst.msk [vmem:[#allocation3 + $0xe8] sm:$0xf] %vm2388_vm3, %v3917_v1  ;;  %v4990_v18 = vadd.f32 %v8109_v62, %v4901_v33  ;;  %v5861_v62 = vld [vmem:[#allocation3 + $0xdc] sm:$0xf] }
 0x2aa   : > { %4828 = vmatmul.bf16.gmra.mxu0 %v5658_v32  ;;  %v2751_v43 = vrot.slane %v2750_v48, 4  ;;  %v2746_v5 = vsel %vm6205_vm8, %v2741_v46, %v2745_v13  ;;  %v8279_v36 = vpop.f32.mrf.mxu2  ;;  %4274 = vst.msk [vmem:[#allocation3 + $0x158] sm:$0xf] %vm510_vm0, %v4203_v55 }
 0x2ab   : > { %v5053_v37 = vpack.c.bf16 %v4990_v18, %v4990_v18  ;;  %v5127_v20 = vsel %vm4726_vm2, %v4990_v18, 0.0  ;;  %v5187_v45 = vmul.f32 %v4990_v18, %v4990_v18  ;;  %2907 = vst.msk [vmem:[#allocation3 + $0x10c] sm:$0xf] %vm510_vm0, %v2746_v5 }
 0x2ac   : > { %v8255_v8 = vadd.f32 %v5127_v20, %v5126_v54  ;;  %v2756_v15 = vsel %vm6205_vm8, %v2751_v43, %v2755_v2  ;;  %4275 = vst.msk [vmem:[#allocation3 + $0x164] sm:$0xf] %vm510_vm0, %v4206_v53 }
 0x2ad   : > { %v3361_v22 = vpop.permute.xlu2 %3360  ;;  %5085 = vst.msk [vmem:[%s7917_s22 + $0x2c] sm:$0xf] %vm510_vm0, %v5053_v37  ;;  %v5229_v0 = vsel %vm4726_vm2, %v5187_v45, 0.0 }
 0x2ae   : > { %v8260_v4 = vadd.f32 %v5229_v0, %v5228_v51  ;;  %3435 = vst.msk [vmem:[#allocation3 + $0x100] sm:$0xf] %vm2195_vm15, %v3361_v22  ;;  %v4052_v51 = vld [vmem:[#allocation2 + $0xd0] sm:$0xf]  ;;  %v8291_v63 = vpop.f32.mrf.mxu3 }
 0x2af   : > { %v2333_v25 = vpop.permute.xlu0 %2332  ;;  %v3379_v61 = vpop.permute.xlu1 %3378  ;;  %2908 = vst.msk [vmem:[#allocation3 + $0x118] sm:$0xf] %vm510_vm0, %v2756_v15  ;;  %v4209_v42 = vrot.slane %v4052_v51, 5 }
 0x2b0   : > { %v5659_v6 = vld [vmem:[#allocation3 + $0xe4] sm:$0xf0]  ;;  %2409 = vst.msk [vmem:[#allocation3 + $0xf0] sm:$0xf] %vm2388_vm3, %v2333_v25 }
 0x2b1   : > { %3444 = vst.msk [vmem:[#allocation3 + $0x16c] sm:$0xf] %vm2195_vm15, %v3379_v61  ;;  %v5662_v54 = vor.u32 %v5861_v62, %v5659_v6  ;;  %v4211_v1 = vrot.slane %v4209_v42, 4  ;;  %v5725_v61 = vld [vmem:[#allocation3 + $0x158] sm:$0xf] }
 0x2b2   : > { %4004 = vst.msk [vmem:[#allocation3 + $0x16c] sm:$0xf] %vm2388_vm3, %v8234_v16  ;;  %v4051_v16 = vld [vmem:[#allocation2 + $0xcc] sm:$0xe]  ;;  %v8294_v59 = vpop.f32.mrf.mxu2 }
 0x2b3   : > { %4917 = vmatmul.bf16.gmra.mxu1 %v5662_v54  ;;  %v5546_v33 = vrot.slane %v4051_v16, 9  ;;  %v4213_v32 = vsel %vm6880_vm13, %v4211_v1, %v4212_v47  ;;  %v5878_v6 = vld [vmem:[#allocation3 + $0x160] sm:$0xf0] }
 0x2b4   : > { %4277 = vst.msk [vmem:[#allocation3 + $0x17c] sm:$0xf] %vm510_vm0, %v4213_v32 }
 0x2b5   : > { %v3919_v21 = vpop.permute.xlu2 %3918  ;;  %v4210_v52 = vsel %vm6880_vm13, %v5546_v33, %v4209_v42 }
 0x2b6   : > { %4276 = vst.msk [vmem:[#allocation3 + $0x170] sm:$0xf] %vm510_vm0, %v4210_v52  ;;  %v8299_v20 = vpop.f32.mrf.mxu3 }
 0x2b7   : > { %v3921_v24 = vpop.permute.xlu0 %3920  ;;  %v3941_v58 = vpop.permute.xlu1 %3940  ;;  %v5669_v53 = vld [vmem:[#allocation3 + $0xf0] sm:$0xf] }
 0x2b8   : > { %3995 = vst.msk [vmem:[#allocation3 + $0x100] sm:$0xf] %vm2388_vm3, %v3921_v24  ;;  %v4814_v9 = vpop.f32.mrf.mxu0 }
 0x2b9   : > { %4005 = vst.msk [vmem:[#allocation3 + $0x178] sm:$0xf] %vm2388_vm3, %v3941_v58  ;;  %v5879_v13 = vld [vmem:[#allocation3 + $0x16c] sm:$0xf] }
 0x2ba   : > { %v8310_v2 = vpop.f32.mrf.mxu2 }
 0x2bd   : > { %v3172_v18 = vpop.permute.xlu2 %3171 }
 0x2be   : > { %3244 = vst.msk [vmem:[#allocation3 + $0x118] sm:$0xf] %vm1855_vm14, %v3172_v18  ;;  %v8314_v5 = vpop.f32.mrf.mxu3 }
 0x2bf   : > { %v3363_v35 = vpop.permute.xlu0 %3362  ;;  %v3359_v10 = vpop.permute.xlu1 %3358  ;;  %v5671_v25 = vld [vmem:[#allocation3 + $0xfc] sm:$0xf0] }
 0x2c0   : > { %v4903_v56 = vpop.f32.mrf.mxu1  ;;  %v5731_v17 = vld [vmem:[#allocation3 + $0x174] sm:$0xf0]  ;;  %3434 = vst.msk [vmem:[#allocation3 + $0xf4] sm:$0xf] %vm2195_vm15, %v3359_v10  ;;  %v4816_v0 = vpop.f32.mrf.mxu0 }
 0x2c1   : > { %v4904_v50 = vadd.f32 %v4903_v56, %v4814_v9  ;;  %v5734_v30 = vor.u32 %v5879_v13, %v5731_v17  ;;  %3994 = vst.msk [vmem:[#allocation3 + $0xf4] sm:$0xf] %vm2388_vm3, %v3919_v21  ;;  %v5726_v21 = vor.u32 %v5878_v6, %v5725_v61  ;;  %v5737_v9 = vld [vmem:[#allocation3 + $0x170] sm:$0xf] }
 0x2c2   : > { %v5022_v49 = vpop.f32.mrf.mxu2 }
 0x2c3   : > { %v4993_v37 = vadd.f32 %v8122_v11, %v4904_v50  ;;  %4947 = vmatmul.bf16.gmra.mxu3 %v5734_v30 }
 0x2c5   : > { %v5054_v45 = vpack.c.bf16 %v4993_v37, %v4993_v37  ;;  %v5129_v48 = vsel %vm4726_vm2, %v4993_v37, 0.0  ;;  %v5188_v19 = vmul.f32 %v4993_v37, %v4993_v37  ;;  %v2337_v62 = vpop.permute.xlu2 %2336 }
 0x2c6   : > { %v5130_v22 = vadd.f32 %v5129_v48, %v8255_v8  ;;  %2411 = vst.msk [vmem:[#allocation3 + $0x108] sm:$0xf] %vm2388_vm3, %v2337_v62 }
 0x2c7   : > { %v2339_v26 = vpop.permute.xlu0 %2338  ;;  %5086 = vst.msk [vmem:[%s7917_s22 + $0x30] sm:$0xf] %vm510_vm0, %v5054_v45  ;;  %v5231_v31 = vsel %vm4726_vm2, %v5188_v19, 0.0  ;;  %v2335_v57 = vpop.permute.xlu1 %2334 }
 0x2c8   : > { %v5232_v11 = vadd.f32 %v5231_v31, %v8260_v4  ;;  %v4905_v43 = vpop.f32.mrf.mxu1  ;;  %2412 = vst.msk [vmem:[#allocation3 + $0x114] sm:$0xf] %vm2388_vm3, %v2339_v26  ;;  %v5864_v8 = vld [vmem:[#allocation3 + $0xf4] sm:$0xf] }
 0x2c9   : > { %v4906_v34 = vadd.f32 %v4905_v43, %v4816_v0  ;;  %2410 = vst.msk [vmem:[#allocation3 + $0xfc] sm:$0xf] %vm2388_vm3, %v2335_v57  ;;  %v5674_v46 = vor.u32 %v5864_v8, %v5671_v25 }
 0x2ca   : > { %v5024_v56 = vpop.f32.mrf.mxu2 }
 0x2cb   : > { %v4995_v44 = vadd.f32 %v8145_v27, %v4906_v34  ;;  %4922 = vmatmul.bf16.gmra.mxu1 %v5674_v46 }
 0x2cd   : > { %v5055_v54 = vpack.c.bf16 %v4995_v44, %v4995_v44  ;;  %v5131_v4 = vsel %vm4726_vm2, %v4995_v44, 0.0  ;;  %v5189_v15 = vmul.f32 %v4995_v44, %v4995_v44  ;;  %v3925_v58 = vpop.permute.xlu2 %3924  ;;  %v5681_v18 = vld [vmem:[#allocation3 + $0x108] sm:$0xf] }
 0x2ce   : > { %v5132_v55 = vadd.f32 %v5131_v4, %v5130_v22 }
 0x2cf   : > { %5087 = vst.msk [vmem:[%s7917_s22 + $0x34] sm:$0xf] %vm510_vm0, %v5055_v54  ;;  %v5233_v51 = vsel %vm4726_vm2, %v5189_v15, 0.0  ;;  %v3170_v24 = vpop.permute.xlu1 %3169  ;;  %v5868_v13 = vld [vmem:[#allocation3 + $0x110] sm:$0xf0] }
 0x2d0   : > { %v5234_v42 = vadd.f32 %v5233_v51, %v5232_v11  ;;  %v5865_v16 = vld [vmem:[#allocation3 + $0xf8] sm:$0xf0]  ;;  %3243 = vst.msk [vmem:[#allocation3 + $0x10c] sm:$0xf] %vm1855_vm14, %v3170_v24  ;;  %v5682_v50 = vor.u32 %v5868_v13, %v5681_v18 }
 0x2d1   : > { %v5670_v27 = vor.u32 %v5865_v16, %v5669_v53  ;;  %3436 = vst.msk [vmem:[#allocation3 + $0x10c] sm:$0xf] %vm2195_vm15, %v3363_v35  ;;  %v5881_v35 = vld [vmem:[#allocation3 + $0x178] sm:$0xf0] }
 0x2d2   : > { %v5738_v30 = vor.u32 %v5881_v35, %v5737_v9 }
 0x2d3   : > { %4833 = vmatmul.bf16.gmra.mxu0 %v5670_v27  ;;  %5825 = vmatmul.msk.bf16.vlgmr.msra.gmra.mxu3 %vm4726_vm2, %v5726_v21 }
 0x2d6   : > { %v4933_v33 = vpop.f32.mrf.mxu3 }
 0x2d7   : > { %v4934_v1 = vadd.f32 %v4933_v33, %v8207_v23  ;;  %v3365_v47 = vpop.permute.xlu1 %3364 }
 0x2d8   : > { %3437 = vst.msk [vmem:[#allocation3 + $0x118] sm:$0xf] %vm2195_vm15, %v3365_v47  ;;  %v4908_v23 = vpop.f32.mrf.mxu1 }
 0x2d9   : > { %v8323_v52 = vadd.f32 %v5022_v49, %v4934_v1  ;;  %3997 = vst.msk [vmem:[#allocation3 + $0x118] sm:$0xf] %vm2388_vm3, %v3925_v58  ;;  %v5027_v53 = vpop.f32.mrf.mxu2 }
 0x2db   : > { %v5066_v32 = vpack.c.bf16 %v8323_v52, %v8323_v52 }
 0x2dd   : > { %5098 = vst.msk [vmem:[%s7917_s22 + $0x60] sm:$0xf] %vm510_vm0, %v5066_v32 }
 0x2de   : > { %v4935_v10 = vpop.f32.mrf.mxu3 }
 0x2df   : > { %v4936_v17 = vadd.f32 %v4935_v10, %v8224_v40  ;;  %v3923_v37 = vpop.permute.xlu1 %3922  ;;  %v4819_v45 = vpop.f32.mrf.mxu0 }
 0x2e0   : > { %3996 = vst.msk [vmem:[#allocation3 + $0x10c] sm:$0xf] %vm2388_vm3, %v3923_v37  ;;  %v4909_v19 = vadd.f32 %v4908_v23, %v4819_v45  ;;  %v5683_v25 = vld [vmem:[#allocation3 + $0x114] sm:$0xf0]  ;;  %v4910_v57 = vpop.f32.mrf.mxu1 }
 0x2e1   : > { %v8332_v48 = vadd.f32 %v5024_v56, %v4936_v17  ;;  %v5029_v16 = vpop.f32.mrf.mxu2 }
 0x2e2   : > { %v4998_v22 = vadd.f32 %v8167_v28, %v4909_v19 }
 0x2e3   : > { %v5067_v62 = vpack.c.bf16 %v8332_v48, %v8332_v48  ;;  %4838 = vmatmul.bf16.gmra.mxu0 %v5682_v50  ;;  %5826 = vmatmul.msk.bf16.gmra.mxu3 %vm4726_vm2, %v5738_v30 }
 0x2e4   : > { %v5056_v40 = vpack.c.bf16 %v4998_v22, %v4998_v22  ;;  %v5133_v26 = vsel %vm4726_vm2, %v4998_v22, 0.0  ;;  %v5190_v31 = vmul.f32 %v4998_v22, %v4998_v22 }
 0x2e5   : > { %5099 = vst.msk [vmem:[%s7917_s22 + $0x64] sm:$0xf] %vm510_vm0, %v5067_v62  ;;  %v5134_v0 = vadd.f32 %v5133_v26, %v5132_v55 }
 0x2e6   : > { %5088 = vst.msk [vmem:[%s7917_s22 + $0x38] sm:$0xf] %vm510_vm0, %v5056_v40  ;;  %v5235_v11 = vsel %vm4726_vm2, %v5190_v31, 0.0 }
 0x2e7   : > { %v5236_v43 = vadd.f32 %v5235_v11, %v5234_v42  ;;  %v4821_v34 = vpop.f32.mrf.mxu0  ;;  %v5867_v28 = vld [vmem:[#allocation3 + $0x10c] sm:$0xf] }
 0x2e8   : > { %v4911_v8 = vadd.f32 %v4910_v57, %v4821_v34  ;;  %v5686_v46 = vor.u32 %v5867_v28, %v5683_v25 }
 0x2ea   : > { %v5000_v44 = vadd.f32 %v8176_v41, %v4911_v8  ;;  %4927 = vmatmul.bf16.gmra.mxu1 %v5686_v46 }
 0x2ec   : > { %v5057_v61 = vpack.c.bf16 %v5000_v44, %v5000_v44  ;;  %v5135_v6 = vsel %vm4726_vm2, %v5000_v44, 0.0  ;;  %v5191_v54 = vmul.f32 %v5000_v44, %v5000_v44 }
 0x2ed   : > { %v5136_v4 = vadd.f32 %v5135_v6, %v5134_v0 }
 0x2ee   : > { %5089 = vst.msk [vmem:[%s7917_s22 + $0x3c] sm:$0xf] %vm510_vm0, %v5057_v61  ;;  %v5237_v15 = vsel %vm4726_vm2, %v5191_v54, 0.0 }
 0x2ef   : > { %v5238_v55 = vadd.f32 %v5237_v15, %v5236_v43  ;;  %v4824_v1 = vpop.f32.mrf.mxu0 }
 0x2f7   : > { %v4938_v51 = vpop.f32.mrf.mxu3  ;;  %v4826_v35 = vpop.f32.mrf.mxu0 }
 0x2f8   : > { %v4939_v21 = vadd.f32 %v4938_v51, %v8236_v38 }
 0x2fa   : > { %v8351_v42 = vadd.f32 %v5027_v53, %v4939_v21 }
 0x2fc   : > { %v5068_v41 = vpack.c.bf16 %v8351_v42, %v8351_v42 }
 0x2fe   : > { %5100 = vst.msk [vmem:[%s7917_s22 + $0x68] sm:$0xf] %vm510_vm0, %v5068_v41 }
 0x2ff   : > { %v4940_v24 = vpop.f32.mrf.mxu3 }
 0x300   : > { %v4941_v27 = vadd.f32 %v4940_v24, %v8249_v29 }
 0x302   : > { %v8358_v49 = vadd.f32 %v5029_v16, %v4941_v27 }
 0x304   : > { %v5069_v33 = vpack.c.bf16 %v8358_v49, %v8358_v49 }
 0x306   : > { %5101 = vst.msk [vmem:[%s7917_s22 + $0x6c] sm:$0xf] %vm510_vm0, %v5069_v33 }
 0x308   : > { %v4913_v38 = vpop.f32.mrf.mxu1 }
 0x309   : > { %v4914_v58 = vadd.f32 %v4913_v38, %v4824_v1 }
 0x30b   : > { %v5003_v47 = vadd.f32 %v8186_v60, %v4914_v58 }
 0x30d   : > { %v5058_v32 = vpack.c.bf16 %v5003_v47, %v5003_v47  ;;  %v5137_v9 = vsel %vm4726_vm2, %v5003_v47, 0.0  ;;  %v5192_v18 = vmul.f32 %v5003_v47, %v5003_v47 }
 0x30e   : > { %v5138_v13 = vadd.f32 %v5137_v9, %v5136_v4 }
 0x30f   : > { %5090 = vst.msk [vmem:[%s7917_s22 + $0x40] sm:$0xf] %vm510_vm0, %v5058_v32  ;;  %v5239_v29 = vsel %vm4726_vm2, %v5192_v18, 0.0 }
 0x310   : > { %v5240_v56 = vadd.f32 %v5239_v29, %v5238_v55  ;;  %v4915_v23 = vpop.f32.mrf.mxu1 }
 0x311   : > { %v4916_v10 = vadd.f32 %v4915_v23, %v4826_v35 }
 0x313   : > { %v5005_v17 = vadd.f32 %v8205_v12, %v4916_v10 }
 0x315   : > { %v5059_v50 = vpack.c.bf16 %v5005_v17, %v5005_v17  ;;  %v5139_v60 = vsel %vm4726_vm2, %v5005_v17, 0.0  ;;  %v5193_v30 = vmul.f32 %v5005_v17, %v5005_v17 }
 0x316   : > { %v5140_v37 = vadd.f32 %v5139_v60, %v5138_v13 }
 0x317   : > { %5091 = vst.msk [vmem:[%s7917_s22 + $0x44] sm:$0xf] %vm510_vm0, %v5059_v50  ;;  %v5241_v45 = vsel %vm4726_vm2, %v5193_v30, 0.0 }
 0x318   : > { %v5242_v19 = vadd.f32 %v5241_v45, %v5240_v56 }
 0x31e   : > { %v4943_v31 = vpop.f32.mrf.mxu3 }
 0x31f   : > { %v4944_v6 = vadd.f32 %v4943_v31, %v8269_v7 }
 0x326   : > { %v4945_v34 = vpop.f32.mrf.mxu3 }
 0x327   : > { %v4829_v62 = vpop.f32.mrf.mxu0 }
 0x32f   : > { %v4831_v12 = vpop.f32.mrf.mxu0 }
 0x330   : > { %v4918_v22 = vpop.f32.mrf.mxu1 }
 0x331   : > { %v4919_v40 = vadd.f32 %v4918_v22, %v4829_v62 }
 0x333   : > { %v5008_v26 = vadd.f32 %v8220_v39, %v4919_v40 }
 0x335   : > { %v5060_v0 = vpack.c.bf16 %v5008_v26, %v5008_v26  ;;  %v5194_v38 = vmul.f32 %v5008_v26, %v5008_v26  ;;  %v5141_v47 = vsel %vm4726_vm2, %v5008_v26, 0.0 }
 0x336   : > { %v5142_v35 = vadd.f32 %v5141_v47, %v5140_v37 }
 0x337   : > { %5092 = vst.msk [vmem:[%s7917_s22 + $0x48] sm:$0xf] %vm510_vm0, %v5060_v0  ;;  %v5243_v18 = vsel %vm4726_vm2, %v5194_v38, 0.0 }
 0x338   : > { %v4920_v25 = vpop.f32.mrf.mxu1  ;;  %v5244_v60 = vadd.f32 %v5243_v18, %v5242_v19 }
 0x339   : > { %v4921_v11 = vadd.f32 %v4920_v25, %v4831_v12 }
 0x33b   : > { %v5010_v43 = vadd.f32 %v8239_v14, %v4921_v11 }
 0x33d   : > { %v5061_v57 = vpack.c.bf16 %v5010_v43, %v5010_v43  ;;  %v5143_v13 = vsel %vm4726_vm2, %v5010_v43, 0.0 }
 0x33e   : > { %v5144_v30 = vadd.f32 %v5143_v13, %v5142_v35 }
 0x33f   : > { %5093 = vst.msk [vmem:[%s7917_s22 + $0x4c] sm:$0xf] %vm510_vm0, %v5061_v57 }
 0x346   : > { %v4948_v28 = vpop.f32.mrf.mxu3 }
 0x347   : > { %v4949_v27 = vadd.f32 %v4948_v28, %v8299_v20 }
 0x348   : > { %v4923_v8 = vpop.f32.mrf.mxu1 }
 0x34e   : > { %v4950_v46 = vpop.f32.mrf.mxu3 }
 0x34f   : > { %v4951_v23 = vadd.f32 %v4950_v46, %v8314_v5  ;;  %v5200_v46 = vmul.f32 %v8323_v52, %v8323_v52 }
 0x350   : > { %v4834_v44 = vpop.f32.mrf.mxu0  ;;  %v4925_v15 = vpop.f32.mrf.mxu1 }
 0x351   : > { %v4924_v39 = vadd.f32 %v4923_v8, %v4834_v44 }
 0x353   : > { %v5013_v61 = vadd.f32 %v8252_v3, %v4924_v39  ;;  %v4946_v3 = vadd.f32 %v4945_v34, %v8291_v63  ;;  %v5195_v63 = vmul.f32 %v5010_v43, %v5010_v43 }
 0x355   : > { %v5062_v54 = vpack.c.bf16 %v5013_v61, %v5013_v61  ;;  %v5196_v29 = vmul.f32 %v5013_v61, %v5013_v61  ;;  %v5245_v56 = vsel %vm4726_vm2, %v5195_v63, 0.0  ;;  %v5145_v10 = vsel %vm4726_vm2, %v5013_v61, 0.0 }
 0x356   : > { %v5032_v4 = vpop.f32.mrf.mxu3  ;;  %v5246_v40 = vadd.f32 %v5245_v56, %v5244_v60  ;;  %v5146_v26 = vadd.f32 %v5145_v10, %v5144_v30 }
 0x357   : > { %5094 = vst.msk [vmem:[%s7917_s22 + $0x50] sm:$0xf] %vm510_vm0, %v5062_v54  ;;  %v8384_v14 = vadd.f32 %v5032_v4, %v4944_v6  ;;  %v5247_v62 = vsel %vm4726_vm2, %v5196_v29, 0.0  ;;  %v5153_v4 = vsel %vm4726_vm2, %v8323_v52, 0.0 }
 0x358   : > { %v4836_v55 = vpop.f32.mrf.mxu0  ;;  %v5248_v11 = vadd.f32 %v5247_v62, %v5246_v40 }
 0x359   : > { %v5070_v53 = vpack.c.bf16 %v8384_v14, %v8384_v14  ;;  %v4926_v51 = vadd.f32 %v4925_v15, %v4836_v55  ;;  %v5201_v15 = vmul.f32 %v8332_v48, %v8332_v48  ;;  %v5204_v63 = vmul.f32 %v8384_v14, %v8384_v14 }
 0x35b   : > { %5102 = vst.msk [vmem:[%s7917_s22 + $0x70] sm:$0xf] %vm510_vm0, %v5070_v53  ;;  %v5015_v21 = vadd.f32 %v8279_v36, %v4926_v51  ;;  %v5255_v51 = vsel %vm4726_vm2, %v5200_v46, 0.0  ;;  %v5257_v52 = vsel %vm4726_vm2, %v5201_v15, 0.0  ;;  %v5263_v29 = vsel %vm4726_vm2, %v5204_v63, 0.0 }
 0x35d   : > { %v5063_v7 = vpack.c.bf16 %v5015_v21, %v5015_v21  ;;  %v5197_v17 = vmul.f32 %v5015_v21, %v5015_v21  ;;  %v5147_v22 = vsel %vm4726_vm2, %v5015_v21, 0.0  ;;  %v5155_v21 = vsel %vm4726_vm2, %v8332_v48, 0.0 }
 0x35e   : > { %v5034_v41 = vpop.f32.mrf.mxu3  ;;  %v5148_v43 = vadd.f32 %v5147_v22, %v5146_v26  ;;  %v5159_v48 = vsel %vm4726_vm2, %v8358_v49, 0.0 }
 0x35f   : > { %5095 = vst.msk [vmem:[%s7917_s22 + $0x54] sm:$0xf] %vm510_vm0, %v5063_v7  ;;  %v8394_v24 = vadd.f32 %v5034_v41, %v4946_v3  ;;  %v5249_v0 = vsel %vm4726_vm2, %v5197_v17, 0.0  ;;  %v5202_v3 = vmul.f32 %v8351_v42, %v8351_v42 }
 0x360   : > { %v4839_v33 = vpop.f32.mrf.mxu0  ;;  %v5250_v28 = vadd.f32 %v5249_v0, %v5248_v11 }
 0x361   : > { %v5071_v16 = vpack.c.bf16 %v8394_v24, %v8394_v24  ;;  %v5259_v38 = vsel %vm4726_vm2, %v5202_v3, 0.0 }
 0x363   : > { %5103 = vst.msk [vmem:[%s7917_s22 + $0x74] sm:$0xf] %vm510_vm0, %v5071_v16  ;;  %v5157_v16 = vsel %vm4726_vm2, %v8351_v42, 0.0  ;;  %v5161_v42 = vsel %vm4726_vm2, %v8384_v14, 0.0 }
 0x366   : > { %v5037_v1 = vpop.f32.mrf.mxu3 }
 0x367   : > { %v8401_v36 = vadd.f32 %v5037_v1, %v4949_v27  ;;  %v4928_v58 = vpop.f32.mrf.mxu1  ;;  %v5203_v27 = vmul.f32 %v8358_v49, %v8358_v49  ;;  %v5163_v49 = vsel %vm4726_vm2, %v8394_v24, 0.0 }
 0x368   : > { %v4929_v9 = vadd.f32 %v4928_v58, %v4839_v33  ;;  %v4841_v31 = vpop.f32.mrf.mxu0 }
 0x369   : > { %v5072_v32 = vpack.c.bf16 %v8401_v36, %v8401_v36  ;;  %v5165_v14 = vsel %vm4726_vm2, %v8401_v36, 0.0 }
 0x36a   : > { %v5018_v20 = vadd.f32 %v8294_v59, %v4929_v9  ;;  %v5205_v9 = vmul.f32 %v8394_v24, %v8394_v24 }
 0x36b   : > { %5104 = vst.msk [vmem:[%s7917_s22 + $0x78] sm:$0xf] %vm510_vm0, %v5072_v32  ;;  %v5261_v32 = vsel %vm4726_vm2, %v5203_v27, 0.0 }
 0x36c   : > { %v5064_v50 = vpack.c.bf16 %v5018_v20, %v5018_v20  ;;  %v5198_v59 = vmul.f32 %v5018_v20, %v5018_v20  ;;  %v5149_v12 = vsel %vm4726_vm2, %v5018_v20, 0.0  ;;  %v5206_v20 = vmul.f32 %v8401_v36, %v8401_v36 }
 0x36d   : > { %v5150_v8 = vadd.f32 %v5149_v12, %v5148_v43 }
 0x36e   : > { %v5039_v45 = vpop.f32.mrf.mxu3  ;;  %5096 = vst.msk [vmem:[%s7917_s22 + $0x58] sm:$0xf] %vm510_vm0, %v5064_v50  ;;  %v5251_v57 = vsel %vm4726_vm2, %v5198_v59, 0.0  ;;  %v5267_v60 = vsel %vm4726_vm2, %v5206_v20, 0.0 }
 0x36f   : > { %v5040_v37 = vadd.f32 %v5039_v45, %v4951_v23  ;;  %v4930_v5 = vpop.f32.mrf.mxu1  ;;  %v5252_v6 = vadd.f32 %v5251_v57, %v5250_v28  ;;  %v5265_v23 = vsel %vm4726_vm2, %v5205_v9, 0.0 }
 0x370   : > { %v4931_v25 = vadd.f32 %v4930_v5, %v4841_v31 }
 0x371   : > { %v5073_v19 = vpack.c.bf16 %v5040_v37, %v5040_v37  ;;  %v5207_v10 = vmul.f32 %v5040_v37, %v5040_v37  ;;  %v5167_v30 = vsel %vm4726_vm2, %v5040_v37, 0.0 }
 0x372   : > { %v5020_v34 = vadd.f32 %v8310_v2, %v4931_v25 }
 0x373   : > { %5105 = vst.msk [vmem:[%s7917_s22 + $0x7c] sm:$0xf] %vm510_vm0, %v5073_v19  ;;  %v5269_v62 = vsel %vm4726_vm2, %v5207_v10, 0.0 }
 0x374   : > { %v5065_v44 = vpack.c.bf16 %v5020_v34, %v5020_v34  ;;  %v5151_v39 = vsel %vm4726_vm2, %v5020_v34, 0.0  ;;  %v5199_v61 = vmul.f32 %v5020_v34, %v5020_v34 }
 0x375   : > { %v5152_v54 = vadd.f32 %v5151_v39, %v5150_v8 }
 0x376   : > { %5097 = vst.msk [vmem:[%s7917_s22 + $0x5c] sm:$0xf] %vm510_vm0, %v5065_v44  ;;  %v5253_v2 = vsel %vm4726_vm2, %v5199_v61, 0.0 }
 0x377   : > { %v5154_v55 = vadd.f32 %v5153_v4, %v5152_v54  ;;  %v5254_v53 = vadd.f32 %v5253_v2, %v5252_v6 }
 0x379   : > { %v5156_v7 = vadd.f32 %v5155_v21, %v5154_v55  ;;  %v5256_v41 = vadd.f32 %v5255_v51, %v5254_v53 }
 0x37b   : > { %v5158_v33 = vadd.f32 %v5157_v16, %v5156_v7  ;;  %v5258_v1 = vadd.f32 %v5257_v52, %v5256_v41 }
 0x37d   : > { %v5160_v58 = vadd.f32 %v5159_v48, %v5158_v33  ;;  %v5260_v47 = vadd.f32 %v5259_v38, %v5258_v1 }
 0x37f   : > { %v5162_v18 = vadd.f32 %v5161_v42, %v5160_v58  ;;  %v5262_v13 = vadd.f32 %v5261_v32, %v5260_v47 }
 0x381   : > { %v5164_v35 = vadd.f32 %v5163_v49, %v5162_v18  ;;  %v5264_v56 = vadd.f32 %v5263_v29, %v5262_v13 }
 0x383   : > { %v5166_v17 = vadd.f32 %v5165_v14, %v5164_v35  ;;  %v5266_v50 = vadd.f32 %v5265_v23, %v5264_v56 }
 0x385   : > { %v5168_v45 = vadd.f32 %v5167_v30, %v5166_v17  ;;  %v5268_v24 = vadd.f32 %v5267_v60, %v5266_v50 }
 0x387   : > { %v5169_v22 = vrot.slane %v5168_v45, 4  ;;  %v5270_v59 = vadd.f32 %v5269_v62, %v5268_v24 }
 0x389   : > { %v5170_v40 = vadd.f32 %v5169_v22, %v5168_v45  ;;  %v5271_v26 = vrot.slane %v5270_v59, 4 }
 0x38b   : > { %v5171_v31 = vrot.slane %v5170_v40, 2  ;;  %v5272_v5 = vadd.f32 %v5271_v26, %v5270_v59 }
 0x38d   : > { %v5172_v36 = vadd.f32 %v5171_v31, %v5170_v40  ;;  %v5273_v0 = vrot.slane %v5272_v5, 2 }
 0x38f   : > { %v5173_v12 = vrot.slane %v5172_v36, 1  ;;  %v5274_v19 = vadd.f32 %v5273_v0, %v5272_v5 }
 0x391   : > { %v5174_v37 = vadd.f32 %v5173_v12, %v5172_v36  ;;  %v5275_v25 = vrot.slane %v5274_v19, 1 }
 0x393   : > { %5175 = vst.msk [vmem:[%s500_s20] sm:$0x1] %vm513_vm1, %v5174_v37  ;;  %v5276_v11 = vadd.f32 %v5275_v25, %v5274_v19 }
 0x395   : > { %5277 = vst.msk [vmem:[%s506_s10] sm:$0x1] %vm513_vm1, %v5276_v11 }
 0x396 PF: > { %s19_s27 = sadd.s32 1, %s6055_s27   ;;  %s8503_s26 = smov %s6051_s2 }
 0x397   : > { %p16_p5 = scmp.ge.s32.totalorder %s19_s27, 4   ;;  %s8504_s2 = smov %s8506_s28 }
 0x399   :  { %18 = sbr.rel (!%p16_p5) target bundleno = 2 (0x2), region = 107 }

// kernel: basic_block_forward.4
= control target key start
LH: loop header
LB: loop body
LE: loop exit
PB: predicated region body
PF: predicated region fallthrough
CT: control target
= control target key end

     0   :  { %s6142_s26 = smov 0   ;;  %s6144_s2 = smov 0   ;;  %s8464_s0 = inlined_call_operand.vmem [shape: bf16[2,16,16,32], index: 0, kind: input, shape index: {}, may-alias: {0,1,2}]   ;;  %s8465_s1 = inlined_call_operand.vmem [shape: bf16[2,16,16,32], index: 1, kind: input, shape index: {}, may-alias: {0,1,2}]   ;;  %s8466_s2 = inlined_call_operand.vmem [shape: bf16[2,16,16,32], index: 2, kind: input, shape index: {}, may-alias: {0,1,2}]   ;;  %s8467_s3 = inlined_call_operand.vmem [shape: f32[1,32], index: 3, kind: input, shape index: {}]   ;;  %s8468_s4 = inlined_call_operand.vmem [shape: f32[1,32], index: 4, kind: input, shape index: {}]   ;;  %s8469_s5 = inlined_call_operand.vmem [shape: bf16[288,32], index: 5, kind: input, shape index: {}]   ;;  %s8470_s6 = inlined_call_operand.vmem [shape: bf16[2,16,16,32], index: 6, kind: output, shape index: {0}]   ;;  %s8471_s7 = inlined_call_operand.vmem [shape: f32[2,1,1,32], index: 7, kind: output, shape index: {1}]   ;;  %s8472_s8 = inlined_call_operand.vmem [shape: f32[2,1,1,32], index: 8, kind: output, shape index: {2}]  }
   0x1   :  { %s6146_s27 = smov 0  }
   0x2 LB: > { %s31_s28 = sadd.s32 1, %s6087_s2  ;;  %p5526_p0 = scmp.ge.s32.totalorder %s6091_s27, 1  ;;  %s6091_s27 = sphi %s6146_s27, %s19_s27   ;;  %s6087_s2 = sphi %s6144_s2, %s8484_s2   ;;  %s6083_s26 = sphi %s6142_s26, %s8483_s26  }
   0x3   : > { %p33_p1 = scmp.ge.s32.totalorder %s31_s28, 2  ;;  %p357_p2 = scmp.lt.s32.totalorder %s6091_s27, 3 }
   0x5   : > { %s8486_s28 = smov (%p33_p1, %s31_s28), 0  ;;  %p358_p3 = pnand %p5526_p0, %p357_p2 }
   0x6   : > { %p440_p4 = scmp.lt.s32.totalorder (!%p358_p3), %s6083_s26, 1  ;;  %s6094_s15 = smov (!%p358_p3), 32  }
   0x7   : > { %361 = sbr.rel (%p358_p3) target bundleno = 923 (0x39b), region = 44  ;;  %s6095_s20 = smov (!%p358_p3), 64  }
   0x8   : > { %s6096_s21 = smov (!%p358_p3), 96  }
   0xc   : > { %vm510_vm0 = vcmask 257024   ;;  %vm513_vm1 = vcmask 253952   ;;  %vm764_vm2 = vsmask.f32 256  ;;  %v6093_v0 = vmov 0   ;;  %s8488_s26 = smov (!%p440_p4, %s6083_s26), 1 }
   0xd   : > { %512 = vst.msk [vmem:[#allocation2 + $0x4] sm:$0xf] %vm510_vm0, %v6093_v0  ;;  %vm765_vm3 = vsmask.f32 4368  ;;  %v6163_v1 = vrot.slane %v6093_v0, 7  ;;  %vm6193_vm5 = vmand %vm513_vm1, %vm764_vm2  ;;  %s5865_s29 = sshll.u32 %s8488_s26, 7 }
   0xe   : > { %514 = vst.msk [vmem:[#allocation2 + $0x8] sm:$0x1] %vm513_vm1, %v6093_v0  ;;  %vm6168_vm4 = vmor %vm764_vm2, %vm765_vm3  ;;  %s6216_s10 = scalar_lea.vmem %s8464_s0, %s5865_s29  ;;  %v6233_v16 = vld [vmem:[%s8467_s3] ss:$0 sm:$0xff]  ;;  %vm1408_vm6 = vsmask.f32 3328  ;;  %s7904_s22 = scalar_lea.vmem %s8470_s6, %s5865_s29 }
   0xf   : > { %v6173_v3 = vrot.slane %v6163_v1, 4  ;;  %511 = vst.msk [vmem:[#allocation2] sm:$0xf] %vm510_vm0, %v6093_v0  ;;  %v6001_v11 = vld [vmem:[%s6216_s10 + $0x10] sm:$0xff]   ;;  %v5937_v12 = vld [vmem:[%s6216_s10] sm:$0xff]   ;;  %v6002_v36 = vld [vmem:[%s6216_s10 + $0x18] sm:$0xff]  }
  0x10   : > { %515 = vst.msk [vmem:[#allocation2 + $0xc] sm:$0xf] %vm510_vm0, %v6093_v0  ;;  %v5946_v15 = vunpack.c.l.bf16 %v6001_v11  ;;  %v5938_v17 = vunpack.c.l.bf16 %v5937_v12  ;;  %vm1409_vm7 = vsmask.f32 7440  ;;  %v6244_v21 = vld [vmem:[%s8468_s4] ss:$0 sm:$0xff]  ;;  %v5947_v26 = vunpack.c.h.bf16 %v6001_v11 }
  0x11   : > { %v6183_v4 = vsel %vm6168_vm4, %v6173_v3, %v6163_v1  ;;  %516 = vst.msk [vmem:[#allocation2 + $0x10] sm:$0xf] %vm510_vm0, %v6093_v0  ;;  %vm6249_vm8 = vmor %vm1408_vm6, %vm1409_vm7  ;;  %v5939_v28 = vunpack.c.h.bf16 %v5937_v12  ;;  %v5950_v40 = vunpack.c.l.bf16 %v6002_v36  ;;  %v5951_v42 = vunpack.c.h.bf16 %v6002_v36 }
  0x12   : > { %1258 = vst.msk [vmem:[#allocation2 + $0x4] sm:$0xf] %vm510_vm0, %v6183_v4  ;;  %v637_v20 = vmul.f32 %v6233_v16, %v5946_v15  ;;  %v633_v22 = vmul.f32 %v6233_v16, %v5938_v17  ;;  %v638_v31 = vmul.f32 %v6233_v16, %v5947_v26  ;;  %vm1089_vm9 = vsmask.f32 7938 }
  0x13   : > { %517 = vst.msk [vmem:[#allocation2 + $0x14] sm:$0x1] %vm513_vm1, %v6093_v0  ;;  %v634_v33 = vmul.f32 %v6233_v16, %v5939_v28  ;;  %v639_v46 = vmul.f32 %v6233_v16, %v5950_v40  ;;  %v640_v48 = vmul.f32 %v6233_v16, %v5951_v42  ;;  %vm6294_vm10 = vmand %vm510_vm0, %vm1089_vm9  ;;  %v6005_v42 = vld [vmem:[%s6216_s10 + $0x30] sm:$0xff]   ;;  %vm2020_vm11 = vcmask 1042432  }
  0x14   : > { %518 = vst.msk [vmem:[#allocation2 + $0x18] sm:$0xf] %vm510_vm0, %v6093_v0  ;;  %v672_v27 = vadd.f32 %v6244_v21, %v637_v20  ;;  %v668_v30 = vadd.f32 %v6244_v21, %v633_v22  ;;  %v673_v37 = vadd.f32 %v6244_v21, %v638_v31  ;;  %vm2021_vm12 = vcmask 1046532  }
  0x15   : > { %v1259_v6 = vld [vmem:[#allocation2 + $0x8] sm:$0x1]  ;;  %519 = vst.msk [vmem:[#allocation2 + $0x1c] sm:$0xf] %vm510_vm0, %v6093_v0  ;;  %v669_v39 = vadd.f32 %v6244_v21, %v634_v33  ;;  %v674_v55 = vadd.f32 %v6244_v21, %v639_v46  ;;  %v675_v56 = vadd.f32 %v6244_v21, %v640_v48  ;;  %vm6889_vm13 = vmor %vm2020_vm11, %vm2021_vm12  ;;  %vm1891_vm14 = vcmask 519424  }
  0x16   : > { %v1260_v7 = vsel %vm6193_vm5, %v6173_v3, %v1259_v6  ;;  %520 = vst.msk [vmem:[#allocation2 + $0x20] sm:$0x1] %vm513_vm1, %v6093_v0  ;;  %v704_v32 = vmax.f32 %v672_v27, 0.0  ;;  %v700_v35 = vmax.f32 %v668_v30, 0.0  ;;  %v705_v43 = vmax.f32 %v673_v37, 0.0 }
  0x17   : > { %1261 = vst [vmem:[#allocation2 + $0x8] sm:$0x1] %v1260_v7  ;;  %v701_v45 = vmax.f32 %v669_v39, 0.0  ;;  %v6298_v58 = vld [vmem:[#allocation2] sm:$0xf]  ;;  %v706_v11 = vmax.f32 %v674_v55, 0.0 }
  0x18   : > { %521 = vst.msk [vmem:[#allocation2 + $0x24] sm:$0xf] %vm510_vm0, %v6093_v0  ;;  %v736_v38 = vpack.c.bf16 %v704_v32, %v704_v32  ;;  %v732_v41 = vpack.c.bf16 %v700_v35, %v700_v35  ;;  %v737_v49 = vpack.c.bf16 %v705_v43, %v705_v43  ;;  %v6314_v7 = vld [vmem:[#allocation2 + $0xc] sm:$0xf]  ;;  %v707_v12 = vmax.f32 %v675_v56, 0.0 }
  0x19   : > { %v1361_v8 = vld [vmem:[#allocation2 + $0x4] sm:$0xf]  ;;  %522 = vst.msk [vmem:[#allocation2 + $0x28] sm:$0xf] %vm510_vm0, %v6093_v0  ;;  %v733_v52 = vpack.c.bf16 %v701_v45, %v701_v45  ;;  %v6338_v22 = vpack.c.bf16 %v706_v11, %v706_v11  ;;  %vm2231_vm15 = vcmask 781824   ;;  %vm4762_vm2 = vcmask 261120  }
  0x1a   : > { %v1421_v9 = vshll.u32 %v1361_v8, 16  ;;  %v1425_v10 = vshrl.u32 %v1361_v8, 16  ;;  %523 = vst.msk [vmem:[#allocation2 + $0x2c] sm:$0x1] %vm513_vm1, %v6093_v0  ;;  %v802_v44 = vshrl.u32 %v736_v38, 16  ;;  %v768_v47 = vshrl.u32 %v732_v41, 16 }
  0x1b   : > { %524 = vst.msk [vmem:[#allocation2 + $0x30] sm:$0xf] %vm510_vm0, %v6093_v0  ;;  %v805_v51 = vshll.u32 %v736_v38, 16  ;;  %v771_v54 = vshll.u32 %v732_v41, 16  ;;  %v810_v60 = vshrl.u32 %v737_v49, 16  ;;  %v776_v61 = vshrl.u32 %v733_v52, 16 }
  0x1c   : > { %v6226_v13 = vrot.slane %v1421_v9, 5  ;;  %v1427_v14 = vrot.slane %v1425_v10, 4  ;;  %525 = vst.msk [vmem:[#allocation2 + $0x34] sm:$0xf] %vm510_vm0, %v6093_v0  ;;  %v6283_v50 = vrot.slane %v802_v44, 7  ;;  %v6287_v53 = vrot.slane %v768_v47, 7 }
  0x1d   : > { %526 = vst.msk [vmem:[#allocation2 + $0x38] sm:$0x1] %vm513_vm1, %v6093_v0  ;;  %v6312_v6 = vrot.slane %v810_v60, 7  ;;  %v6004_v8 = vld [vmem:[%s6216_s10 + $0x28] sm:$0xff]   ;;  %v1256_v9 = vsel %vm6294_vm10, %v6163_v1, %v6298_v58  ;;  %v813_v10 = vshll.u32 %v737_v49, 16  ;;  %v6330_v17 = vrot.slane %v776_v61, 7 }
  0x1e   : > { %v1362_v18 = vld [vmem:[#allocation2 + $0x8] sm:$0x1]  ;;  %v1428_v19 = vor.u32 %v1427_v14, %v6226_v13  ;;  %527 = vst.msk [vmem:[#allocation2 + $0x3c] sm:$0xf] %vm510_vm0, %v6093_v0  ;;  %v6301_v59 = vor.u32 %v805_v51, %v6283_v50  ;;  %v6308_v63 = vor.u32 %v771_v54, %v6287_v53  ;;  %v808_v26 = vrot.slane %v6283_v50, 4  ;;  %v6003_v47 = vld [vmem:[%s6216_s10 + $0x20] sm:$0xff]  }
  0x1f   : > { %v1431_v23 = vshll.u32 %v1362_v18, 16  ;;  %528 = vst.msk [vmem:[#allocation2 + $0x40] sm:$0xf] %vm510_vm0, %v6093_v0  ;;  %v6305_v62 = vld [vmem:[#allocation2 + $0x24] sm:$0xf]  ;;  %v6000_v14 = vld [vmem:[%s6216_s10 + $0x8] sm:$0xff]   ;;  %v5959_v27 = vunpack.c.h.bf16 %v6004_v8  ;;  %v815_v30 = vor.u32 %v813_v10, %v6312_v6  ;;  %v5962_v50 = vunpack.c.l.bf16 %v6005_v42 }
  0x20   : > { %v1429_v25 = vrot.slane %v1428_v19, 4  ;;  %529 = vst.msk [vmem:[#allocation2 + $0x44] sm:$0x1] %vm513_vm1, %v6093_v0  ;;  %v1108_v15 = vsel %vm6294_vm10, %v6301_v59, %v6305_v62  ;;  %v779_v18 = vshll.u32 %v733_v52, 16  ;;  %v5958_v19 = vunpack.c.l.bf16 %v6004_v8 }
  0x21   : > { %v1433_v29 = vrot.slane %v1431_v23, 5  ;;  %530 = vst.msk [vmem:[#allocation2 + $0x48] sm:$0xf] %vm510_vm0, %v6093_v0  ;;  %v1092_v20 = vsel %vm6294_vm10, %v6308_v63, %v6314_v7  ;;  %v739_v23 = vpack.c.bf16 %v707_v12, %v707_v12  ;;  %v819_v31 = vshrl.u32 %v6338_v22, 16  ;;  %v6512_v7 = vld [vmem:[%s6216_s10 + $0x38] sm:$0xff]  }
  0x22   : > { %531 = vst.msk [vmem:[#allocation2 + $0x4c] sm:$0xf] %vm510_vm0, %v6093_v0  ;;  %v643_v28 = vmul.f32 %v6233_v16, %v5958_v19  ;;  %v774_v38 = vrot.slane %v6287_v53, 4  ;;  %v781_v39 = vor.u32 %v779_v18, %v6330_v17  ;;  %v5963_v51 = vunpack.c.h.bf16 %v6005_v42 }
  0x23   : > { %v1434_v34 = vsel %vm6249_vm8, %v1429_v25, %v1433_v29  ;;  %532 = vst.msk [vmem:[#allocation2 + $0x50] sm:$0x1] %vm513_vm1, %v6093_v0  ;;  %v5942_v25 = vunpack.c.l.bf16 %v6000_v14  ;;  %v5943_v29 = vunpack.c.h.bf16 %v6000_v14  ;;  %v827_v32 = vshrl.u32 %v739_v23, 16 }
  0x24   : > { %1797 = vrot.lane.b32.xlu0 %v1434_v34, %s6094_s15  ;;  %533 = vst.msk [vmem:[#allocation2 + $0x54] sm:$0xf] %vm510_vm0, %v6093_v0  ;;  %v830_v33 = vshll.u32 %v739_v23, 16  ;;  %v644_v34 = vmul.f32 %v6233_v16, %v5959_v27  ;;  %v678_v35 = vadd.f32 %v6244_v21, %v643_v28  ;;  %v6358_v40 = vrot.slane %v819_v31, 7  ;;  %v1118_v60 = vld [vmem:[#allocation2 + $0x38] sm:$0x1] }
  0x25   : > { %534 = vst.msk [vmem:[#allocation2 + $0x58] sm:$0xf] %vm510_vm0, %v6093_v0  ;;  %v635_v36 = vmul.f32 %v6233_v16, %v5942_v25  ;;  %v636_v37 = vmul.f32 %v6233_v16, %v5943_v29  ;;  %v829_v41 = vrot.slane %v827_v32, 7  ;;  %v6374_v52 = vsel %vm6168_vm4, %v808_v26, %v815_v30  ;;  %v1097_v28 = vld [vmem:[#allocation2 + $0x14] sm:$0x1] }
  0x26   : > { %535 = vst.msk [vmem:[#allocation2 + $0x5c] sm:$0x1] %vm513_vm1, %v6093_v0  ;;  %v679_v43 = vadd.f32 %v6244_v21, %v644_v34  ;;  %v710_v44 = vmax.f32 %v678_v35, 0.0  ;;  %v825_v48 = vrot.slane %v6358_v40, 4  ;;  %v6380_v56 = vsel %vm6168_vm4, %v774_v38, %v781_v39 }
  0x27   : > { %536 = vst.msk [vmem:[#allocation2 + $0x60] sm:$0xf] %vm510_vm0, %v6093_v0  ;;  %v670_v45 = vadd.f32 %v6244_v21, %v635_v36  ;;  %v671_v46 = vadd.f32 %v6244_v21, %v636_v37  ;;  %v832_v49 = vor.u32 %v830_v33, %v829_v41  ;;  %v834_v53 = vrot.slane %v829_v41, 4 }
  0x28   : > { %537 = vst.msk [vmem:[#allocation2 + $0x64] sm:$0xf] %vm510_vm0, %v6093_v0  ;;  %v711_v54 = vmax.f32 %v679_v43, 0.0  ;;  %v742_v55 = vpack.c.bf16 %v710_v44, %v710_v44  ;;  %v645_v61 = vmul.f32 %v6233_v16, %v5962_v50  ;;  %v646_v8 = vmul.f32 %v6233_v16, %v5963_v51  ;;  %v6403_v31 = vld [vmem:[#allocation2 + $0x48] sm:$0xf] }
  0x29   : > { %538 = vst.msk [vmem:[#allocation2 + $0x68] sm:$0x1] %vm513_vm1, %v6093_v0  ;;  %v5954_v10 = vunpack.c.l.bf16 %v6003_v47  ;;  %v6388_v11 = vsel %vm6168_vm4, %v825_v48, %v832_v49  ;;  %v783_v12 = vrot.slane %v6330_v17, 4  ;;  %v702_v23 = vmax.f32 %v670_v45, 0.0  ;;  %v6007_v49 = vld [vmem:[%s6216_s10 + $0x40] sm:$0xff]  }
  0x2a   : > { %539 = vst.msk [vmem:[#allocation2 + $0x6c] sm:$0xf] %vm510_vm0, %v6093_v0  ;;  %v743_v14 = vpack.c.bf16 %v711_v54, %v711_v54  ;;  %v853_v18 = vshrl.u32 %v742_v55, 16  ;;  %v856_v19 = vshll.u32 %v742_v55, 16  ;;  %v703_v25 = vmax.f32 %v671_v46, 0.0 }
  0x2b   : > { %540 = vst.msk [vmem:[#allocation2 + $0x70] sm:$0xf] %vm510_vm0, %v6093_v0  ;;  %v680_v26 = vadd.f32 %v6244_v21, %v645_v61  ;;  %v6398_v27 = vsel %vm6193_vm5, %v834_v53, %v1118_v60  ;;  %v681_v30 = vadd.f32 %v6244_v21, %v646_v8  ;;  %v734_v32 = vpack.c.bf16 %v702_v23, %v702_v23  ;;  %v1111_v53 = vld [vmem:[#allocation2 + $0x2c] sm:$0x1] }
  0x2c   : > { %541 = vst.msk [vmem:[#allocation2 + $0x74] sm:$0x1] %vm513_vm1, %v6093_v0  ;;  %v855_v29 = vrot.slane %v853_v18, 7  ;;  %v861_v17 = vshrl.u32 %v743_v14, 16  ;;  %v735_v33 = vpack.c.bf16 %v703_v25, %v703_v25  ;;  %v5955_v34 = vunpack.c.h.bf16 %v6003_v47 }
  0x2d   : > { %542 = vst.msk [vmem:[#allocation2 + $0x78] sm:$0xf] %vm510_vm0, %v6093_v0  ;;  %v641_v35 = vmul.f32 %v6233_v16, %v5954_v10  ;;  %v864_v38 = vshll.u32 %v743_v14, 16  ;;  %v712_v39 = vmax.f32 %v680_v26, 0.0  ;;  %v6416_v41 = vsel %vm6193_vm5, %v783_v12, %v1097_v28 }
  0x2e   : > { %543 = vst.msk [vmem:[#allocation2 + $0x7c] sm:$0xf] %vm510_vm0, %v6093_v0  ;;  %v6408_v36 = vor.u32 %v856_v19, %v855_v29  ;;  %v6410_v37 = vrot.slane %v861_v17, 7  ;;  %v785_v42 = vshrl.u32 %v734_v32, 16  ;;  %v793_v43 = vshrl.u32 %v735_v33, 16 }
  0x2f   : > { %544 = vst.msk [vmem:[#allocation2 + $0x80] sm:$0x1] %vm513_vm1, %v6093_v0  ;;  %v796_v44 = vshll.u32 %v735_v33, 16  ;;  %v859_v45 = vrot.slane %v855_v29, 4  ;;  %v788_v47 = vshll.u32 %v734_v32, 16  ;;  %v817_v48 = vrot.slane %v6312_v6, 4 }
  0x30   : > { %545 = vst.msk [vmem:[#allocation2 + $0x84] sm:$0xf] %vm510_vm0, %v6093_v0  ;;  %v866_v46 = vor.u32 %v864_v38, %v6410_v37  ;;  %v787_v50 = vrot.slane %v785_v42, 7  ;;  %v6425_v51 = vrot.slane %v793_v43, 7  ;;  %v6427_v54 = vpack.c.bf16 %v712_v39, %v712_v39  ;;  %v6460_v17 = vld [vmem:[#allocation2 + $0x18] sm:$0xf] }
  0x31   : > { %546 = vst.msk [vmem:[#allocation2 + $0x88] sm:$0xf] %vm510_vm0, %v6093_v0  ;;  %v642_v55 = vmul.f32 %v6233_v16, %v5955_v34  ;;  %v1129_v6 = vsel %vm6294_vm10, %v6408_v36, %v6403_v31  ;;  %v713_v61 = vmax.f32 %v681_v30, 0.0  ;;  %v676_v8 = vadd.f32 %v6244_v21, %v641_v35  ;;  %v6008_v33 = vld [vmem:[%s6216_s10 + $0x48] sm:$0xff]  }
  0x32   : > { %547 = vst.msk [vmem:[#allocation2 + $0x8c] sm:$0x1] %vm513_vm1, %v6093_v0  ;;  %v6434_v60 = vsel %vm6168_vm4, %v859_v45, %v866_v46  ;;  %v791_v10 = vrot.slane %v787_v50, 4  ;;  %v798_v12 = vor.u32 %v796_v44, %v6425_v51  ;;  %v6446_v14 = vsel %vm6193_vm5, %v817_v48, %v1111_v53 }
  0x33   : > { %548 = vst.msk [vmem:[#allocation2 + $0x90] sm:$0xf] %vm510_vm0, %v6093_v0  ;;  %v870_v18 = vshrl.u32 %v6427_v54, 16  ;;  %v745_v19 = vpack.c.bf16 %v713_v61, %v713_v61  ;;  %v677_v23 = vadd.f32 %v6244_v21, %v642_v55  ;;  %v708_v25 = vmax.f32 %v676_v8, 0.0 }
  0x34   : > { %549 = vst.msk [vmem:[#allocation2 + $0x94] sm:$0xf] %vm510_vm0, %v6093_v0  ;;  %v5970_v26 = vunpack.c.l.bf16 %v6007_v49  ;;  %v6454_v28 = vor.u32 %v788_v47, %v787_v50  ;;  %v6458_v29 = vsel %vm6168_vm4, %v791_v10, %v798_v12  ;;  %v5971_v32 = vunpack.c.h.bf16 %v6007_v49  ;;  %v1104_v49 = vld [vmem:[#allocation2 + $0x20] sm:$0x1] }
  0x35   : > { %550 = vst.msk [vmem:[#allocation2 + $0x98] sm:$0x1] %vm513_vm1, %v6093_v0  ;;  %v6462_v30 = vrot.slane %v870_v18, 7  ;;  %v878_v34 = vshrl.u32 %v745_v19, 16  ;;  %v881_v35 = vshll.u32 %v745_v19, 16  ;;  %v709_v38 = vmax.f32 %v677_v23, 0.0 }
  0x36   : > { %551 = vst.msk [vmem:[#allocation2 + $0x9c] sm:$0xf] %vm510_vm0, %v6093_v0  ;;  %v740_v39 = vpack.c.bf16 %v708_v25, %v708_v25  ;;  %v649_v43 = vmul.f32 %v6233_v16, %v5970_v26  ;;  %v650_v44 = vmul.f32 %v6233_v16, %v5971_v32  ;;  %v5974_v45 = vunpack.c.l.bf16 %v6008_v33  ;;  %v6520_v19 = vld [vmem:[#allocation2 + $0x3c] sm:$0xf] }
  0x37   : > { %552 = vst.msk [vmem:[#allocation2 + $0xa0] sm:$0xf] %vm510_vm0, %v6093_v0  ;;  %v876_v42 = vrot.slane %v6462_v30, 4  ;;  %v800_v46 = vrot.slane %v6425_v51, 4  ;;  %v741_v47 = vpack.c.bf16 %v709_v38, %v709_v38  ;;  %v1101_v58 = vsel %vm6294_vm10, %v6454_v28, %v6460_v17 }
  0x38   : > { %553 = vst.msk [vmem:[#allocation2 + $0xa4] sm:$0x1] %vm513_vm1, %v6093_v0  ;;  %v836_v48 = vshrl.u32 %v740_v39, 16  ;;  %v685_v50 = vadd.f32 %v6244_v21, %v650_v44  ;;  %v5975_v51 = vunpack.c.h.bf16 %v6008_v33  ;;  %v651_v62 = vmul.f32 %v6233_v16, %v5974_v45 }
  0x39   : > { %554 = vst.msk [vmem:[#allocation2 + $0xa8] sm:$0xf] %vm510_vm0, %v6093_v0  ;;  %v844_v61 = vshrl.u32 %v741_v47, 16  ;;  %v847_v8 = vshll.u32 %v741_v47, 16  ;;  %v6509_v18 = vsel %vm6193_vm5, %v800_v46, %v1104_v49  ;;  %v822_v25 = vshll.u32 %v6338_v22, 16 }
  0x3a   : > { %555 = vst.msk [vmem:[#allocation2 + $0xac] sm:$0xf] %vm510_vm0, %v6093_v0  ;;  %v838_v59 = vrot.slane %v836_v48, 7  ;;  %v717_v63 = vmax.f32 %v685_v50, 0.0  ;;  %vm2424_vm3 = vcmask 1044224  }
  0x3b   : > { %556 = vst.msk [vmem:[#allocation2 + $0xb0] sm:$0x1] %vm513_vm1, %v6093_v0  ;;  %v6547_v44 = vor.u32 %v822_v25, %v6358_v40 }
  0x3c   : > { %557 = vst.msk [vmem:[#allocation2 + $0xb4] sm:$0xf] %vm510_vm0, %v6093_v0  ;;  %v842_v32 = vrot.slane %v838_v59, 4  ;;  %v6526_v33 = vpack.c.bf16 %v717_v63, %v717_v63 }
  0x3d   : > { %558 = vst.msk [vmem:[#allocation2 + $0xb8] sm:$0xf] %vm510_vm0, %v6093_v0 }
  0x3e   : > { %559 = vst.msk [vmem:[#allocation2 + $0xbc] sm:$0x1] %vm513_vm1, %v6093_v0 }
  0x3f   : > { %560 = vst.msk [vmem:[#allocation2 + $0xc0] sm:$0xf] %vm510_vm0, %v6093_v0 }
  0x40   : > { %561 = vst.msk [vmem:[#allocation2 + $0xc4] sm:$0xf] %vm510_vm0, %v6093_v0 }
  0x41   : > { %562 = vst.msk [vmem:[#allocation2 + $0xc8] sm:$0x1] %vm513_vm1, %v6093_v0 }
  0x42   : > { %563 = vst.msk [vmem:[#allocation2 + $0xcc] sm:$0xf] %vm510_vm0, %v6093_v0 }
  0x43   : > { %564 = vst.msk [vmem:[#allocation2 + $0xd0] sm:$0xf] %vm510_vm0, %v6093_v0 }
  0x44   : > { %565 = vst.msk [vmem:[#allocation2 + $0xd4] sm:$0x1] %vm513_vm1, %v6093_v0  ;;  %v880_v0 = vrot.slane %v878_v34, 7  ;;  %v652_v34 = vmul.f32 %v6233_v16, %v5975_v51 }
  0x45   : > { %1257 = vst [vmem:[#allocation2] sm:$0xf] %v1256_v9  ;;  %v1139_v9 = vld [vmem:[#allocation2 + $0x5c] sm:$0x1] }
  0x46   : > { %1292 = vst.msk [vmem:[#allocation2 + $0xd0] sm:$0xf] %vm510_vm0, %v6183_v4  ;;  %v684_v4 = vadd.f32 %v6244_v21, %v649_v43  ;;  %v883_v53 = vor.u32 %v881_v35, %v880_v0  ;;  %v885_v55 = vrot.slane %v880_v0, 4  ;;  %v6556_v49 = vadd.f32 %v6244_v21, %v652_v34 }
  0x47   : > { %1109 = vst [vmem:[#allocation2 + $0x24] sm:$0xf] %v1108_v15  ;;  %v839_v15 = vshll.u32 %v740_v39, 16 }
  0x48   : > { %1110 = vst.msk [vmem:[#allocation2 + $0x28] sm:$0xf] %vm510_vm0, %v6374_v52  ;;  %v716_v10 = vmax.f32 %v684_v4, 0.0  ;;  %v6501_v52 = vsel %vm6168_vm4, %v876_v42, %v883_v53  ;;  %v6505_v12 = vsel %vm6193_vm5, %v885_v55, %v1139_v9  ;;  %v5966_v42 = vunpack.c.l.bf16 %v6512_v7 }
  0x49   : > { %1093 = vst [vmem:[#allocation2 + $0xc] sm:$0xf] %v1092_v20  ;;  %v6516_v20 = vor.u32 %v839_v15, %v838_v59 }
  0x4a   : > { %1094 = vst.msk [vmem:[#allocation2 + $0x10] sm:$0xf] %vm510_vm0, %v6380_v56  ;;  %v6518_v56 = vrot.slane %v844_v61, 7  ;;  %v6522_v23 = vpack.c.bf16 %v716_v10, %v716_v10 }
  0x4b   : > { %1117 = vst.msk [vmem:[#allocation2 + $0x34] sm:$0xf] %vm510_vm0, %v6388_v11  ;;  %v6530_v11 = vadd.f32 %v6244_v21, %v651_v62 }
  0x4c   : > { %v1360_v26 = vld [vmem:[#allocation2] sm:$0xf]  ;;  %1120 = vst [vmem:[#allocation2 + $0x38] sm:$0x1] %v6398_v27  ;;  %v849_v39 = vor.u32 %v847_v8, %v6518_v56  ;;  %v1122_v27 = vsel %vm6294_vm10, %v6516_v20, %v6520_v19  ;;  %v904_v43 = vshrl.u32 %v6522_v23, 16 }
  0x4d   : > { %v1412_v35 = vshrl.u32 %v1360_v26, 16  ;;  %v1415_v38 = vshll.u32 %v1360_v26, 16  ;;  %1099 = vst [vmem:[#allocation2 + $0x14] sm:$0x1] %v6416_v41  ;;  %v907_v41 = vshll.u32 %v6522_v23, 16 }
  0x4e   : > { %v1369_v22 = vld [vmem:[#allocation2 + $0x24] sm:$0xf]  ;;  %1130 = vst [vmem:[#allocation2 + $0x48] sm:$0xf] %v1129_v6  ;;  %v6553_v6 = vsel %vm6168_vm4, %v842_v32, %v849_v39  ;;  %v6560_v8 = vld [vmem:[#allocation2 + $0x30] sm:$0xf] }
  0x4f   : > { %v1414_v45 = vrot.slane %v1412_v35, 4  ;;  %v1417_v0 = vrot.slane %v1415_v38, 5  ;;  %v1370_v46 = vld [vmem:[#allocation2 + $0x28] sm:$0xf]  ;;  %v1484_v47 = vshrl.u32 %v1369_v22, 16  ;;  %v1487_v48 = vshll.u32 %v1369_v22, 16 }
  0x50   : > { %v1493_v9 = vshll.u32 %v1370_v46, 16  ;;  %v1497_v31 = vshrl.u32 %v1370_v46, 16  ;;  %v1363_v36 = vld [vmem:[#allocation2 + $0xc] sm:$0xf]  ;;  %1131 = vst.msk [vmem:[#allocation2 + $0x4c] sm:$0xf] %vm510_vm0, %v6434_v60 }
  0x51   : > { %v1418_v40 = vor.u32 %v1417_v0, %v1414_v45  ;;  %v1486_v4 = vrot.slane %v1484_v47, 4  ;;  %v1489_v50 = vrot.slane %v1487_v48, 5  ;;  %v1364_v51 = vld [vmem:[#allocation2 + $0x10] sm:$0xf]  ;;  %v1436_v53 = vshrl.u32 %v1363_v36, 16 }
  0x52   : > { %v6558_v55 = vrot.slane %v1493_v9, 5  ;;  %v1439_v59 = vshll.u32 %v1363_v36, 16  ;;  %v1445_v62 = vshll.u32 %v1364_v51, 16  ;;  %v1449_v15 = vshrl.u32 %v1364_v51, 16  ;;  %v1373_v61 = vld [vmem:[#allocation2 + $0x34] sm:$0xf] }
  0x53   : > { %v1419_v60 = vrot.slane %v1418_v40, 4  ;;  %v1490_v10 = vor.u32 %v1489_v50, %v1486_v4  ;;  %v1438_v63 = vrot.slane %v1436_v53, 4  ;;  %v1374_v25 = vld [vmem:[#allocation2 + $0x38] sm:$0x1]  ;;  %v1517_v26 = vshll.u32 %v1373_v61, 16 }
  0x54   : > { %v1441_v32 = vrot.slane %v1439_v59, 5  ;;  %v1447_v34 = vrot.slane %v1445_v62, 5  ;;  %v1451_v35 = vrot.slane %v1449_v15, 4  ;;  %v1521_v38 = vshrl.u32 %v1373_v61, 16  ;;  %v1365_v39 = vld [vmem:[#allocation2 + $0x14] sm:$0x1] }
  0x55   : > { %v1424_v22 = vsel %vm6249_vm8, %v1419_v60, %v6226_v13  ;;  %v1491_v45 = vrot.slane %v1490_v10, 4  ;;  %v6565_v0 = vrot.slane %v1517_v26, 5  ;;  %v1527_v46 = vshll.u32 %v1374_v25, 16  ;;  %v1378_v47 = vld [vmem:[#allocation2 + $0x48] sm:$0xf] }
  0x56   : > { %1795 = vrot.lane.b32.xlu0 %v1424_v22, %s6094_s15  ;;  %v1442_v48 = vor.u32 %v1441_v32, %v1438_v63  ;;  %v1523_v9 = vrot.slane %v1521_v38, 4  ;;  %v1452_v36 = vor.u32 %v1451_v35, %v1447_v34  ;;  %v1455_v40 = vshll.u32 %v1365_v39, 16  ;;  %1102 = vst [vmem:[#allocation2 + $0x18] sm:$0xf] %v1101_v58  ;;  %v1149_v25 = vld [vmem:[#allocation2 + $0x6c] sm:$0xf] }
  0x57   : > { %v1496_v13 = vsel %vm6249_vm8, %v1491_v45, %v6558_v55  ;;  %v1379_v4 = vld [vmem:[#allocation2 + $0x4c] sm:$0xf]  ;;  %v1556_v50 = vshrl.u32 %v1378_v47, 16  ;;  %v1559_v51 = vshll.u32 %v1378_v47, 16  ;;  %v1115_v53 = vsel %vm6294_vm10, %v6547_v44, %v6560_v8  ;;  %1103 = vst.msk [vmem:[#allocation2 + $0x1c] sm:$0xf] %vm510_vm0, %v6458_v29 }
  0x58   : > { %v1443_v59 = vrot.slane %v1442_v48, 4  ;;  %v1524_v62 = vor.u32 %v1523_v9, %v6565_v0  ;;  %v1453_v15 = vrot.slane %v1452_v36, 4  ;;  %v1457_v61 = vrot.slane %v1455_v40, 5  ;;  %1113 = vst [vmem:[#allocation2 + $0x2c] sm:$0x1] %v6446_v14 }
  0x59   : > { %v6583_v28 = vrot.slane %v1527_v46, 5  ;;  %v1558_v17 = vrot.slane %v1556_v50, 4  ;;  %v1561_v58 = vrot.slane %v1559_v51, 5  ;;  %v1565_v60 = vshll.u32 %v1379_v4, 16  ;;  %1138 = vst.msk [vmem:[#allocation2 + $0x58] sm:$0xf] %vm510_vm0, %v6501_v52 }
  0x5a   : > { %v1448_v10 = vsel %vm6249_vm8, %v1443_v59, %v1447_v34  ;;  %v6588_v63 = vrot.slane %v1524_v62, 4  ;;  %v1569_v44 = vshrl.u32 %v1379_v4, 16  ;;  %v1499_v8 = vrot.slane %v1497_v31, 4  ;;  %1141 = vst [vmem:[#allocation2 + $0x5c] sm:$0x1] %v6505_v12 }
  0x5b   : > { %1799 = vrot.lane.b32.xlu1 %v1448_v10, %s6094_s15  ;;  %v1562_v29 = vor.u32 %v1561_v58, %v1558_v17  ;;  %v6593_v26 = vrot.slane %v1565_v60, 5  ;;  %v906_v14 = vrot.slane %v904_v43, 7  ;;  %v912_v32 = vshrl.u32 %v6526_v33, 16  ;;  %1106 = vst [vmem:[#allocation2 + $0x20] sm:$0x1] %v6509_v18 }
  0x5c   : > { %v1458_v34 = vsel %vm6249_vm8, %v1453_v15, %v1457_v61  ;;  %v1500_v31 = vor.u32 %v1499_v8, %v6558_v55  ;;  %v915_v52 = vshll.u32 %v6526_v33, 16  ;;  %v868_v35 = vrot.slane %v6410_v37, 4  ;;  %v1132_v38 = vld [vmem:[#allocation2 + $0x50] sm:$0x1]  ;;  %1123 = vst [vmem:[#allocation2 + $0x3c] sm:$0xf] %v1122_v27 }
  0x5d   : > { %v1530_v12 = vsel %vm6249_vm8, %v6588_v63, %v6583_v28  ;;  %v6609_v43 = vrot.slane %v1562_v29, 4  ;;  %v1366_v39 = vld [vmem:[#allocation2 + $0x18] sm:$0xf]  ;;  %v909_v18 = vor.u32 %v907_v41, %v906_v14  ;;  %v910_v33 = vrot.slane %v906_v14, 4  ;;  %1124 = vst.msk [vmem:[#allocation2 + $0x40] sm:$0xf] %vm510_vm0, %v6553_v6 }
  0x5e   : > { %1807 = vrot.lane.b32.xlu0 %v1496_v13, %s6094_s15  ;;  %v1460_v37 = vshrl.u32 %v1366_v39, 16  ;;  %v1463_v55 = vshll.u32 %v1366_v39, 16  ;;  %v6621_v22 = vrot.slane %v912_v32, 7  ;;  %v5967_v45 = vunpack.c.h.bf16 %v6512_v7  ;;  %v1367_v19 = vld [vmem:[#allocation2 + $0x1c] sm:$0xf] }
  0x5f   : > { %v1568_v20 = vsel %vm6249_vm8, %v6609_v43, %v6593_v26  ;;  %v1501_v23 = vrot.slane %v1500_v31, 4  ;;  %v1150_v27 = vsel %vm6294_vm10, %v909_v18, %v1149_v25  ;;  %1116 = vst [vmem:[#allocation2 + $0x30] sm:$0xf] %v1115_v53  ;;  %v1571_v41 = vrot.slane %v1569_v44, 4  ;;  %v1371_v9 = vld [vmem:[#allocation2 + $0x2c] sm:$0x1] }
  0x60   : > { %v1462_v46 = vrot.slane %v1460_v37, 4  ;;  %v1465_v47 = vrot.slane %v1463_v55, 5  ;;  %v1469_v48 = vshll.u32 %v1367_v19, 16  ;;  %v1473_v6 = vshrl.u32 %v1367_v19, 16  ;;  %v1382_v40 = vld [vmem:[#allocation2 + $0x58] sm:$0xf] }
  0x61   : > { %v1503_v36 = vshll.u32 %v1371_v9, 16  ;;  %v917_v13 = vor.u32 %v915_v52, %v6621_v22  ;;  %1151 = vst [vmem:[#allocation2 + $0x6c] sm:$0xf] %v1150_v27  ;;  %v1133_v4 = vsel %vm6193_vm5, %v868_v35, %v1132_v38  ;;  %v1572_v50 = vor.u32 %v1571_v41, %v6593_v26  ;;  %v1383_v53 = vld [vmem:[#allocation2 + $0x5c] sm:$0x1] }
  0x62   : > { %v1466_v51 = vor.u32 %v1465_v47, %v1462_v46  ;;  %v1471_v59 = vrot.slane %v1469_v48, 5  ;;  %v1475_v62 = vrot.slane %v1473_v6, 4  ;;  %v1589_v15 = vshll.u32 %v1382_v40, 16  ;;  %v1368_v58 = vld [vmem:[#allocation2 + $0x20] sm:$0x1] }
  0x63   : > { %1801 = vrot.lane.b32.xlu1 %v1458_v34, %s6094_s15  ;;  %v1505_v61 = vrot.slane %v1503_v36, 5  ;;  %v1593_v28 = vshrl.u32 %v1382_v40, 16  ;;  %v1599_v17 = vshll.u32 %v1383_v53, 16  ;;  %v918_v60 = vsel %vm6168_vm4, %v910_v33, %v917_v13  ;;  %v1375_v25 = vld [vmem:[#allocation2 + $0x3c] sm:$0xf] }
  0x64   : > { %v1467_v10 = vrot.slane %v1466_v51, 4  ;;  %v6637_v63 = vrot.slane %v1589_v15, 5  ;;  %v1476_v44 = vor.u32 %v1475_v62, %v1471_v59  ;;  %v1479_v8 = vshll.u32 %v1368_v58, 16  ;;  %v1376_v32 = vld [vmem:[#allocation2 + $0x40] sm:$0xf] }
  0x65   : > { %v1506_v29 = vsel %vm6249_vm8, %v1501_v23, %v1505_v61  ;;  %v1595_v14 = vrot.slane %v1593_v28, 4  ;;  %v1532_v31 = vshrl.u32 %v1375_v25, 16  ;;  %v718_v34 = vmax.f32 %v6530_v11, 0.0  ;;  %1152 = vst.msk [vmem:[#allocation2 + $0x70] sm:$0xf] %vm510_vm0, %v918_v60 }
  0x66   : > { %1813 = vrot.lane.b32.xlu0 %v1530_v12, %s6094_s15  ;;  %v1472_v52 = vsel %vm6249_vm8, %v1467_v10, %v1471_v59  ;;  %v1477_v35 = vrot.slane %v1476_v44, 4  ;;  %v1481_v38 = vrot.slane %v1479_v8, 5  ;;  %v1535_v39 = vshll.u32 %v1375_v25, 16  ;;  %v1372_v19 = vld [vmem:[#allocation2 + $0x30] sm:$0xf] }
  0x67   : > { %1803 = vrot.lane.b32.xlu2 %v1472_v52, %s6094_s15  ;;  %v1596_v18 = vor.u32 %v1595_v14, %v6637_v63  ;;  %v6648_v33 = vrot.slane %v1599_v17, 5  ;;  %v1534_v37 = vrot.slane %v1532_v31, 4  ;;  %v1541_v55 = vshll.u32 %v1376_v32, 16  ;;  %1134 = vst [vmem:[#allocation2 + $0x50] sm:$0x1] %v1133_v4 }
  0x68   : > { %v1537_v11 = vrot.slane %v1535_v39, 5  ;;  %v1545_v23 = vshrl.u32 %v1376_v32, 16  ;;  %v1387_v12 = vld [vmem:[#allocation2 + $0x6c] sm:$0xf]  ;;  %v1508_v27 = vshrl.u32 %v1372_v19, 16  ;;  %v1511_v41 = vshll.u32 %v1372_v19, 16 }
  0x69   : > { %v6650_v46 = vrot.slane %v1596_v18, 4  ;;  %v1482_v47 = vsel %vm6249_vm8, %v1477_v35, %v1481_v38  ;;  %v1628_v48 = vshrl.u32 %v1387_v12, 16  ;;  %v1631_v6 = vshll.u32 %v1387_v12, 16  ;;  %v1125_v44 = vld [vmem:[#allocation2 + $0x44] sm:$0x1] }
  0x6a   : > { %v1538_v9 = vor.u32 %v1537_v11, %v1534_v37  ;;  %v1543_v36 = vrot.slane %v1541_v55, 5  ;;  %v1510_v40 = vrot.slane %v1508_v27, 4  ;;  %v1513_v13 = vrot.slane %v1511_v41, 5  ;;  %v1160_v55 = vld [vmem:[#allocation2 + $0x80] sm:$0x1] }
  0x6b   : > { %1809 = vrot.lane.b32.xlu1 %v1506_v29, %s6094_s15  ;;  %v1630_v51 = vrot.slane %v1628_v48, 4  ;;  %v1633_v59 = vrot.slane %v1631_v6, 5  ;;  %v6655_v62 = vrot.slane %v1572_v50, 4  ;;  %v719_v53 = vmax.f32 %v6556_v49, 0.0 }
  0x6c   : > { %v1539_v15 = vrot.slane %v1538_v9, 4  ;;  %v1514_v61 = vor.u32 %v1513_v13, %v1510_v40  ;;  %v6658_v28 = vpack.c.bf16 %v718_v34, %v718_v34  ;;  %v851_v17 = vrot.slane %v6518_v56, 4  ;;  %v1388_v58 = vld [vmem:[#allocation2 + $0x70] sm:$0xf]  ;;  %v6010_v34 = vld [vmem:[%s6216_s10 + $0x58] sm:$0xff]  }
  0x6d   : > { %v1602_v4 = vsel %vm6249_vm8, %v6650_v46, %v6648_v33  ;;  %v1634_v60 = vor.u32 %v1633_v59, %v1630_v51  ;;  %v751_v10 = vpack.c.bf16 %v719_v53, %v719_v53  ;;  %v1547_v50 = vrot.slane %v1545_v23, 4  ;;  %v1153_v53 = vld [vmem:[#allocation2 + $0x74] sm:$0x1] }
  0x6e   : > { %1819 = vrot.lane.b32.xlu0 %v1568_v20, %s6094_s15  ;;  %v1544_v56 = vsel %vm6249_vm8, %v1539_v15, %v1543_v36  ;;  %v1637_v49 = vshll.u32 %v1388_v58, 16  ;;  %v1515_v8 = vrot.slane %v1514_v61, 4  ;;  %v647_v25 = vmul.f32 %v6233_v16, %v5966_v42  ;;  %v1380_v20 = vld [vmem:[#allocation2 + $0x50] sm:$0x1] }
  0x6f   : > { %1805 = vrot.lane.b32.xlu2 %v1482_v47, %s6094_s15  ;;  %v6677_v29 = vrot.slane %v1634_v60, 4  ;;  %v921_v14 = vshrl.u32 %v6658_v28, 16  ;;  %v929_v32 = vshrl.u32 %v751_v10, 16  ;;  %v932_v31 = vshll.u32 %v751_v10, 16 }
  0x70   : > { %v6681_v26 = vrot.slane %v1637_v49, 5  ;;  %v1641_v43 = vshrl.u32 %v1388_v58, 16  ;;  %v1126_v52 = vsel %vm6193_vm5, %v851_v17, %v1125_v44  ;;  %v1548_v35 = vor.u32 %v1547_v50, %v1543_v36  ;;  %v1135_v36 = vld [vmem:[#allocation2 + $0x54] sm:$0xf]  ;;  %v6011_v44 = vld [vmem:[%s6216_s10 + $0x60] sm:$0xff]  }
  0x71   : > { %v1575_v38 = vshll.u32 %v1380_v20, 16  ;;  %v6685_v39 = vrot.slane %v921_v14, 7  ;;  %v931_v42 = vrot.slane %v929_v32, 7  ;;  %1127 = vst [vmem:[#allocation2 + $0x44] sm:$0x1] %v1126_v52  ;;  %v648_v18 = vmul.f32 %v6233_v16, %v5967_v45 }
  0x72   : > { %v1640_v33 = vsel %vm6249_vm8, %v6677_v29, %v6681_v26  ;;  %v1520_v37 = vsel %vm6249_vm8, %v1515_v8, %v6565_v0  ;;  %v682_v19 = vadd.f32 %v6244_v21, %v647_v25  ;;  %v5982_v11 = vunpack.c.l.bf16 %v6010_v34  ;;  %v1142_v14 = vld [vmem:[#allocation2 + $0x60] sm:$0xf] }
  0x73   : > { %1815 = vrot.lane.b32.xlu1 %v1544_v56, %s6094_s15  ;;  %v1577_v23 = vrot.slane %v1575_v38, 5  ;;  %v927_v7 = vrot.slane %v6685_v39, 4  ;;  %v934_v12 = vor.u32 %v932_v31, %v931_v42  ;;  %v936_v45 = vrot.slane %v931_v42, 4 }
  0x74   : > { %v683_v27 = vadd.f32 %v6244_v21, %v648_v18  ;;  %v714_v41 = vmax.f32 %v682_v19, 0.0  ;;  %v5983_v46 = vunpack.c.h.bf16 %v6010_v34  ;;  %v655_v47 = vmul.f32 %v6233_v16, %v5982_v11 }
  0x75   : > { %v935_v0 = vsel %vm6168_vm4, %v927_v7, %v934_v12  ;;  %v1161_v48 = vsel %vm6193_vm5, %v936_v45, %v1160_v55  ;;  %v1549_v6 = vrot.slane %v1548_v35, 4  ;;  %v873_v9 = vshll.u32 %v6427_v54, 16 }
  0x76   : > { %1825 = vrot.lane.b32.xlu0 %v1602_v4, %s6094_s15  ;;  %1159 = vst.msk [vmem:[#allocation2 + $0x7c] sm:$0xf] %vm510_vm0, %v935_v0  ;;  %v715_v40 = vmax.f32 %v683_v27, 0.0  ;;  %v746_v13 = vpack.c.bf16 %v714_v41, %v714_v41  ;;  %v656_v51 = vmul.f32 %v6233_v16, %v5983_v46  ;;  %v690_v59 = vadd.f32 %v6244_v21, %v655_v47  ;;  %v1170_v47 = vld [vmem:[#allocation2 + $0x90] sm:$0xf] }
  0x77   : > { %1811 = vrot.lane.b32.xlu2 %v1520_v37, %s6094_s15  ;;  %v1578_v15 = vsel %vm6249_vm8, %v6655_v62, %v1577_v23  ;;  %1162 = vst [vmem:[#allocation2 + $0x80] sm:$0x1] %v1161_v48  ;;  %v875_v54 = vor.u32 %v873_v9, %v6462_v30  ;;  %v919_v61 = vrot.slane %v6621_v22, 4  ;;  %v6717_v17 = vrot.slane %v1641_v43, 4  ;;  %v6741_v0 = vld [vmem:[%s8467_s3] ss:$0 sm:$0xff] }
  0x78   : > { %v1377_v4 = vld [vmem:[#allocation2 + $0x44] sm:$0x1]  ;;  %v747_v58 = vpack.c.bf16 %v715_v40, %v715_v40  ;;  %v887_v60 = vshrl.u32 %v746_v13, 16  ;;  %v890_v16 = vshll.u32 %v746_v13, 16  ;;  %v691_v10 = vadd.f32 %v6244_v21, %v656_v51 }
  0x79   : > { %v1551_v50 = vshll.u32 %v1377_v4, 16  ;;  %v722_v56 = vmax.f32 %v690_v59, 0.0  ;;  %v1136_v49 = vsel %vm6294_vm10, %v875_v54, %v1135_v36  ;;  %v1154_v62 = vsel %vm6193_vm5, %v919_v61, %v1153_v53  ;;  %v6752_v54 = vld [vmem:[%s8468_s4] ss:$0 sm:$0xff] }
  0x7a   : > { %v889_v30 = vrot.slane %v887_v60, 7  ;;  %v895_v8 = vshrl.u32 %v747_v58, 16  ;;  %v898_v22 = vshll.u32 %v747_v58, 16  ;;  %v723_v25 = vmax.f32 %v691_v10, 0.0  ;;  %1137 = vst [vmem:[#allocation2 + $0x54] sm:$0xf] %v1136_v49 }
  0x7b   : > { %1821 = vrot.lane.b32.xlu1 %v1578_v15, %s6094_s15  ;;  %v1553_v29 = vrot.slane %v1551_v50, 5  ;;  %v754_v32 = vpack.c.bf16 %v722_v56, %v722_v56  ;;  %1155 = vst [vmem:[#allocation2 + $0x74] sm:$0x1] %v1154_v62  ;;  %v1644_v21 = vor.u32 %v6717_v17, %v6681_v26  ;;  %v5986_v31 = vunpack.c.l.bf16 %v6011_v44  ;;  %v6009_v49 = vld [vmem:[%s6216_s10 + $0x50] sm:$0xff]  }
  0x7c   : > { %v892_v34 = vor.u32 %v890_v16, %v889_v30  ;;  %v893_v43 = vrot.slane %v889_v30, 4  ;;  %v897_v20 = vrot.slane %v895_v8, 7  ;;  %v755_v52 = vpack.c.bf16 %v723_v25, %v723_v25 }
  0x7d   : > { %v1391_v35 = vld [vmem:[#allocation2 + $0x7c] sm:$0xf]  ;;  %v1554_v38 = vsel %vm6249_vm8, %v1549_v6, %v1553_v29  ;;  %v955_v42 = vshrl.u32 %v754_v32, 16  ;;  %v958_v18 = vshll.u32 %v754_v32, 16  ;;  %v5987_v37 = vunpack.c.h.bf16 %v6011_v44  ;;  %v1146_v6 = vld [vmem:[#allocation2 + $0x68] sm:$0x1] }
  0x7e   : > { %1831 = vrot.lane.b32.xlu0 %v1640_v33, %s6094_s15  ;;  %v1392_v55 = vld [vmem:[#allocation2 + $0x80] sm:$0x1]  ;;  %v1661_v19 = vshll.u32 %v1391_v35, 16  ;;  %v1665_v11 = vshrl.u32 %v1391_v35, 16  ;;  %v900_v23 = vor.u32 %v898_v22, %v897_v20  ;;  %v1143_v26 = vsel %vm6294_vm10, %v892_v34, %v1142_v14 }
  0x7f   : > { %v1671_v7 = vshll.u32 %v1392_v55, 16  ;;  %1817 = vrot.lane.b32.xlu2 %v1554_v38, %s6094_s15  ;;  %1144 = vst [vmem:[#allocation2 + $0x60] sm:$0xf] %v1143_v26  ;;  %v957_v12 = vrot.slane %v955_v42, 7  ;;  %v963_v45 = vshrl.u32 %v755_v52, 16  ;;  %v966_v27 = vshll.u32 %v755_v52, 16 }
  0x80   : > { %v6734_v41 = vrot.slane %v1661_v19, 5  ;;  %v1667_v46 = vrot.slane %v1665_v11, 4  ;;  %v901_v33 = vsel %vm6168_vm4, %v893_v43, %v900_v23  ;;  %v657_v48 = vmul.f32 %v6741_v0, %v5986_v31 }
  0x81   : > { %v1673_v9 = vrot.slane %v1671_v7, 5  ;;  %1145 = vst.msk [vmem:[#allocation2 + $0x64] sm:$0xf] %vm510_vm0, %v901_v33  ;;  %v960_v36 = vor.u32 %v958_v18, %v957_v12  ;;  %v961_v40 = vrot.slane %v957_v12, 4  ;;  %v6745_v13 = vrot.slane %v963_v45, 7 }
  0x82   : > { %v1668_v51 = vor.u32 %v1667_v46, %v6734_v41  ;;  %v1381_v59 = vld [vmem:[#allocation2 + $0x54] sm:$0xf]  ;;  %v658_v15 = vmul.f32 %v6741_v0, %v5987_v37  ;;  %v692_v61 = vadd.f32 %v6752_v54, %v657_v48  ;;  %v902_v17 = vrot.slane %v897_v20, 4 }
  0x83   : > { %v1389_v53 = vld [vmem:[#allocation2 + $0x74] sm:$0x1]  ;;  %v968_v4 = vor.u32 %v966_v27, %v6745_v13  ;;  %v1171_v58 = vsel %vm6294_vm10, %v960_v36, %v1170_v47  ;;  %v1580_v60 = vshrl.u32 %v1381_v59, 16  ;;  %v1583_v16 = vshll.u32 %v1381_v59, 16 }
  0x84   : > { %v1669_v10 = vrot.slane %v1668_v51, 4  ;;  %1172 = vst [vmem:[#allocation2 + $0x90] sm:$0xf] %v1171_v58  ;;  %v1647_v44 = vshll.u32 %v1389_v53, 16  ;;  %v693_v50 = vadd.f32 %v6752_v54, %v658_v15  ;;  %v724_v56 = vmax.f32 %v692_v61, 0.0 }
  0x85   : > { %v969_v62 = vsel %vm6168_vm4, %v961_v40, %v968_v4  ;;  %v1582_v30 = vrot.slane %v1580_v60, 4  ;;  %v1585_v8 = vrot.slane %v1583_v16, 5  ;;  %v1147_v22 = vsel %vm6193_vm5, %v902_v17, %v1146_v6  ;;  %v1181_v53 = vld [vmem:[#allocation2 + $0xa4] sm:$0x1]  ;;  %v6013_v16 = vld [vmem:[%s6216_s10 + $0x70] sm:$0xff]  }
  0x86   : > { %v1674_v25 = vsel %vm6249_vm8, %v1669_v10, %v1673_v9  ;;  %v1384_v29 = vld [vmem:[#allocation2 + $0x60] sm:$0xf]  ;;  %1173 = vst.msk [vmem:[#allocation2 + $0x94] sm:$0xf] %vm510_vm0, %v969_v62  ;;  %v6767_v14 = vrot.slane %v1644_v21, 4  ;;  %v725_v32 = vmax.f32 %v693_v50, 0.0  ;;  %v6769_v31 = vpack.c.bf16 %v724_v56, %v724_v56 }
  0x87   : > { %1837 = vrot.lane.b32.xlu0 %v1674_v25, %s6094_s15  ;;  %v1604_v34 = vshrl.u32 %v1384_v29, 16  ;;  %v1607_v43 = vshll.u32 %v1384_v29, 16  ;;  %v1586_v20 = vor.u32 %v1585_v8, %v1582_v30  ;;  %1148 = vst [vmem:[#allocation2 + $0x68] sm:$0x1] %v1147_v22  ;;  %v5978_v52 = vunpack.c.l.bf16 %v6009_v49 }
  0x88   : > { %v1385_v35 = vld [vmem:[#allocation2 + $0x64] sm:$0xf]  ;;  %v6772_v38 = vrot.slane %v1647_v44, 5  ;;  %v757_v42 = vpack.c.bf16 %v725_v32, %v725_v32  ;;  %v972_v18 = vshrl.u32 %v6769_v31, 16  ;;  %v5979_v37 = vunpack.c.h.bf16 %v6009_v49  ;;  %v1174_v32 = vld [vmem:[#allocation2 + $0x98] sm:$0x1] }
  0x89   : > { %v1606_v55 = vrot.slane %v1604_v34, 4  ;;  %v1609_v21 = vrot.slane %v1607_v43, 5  ;;  %v1613_v19 = vshll.u32 %v1385_v35, 16  ;;  %v1617_v11 = vshrl.u32 %v1385_v35, 16 }
  0x8a   : > { %v1587_v23 = vrot.slane %v1586_v20, 4  ;;  %v6775_v26 = vrot.slane %v972_v18, 7  ;;  %v980_v7 = vshrl.u32 %v757_v42, 16  ;;  %v983_v12 = vshll.u32 %v757_v42, 16 }
  0x8b   : > { %v1610_v45 = vor.u32 %v1609_v21, %v1606_v55  ;;  %v1615_v27 = vrot.slane %v1613_v19, 5  ;;  %v1396_v46 = vld [vmem:[#allocation2 + $0x90] sm:$0xf]  ;;  %v1619_v33 = vrot.slane %v1617_v11, 4  ;;  %v653_v47 = vmul.f32 %v6741_v0, %v5978_v52  ;;  %v1156_v11 = vld [vmem:[#allocation2 + $0x78] sm:$0xf] }
  0x8c   : > { %v1700_v48 = vshrl.u32 %v1396_v46, 16  ;;  %v1703_v6 = vshll.u32 %v1396_v46, 16  ;;  %v1592_v9 = vsel %vm6249_vm8, %v1587_v23, %v6637_v63  ;;  %v978_v36 = vrot.slane %v6775_v26, 4 }
  0x8d   : > { %v1611_v40 = vrot.slane %v1610_v45, 4  ;;  %v6782_v51 = vld [vmem:[#allocation2 + $0x94] sm:$0xf]  ;;  %1823 = vrot.lane.b32.xlu2 %v1592_v9, %s6094_s15  ;;  %v982_v59 = vrot.slane %v980_v7, 7  ;;  %v1620_v15 = vor.u32 %v1619_v33, %v1615_v27  ;;  %v654_v61 = vmul.f32 %v6741_v0, %v5979_v37 }
  0x8e   : > { %v1702_v17 = vrot.slane %v1700_v48, 4  ;;  %v1705_v4 = vrot.slane %v1703_v6, 5  ;;  %v1709_v58 = vshll.u32 %v6782_v51, 16  ;;  %v1650_v63 = vsel %vm6249_vm8, %v6767_v14, %v6772_v38  ;;  %v1386_v60 = vld [vmem:[#allocation2 + $0x68] sm:$0x1] }
  0x8f   : > { %v1616_v10 = vsel %vm6249_vm8, %v1611_v40, %v1615_v27  ;;  %v985_v44 = vor.u32 %v983_v12, %v982_v59  ;;  %v987_v50 = vrot.slane %v982_v59, 4  ;;  %v1621_v56 = vrot.slane %v1620_v15, 4  ;;  %v1163_v40 = vld [vmem:[#allocation2 + $0x84] sm:$0xf] }
  0x90   : > { %1827 = vrot.lane.b32.xlu1 %v1616_v10, %s6094_s15  ;;  %v1706_v49 = vor.u32 %v1705_v4, %v1702_v17  ;;  %v6795_v62 = vrot.slane %v1709_v58, 5  ;;  %v1623_v30 = vshll.u32 %v1386_v60, 16  ;;  %v688_v8 = vadd.f32 %v6752_v54, %v653_v47 }
  0x91   : > { %v986_v22 = vsel %vm6168_vm4, %v978_v36, %v985_v44  ;;  %v1182_v25 = vsel %vm6193_vm5, %v987_v50, %v1181_v53  ;;  %v689_v29 = vadd.f32 %v6752_v54, %v654_v61  ;;  %v5994_v14 = vunpack.c.l.bf16 %v6013_v16 }
  0x92   : > { %v1707_v34 = vrot.slane %v1706_v49, 4  ;;  %1180 = vst.msk [vmem:[#allocation2 + $0xa0] sm:$0xf] %vm510_vm0, %v986_v22  ;;  %v1625_v43 = vrot.slane %v1623_v30, 5  ;;  %v720_v20 = vmax.f32 %v688_v8, 0.0  ;;  %v5995_v52 = vunpack.c.h.bf16 %v6013_v16 }
  0x93   : > { %1183 = vst [vmem:[#allocation2 + $0xa4] sm:$0x1] %v1182_v25  ;;  %v721_v35 = vmax.f32 %v689_v29, 0.0  ;;  %v661_v38 = vmul.f32 %v6741_v0, %v5994_v14  ;;  %v924_v42 = vshll.u32 %v6658_v28, 16  ;;  %v970_v18 = vrot.slane %v6745_v13, 4  ;;  %v6012_v25 = vld [vmem:[%s6216_s10 + $0x68] sm:$0xff]  }
  0x94   : > { %v1712_v37 = vsel %vm6249_vm8, %v1707_v34, %v6795_v62  ;;  %v1626_v55 = vsel %vm6249_vm8, %v1621_v56, %v1625_v43  ;;  %v752_v21 = vpack.c.bf16 %v720_v20, %v720_v20  ;;  %v662_v19 = vmul.f32 %v6741_v0, %v5995_v52  ;;  %v1191_v34 = vld [vmem:[#allocation2 + $0xb4] sm:$0xf] }
  0x95   : > { %1843 = vrot.lane.b32.xlu0 %v1712_v37, %s6094_s15  ;;  %1829 = vrot.lane.b32.xlu2 %v1626_v55, %s6094_s15  ;;  %v753_v23 = vpack.c.bf16 %v721_v35, %v721_v35  ;;  %v696_v28 = vadd.f32 %v6752_v54, %v661_v38  ;;  %v926_v13 = vor.u32 %v924_v42, %v6685_v39  ;;  %v1713_v49 = vshrl.u32 %v6782_v51, 16 }
  0x96   : > { %v938_v7 = vshrl.u32 %v752_v21, 16  ;;  %v941_v12 = vshll.u32 %v752_v21, 16  ;;  %v697_v45 = vadd.f32 %v6752_v54, %v662_v19  ;;  %v1175_v27 = vsel %vm6193_vm5, %v970_v18, %v1174_v32  ;;  %v1167_v19 = vld [vmem:[#allocation2 + $0x8c] sm:$0x1] }
  0x97   : > { %v946_v46 = vshrl.u32 %v753_v23, 16  ;;  %v949_v33 = vshll.u32 %v753_v23, 16  ;;  %v728_v47 = vmax.f32 %v696_v28, 0.0  ;;  %v1157_v48 = vsel %vm6294_vm10, %v926_v13, %v1156_v11  ;;  %1176 = vst [vmem:[#allocation2 + $0x98] sm:$0x1] %v1175_v27 }
  0x98   : > { %1833 = vrot.lane.b32.xlu1 %v1650_v63, %s6094_s15  ;;  %v940_v6 = vrot.slane %v938_v7, 7  ;;  %v729_v9 = vmax.f32 %v697_v45, 0.0  ;;  %1158 = vst [vmem:[#allocation2 + $0x78] sm:$0xf] %v1157_v48  ;;  %v5990_v18 = vunpack.c.l.bf16 %v6012_v25  ;;  %v1715_v21 = vrot.slane %v1713_v49, 4 }
  0x99   : > { %v1400_v39 = vld [vmem:[#allocation2 + $0xa0] sm:$0xf]  ;;  %v948_v36 = vrot.slane %v946_v46, 7  ;;  %v760_v59 = vpack.c.bf16 %v728_v47, %v728_v47  ;;  %v5991_v45 = vunpack.c.h.bf16 %v6012_v25  ;;  %v975_v48 = vshll.u32 %v6769_v31, 16 }
  0x9a   : > { %v1401_v53 = vld [vmem:[#allocation2 + $0xa4] sm:$0x1]  ;;  %v1733_v15 = vshll.u32 %v1400_v39, 16  ;;  %v1737_v61 = vshrl.u32 %v1400_v39, 16  ;;  %v943_v17 = vor.u32 %v941_v12, %v940_v6  ;;  %v944_v4 = vrot.slane %v940_v6, 4 }
  0x9b   : > { %v1743_v58 = vshll.u32 %v1401_v53, 16  ;;  %v951_v60 = vor.u32 %v949_v33, %v948_v36  ;;  %v761_v16 = vpack.c.bf16 %v729_v9, %v729_v9  ;;  %v1006_v10 = vshrl.u32 %v760_v59, 16 }
  0x9c   : > { %v6823_v44 = vrot.slane %v1733_v15, 5  ;;  %v1739_v63 = vrot.slane %v1737_v61, 4  ;;  %v1164_v50 = vsel %vm6294_vm10, %v943_v17, %v1163_v40  ;;  %v1009_v56 = vshll.u32 %v760_v59, 16 }
  0x9d   : > { %v952_v30 = vsel %vm6168_vm4, %v944_v4, %v951_v60  ;;  %1165 = vst [vmem:[#allocation2 + $0x84] sm:$0xf] %v1164_v50  ;;  %v1008_v8 = vrot.slane %v1006_v10, 7  ;;  %v1014_v22 = vshrl.u32 %v761_v16, 16  ;;  %v1745_v14 = vrot.slane %v1743_v58, 5 }
  0x9e   : > { %v1740_v29 = vor.u32 %v1739_v63, %v6823_v44  ;;  %1166 = vst.msk [vmem:[#allocation2 + $0x88] sm:$0xf] %vm510_vm0, %v952_v30  ;;  %v1017_v32 = vshll.u32 %v761_v16, 16  ;;  %v953_v13 = vrot.slane %v948_v36, 4  ;;  %v1398_v12 = vld [vmem:[#allocation2 + $0x98] sm:$0x1]  ;;  %v659_v47 = vmul.f32 %v6741_v0, %v5990_v18 }
  0x9f   : > { %v1011_v43 = vor.u32 %v1009_v56, %v1008_v8  ;;  %v1012_v20 = vrot.slane %v1008_v8, 4  ;;  %v6833_v52 = vrot.slane %v1014_v22, 7  ;;  %v1390_v35 = vld [vmem:[#allocation2 + $0x78] sm:$0xf]  ;;  %v1716_v36 = vor.u32 %v1715_v21, %v6795_v62  ;;  %v1177_v63 = vld [vmem:[#allocation2 + $0x9c] sm:$0xf] }
  0xa0   : > { %v1741_v51 = vrot.slane %v1740_v29, 4  ;;  %v1652_v38 = vshrl.u32 %v1390_v35, 16  ;;  %v1655_v42 = vshll.u32 %v1390_v35, 16  ;;  %v1168_v33 = vsel %vm6193_vm5, %v953_v13, %v1167_v19 }
  0xa1   : > { %v1019_v37 = vor.u32 %v1017_v32, %v6833_v52  ;;  %v1192_v55 = vsel %vm6294_vm10, %v1011_v43, %v1191_v34  ;;  %1169 = vst [vmem:[#allocation2 + $0x8c] sm:$0x1] %v1168_v33  ;;  %v660_v40 = vmul.f32 %v6741_v0, %v5991_v45  ;;  %v694_v61 = vadd.f32 %v6752_v54, %v659_v47  ;;  %v6859_v32 = vld [vmem:[#allocation2 + $0x4] sm:$0xf]  ;;  %v1184_v33 = vld [vmem:[#allocation2 + $0xa8] sm:$0xf] }
  0xa2   : > { %v1746_v11 = vsel %vm6249_vm8, %v1741_v51, %v1745_v14  ;;  %1193 = vst [vmem:[#allocation2 + $0xb4] sm:$0xf] %v1192_v55  ;;  %v1654_v23 = vrot.slane %v1652_v38, 4  ;;  %v1657_v28 = vrot.slane %v1655_v42, 5  ;;  %v1719_v58 = vshll.u32 %v1398_v12, 16 }
  0xa3   : > { %1849 = vrot.lane.b32.xlu0 %v1746_v11, %s6094_s15  ;;  %v1020_v7 = vsel %vm6168_vm4, %v1012_v20, %v1019_v37  ;;  %v695_v60 = vadd.f32 %v6752_v54, %v660_v40  ;;  %v726_v62 = vmax.f32 %v694_v61, 0.0  ;;  %v977_v49 = vor.u32 %v975_v48, %v6775_v26  ;;  %v1926_v47 = vld [vmem:[#allocation2 + $0x8] sm:$0x1]  ;;  %v1188_v40 = vld [vmem:[#allocation2 + $0xb0] sm:$0x1] }
  0xa4   : > { %v1393_v27 = vld [vmem:[#allocation2 + $0x84] sm:$0xf]  ;;  %1194 = vst.msk [vmem:[#allocation2 + $0xb8] sm:$0xf] %vm510_vm0, %v1020_v7  ;;  %v1658_v46 = vor.u32 %v1657_v28, %v1654_v23  ;;  %v1717_v14 = vrot.slane %v1716_v36, 4  ;;  %v1721_v51 = vrot.slane %v1719_v58, 5 }
  0xa5   : > { %v1394_v6 = vld [vmem:[#allocation2 + $0x88] sm:$0xf]  ;;  %v1676_v9 = vshrl.u32 %v1393_v27, 16  ;;  %v1679_v39 = vshll.u32 %v1393_v27, 16  ;;  %v727_v56 = vmax.f32 %v695_v60, 0.0  ;;  %v758_v25 = vpack.c.bf16 %v726_v62, %v726_v62 }
  0xa6   : > { %v1685_v59 = vshll.u32 %v1394_v6, 16  ;;  %v1689_v53 = vshrl.u32 %v1394_v6, 16  ;;  %v1659_v15 = vrot.slane %v1658_v46, 4  ;;  %v1178_v34 = vsel %vm6294_vm10, %v977_v49, %v1177_v63  ;;  %v1195_v23 = vld [vmem:[#allocation2 + $0xbc] sm:$0x1] }
  0xa7   : > { %v1678_v17 = vrot.slane %v1676_v9, 4  ;;  %v1681_v4 = vrot.slane %v1679_v39, 5  ;;  %v989_v37 = vshrl.u32 %v758_v25, 16  ;;  %1179 = vst [vmem:[#allocation2 + $0x9c] sm:$0xf] %v1178_v34  ;;  %v992_v19 = vshll.u32 %v758_v25, 16 }
  0xa8   : > { %v1687_v16 = vrot.slane %v1685_v59, 5  ;;  %v1664_v31 = vsel %vm6249_vm8, %v1659_v15, %v6734_v41  ;;  %v1691_v10 = vrot.slane %v1689_v53, 4  ;;  %v759_v41 = vpack.c.bf16 %v727_v56, %v727_v56  ;;  %v1395_v26 = vld [vmem:[#allocation2 + $0x8c] sm:$0x1]  ;;  %v6899_v56 = vld [vmem:[#allocation2 + $0x1c] sm:$0xf] }
  0xa9   : > { %v1682_v50 = vor.u32 %v1681_v4, %v1678_v17  ;;  %v1405_v0 = vld [vmem:[#allocation2 + $0xb4] sm:$0xf]  ;;  %1835 = vrot.lane.b32.xlu2 %v1664_v31, %s6094_s15  ;;  %v1695_v18 = vshll.u32 %v1395_v26, 16  ;;  %v991_v13 = vrot.slane %v989_v37, 7  ;;  %v1021_v12 = vrot.slane %v6833_v52, 4  ;;  %v1798_v37 = vpop.permute.xlu0 %1797 }
  0xaa   : > { %v1772_v30 = vshrl.u32 %v1405_v0, 16  ;;  %v1775_v8 = vshll.u32 %v1405_v0, 16  ;;  %v1692_v22 = vor.u32 %v1691_v10, %v1687_v16  ;;  %v997_v11 = vshrl.u32 %v759_v41, 16  ;;  %v1930_v0 = vld [vmem:[#allocation2 + $0x18] sm:$0xe] }
  0xab   : > { %v1683_v54 = vrot.slane %v1682_v50, 4  ;;  %v6857_v29 = vld [vmem:[#allocation2 + $0xb8] sm:$0xf]  ;;  %v1697_v28 = vrot.slane %v1695_v18, 5  ;;  %v1000_v7 = vshll.u32 %v759_v41, 16  ;;  %v2025_v27 = vrot.slane %v6859_v32, 5 }
  0xac   : > { %v1774_v43 = vrot.slane %v1772_v30, 4  ;;  %v1777_v20 = vrot.slane %v1775_v8, 5  ;;  %v1781_v35 = vshll.u32 %v6857_v29, 16  ;;  %v1693_v42 = vrot.slane %v1692_v22, 4 }
  0xad   : > { %v1688_v38 = vsel %vm6249_vm8, %v1683_v54, %v1687_v16  ;;  %v999_v46 = vrot.slane %v997_v11, 7  ;;  %v994_v6 = vor.u32 %v992_v19, %v991_v13  ;;  %v995_v9 = vrot.slane %v991_v13, 4 }
  0xae   : > { %1839 = vrot.lane.b32.xlu1 %v1688_v38, %s6094_s15  ;;  %v1778_v55 = vor.u32 %v1777_v20, %v1774_v43  ;;  %v6867_v21 = vrot.slane %v1781_v35, 5  ;;  %v1698_v48 = vsel %vm6249_vm8, %v1693_v42, %v1697_v28  ;;  %v1196_v39 = vsel %vm6193_vm5, %v1021_v12, %v1195_v23  ;;  %v1399_v58 = vld [vmem:[#allocation2 + $0x9c] sm:$0xf]  ;;  %v6904_v43 = vld [vmem:[#allocation2 + $0x28] sm:$0xf] }
  0xaf   : > { %v1002_v52 = vor.u32 %v1000_v7, %v999_v46  ;;  %1197 = vst [vmem:[#allocation2 + $0xbc] sm:$0x1] %v1196_v39  ;;  %v1722_v59 = vsel %vm6249_vm8, %v1717_v14, %v1721_v51  ;;  %v1185_v53 = vsel %vm6294_vm10, %v994_v6, %v1184_v33  ;;  %v1004_v15 = vrot.slane %v999_v46, 4  ;;  %v1935_v7 = vld [vmem:[#allocation2 + $0x2c] sm:$0x1] }
  0xb0   : > { %v1779_v45 = vrot.slane %v1778_v55, 4  ;;  %v2027_v61 = vrot.slane %v2025_v27, 4  ;;  %v2028_v17 = vrot.slane %v1926_v47, 5  ;;  %1186 = vst [vmem:[#allocation2 + $0xa8] sm:$0xf] %v1185_v53  ;;  %v1724_v16 = vshrl.u32 %v1399_v58, 16 }
  0xb1   : > { %1841 = vrot.lane.b32.xlu2 %v1698_v48, %s6094_s15  ;;  %v1003_v4 = vsel %vm6168_vm4, %v995_v9, %v1002_v52  ;;  %v1727_v31 = vshll.u32 %v1399_v58, 16  ;;  %v1189_v10 = vsel %vm6193_vm5, %v1004_v15, %v1188_v40  ;;  %v1785_v30 = vshrl.u32 %v6857_v29, 16  ;;  %v1297_v55 = vld [vmem:[#allocation2 + $0x4] sm:$0xf]  ;;  %v1296_v40 = vld [vmem:[#allocation2] sm:$0xf] }
  0xb2   : > { %v1784_v36 = vsel %vm6249_vm8, %v1779_v45, %v6867_v21  ;;  %1187 = vst.msk [vmem:[#allocation2 + $0xac] sm:$0xf] %vm510_vm0, %v1003_v4  ;;  %v1726_v62 = vrot.slane %v1724_v16, 4  ;;  %v2029_v50 = vsel %vm6889_vm13, %v2027_v61, %v2028_v17  ;;  %v5537_v22 = vrot.slane %v1930_v0, 9  ;;  %v1928_v4 = vld [vmem:[#allocation2 + $0x10] sm:$0xf] }
  0xb3   : > { %1855 = vrot.lane.b32.xlu0 %v1784_v36, %s6094_s15  ;;  %1190 = vst [vmem:[#allocation2 + $0xb0] sm:$0x1] %v1189_v10  ;;  %v1729_v63 = vrot.slane %v1727_v31, 5  ;;  %v2039_v25 = vrot.slane %v6899_v56, 5  ;;  %v1787_v42 = vrot.slane %v1785_v30, 4  ;;  %v2046_v13 = vrot.slane %v6904_v43, 5 }
  0xb4   : > { %1329 = vst.msk [vmem:[#allocation3 + $0xc] sm:$0xf] %vm510_vm0, %v1297_v55  ;;  %v2049_v39 = vrot.slane %v1935_v7, 5  ;;  %v1924_v36 = vld [vmem:[#allocation2] sm:$0xe] }
  0xb5   : > { %v1730_v49 = vor.u32 %v1729_v63, %v1726_v62  ;;  %1893 = vst.msk [vmem:[#allocation3 + $0xc] sm:$0xf] %vm1891_vm14, %v1798_v37  ;;  %v1788_v33 = vor.u32 %v1787_v42, %v6867_v21  ;;  %v2048_v9 = vrot.slane %v2046_v13, 4  ;;  %v1300_v21 = vld [vmem:[#allocation2 + $0x18] sm:$0xf]  ;;  %v5535_v61 = vrot.slane %v1924_v36, 9 }
  0xb6   : > { %1845 = vrot.lane.b32.xlu1 %v1722_v59, %s6094_s15  ;;  %v1407_v11 = vld [vmem:[#allocation2 + $0xbc] sm:$0x1]  ;;  %1328 = vst.msk [vmem:[#allocation3] sm:$0xf] %vm510_vm0, %v1296_v40  ;;  %v1939_v16 = vld [vmem:[#allocation2 + $0x3c] sm:$0xe] }
  0xb7   : > { %v1402_v8 = vld [vmem:[#allocation2 + $0xa8] sm:$0xf]  ;;  %v1731_v54 = vrot.slane %v1730_v49, 4  ;;  %v1791_v47 = vshll.u32 %v1407_v11, 16  ;;  %v1789_v53 = vrot.slane %v1788_v33, 4  ;;  %v2050_v17 = vsel %vm6889_vm13, %v2048_v9, %v2049_v39 }
  0xb8   : > { %v1748_v41 = vshrl.u32 %v1402_v8, 16  ;;  %v1751_v34 = vshll.u32 %v1402_v8, 16  ;;  %1332 = vst.msk [vmem:[#allocation3 + $0x30] sm:$0xf] %vm510_vm0, %v1300_v21  ;;  %v6932_v31 = vld [vmem:[#allocation2 + $0x40] sm:$0xf]  ;;  %v2026_v63 = vsel %vm6889_vm13, %v5535_v61, %v2025_v27 }
  0xb9   : > { %v1403_v14 = vld [vmem:[#allocation2 + $0xac] sm:$0xf]  ;;  %v1736_v51 = vsel %vm6249_vm8, %v1731_v54, %v6823_v44  ;;  %v2040_v44 = vsel %vm6889_vm13, %v5537_v22, %v2039_v25  ;;  %v1793_v15 = vrot.slane %v1791_v47, 5  ;;  %v5540_v0 = vrot.slane %v1939_v16, 9  ;;  %v1929_v30 = vld [vmem:[#allocation2 + $0x14] sm:$0x1] }
  0xba   : > { %v1757_v20 = vshll.u32 %v1403_v14, 16  ;;  %v1761_v35 = vshrl.u32 %v1403_v14, 16  ;;  %v1404_v29 = vld [vmem:[#allocation2 + $0xb0] sm:$0x1]  ;;  %v1750_v26 = vrot.slane %v1748_v41, 4  ;;  %v1753_v38 = vrot.slane %v1751_v34, 5  ;;  %1847 = vrot.lane.b32.xlu2 %v1736_v51, %s6094_s15 }
  0xbb   : > { %2137 = vrot.lane.b32.xlu0 %v2029_v50, %s6095_s20  ;;  %v1767_v18 = vshll.u32 %v1404_v29, 16  ;;  %v1794_v10 = vsel %vm6249_vm8, %v1789_v53, %v1793_v15  ;;  %v1927_v62 = vld [vmem:[#allocation2 + $0xc] sm:$0xe]  ;;  %v2032_v50 = vrot.slane %v1928_v4, 5  ;;  %v2060_v49 = vrot.slane %v6932_v31, 5 }
  0xbc   : > { %v1759_v19 = vrot.slane %v1757_v20, 5  ;;  %v1763_v23 = vrot.slane %v1761_v35, 4  ;;  %v1754_v28 = vor.u32 %v1753_v38, %v1750_v26  ;;  %v6944_v8 = vld [vmem:[#allocation2 + $0x4c] sm:$0xf]  ;;  %v1302_v22 = vld [vmem:[#allocation2 + $0x24] sm:$0xf] }
  0xbd   : > { %v1769_v45 = vrot.slane %v1767_v18, 5  ;;  %v1301_v54 = vld [vmem:[#allocation2 + $0x1c] sm:$0xf]  ;;  %v5536_v34 = vrot.slane %v1927_v62, 9  ;;  %1334 = vst.msk [vmem:[#allocation3 + $0x48] sm:$0xf] %vm510_vm0, %v1302_v22  ;;  %v2061_v35 = vsel %vm6889_vm13, %v5540_v0, %v2060_v49 }
  0xbe   : > { %v1764_v12 = vor.u32 %v1763_v23, %v1759_v19  ;;  %v1755_v46 = vrot.slane %v1754_v28, 4  ;;  %v2034_v32 = vrot.slane %v2032_v50, 4  ;;  %v2035_v27 = vrot.slane %v1929_v30, 5  ;;  %1333 = vst.msk [vmem:[#allocation3 + $0x3c] sm:$0xf] %vm510_vm0, %v1301_v54 }
  0xbf   : > { %v1298_v20 = vld [vmem:[#allocation2 + $0xc] sm:$0xf]  ;;  %v2067_v51 = vrot.slane %v6944_v8, 5  ;;  %v1944_v26 = vld [vmem:[#allocation2 + $0x50] sm:$0x1]  ;;  %v2033_v38 = vsel %vm6889_vm13, %v5536_v34, %v2032_v50  ;;  %v2041_v7 = vrot.slane %v2039_v25, 4 }
  0xc0   : > { %v1765_v48 = vrot.slane %v1764_v12, 4  ;;  %v1760_v6 = vsel %vm6249_vm8, %v1755_v46, %v1759_v19  ;;  %1330 = vst.msk [vmem:[#allocation3 + $0x18] sm:$0xf] %vm510_vm0, %v1298_v20  ;;  %v1932_v42 = vld [vmem:[#allocation2 + $0x20] sm:$0x1]  ;;  %v2036_v18 = vsel %vm6889_vm13, %v2034_v32, %v2035_v27  ;;  %v2070_v55 = vrot.slane %v1944_v26, 5 }
  0xc1   : > { %1851 = vrot.lane.b32.xlu1 %v1760_v6, %s6094_s15  ;;  %v1804_v59 = vpop.permute.xlu2 %1803  ;;  %v2069_v37 = vrot.slane %v2067_v51, 4  ;;  %v1933_v19 = vld [vmem:[#allocation2 + $0x24] sm:$0xe]  ;;  %v1305_v11 = vld [vmem:[#allocation2 + $0x34] sm:$0xf]  ;;  %v2042_v12 = vrot.slane %v1932_v42, 5 }
  0xc2   : > { %v1770_v52 = vsel %vm6249_vm8, %v1765_v48, %v1769_v45  ;;  %1896 = vst.msk [vmem:[#allocation3 + $0x30] sm:$0xf] %vm1891_vm14, %v1804_v59  ;;  %v1304_v23 = vld [vmem:[#allocation2 + $0x30] sm:$0xf]  ;;  %v5538_v45 = vrot.slane %v1933_v19, 9  ;;  %v2062_v32 = vrot.slane %v2060_v49, 4 }
  0xc3   : > { %2143 = vrot.lane.b32.xlu0 %v2040_v44, %s6095_s20  ;;  %1853 = vrot.lane.b32.xlu2 %v1770_v52, %s6094_s15  ;;  %1337 = vst.msk [vmem:[#allocation3 + $0x6c] sm:$0xf] %vm510_vm0, %v1305_v11  ;;  %v1299_v46 = vld [vmem:[#allocation2 + $0x10] sm:$0xf]  ;;  %v2071_v33 = vsel %vm6889_vm13, %v2069_v37, %v2070_v55  ;;  %v1937_v47 = vld [vmem:[#allocation2 + $0x34] sm:$0xf]  ;;  %v2043_v56 = vsel %vm6889_vm13, %v2041_v7, %v2042_v12 }
  0xc4   : > { %1336 = vst.msk [vmem:[#allocation3 + $0x60] sm:$0xf] %vm510_vm0, %v1304_v23  ;;  %v1948_v6 = vld [vmem:[#allocation2 + $0x60] sm:$0xe]  ;;  %v6974_v9 = vld [vmem:[#allocation2 + $0x64] sm:$0xf]  ;;  %v2047_v39 = vsel %vm6889_vm13, %v5538_v45, %v2046_v13 }
  0xc5   : > { %1331 = vst.msk [vmem:[#allocation3 + $0x24] sm:$0xf] %vm510_vm0, %v1299_v46  ;;  %v1936_v25 = vld [vmem:[#allocation2 + $0x30] sm:$0xe]  ;;  %v2053_v36 = vrot.slane %v1937_v47, 5  ;;  %v5543_v52 = vrot.slane %v1948_v6, 9 }
  0xc6   : > { %v2081_v40 = vrot.slane %v6974_v9, 5  ;;  %v1938_v59 = vld [vmem:[#allocation2 + $0x38] sm:$0x1]  ;;  %v6988_v21 = vld [vmem:[#allocation2 + $0x70] sm:$0xf]  ;;  %v5539_v4 = vrot.slane %v1936_v25, 9 }
  0xc7   : > { %v1308_v53 = vld [vmem:[#allocation2 + $0x48] sm:$0xf]  ;;  %v1307_v15 = vld [vmem:[#allocation2 + $0x40] sm:$0xf]  ;;  %v2055_v43 = vrot.slane %v2053_v36, 4  ;;  %v2056_v13 = vrot.slane %v1938_v59, 5 }
  0xc8   : > { %v1796_v58 = vpop.permute.xlu0 %1795  ;;  %1340 = vst.msk [vmem:[#allocation3 + $0x90] sm:$0xf] %vm510_vm0, %v1308_v53  ;;  %v2082_v16 = vsel %vm6889_vm13, %v5543_v52, %v2081_v40  ;;  %v2054_v50 = vsel %vm6889_vm13, %v5539_v4, %v2053_v36  ;;  %v1941_v0 = vld [vmem:[#allocation2 + $0x44] sm:$0x1]  ;;  %v1310_v34 = vld [vmem:[#allocation2 + $0x54] sm:$0xf] }
  0xc9   : > { %1892 = vst.msk [vmem:[#allocation3] sm:$0xf] %vm1891_vm14, %v1796_v58  ;;  %1857 = vrot.lane.b32.xlu1 %v1794_v10, %s6094_s15  ;;  %v1806_v14 = vpop.permute.xlu2 %1805  ;;  %v1303_v58 = vld [vmem:[#allocation2 + $0x28] sm:$0xf]  ;;  %v2088_v10 = vrot.slane %v6988_v21, 5  ;;  %v2057_v30 = vsel %vm6889_vm13, %v2055_v43, %v2056_v13  ;;  %v2063_v27 = vrot.slane %v1941_v0, 5 }
  0xca   : > { %1897 = vst.msk [vmem:[#allocation3 + $0x3c] sm:$0xf] %vm1891_vm14, %v1806_v14  ;;  %v1942_v14 = vld [vmem:[#allocation2 + $0x48] sm:$0xe]  ;;  %v1306_v26 = vld [vmem:[#allocation2 + $0x3c] sm:$0xf] }
  0xcb   : > { %2149 = vrot.lane.b32.xlu0 %v2050_v17, %s6095_s20  ;;  %2135 = vrot.lane.b32.xlu2 %v2026_v63, %s6095_s20  ;;  %1339 = vst.msk [vmem:[#allocation3 + $0x84] sm:$0xf] %vm510_vm0, %v1307_v15  ;;  %v1953_v63 = vld [vmem:[#allocation2 + $0x74] sm:$0x1]  ;;  %v2090_v22 = vrot.slane %v2088_v10, 4  ;;  %v2064_v37 = vsel %vm6889_vm13, %v2062_v32, %v2063_v27  ;;  %v2083_v13 = vrot.slane %v2081_v40, 4 }
  0xcc   : > { %1335 = vst.msk [vmem:[#allocation3 + $0x54] sm:$0xf] %vm510_vm0, %v1303_v58  ;;  %v2091_v54 = vrot.slane %v1953_v63, 5  ;;  %v1946_v42 = vld [vmem:[#allocation2 + $0x58] sm:$0xf] }
  0xcd   : > { %v1800_v41 = vpop.permute.xlu1 %1799  ;;  %1342 = vst.msk [vmem:[#allocation3 + $0xa8] sm:$0xf] %vm510_vm0, %v1310_v34  ;;  %v1957_v31 = vld [vmem:[#allocation2 + $0x84] sm:$0xe]  ;;  %v7018_v49 = vld [vmem:[#allocation2 + $0x88] sm:$0xf] }
  0xce   : > { %1894 = vst.msk [vmem:[#allocation3 + $0x18] sm:$0xf] %vm1891_vm14, %v1800_v41  ;;  %v1311_v41 = vld [vmem:[#allocation2 + $0x58] sm:$0xf]  ;;  %v1945_v55 = vld [vmem:[#allocation2 + $0x54] sm:$0xe] }
  0xcf   : > { %1343 = vst.msk [vmem:[#allocation3 + $0xb4] sm:$0xf] %vm510_vm0, %v1311_v41  ;;  %v2074_v11 = vrot.slane %v1946_v42, 5  ;;  %v5546_v23 = vrot.slane %v1957_v31, 9  ;;  %v7032_v7 = vld [vmem:[#allocation2 + $0x94] sm:$0xf] }
  0xd0   : > { %v1808_v29 = vpop.permute.xlu0 %1807  ;;  %1338 = vst.msk [vmem:[#allocation3 + $0x78] sm:$0xf] %vm510_vm0, %v1306_v26  ;;  %v1314_v12 = vld [vmem:[#allocation2 + $0x6c] sm:$0xf]  ;;  %v1313_v45 = vld [vmem:[#allocation2 + $0x64] sm:$0xf] }
  0xd1   : > { %1898 = vst.msk [vmem:[#allocation3 + $0x48] sm:$0xf] %vm1891_vm14, %v1808_v29  ;;  %2139 = vrot.lane.b32.xlu1 %v2033_v38, %s6095_s20  ;;  %v1812_v28 = vpop.permute.xlu2 %1811  ;;  %v2092_v38 = vsel %vm6889_vm13, %v2090_v22, %v2091_v54  ;;  %v5542_v46 = vrot.slane %v1945_v55, 9  ;;  %v2076_v8 = vrot.slane %v2074_v11, 4  ;;  %v1309_v47 = vld [vmem:[#allocation2 + $0x4c] sm:$0xf] }
  0xd2   : > { %1900 = vst.msk [vmem:[#allocation3 + $0x60] sm:$0xf] %vm1891_vm14, %v1812_v28  ;;  %v2102_v28 = vrot.slane %v7018_v49, 5  ;;  %v2109_v6 = vrot.slane %v7032_v7, 5  ;;  %v1950_v52 = vld [vmem:[#allocation2 + $0x68] sm:$0x1] }
  0xd3   : > { %2155 = vrot.lane.b32.xlu0 %v2061_v35, %s6095_s20  ;;  %2141 = vrot.lane.b32.xlu2 %v2036_v18, %s6095_s20  ;;  %v5541_v35 = vrot.slane %v1942_v14, 9  ;;  %1346 = vst.msk [vmem:[#allocation3 + $0xd8] sm:$0xf] %vm510_vm0, %v1314_v12  ;;  %v2075_v36 = vsel %vm6889_vm13, %v5542_v46, %v2074_v11  ;;  %v1316_v4 = vld [vmem:[#allocation2 + $0x78] sm:$0xf]  ;;  %v2084_v58 = vrot.slane %v1950_v52, 5 }
  0xd4   : > { %1345 = vst.msk [vmem:[#allocation3 + $0xcc] sm:$0xf] %vm510_vm0, %v1313_v45  ;;  %v2111_v53 = vrot.slane %v2109_v6, 4  ;;  %v1312_v43 = vld [vmem:[#allocation2 + $0x60] sm:$0xf] }
  0xd5   : > { %v1802_v44 = vpop.permute.xlu1 %1801  ;;  %v2068_v19 = vsel %vm6889_vm13, %v5541_v35, %v2067_v51  ;;  %1341 = vst.msk [vmem:[#allocation3 + $0x9c] sm:$0xf] %vm510_vm0, %v1309_v47  ;;  %v1955_v63 = vld [vmem:[#allocation2 + $0x7c] sm:$0xf]  ;;  %v7062_v0 = vld [vmem:[#allocation2 + $0x10] sm:$0xf]  ;;  %v2085_v9 = vsel %vm6889_vm13, %v2083_v13, %v2084_v58 }
  0xd6   : > { %1895 = vst.msk [vmem:[#allocation3 + $0x24] sm:$0xf] %vm1891_vm14, %v1802_v44  ;;  %v1947_v44 = vld [vmem:[#allocation2 + $0x5c] sm:$0x1]  ;;  %v1954_v40 = vld [vmem:[#allocation2 + $0x78] sm:$0xe] }
  0xd7   : > { %v2077_v51 = vrot.slane %v1947_v44, 5  ;;  %1348 = vst.msk [vmem:[#allocation3 + $0xf0] sm:$0xf] %vm510_vm0, %v1316_v4  ;;  %v2095_v22 = vrot.slane %v1955_v63, 5  ;;  %v3051_v41 = vrot.slane %v7062_v0, 5 }
  0xd8   : > { %v1814_v48 = vpop.permute.xlu0 %1813  ;;  %1344 = vst.msk [vmem:[#allocation3 + $0xc0] sm:$0xf] %vm510_vm0, %v1312_v43  ;;  %v1956_v34 = vld [vmem:[#allocation2 + $0x80] sm:$0x1]  ;;  %v3482_v32 = vld [vmem:[#allocation2 + $0x18] sm:$0xf] }
  0xd9   : > { %1901 = vst.msk [vmem:[#allocation3 + $0x6c] sm:$0xf] %vm1891_vm14, %v1814_v48  ;;  %2145 = vrot.lane.b32.xlu1 %v2043_v56, %s6095_s20  ;;  %v1818_v61 = vpop.permute.xlu2 %1817  ;;  %v2103_v48 = vsel %vm6889_vm13, %v5546_v23, %v2102_v28  ;;  %v2078_v59 = vsel %vm6889_vm13, %v2076_v8, %v2077_v51  ;;  %v1320_v27 = vld [vmem:[#allocation2 + $0x90] sm:$0xf]  ;;  %v2097_v26 = vrot.slane %v2095_v22, 4  ;;  %v2098_v21 = vrot.slane %v1956_v34, 5 }
  0xda   : > { %1903 = vst.msk [vmem:[#allocation3 + $0x84] sm:$0xf] %vm1891_vm14, %v1818_v61  ;;  %v1951_v61 = vld [vmem:[#allocation2 + $0x6c] sm:$0xe]  ;;  %v1315_v35 = vld [vmem:[#allocation2 + $0x70] sm:$0xf] }
  0xdb   : > { %2161 = vrot.lane.b32.xlu0 %v2071_v33, %s6095_s20  ;;  %2147 = vrot.lane.b32.xlu2 %v2047_v39, %s6095_s20  ;;  %v1962_v39 = vld [vmem:[#allocation2 + $0x98] sm:$0x1]  ;;  %1352 = vst.msk [vmem:[#allocation3 + $0x120] sm:$0xf] %vm510_vm0, %v1320_v27  ;;  %v3534_v42 = vshll.u32 %v3482_v32, 16  ;;  %v2099_v55 = vsel %vm6889_vm13, %v2097_v26, %v2098_v21  ;;  %v2104_v8 = vrot.slane %v2102_v28, 4 }
  0xdc   : > { %v2112_v15 = vrot.slane %v1962_v39, 5  ;;  %1347 = vst.msk [vmem:[#allocation3 + $0xe4] sm:$0xf] %vm510_vm0, %v1315_v35  ;;  %v1960_v11 = vld [vmem:[#allocation2 + $0x90] sm:$0xe] }
  0xdd   : > { %v1810_v17 = vpop.permute.xlu1 %1809  ;;  %v3536_v44 = vrot.slane %v3534_v42, 5  ;;  %v7090_v12 = vld [vmem:[#allocation2 + $0x1c] sm:$0xf]  ;;  %v1323_v45 = vld [vmem:[#allocation2 + $0xa0] sm:$0xf] }
  0xde   : > { %1899 = vst.msk [vmem:[#allocation3 + $0x54] sm:$0xf] %vm1891_vm14, %v1810_v17  ;;  %v1317_v17 = vld [vmem:[#allocation2 + $0x7c] sm:$0xf]  ;;  %v1965_v4 = vld [vmem:[#allocation2 + $0xa4] sm:$0x1] }
  0xdf   : > { %1349 = vst.msk [vmem:[#allocation3 + $0xfc] sm:$0xf] %vm510_vm0, %v1317_v17  ;;  %v1322_v46 = vld [vmem:[#allocation2 + $0x9c] sm:$0xf]  ;;  %v1326_v13 = vld [vmem:[#allocation2 + $0xb4] sm:$0xf] }
  0xe0   : > { %v1820_v62 = vpop.permute.xlu0 %1819  ;;  %1355 = vst.msk [vmem:[#allocation3 + $0x144] sm:$0xf] %vm510_vm0, %v1323_v45  ;;  %v3291_v47 = vld [vmem:[#allocation2 + $0x1c] sm:$0xf]  ;;  %v1325_v58 = vld [vmem:[#allocation2 + $0xac] sm:$0xf] }
  0xe1   : > { %1904 = vst.msk [vmem:[#allocation3 + $0x90] sm:$0xf] %vm1891_vm14, %v1820_v62  ;;  %2151 = vrot.lane.b32.xlu1 %v2054_v50, %s6095_s20  ;;  %v2113_v62 = vsel %vm6889_vm13, %v2111_v53, %v2112_v15  ;;  %v2953_v50 = vld [vmem:[#allocation2 + $0xc] sm:$0xe]  ;;  %v1963_v52 = vld [vmem:[#allocation2 + $0x9c] sm:$0xe] }
  0xe2   : > { %v5551_v14 = vrot.slane %v2953_v50, 9  ;;  %1354 = vst.msk [vmem:[#allocation3 + $0x138] sm:$0xf] %vm510_vm0, %v1322_v46  ;;  %v7110_v43 = vld [vmem:[#allocation2 + $0x1c] sm:$0xf] }
  0xe3   : > { %2167 = vrot.lane.b32.xlu0 %v2082_v16, %s6095_s20  ;;  %2153 = vrot.lane.b32.xlu2 %v2057_v30, %s6095_s20  ;;  %v5544_v16 = vrot.slane %v1951_v61, 9  ;;  %1358 = vst.msk [vmem:[#allocation3 + $0x168] sm:$0xf] %vm510_vm0, %v1326_v13  ;;  %v1321_v7 = vld [vmem:[#allocation2 + $0x94] sm:$0xf]  ;;  %v3058_v50 = vrot.slane %v7110_v43, 5 }
  0xe4   : > { %1357 = vst.msk [vmem:[#allocation3 + $0x15c] sm:$0xf] %vm510_vm0, %v1325_v58  ;;  %v1324_v27 = vld [vmem:[#allocation2 + $0xa8] sm:$0xf]  ;;  %v2264_v46 = vld [vmem:[#allocation2 + $0xc] sm:$0xf] }
  0xe5   : > { %v1816_v20 = vpop.permute.xlu1 %1815  ;;  %v2089_v54 = vsel %vm6889_vm13, %v5544_v16, %v2088_v10  ;;  %v3052_v10 = vsel %vm6889_vm13, %v5551_v14, %v3051_v41  ;;  %v5548_v16 = vrot.slane %v1963_v52, 9  ;;  %1353 = vst.msk [vmem:[#allocation3 + $0x12c] sm:$0xf] %vm510_vm0, %v1321_v7  ;;  %v3294_v7 = vld [vmem:[#allocation2 + $0x30] sm:$0xf] }
  0xe6   : > { %1902 = vst.msk [vmem:[#allocation3 + $0x78] sm:$0xf] %vm1891_vm14, %v1816_v20  ;;  %v1319_v20 = vld [vmem:[#allocation2 + $0x88] sm:$0xf] }
  0xe7   : > { %v1824_v29 = vpop.permute.xlu2 %1823  ;;  %1351 = vst.msk [vmem:[#allocation3 + $0x114] sm:$0xf] %vm510_vm0, %v1319_v20  ;;  %v3053_v20 = vrot.slane %v3051_v41, 4  ;;  %v3290_v41 = vld [vmem:[#allocation2 + $0x18] sm:$0xf] }
  0xe8   : > { %v1826_v18 = vpop.permute.xlu0 %1825  ;;  %1906 = vst.msk [vmem:[#allocation3 + $0xa8] sm:$0xf] %vm1891_vm14, %v1824_v29  ;;  %v5545_v29 = vrot.slane %v1954_v40, 9  ;;  %v2955_v40 = vld [vmem:[#allocation2 + $0x14] sm:$0x1] }
  0xe9   : > { %1907 = vst.msk [vmem:[#allocation3 + $0xb4] sm:$0xf] %vm1891_vm14, %v1826_v18  ;;  %2157 = vrot.lane.b32.xlu1 %v2064_v37, %s6095_s20  ;;  %v1959_v37 = vld [vmem:[#allocation2 + $0x8c] sm:$0x1]  ;;  %v3054_v35 = vrot.slane %v2955_v40, 5 }
  0xea   : > { %v2096_v18 = vsel %vm6889_vm13, %v5545_v29, %v2095_v22  ;;  %v2105_v51 = vrot.slane %v1959_v37, 5  ;;  %1356 = vst.msk [vmem:[#allocation3 + $0x150] sm:$0xf] %vm510_vm0, %v1324_v27  ;;  %v1327_v37 = vld [vmem:[#allocation2 + $0xb8] sm:$0xf] }
  0xeb   : > { %2173 = vrot.lane.b32.xlu0 %v2092_v38, %s6095_s20  ;;  %2159 = vrot.lane.b32.xlu2 %v2068_v19, %s6095_s20  ;;  %v3531_v38 = vshrl.u32 %v3482_v32, 16  ;;  %v3486_v32 = vld [vmem:[#allocation2 + $0x28] sm:$0xf]  ;;  %v3055_v0 = vsel %vm6889_vm13, %v3053_v20, %v3054_v35  ;;  %1359 = vst.msk [vmem:[#allocation3 + $0x174] sm:$0xf] %vm510_vm0, %v1327_v37 }
  0xec   : > { %v2106_v49 = vsel %vm6889_vm13, %v2104_v8, %v2105_v51  ;;  %v3564_v21 = vshll.u32 %v3486_v32, 16  ;;  %v3293_v43 = vld [vmem:[#allocation2 + $0x28] sm:$0xf]  ;;  %v2961_v27 = vld [vmem:[#allocation2 + $0x2c] sm:$0x1] }
  0xed   : > { %v1822_v25 = vpop.permute.xlu1 %1821  ;;  %v3533_v23 = vrot.slane %v3531_v38, 4  ;;  %v3544_v38 = vshrl.u32 %v7090_v12, 16  ;;  %v2269_v40 = vld [vmem:[#allocation2 + $0x28] sm:$0xf] }
  0xee   : > { %1905 = vst.msk [vmem:[#allocation3 + $0x9c] sm:$0xf] %vm1891_vm14, %v1822_v25  ;;  %v1964_v25 = vld [vmem:[#allocation2 + $0xa0] sm:$0xf]  ;;  %v7142_v42 = vrot.slane %v3564_v21, 5 }
  0xef   : > { %v1830_v33 = vpop.permute.xlu2 %1829  ;;  %v3537_v39 = vor.u32 %v3536_v44, %v3533_v23  ;;  %v2266_v23 = vld [vmem:[#allocation2 + $0x18] sm:$0xf] }
  0xf0   : > { %v1832_v56 = vpop.permute.xlu0 %1831  ;;  %1909 = vst.msk [vmem:[#allocation3 + $0xcc] sm:$0xf] %vm1891_vm14, %v1830_v33  ;;  %v1318_v33 = vld [vmem:[#allocation2 + $0x84] sm:$0xf] }
  0xf1   : > { %1910 = vst.msk [vmem:[#allocation3 + $0xd8] sm:$0xf] %vm1891_vm14, %v1832_v56  ;;  %2163 = vrot.lane.b32.xlu1 %v2075_v36, %s6095_s20  ;;  %v3540_v36 = vshll.u32 %v7090_v12, 16  ;;  %v3538_v15 = vrot.slane %v3537_v39, 4 }
  0xf2   : > { %1350 = vst.msk [vmem:[#allocation3 + $0x108] sm:$0xf] %vm510_vm0, %v1318_v33  ;;  %v2265_v33 = vld [vmem:[#allocation2 + $0x10] sm:$0xf] }
  0xf3   : > { %2179 = vrot.lane.b32.xlu0 %v2103_v48, %s6095_s20  ;;  %2165 = vrot.lane.b32.xlu2 %v2078_v59, %s6095_s20  ;;  %v5547_v48 = vrot.slane %v1960_v11, 9  ;;  %v2116_v59 = vrot.slane %v1964_v25, 5  ;;  %v7108_v61 = vrot.slane %v3540_v36, 5 }
  0xf5   : > { %v2110_v53 = vsel %vm6889_vm13, %v5547_v48, %v2109_v6  ;;  %v2118_v6 = vrot.slane %v2116_v59, 4  ;;  %v3543_v63 = vsel %vm6249_vm8, %v3538_v15, %v7108_v61 }
  0xf9   : > { %v1838_v30 = vpop.permute.xlu0 %1837  ;;  %2169 = vrot.lane.b32.xlu1 %v2085_v9, %s6095_s20  ;;  %v2117_v9 = vsel %vm6889_vm13, %v5548_v16, %v2116_v59 }
  0xfa   : > { %1913 = vst.msk [vmem:[#allocation3 + $0xfc] sm:$0xf] %vm1891_vm14, %v1838_v30  ;;  %v2958_v30 = vld [vmem:[#allocation2 + $0x20] sm:$0x1] }
  0xfb   : > { %2185 = vrot.lane.b32.xlu0 %v2113_v62, %s6095_s20  ;;  %2171 = vrot.lane.b32.xlu2 %v2089_v54, %s6095_s20  ;;  %v2119_v62 = vrot.slane %v1965_v4, 5  ;;  %v3060_v54 = vrot.slane %v3058_v50, 4  ;;  %v3061_v14 = vrot.slane %v2958_v30, 5 }
  0xfd   : > { %v2120_v22 = vsel %vm6889_vm13, %v2118_v6, %v2119_v62  ;;  %v3062_v29 = vsel %vm6889_vm13, %v3060_v54, %v3061_v14  ;;  %v3292_v62 = vld [vmem:[#allocation2 + $0x24] sm:$0xf]  ;;  %v2267_v54 = vld [vmem:[#allocation2 + $0x1c] sm:$0xf]  ;;  %v2960_v14 = vld [vmem:[#allocation2 + $0x28] sm:$0xf] }
  0xfe   : > { %v3065_v20 = vrot.slane %v2960_v14, 5 }
 0x101   : > { %2175 = vrot.lane.b32.xlu1 %v2096_v18, %s6095_s20 }
 0x102   : > { %v1828_v31 = vpop.permute.xlu1 %1827 }
 0x103   : > { %3161 = vrot.lane.b32.xlu0 %v3052_v10, %s6094_s15  ;;  %v1836_v19 = vpop.permute.xlu2 %1835  ;;  %1908 = vst.msk [vmem:[#allocation3 + $0xc0] sm:$0xf] %vm1891_vm14, %v1828_v31  ;;  %2177 = vrot.lane.b32.xlu2 %v2099_v55, %s6095_s20  ;;  %v3568_v10 = vshrl.u32 %v3486_v32, 16  ;;  %v3487_v31 = vld [vmem:[#allocation2 + $0x2c] sm:$0x1]  ;;  %v3546_v55 = vrot.slane %v3544_v38, 4 }
 0x104   : > { %1912 = vst.msk [vmem:[#allocation3 + $0xf0] sm:$0xf] %vm1891_vm14, %v1836_v19  ;;  %v3484_v19 = vld [vmem:[#allocation2 + $0x20] sm:$0x1]  ;;  %v3574_v45 = vshll.u32 %v3487_v31, 16  ;;  %v3068_v38 = vrot.slane %v2961_v27, 5 }
 0x105   : > { %v3570_v18 = vrot.slane %v3568_v10, 4  ;;  %v3547_v8 = vor.u32 %v3546_v55, %v7108_v61  ;;  %v3550_v51 = vshll.u32 %v3484_v19, 16  ;;  %v3067_v10 = vrot.slane %v3065_v20, 4  ;;  %v2964_v31 = vld [vmem:[#allocation2 + $0x38] sm:$0x1] }
 0x106   : > { %v3576_v48 = vrot.slane %v3574_v45, 5  ;;  %v3489_v55 = vld [vmem:[#allocation2 + $0x34] sm:$0xf]  ;;  %v3075_v45 = vrot.slane %v2964_v31, 5 }
 0x107   : > { %v1844_v56 = vpop.permute.xlu0 %1843  ;;  %v3571_v12 = vor.u32 %v3570_v18, %v7142_v42  ;;  %v3548_v39 = vrot.slane %v3547_v8, 4  ;;  %v3552_v36 = vrot.slane %v3550_v51, 5  ;;  %v3588_v8 = vshll.u32 %v3489_v55, 16  ;;  %v3492_v51 = vld [vmem:[#allocation2 + $0x40] sm:$0xf] }
 0x108   : > { %1916 = vst.msk [vmem:[#allocation3 + $0x120] sm:$0xf] %vm1891_vm14, %v1844_v56  ;;  %v2956_v56 = vld [vmem:[#allocation2 + $0x18] sm:$0xe] }
 0x109   : > { %2181 = vrot.lane.b32.xlu1 %v2106_v49, %s6095_s20  ;;  %v5552_v49 = vrot.slane %v2956_v56, 9  ;;  %v3553_v15 = vsel %vm6249_vm8, %v3548_v39, %v3552_v36  ;;  %v3490_v36 = vld [vmem:[#allocation2 + $0x38] sm:$0x1] }
 0x10a   : > { %v1834_v28 = vpop.permute.xlu1 %1833 }
 0x10b   : > { %3356 = vrot.lane.b32.xlu0 %v3291_v47, %s6095_s20  ;;  %1911 = vst.msk [vmem:[#allocation3 + $0xe4] sm:$0xf] %vm1891_vm14, %v1834_v28  ;;  %v1842_v17 = vpop.permute.xlu2 %1841  ;;  %2183 = vrot.lane.b32.xlu2 %v2110_v53, %s6095_s20  ;;  %v3572_v47 = vrot.slane %v3571_v12, 4  ;;  %v3485_v53 = vld [vmem:[#allocation2 + $0x24] sm:$0xf]  ;;  %v3059_v61 = vsel %vm6889_vm13, %v5552_v49, %v3058_v50  ;;  %v3612_v49 = vshll.u32 %v3492_v51, 16 }
 0x10c   : > { %1915 = vst.msk [vmem:[#allocation3 + $0x114] sm:$0xf] %vm1891_vm14, %v1842_v17  ;;  %v3555_v17 = vshrl.u32 %v3485_v53, 16  ;;  %v3558_v4 = vshll.u32 %v3485_v53, 16 }
 0x10d   : > { %v3577_v52 = vsel %vm6249_vm8, %v3572_v47, %v3576_v48 }
 0x10e   : > { %v3557_v58 = vrot.slane %v3555_v17, 4  ;;  %v3560_v16 = vrot.slane %v3558_v4, 5  ;;  %v3598_v17 = vshll.u32 %v3490_v36, 16  ;;  %v7203_v4 = vrot.slane %v3612_v49, 5  ;;  %v3296_v36 = vld [vmem:[#allocation2 + $0x3c] sm:$0xf] }
 0x111   : > { %2187 = vrot.lane.b32.xlu1 %v2117_v9, %s6095_s20 }
 0x113   : > { %3914 = vrot.lane.b32.xlu0 %v3543_v63, %s6096_s21  ;;  %2189 = vrot.lane.b32.xlu2 %v2120_v22, %s6095_s20  ;;  %v3561_v63 = vor.u32 %v3560_v16, %v3557_v58  ;;  %v3493_v16 = vld [vmem:[#allocation2 + $0x44] sm:$0x1] }
 0x114   : > { %v1848_v26 = vpop.permute.xlu2 %1847 }
 0x115   : > { %v1850_v34 = vpop.permute.xlu0 %1849  ;;  %1918 = vst.msk [vmem:[#allocation3 + $0x138] sm:$0xf] %vm1891_vm14, %v1848_v26  ;;  %v3562_v9 = vrot.slane %v3561_v63, 4  ;;  %v2270_v63 = vld [vmem:[#allocation2 + $0x30] sm:$0xf] }
 0x116   : > { %1919 = vst.msk [vmem:[#allocation3 + $0x144] sm:$0xf] %vm1891_vm14, %v1850_v34  ;;  %v2959_v34 = vld [vmem:[#allocation2 + $0x24] sm:$0xe] }
 0x117   : > { %v3567_v32 = vsel %vm6249_vm8, %v3562_v9, %v7142_v42  ;;  %v5553_v26 = vrot.slane %v2959_v34, 9  ;;  %v3622_v9 = vshll.u32 %v3493_v16, 16  ;;  %v2962_v34 = vld [vmem:[#allocation2 + $0x30] sm:$0xe] }
 0x119   : > { %3163 = vrot.lane.b32.xlu1 %v3055_v0, %s6094_s15  ;;  %v3488_v0 = vld [vmem:[#allocation2 + $0x30] sm:$0xf]  ;;  %v3066_v37 = vsel %vm6889_vm13, %v5553_v26, %v3065_v20  ;;  %v3624_v14 = vrot.slane %v3622_v9, 5  ;;  %v5554_v20 = vrot.slane %v2962_v34, 9  ;;  %v5923_v9 = vld [vmem:[%s8469_s5 + $0x28] sm:$0xff] }
 0x11a   : > { %v3579_v19 = vshrl.u32 %v3488_v0, 16 }
 0x11b   : > { %3167 = vrot.lane.b32.xlu0 %v3062_v29, %s6094_s15  ;;  %3354 = vrot.lane.b32.xlu2 %v3290_v41, %s6095_s20  ;;  %v7181_v29 = vld [vmem:[#allocation2 + $0x34] sm:$0xf]  ;;  %v2288_v41 = vld [vmem:[#allocation2 + $0x9c] sm:$0xf] }
 0x11c   : > { %v3072_v18 = vrot.slane %v7181_v29, 5 }
 0x11d   : > { %v1854_v44 = vpop.permute.xlu2 %1853 }
 0x11e   : > { %1921 = vst.msk [vmem:[#allocation3 + $0x15c] sm:$0xf] %vm1891_vm14, %v1854_v44  ;;  %v3592_v44 = vshrl.u32 %v3489_v55, 16  ;;  %v3074_v12 = vrot.slane %v3072_v18, 4 }
 0x120   : > { %v1840_v11 = vpop.permute.xlu1 %1839  ;;  %v3594_v56 = vrot.slane %v3592_v44, 4  ;;  %v2457_v44 = vld [vmem:[#allocation2 + $0xc] sm:$0xf] }
 0x121   : > { %1914 = vst.msk [vmem:[#allocation3 + $0x108] sm:$0xf] %vm1891_vm14, %v1840_v11  ;;  %2328 = vrot.lane.b32.xlu1 %v2264_v46, %s6096_s21  ;;  %v3582_v11 = vshll.u32 %v3488_v0, 16  ;;  %v2289_v0 = vld [vmem:[#allocation2 + $0xa0] sm:$0xf]  ;;  %v2509_v29 = vshll.u32 %v2457_v44, 16 }
 0x123   : > { %2332 = vrot.lane.b32.xlu0 %v2266_v23, %s6096_s21  ;;  %2330 = vrot.lane.b32.xlu2 %v2265_v33, %s6096_s21  ;;  %v3069_v23 = vsel %vm6889_vm13, %v3067_v10, %v3068_v38  ;;  %v3581_v33 = vrot.slane %v3579_v19, 4  ;;  %v3584_v47 = vrot.slane %v3582_v11, 5  ;;  %v2965_v10 = vld [vmem:[#allocation2 + $0x3c] sm:$0xe]  ;;  %v7223_v38 = vld [vmem:[#allocation2 + $0x40] sm:$0xf] }
 0x124   : > { %v3079_v55 = vrot.slane %v7223_v38, 5  ;;  %v3494_v19 = vld [vmem:[#allocation2 + $0x48] sm:$0xf] }
 0x125   : > { %v1856_v25 = vpop.permute.xlu0 %1855  ;;  %v2136_v59 = vpop.permute.xlu2 %2135  ;;  %v3585_v53 = vor.u32 %v3584_v47, %v3581_v33 }
 0x126   : > { %1922 = vst.msk [vmem:[#allocation3 + $0x168] sm:$0xf] %vm1891_vm14, %v1856_v25  ;;  %v3076_v25 = vsel %vm6889_vm13, %v3074_v12, %v3075_v45  ;;  %v2506_v12 = vshrl.u32 %v2457_v44, 16 }
 0x127   : > { %2232 = vst.msk [vmem:[#allocation3] sm:$0xf] %vm2231_vm15, %v2136_v59  ;;  %v3295_v59 = vld [vmem:[#allocation2 + $0x34] sm:$0xf] }
 0x128   : > { %v1846_v28 = vpop.permute.xlu1 %1845 }
 0x129   : > { %1917 = vst.msk [vmem:[#allocation3 + $0x12c] sm:$0xf] %vm1891_vm14, %v1846_v28  ;;  %3916 = vrot.lane.b32.xlu1 %v3553_v15, %s6096_s21  ;;  %v3616_v28 = vshrl.u32 %v3492_v51, 16  ;;  %v2268_v15 = vld [vmem:[#allocation2 + $0x24] sm:$0xf]  ;;  %v3630_v51 = vshll.u32 %v3494_v19, 16 }
 0x12b   : > { %3920 = vrot.lane.b32.xlu0 %v3577_v52, %s6096_s21  ;;  %3165 = vrot.lane.b32.xlu2 %v3059_v61, %s6094_s15  ;;  %v3590_v52 = vrot.slane %v3588_v8, 5  ;;  %v3627_v8 = vshrl.u32 %v3494_v19, 16 }
 0x12d   : > { %v2138_v13 = vpop.permute.xlu0 %2137  ;;  %v2142_v6 = vpop.permute.xlu2 %2141  ;;  %v3595_v61 = vor.u32 %v3594_v56, %v3590_v52  ;;  %v2508_v56 = vrot.slane %v2506_v12, 4 }
 0x12e   : > { %2233 = vst.msk [vmem:[#allocation3 + $0xc] sm:$0xf] %vm2231_vm15, %v2138_v13  ;;  %v3618_v13 = vrot.slane %v3616_v28, 4  ;;  %v3297_v28 = vld [vmem:[#allocation2 + $0x40] sm:$0xf] }
 0x12f   : > { %2235 = vst.msk [vmem:[#allocation3 + $0x24] sm:$0xf] %vm2231_vm15, %v2142_v6 }
 0x131   : > { %3358 = vrot.lane.b32.xlu1 %v3292_v62, %s6095_s20  ;;  %v3596_v62 = vrot.slane %v3595_v61, 4 }
 0x133   : > { %3362 = vrot.lane.b32.xlu0 %v3294_v7, %s6095_s20  ;;  %3360 = vrot.lane.b32.xlu2 %v3293_v43, %s6095_s20  ;;  %v1852_v30 = vpop.permute.xlu1 %1851  ;;  %v3586_v7 = vrot.slane %v3585_v53, 4  ;;  %v3600_v43 = vrot.slane %v3598_v17, 5  ;;  %v3632_v53 = vrot.slane %v3630_v51, 5  ;;  %v5921_v51 = vld [vmem:[%s8469_s5 + $0x18] sm:$0xff] }
 0x134   : > { %1920 = vst.msk [vmem:[#allocation3 + $0x150] sm:$0xf] %vm1891_vm14, %v1852_v30  ;;  %v3619_v30 = vor.u32 %v3618_v13, %v7203_v4  ;;  %v7245_v13 = vld [vmem:[#allocation2 + $0x4c] sm:$0xf] }
 0x135   : > { %v2144_v50 = vpop.permute.xlu0 %2143  ;;  %v2148_v22 = vpop.permute.xlu2 %2147 }
 0x136   : > { %2236 = vst.msk [vmem:[#allocation3 + $0x30] sm:$0xf] %vm2231_vm15, %v2144_v50 }
 0x137   : > { %2238 = vst.msk [vmem:[#allocation3 + $0x48] sm:$0xf] %vm2231_vm15, %v2148_v22  ;;  %v3601_v22 = vsel %vm6249_vm8, %v3596_v62, %v3600_v43 }
 0x139   : > { %2334 = vrot.lane.b32.xlu1 %v2267_v54, %s6096_s21  ;;  %v3620_v54 = vrot.slane %v3619_v30, 4  ;;  %v3636_v30 = vshll.u32 %v7245_v13, 16 }
 0x13b   : > { %2338 = vrot.lane.b32.xlu0 %v2269_v40, %s6096_s21  ;;  %3918 = vrot.lane.b32.xlu2 %v3567_v32, %s6096_s21  ;;  %v1858_v21 = vpop.permute.xlu1 %1857  ;;  %v3591_v40 = vsel %vm6249_vm8, %v3586_v7, %v3590_v52 }
 0x13c   : > { %1923 = vst.msk [vmem:[#allocation3 + $0x174] sm:$0xf] %vm1891_vm14, %v1858_v21  ;;  %v3491_v21 = vld [vmem:[#allocation2 + $0x3c] sm:$0xf] }
 0x13d   : > { %v2150_v35 = vpop.permute.xlu0 %2149  ;;  %v2154_v42 = vpop.permute.xlu2 %2153  ;;  %v3606_v31 = vshll.u32 %v3491_v21, 16 }
 0x13e   : > { %2239 = vst.msk [vmem:[#allocation3 + $0x54] sm:$0xf] %vm2231_vm15, %v2150_v35  ;;  %v3625_v35 = vsel %vm6249_vm8, %v3620_v54, %v3624_v14  ;;  %v2459_v54 = vld [vmem:[#allocation2 + $0x14] sm:$0x1] }
 0x13f   : > { %2241 = vst.msk [vmem:[#allocation3 + $0x6c] sm:$0xf] %vm2231_vm15, %v2154_v42  ;;  %v3603_v42 = vshrl.u32 %v3491_v21, 16  ;;  %v7274_v21 = vld [vmem:[#allocation2 + $0xac] sm:$0xf] }
 0x141   : > { %3169 = vrot.lane.b32.xlu1 %v3066_v37, %s6094_s15  ;;  %v5555_v37 = vrot.slane %v2965_v10, 9  ;;  %v5922_v10 = vld [vmem:[%s8469_s5 + $0x20] sm:$0xff] }
 0x143   : > { %2376 = vrot.lane.b32.xlu0 %v2288_v41, %s6096_s21  ;;  %3171 = vrot.lane.b32.xlu2 %v3069_v23, %s6094_s15  ;;  %v2140_v48 = vpop.permute.xlu1 %2139  ;;  %v3073_v41 = vsel %vm6889_vm13, %v5554_v20, %v3072_v18  ;;  %v2458_v23 = vld [vmem:[#allocation2 + $0x10] sm:$0xf]  ;;  %v3608_v18 = vrot.slane %v3606_v31, 5  ;;  %v3080_v33 = vsel %vm6889_vm13, %v5555_v37, %v3079_v55  ;;  %v7271_v20 = vrot.slane %v3636_v30, 5  ;;  %v4042_v31 = vld [vmem:[#allocation2 + $0x18] sm:$0xe] }
 0x144   : > { %2234 = vst.msk [vmem:[#allocation3 + $0x18] sm:$0xf] %vm2231_vm15, %v2140_v48  ;;  %v2515_v48 = vshll.u32 %v2458_v23, 16  ;;  %v2519_v43 = vshrl.u32 %v2458_v23, 16  ;;  %v4044_v37 = vld [vmem:[#allocation2 + $0x20] sm:$0x1] }
 0x145   : > { %v2156_v46 = vpop.permute.xlu0 %2155  ;;  %v2160_v39 = vpop.permute.xlu2 %2159  ;;  %v5567_v23 = vrot.slane %v4042_v31, 9  ;;  %v4143_v12 = vrot.slane %v4044_v37, 5 }
 0x146   : > { %2242 = vst.msk [vmem:[#allocation3 + $0x78] sm:$0xf] %vm2231_vm15, %v2156_v46  ;;  %v3605_v46 = vrot.slane %v3603_v42, 4  ;;  %v2521_v34 = vrot.slane %v2519_v43, 4 }
 0x147   : > { %2244 = vst.msk [vmem:[#allocation3 + $0x90] sm:$0xf] %vm2231_vm15, %v2160_v39  ;;  %v5925_v39 = vld [vmem:[%s8469_s5 + $0x38] sm:$0xff] }
 0x148   : > { %4811 = vmatpush.bf16.msra.mxu0 %v5925_v39  ;;  %6015 = vmatpush.bf16.msra.mxu3 %v5925_v39  ;;  %v3609_v52 = vor.u32 %v3608_v18, %v3605_v46  ;;  %v1968_v46 = vld [vmem:[#allocation2 + $0xb0] sm:$0x1]  ;;  %v2123_v18 = vrot.slane %v7274_v21, 5  ;;  %v2967_v39 = vld [vmem:[#allocation2 + $0x44] sm:$0x1] }
 0x149   : > { %3364 = vrot.lane.b32.xlu1 %v3295_v59, %s6095_s20  ;;  %v3629_v59 = vrot.slane %v3627_v8, 4 }
 0x14a   : > { %v3610_v62 = vrot.slane %v3609_v52, 4  ;;  %v3081_v52 = vrot.slane %v3079_v55, 4 }
 0x14b   : > { %3175 = vrot.lane.b32.xlu0 %v3076_v25, %s6094_s15  ;;  %2336 = vrot.lane.b32.xlu2 %v2268_v15, %s6096_s21  ;;  %v2146_v6 = vpop.permute.xlu1 %2145  ;;  %v2511_v25 = vrot.slane %v2509_v29, 5  ;;  %v2517_v15 = vrot.slane %v2515_v48, 5 }
 0x14c   : > { %2237 = vst.msk [vmem:[#allocation3 + $0x3c] sm:$0xf] %vm2231_vm15, %v2146_v6  ;;  %v3299_v6 = vld [vmem:[#allocation2 + $0x4c] sm:$0xf]  ;;  %v3615_v14 = vsel %vm6249_vm8, %v3610_v62, %v7203_v4  ;;  %v7282_v4 = vld [vmem:[%s8469_s5 + $0x70] sm:$0xff] }
 0x14d   : > { %v2162_v58 = vpop.permute.xlu0 %2161  ;;  %v2166_v50 = vpop.permute.xlu2 %2165  ;;  %v2512_v49 = vor.u32 %v2511_v25, %v2508_v56  ;;  %v2290_v25 = vld [vmem:[#allocation2 + $0xa8] sm:$0xf] }
 0x14e   : > { %2245 = vst.msk [vmem:[#allocation3 + $0x9c] sm:$0xf] %vm2231_vm15, %v2162_v58  ;;  %v5924_v58 = vld [vmem:[%s8469_s5 + $0x30] sm:$0xff] }
 0x14f   : > { %2247 = vst.msk [vmem:[#allocation3 + $0xb4] sm:$0xf] %vm2231_vm15, %v2166_v50  ;;  %v2513_v61 = vrot.slane %v2512_v49, 4  ;;  %4812 = vmatpush.bf16.msra.mxu0 %v5924_v58  ;;  %6016 = vmatpush.bf16.msra.mxu3 %v5924_v58  ;;  %v3633_v50 = vor.u32 %v3632_v53, %v3629_v59  ;;  %v2125_v49 = vrot.slane %v2123_v18, 4  ;;  %v3082_v59 = vrot.slane %v2967_v39, 5 }
 0x150   : > { %v2461_v58 = vld [vmem:[#allocation2 + $0x1c] sm:$0xf] }
 0x151   : > { %3922 = vrot.lane.b32.xlu1 %v3591_v40, %s6096_s21  ;;  %v2518_v16 = vsel %vm6249_vm8, %v2513_v61, %v2517_v15  ;;  %v7263_v40 = vld [vmem:[%s8469_s5 + $0x78] sm:$0xff]  ;;  %v7326_v61 = vld [vmem:[%s8469_s5 + $0x60] sm:$0xff]  ;;  %v2539_v62 = vshll.u32 %v2461_v58, 16  ;;  %v2543_v43 = vshrl.u32 %v2461_v58, 16 }
 0x152   : > { %2921 = vst.msk [vmem:[#allocation3 + $0x4] sm:$0xf] %vm510_vm0, %v2518_v16  ;;  %4900 = vmatpush.bf16.msra.mxu1 %v7263_v40 }
 0x153   : > { %2340 = vrot.lane.b32.xlu0 %v2270_v63, %s6096_s21  ;;  %3924 = vrot.lane.b32.xlu2 %v3601_v22, %s6096_s21  ;;  %v2152_v27 = vpop.permute.xlu1 %2151  ;;  %v2271_v22 = vld [vmem:[#allocation2 + $0x34] sm:$0xf] }
 0x154   : > { %2240 = vst.msk [vmem:[#allocation3 + $0x60] sm:$0xf] %vm2231_vm15, %v2152_v27  ;;  %4813 = vmatpush.bf16.msra.mxu0 %v5923_v9  ;;  %v3634_v27 = vrot.slane %v3633_v50, 4  ;;  %6017 = vmatpush.bf16.msra.mxu3 %v5923_v9  ;;  %v5934_v50 = vld [vmem:[%s8469_s5 + $0x80] sm:$0xff] }
 0x155   : > { %v2168_v32 = vpop.permute.xlu0 %2167  ;;  %v2172_v26 = vpop.permute.xlu2 %2171 }
 0x156   : > { %2248 = vst.msk [vmem:[#allocation3 + $0xc0] sm:$0xf] %vm2231_vm15, %v2168_v32  ;;  %v2525_v32 = vshll.u32 %v2459_v54, 16  ;;  %4901 = vmatpush.bf16.msra.mxu1 %v7282_v4  ;;  %v3639_v29 = vsel %vm6249_vm8, %v3634_v27, %v7271_v20  ;;  %v2541_v27 = vrot.slane %v2539_v62, 5  ;;  %v2272_v62 = vld [vmem:[#allocation2 + $0x3c] sm:$0xf] }
 0x157   : > { %2250 = vst.msk [vmem:[#allocation3 + $0xd8] sm:$0xf] %vm2231_vm15, %v2172_v26 }
 0x158   : > { %4814 = vmatpush.bf16.msra.mxu0 %v5922_v10  ;;  %6018 = vmatpush.bf16.msra.mxu3 %v5922_v10  ;;  %v3083_v10 = vsel %vm6889_vm13, %v3081_v52, %v3082_v59 }
 0x159   : > { %2378 = vrot.lane.b32.xlu1 %v2289_v0, %s6096_s21  ;;  %v2522_v0 = vor.u32 %v2521_v34, %v2517_v15  ;;  %v5920_v15 = vld [vmem:[%s8469_s5 + $0x10] sm:$0xff]  ;;  %v5919_v34 = vld [vmem:[%s8469_s5 + $0x8] sm:$0xff] }
 0x15b   : > { %3928 = vrot.lane.b32.xlu0 %v3625_v35, %s6096_s21  ;;  %3173 = vrot.lane.b32.xlu2 %v3073_v41, %s6094_s15  ;;  %v2158_v45 = vpop.permute.xlu1 %2157  ;;  %v4043_v35 = vld [vmem:[#allocation2 + $0x1c] sm:$0xf]  ;;  %v2527_v41 = vrot.slane %v2525_v32, 5  ;;  %v3640_v32 = vshrl.u32 %v7245_v13, 16 }
 0x15c   : > { %2243 = vst.msk [vmem:[#allocation3 + $0x84] sm:$0xf] %vm2231_vm15, %v2158_v45  ;;  %v4140_v42 = vrot.slane %v4043_v35, 5  ;;  %4815 = vmatpush.bf16.msra.mxu0 %v5921_v51  ;;  %6019 = vmatpush.bf16.msra.mxu3 %v5921_v51  ;;  %v2545_v35 = vrot.slane %v2543_v43, 4  ;;  %v7395_v43 = vld [vmem:[%s8469_s5 + $0x48] sm:$0xff] }
 0x15d   : > { %v2174_v11 = vpop.permute.xlu0 %2173  ;;  %v2178_v47 = vpop.permute.xlu2 %2177 }
 0x15e   : > { %2251 = vst.msk [vmem:[#allocation3 + $0xe4] sm:$0xf] %vm2231_vm15, %v2174_v11  ;;  %v2523_v11 = vrot.slane %v2522_v0, 4  ;;  %v4142_v44 = vrot.slane %v4140_v42, 4  ;;  %v4141_v48 = vsel %vm6889_vm13, %v5567_v23, %v4140_v42  ;;  %v3298_v0 = vld [vmem:[#allocation2 + $0x48] sm:$0xf]  ;;  %v2546_v13 = vor.u32 %v2545_v35, %v2541_v27 }
 0x15f   : > { %2253 = vst.msk [vmem:[#allocation3 + $0xfc] sm:$0xf] %vm2231_vm15, %v2178_v47  ;;  %v5935_v47 = vld [vmem:[%s8469_s5 + $0x88] sm:$0xff]  ;;  %v7412_v35 = vld [vmem:[#allocation2 + $0x58] sm:$0xf] }
 0x160   : > { %v2528_v8 = vsel %vm6249_vm8, %v2523_v11, %v2527_v41  ;;  %v4144_v56 = vsel %vm6889_vm13, %v4142_v44, %v4143_v12  ;;  %4282 = vst.msk [vmem:[#allocation3 + $0x8] sm:$0xf] %vm510_vm0, %v4141_v48  ;;  %4995 = vmatpush.bf16.msra.mxu2 %v5935_v47  ;;  %4816 = vmatpush.bf16.msra.mxu0 %v5920_v15  ;;  %v2547_v51 = vrot.slane %v2546_v13, 4  ;;  %v5918_v47 = vld [vmem:[%s8469_s5] sm:$0xff]  ;;  %v7366_v48 = vld [vmem:[%s8469_s5 + $0x50] sm:$0xff] }
 0x161   : > { %3366 = vrot.lane.b32.xlu1 %v3296_v36, %s6095_s20  ;;  %2922 = vst.msk [vmem:[#allocation3 + $0x10] sm:$0xf] %vm510_vm0, %v2528_v8  ;;  %v2291_v36 = vld [vmem:[#allocation2 + $0xac] sm:$0xf]  ;;  %6020 = vmatpush.bf16.msra.mxu3 %v5920_v15  ;;  %v3642_v8 = vrot.slane %v3640_v32, 4 }
 0x162   : > { %4283 = vst.msk [vmem:[#allocation3 + $0x14] sm:$0xf] %vm510_vm0, %v4144_v56  ;;  %v7369_v56 = vld [vmem:[%s6216_s10 + $0x78] sm:$0xff]   ;;  %s506_s10 = scalar_lea.vmem %s8472_s8, %s8488_s26 }
 0x163   : > { %3177 = vrot.lane.b32.xlu0 %v3080_v33, %s6094_s15  ;;  %3368 = vrot.lane.b32.xlu2 %v3297_v28, %s6095_s20  ;;  %v2164_v7 = vpop.permute.xlu1 %2163  ;;  %v7301_v33 = vld [vmem:[%s8469_s5 + $0x68] sm:$0xff]  ;;  %v2126_v28 = vrot.slane %v1968_v46, 5  ;;  %v3496_v46 = vld [vmem:[#allocation2 + $0x50] sm:$0x1]  ;;  %v5999_v21 = vunpack.c.h.bf16 %v7369_v56 }
 0x164   : > { %2246 = vst.msk [vmem:[#allocation3 + $0xa8] sm:$0xf] %vm2231_vm15, %v2164_v7  ;;  %4902 = vmatpush.bf16.msra.mxu1 %v7301_v33  ;;  %v7330_v7 = vld [vmem:[#allocation2 + $0x48] sm:$0xe]  ;;  %4996 = vmatpush.bf16.msra.mxu2 %v5934_v50 }
 0x165   : > { %v2180_v17 = vpop.permute.xlu0 %2179  ;;  %v2184_v63 = vpop.permute.xlu2 %2183  ;;  %v2127_v30 = vsel %vm6889_vm13, %v2125_v49, %v2126_v28  ;;  %4817 = vmatpush.bf16.msra.mxu0 %v5919_v34  ;;  %v5556_v11 = vrot.slane %v7330_v7, 9  ;;  %6021 = vmatpush.bf16.msra.mxu3 %v5919_v34  ;;  %v4047_v49 = vld [vmem:[#allocation2 + $0x2c] sm:$0x1]  ;;  %v5998_v28 = vunpack.c.l.bf16 %v7369_v56  ;;  %v1966_v34 = vld [vmem:[#allocation2 + $0xa8] sm:$0xe] }
 0x166   : > { %2254 = vst.msk [vmem:[#allocation3 + $0x108] sm:$0xf] %vm2231_vm15, %v2180_v17  ;;  %v2460_v17 = vld [vmem:[#allocation2 + $0x18] sm:$0xf]  ;;  %v5549_v13 = vrot.slane %v1966_v34, 9 }
 0x167   : > { %2256 = vst.msk [vmem:[#allocation3 + $0x120] sm:$0xf] %vm2231_vm15, %v2184_v63  ;;  %v2530_v38 = vshrl.u32 %v2460_v17, 16  ;;  %v2533_v55 = vshll.u32 %v2460_v17, 16  ;;  %v2462_v63 = vld [vmem:[#allocation2 + $0x20] sm:$0x1] }
 0x168   : > { %4903 = vmatpush.bf16.msra.mxu1 %v7326_v61  ;;  %v5593_v42 = vld [vmem:[#allocation3 + $0x8] sm:$0xf] }
 0x169   : > { %2342 = vrot.lane.b32.xlu1 %v2271_v22, %s6096_s21  ;;  %v2532_v22 = vrot.slane %v2530_v38, 4  ;;  %v2535_v54 = vrot.slane %v2533_v55, 5  ;;  %v5872_v37 = vld [vmem:[#allocation3 + $0x10] sm:$0xf0]  ;;  %4818 = vmatpush.bf16.msra.mxu0 %v5918_v47  ;;  %v4150_v55 = vrot.slane %v4047_v49, 5 }
 0x16a   : > { %v5594_v12 = vor.u32 %v5872_v37, %v5593_v42  ;;  %6022 = vmatpush.bf16.msra.mxu3 %v5918_v47 }
 0x16b   : > { %3372 = vrot.lane.b32.xlu0 %v3299_v6, %s6095_s20  ;;  %3926 = vrot.lane.b32.xlu2 %v3615_v14, %s6096_s21  ;;  %v2170_v19 = vpop.permute.xlu1 %2169  ;;  %v7332_v6 = vld [vmem:[#allocation2 + $0x4c] sm:$0xf]  ;;  %v2549_v14 = vshll.u32 %v2462_v63, 16  ;;  %v2536_v41 = vor.u32 %v2535_v54, %v2532_v22  ;;  %v2273_v22 = vld [vmem:[#allocation2 + $0x40] sm:$0xf] }
 0x16c   : > { %2249 = vst.msk [vmem:[#allocation3 + $0xcc] sm:$0xf] %vm2231_vm15, %v2170_v19  ;;  %v3497_v19 = vld [vmem:[#allocation2 + $0x54] sm:$0xf]  ;;  %v3086_v23 = vrot.slane %v7332_v6, 5  ;;  %5847 = vmatmul.msk.bf16.vlgmr.msra.gmra.mxu2 %vm4762_vm2, %v5594_v12 }
 0x16d   : > { %v2186_v26 = vpop.permute.xlu0 %2185  ;;  %v2190_v45 = vpop.permute.xlu2 %2189  ;;  %v2551_v31 = vrot.slane %v2549_v14, 5  ;;  %v2537_v44 = vrot.slane %v2536_v41, 4  ;;  %v3651_v39 = vshrl.u32 %v3497_v19, 16  ;;  %v7404_v54 = vld [vmem:[%s8468_s4] ss:$0 sm:$0xff] }
 0x16e   : > { %2257 = vst.msk [vmem:[#allocation3 + $0x12c] sm:$0xf] %vm2231_vm15, %v2186_v26  ;;  %v7349_v26 = vld [vmem:[%s8469_s5 + $0x58] sm:$0xff]  ;;  %v3087_v58 = vsel %vm6889_vm13, %v5556_v11, %v3086_v23  ;;  %6023 = vmatpush.bf16.msrb.mxu3 %v7263_v40  ;;  %v3660_v11 = vshll.u32 %v7412_v35, 16 }
 0x16f   : > { %2259 = vst.msk [vmem:[#allocation3 + $0x144] sm:$0xf] %vm2231_vm15, %v2190_v45  ;;  %4904 = vmatpush.bf16.msra.mxu1 %v7349_v26  ;;  %v2552_v59 = vsel %vm6249_vm8, %v2547_v51, %v2551_v31  ;;  %v3653_v32 = vrot.slane %v3651_v39, 4 }
 0x170   : > { %2924 = vst.msk [vmem:[#allocation3 + $0x28] sm:$0xf] %vm510_vm0, %v2552_v59  ;;  %v4049_v59 = vld [vmem:[#allocation2 + $0x34] sm:$0xf] }
 0x171   : > { %2380 = vrot.lane.b32.xlu1 %v2290_v25, %s6096_s21  ;;  %v2542_v25 = vsel %vm6249_vm8, %v2537_v44, %v2541_v27  ;;  %v3301_v44 = vld [vmem:[#allocation2 + $0x58] sm:$0xf] }
 0x172   : > { %2923 = vst.msk [vmem:[#allocation3 + $0x1c] sm:$0xf] %vm510_vm0, %v2542_v25  ;;  %6024 = vmatpush.bf16.msrb.mxu3 %v7282_v4  ;;  %v2124_v4 = vsel %vm6889_vm13, %v5549_v13, %v2123_v18  ;;  %v7439_v25 = vrot.slane %v3660_v11, 5 }
 0x173   : > { %3930 = vrot.lane.b32.xlu0 %v3639_v29, %s6096_s21  ;;  %2382 = vrot.lane.b32.xlu2 %v2291_v36, %s6096_s21  ;;  %v2176_v16 = vpop.permute.xlu1 %2175  ;;  %v4046_v29 = vld [vmem:[#allocation2 + $0x28] sm:$0xf]  ;;  %v4045_v36 = vld [vmem:[#allocation2 + $0x24] sm:$0xe] }
 0x174   : > { %2252 = vst.msk [vmem:[#allocation3 + $0xf0] sm:$0xf] %vm2231_vm15, %v2176_v16  ;;  %v5568_v15 = vrot.slane %v4045_v36, 9  ;;  %v4147_v17 = vrot.slane %v4046_v29, 5  ;;  %4905 = vmatpush.bf16.msra.mxu1 %v7366_v48  ;;  %v7388_v16 = vld [vmem:[%s8467_s3] ss:$0 sm:$0xff] }
 0x175   : > { %v3162_v53 = vpop.permute.xlu0 %3161  ;;  %v3355_v9 = vpop.permute.xlu2 %3354  ;;  %v663_v7 = vmul.f32 %v7388_v16, %v5998_v28 }
 0x176   : > { %3257 = vst.msk [vmem:[#allocation3 + $0x4] sm:$0xf] %vm1891_vm14, %v3162_v53  ;;  %v3654_v53 = vshll.u32 %v3497_v19, 16  ;;  %v4148_v63 = vsel %vm6889_vm13, %v5568_v15, %v4147_v17  ;;  %v4149_v50 = vrot.slane %v4147_v17, 4  ;;  %6025 = vmatpush.bf16.msrb.mxu3 %v7301_v33  ;;  %v2465_v33 = vld [vmem:[#allocation2 + $0x2c] sm:$0x1] }
 0x177   : > { %3450 = vst.msk [vmem:[#allocation3 + $0x4] sm:$0xf] %vm2231_vm15, %v3355_v9  ;;  %v3646_v9 = vshll.u32 %v3496_v46, 16  ;;  %v698_v14 = vadd.f32 %v7404_v54, %v663_v7  ;;  %v7429_v46 = vld [vmem:[#allocation2 + $0xb8] sm:$0xf]  ;;  %v4154_v7 = vrot.slane %v4049_v59, 5 }
 0x178   : > { %v3656_v27 = vrot.slane %v3654_v53, 5  ;;  %4284 = vst.msk [vmem:[#allocation3 + $0x20] sm:$0xf] %vm510_vm0, %v4148_v63  ;;  %4906 = vmatpush.bf16.msra.mxu1 %v7395_v43  ;;  %v2130_v28 = vrot.slane %v7429_v46, 5  ;;  %v2464_v53 = vld [vmem:[#allocation2 + $0x28] sm:$0xf] }
 0x179   : > { %3179 = vrot.lane.b32.xlu1 %v3083_v10, %s6094_s15  ;;  %v730_v10 = vmax.f32 %v698_v14, 0.0  ;;  %v3648_v42 = vrot.slane %v3646_v9, 5  ;;  %v1198_v17 = vld [vmem:[#allocation2 + $0xc0] sm:$0xf]  ;;  %v1971_v63 = vld [vmem:[#allocation2 + $0xbc] sm:$0x1] }
 0x17a   : > { %v3657_v19 = vor.u32 %v3656_v27, %v3653_v32  ;;  %v4050_v9 = vld [vmem:[#allocation2 + $0x38] sm:$0x1]  ;;  %6026 = vmatpush.bf16.msrb.mxu3 %v7326_v61  ;;  %v2292_v14 = vld [vmem:[#allocation2 + $0xb4] sm:$0xf]  ;;  %v4156_v11 = vrot.slane %v4154_v7, 4 }
 0x17b   : > { %2193 = vrot.lane.b32.xlu0 %v2127_v30, %s6095_s20  ;;  %3370 = vrot.lane.b32.xlu2 %v3298_v0, %s6095_s20  ;;  %v2182_v52 = vpop.permute.xlu1 %2181  ;;  %v3643_v30 = vor.u32 %v3642_v8, %v7271_v20  ;;  %v4151_v20 = vsel %vm6889_vm13, %v4149_v50, %v4150_v55  ;;  %v7420_v0 = vld [vmem:[%s8469_s5 + $0x40] sm:$0xff]  ;;  %v762_v31 = vpack.c.bf16 %v730_v10, %v730_v10  ;;  %v2573_v55 = vshll.u32 %v2465_v33, 16  ;;  %v2971_v59 = vld [vmem:[#allocation2 + $0x54] sm:$0xe] }
 0x17c   : > { %2255 = vst.msk [vmem:[#allocation3 + $0x114] sm:$0xf] %vm2231_vm15, %v2182_v52  ;;  %4907 = vmatpush.bf16.msra.mxu1 %v7420_v0  ;;  %v3658_v47 = vrot.slane %v3657_v19, 4  ;;  %v2463_v50 = vld [vmem:[#allocation2 + $0x24] sm:$0xf]  ;;  %v2132_v19 = vrot.slane %v2130_v28, 4 }
 0x17d   : > { %v7358_v45 = vpop.permute.xlu0 %3356  ;;  %v2331_v38 = vpop.permute.xlu2 %2330  ;;  %4285 = vst.msk [vmem:[#allocation3 + $0x2c] sm:$0xf] %vm510_vm0, %v4151_v20  ;;  %v3644_v41 = vrot.slane %v3643_v30, 4  ;;  %v1023_v29 = vshrl.u32 %v762_v31, 16  ;;  %v1026_v49 = vshll.u32 %v762_v31, 16  ;;  %v2554_v10 = vshrl.u32 %v2463_v50, 16 }
 0x17e   : > { %2426 = vst.msk [vmem:[#allocation3 + $0xc] sm:$0xf] %vm2424_vm3, %v2331_v38  ;;  %v2567_v38 = vshrl.u32 %v2464_v53, 16  ;;  %v3663_v56 = vsel %vm6249_vm8, %v3658_v47, %v7439_v25  ;;  %v4048_v30 = vld [vmem:[#allocation2 + $0x30] sm:$0xe]  ;;  %v2557_v31 = vshll.u32 %v2463_v50, 16  ;;  %6027 = vmatpush.bf16.msrb.mxu3 %v7349_v26 }
 0x17f   : > { %v3649_v8 = vsel %vm6249_vm8, %v3644_v41, %v3648_v42  ;;  %v5605_v51 = vld [vmem:[#allocation3 + $0x20] sm:$0xf]  ;;  %v7441_v36 = vrot.slane %v1023_v29, 7  ;;  %v2575_v42 = vrot.slane %v2573_v55, 5  ;;  %v2556_v13 = vrot.slane %v2554_v10, 4 }
 0x180   : > { %v2569_v27 = vrot.slane %v2567_v38, 4  ;;  %v2293_v41 = vld [vmem:[#allocation2 + $0xb8] sm:$0xf]  ;;  %v2559_v29 = vrot.slane %v2557_v31, 5  ;;  %v3499_v55 = vld [vmem:[#allocation2 + $0x5c] sm:$0x1] }
 0x181   : > { %2344 = vrot.lane.b32.xlu1 %v2272_v62, %s6096_s21  ;;  %v1028_v15 = vor.u32 %v1026_v49, %v7441_v36 }
 0x182   : > { %v2560_v49 = vor.u32 %v2559_v29, %v2556_v13  ;;  %6028 = vmatpush.bf16.msrb.mxu3 %v7366_v48 }
 0x183   : > { %3181 = vrot.lane.b32.xlu0 %v3087_v58, %s6094_s15  ;;  %2346 = vrot.lane.b32.xlu2 %v2273_v22, %s6096_s21  ;;  %v2188_v37 = vpop.permute.xlu1 %2187  ;;  %v2563_v58 = vshll.u32 %v2464_v53, 16  ;;  %v664_v22 = vmul.f32 %v7388_v16, %v5999_v21  ;;  %v1199_v20 = vsel %vm6294_vm10, %v1028_v15, %v1198_v17  ;;  %v7486_v21 = vld [vmem:[#allocation2 + $0x58] sm:$0xf]  ;;  %v3300_v17 = vld [vmem:[#allocation2 + $0x54] sm:$0xf] }
 0x184   : > { %2258 = vst.msk [vmem:[#allocation3 + $0x138] sm:$0xf] %vm2231_vm15, %v2188_v37  ;;  %v5875_v39 = vld [vmem:[#allocation3 + $0x28] sm:$0xf0]  ;;  %v5569_v37 = vrot.slane %v4048_v30, 9  ;;  %v3093_v38 = vrot.slane %v7486_v21, 5 }
 0x185   : > { %v3915_v40 = vpop.permute.xlu0 %3914  ;;  %v3166_v12 = vpop.permute.xlu2 %3165  ;;  %v5606_v52 = vor.u32 %v5875_v39, %v5605_v51  ;;  %v2565_v32 = vrot.slane %v2563_v58, 5  ;;  %v699_v16 = vadd.f32 %v7404_v54, %v664_v22  ;;  %1200 = vst [vmem:[#allocation2 + $0xc0] sm:$0xf] %v1199_v20  ;;  %v5557_v58 = vrot.slane %v2971_v59, 9  ;;  %v5871_v50 = vld [vmem:[#allocation3 + $0x8] sm:$0xf0] }
 0x186   : > { %4010 = vst.msk [vmem:[#allocation3 + $0x4] sm:$0xf] %vm2424_vm3, %v3915_v40  ;;  %v2970_v40 = vld [vmem:[#allocation2 + $0x50] sm:$0x1]  ;;  %v4155_v54 = vsel %vm6889_vm13, %v5569_v37, %v4154_v7  ;;  %6029 = vmatpush.bf16.msrb.mxu3 %v7395_v43  ;;  %v3500_v7 = vld [vmem:[#allocation2 + $0x60] sm:$0xf] }
 0x187   : > { %3259 = vst.msk [vmem:[#allocation3 + $0x1c] sm:$0xf] %vm1891_vm14, %v3166_v12  ;;  %5848 = vmatmul.msk.bf16.gmra.mxu2 %vm4762_vm2, %v5606_v52  ;;  %v2570_v61 = vor.u32 %v2569_v27, %v2565_v32  ;;  %v731_v47 = vmax.f32 %v699_v16, 0.0  ;;  %v3089_v39 = vrot.slane %v2970_v40, 5  ;;  %v4051_v43 = vld [vmem:[#allocation2 + $0x3c] sm:$0xe]  ;;  %v3094_v20 = vsel %vm6889_vm13, %v5557_v58, %v3093_v38 }
 0x188   : > { %4286 = vst.msk [vmem:[#allocation3 + $0x38] sm:$0xf] %vm510_vm0, %v4155_v54  ;;  %v3675_v40 = vshrl.u32 %v3500_v7, 16  ;;  %v5570_v31 = vrot.slane %v4051_v43, 9  ;;  %v3670_v37 = vshll.u32 %v3499_v55, 16 }
 0x189   : > { %3932 = vrot.lane.b32.xlu1 %v3649_v8, %s6096_s21  ;;  %v2571_v12 = vrot.slane %v2570_v61, 4  ;;  %v3664_v8 = vshrl.u32 %v7412_v35, 16  ;;  %v763_v53 = vpack.c.bf16 %v731_v47, %v731_v47  ;;  %v3678_v61 = vshll.u32 %v3500_v7, 16  ;;  %v2275_v54 = vld [vmem:[#allocation2 + $0x4c] sm:$0xf] }
 0x18a   : > { %6030 = vmatpush.bf16.msrb.mxu3 %v7420_v0  ;;  %v3672_v2 = vrot.slane %v3670_v37, 5  ;;  %v3303_v7 = vld [vmem:[#allocation2 + $0x64] sm:$0xf] }
 0x18b   : > { %3376 = vrot.lane.b32.xlu0 %v3301_v44, %s6095_s20  ;;  %2191 = vrot.lane.b32.xlu2 %v2124_v4, %s6095_s20  ;;  %v3164_v62 = vpop.permute.xlu1 %3163  ;;  %v4157_v44 = vrot.slane %v4050_v9, 5  ;;  %v3088_v4 = vrot.slane %v3086_v23, 4  ;;  %v2576_v26 = vsel %vm6249_vm8, %v2571_v12, %v2575_v42  ;;  %v3666_v15 = vrot.slane %v3664_v8, 4 }
 0x18c   : > { %3258 = vst.msk [vmem:[#allocation3 + $0x10] sm:$0xf] %vm1891_vm14, %v3164_v62  ;;  %v1031_v62 = vshrl.u32 %v763_v53, 16  ;;  %v3680_v47 = vrot.slane %v3678_v61, 5 }
 0x18d   : > { %v3168_v18 = vpop.permute.xlu0 %3167  ;;  %v3361_v34 = vpop.permute.xlu2 %3360  ;;  %3451 = vst.msk [vmem:[#allocation3 + $0x10] sm:$0xf] %vm2231_vm15, %v7358_v45  ;;  %v2133_v45 = vrot.slane %v1971_v63, 5  ;;  %v4158_v52 = vsel %vm6889_vm13, %v4156_v11, %v4157_v44  ;;  %v3090_v33 = vsel %vm6889_vm13, %v3088_v4, %v3089_v39  ;;  %v4052_v63 = vld [vmem:[#allocation2 + $0x40] sm:$0xf]  ;;  %v3667_v10 = vor.u32 %v3666_v15, %v7439_v25 }
 0x18e   : > { %3260 = vst.msk [vmem:[#allocation3 + $0x28] sm:$0xf] %vm1891_vm14, %v3168_v18  ;;  %v2561_v18 = vrot.slane %v2560_v49, 4  ;;  %v4161_v22 = vrot.slane %v4052_v63, 5  ;;  %v2274_v25 = vld [vmem:[#allocation2 + $0x48] sm:$0xf] }
 0x18f   : > { %3453 = vst.msk [vmem:[#allocation3 + $0x28] sm:$0xf] %vm2231_vm15, %v3361_v34  ;;  %v2134_v6 = vsel %vm6889_vm13, %v2132_v19, %v2133_v45  ;;  %v5617_v9 = vld [vmem:[#allocation3 + $0x38] sm:$0xf]  ;;  %v7501_v34 = vrot.slane %v1031_v62, 7  ;;  %v3668_v29 = vrot.slane %v3667_v10, 4 }
 0x190   : > { %2926 = vst.msk [vmem:[#allocation3 + $0x40] sm:$0xf] %vm510_vm0, %v2576_v26  ;;  %v2566_v48 = vsel %vm6249_vm8, %v2561_v18, %v2565_v32  ;;  %v4163_v11 = vrot.slane %v4161_v22, 4  ;;  %v7512_v44 = vld [vmem:[#allocation2 + $0x64] sm:$0xf]  ;;  %v4162_v45 = vsel %vm6889_vm13, %v5570_v31, %v4161_v22 }
 0x191   : > { %2384 = vrot.lane.b32.xlu1 %v2292_v14, %s6096_s21  ;;  %4287 = vst.msk [vmem:[#allocation3 + $0x44] sm:$0xf] %vm510_vm0, %v4158_v52  ;;  %v1029_v14 = vrot.slane %v7441_v36, 4  ;;  %v5870_v12 = vld [vmem:[#allocation3 + $0x4] sm:$0xf]  ;;  %v3684_v26 = vshll.u32 %v7512_v44, 16  ;;  %v3673_v22 = vsel %vm6249_vm8, %v3668_v29, %v3672_v2 }
 0x192   : > { %2925 = vst.msk [vmem:[#allocation3 + $0x34] sm:$0xf] %vm510_vm0, %v2566_v48  ;;  %v1969_v4 = vld [vmem:[#allocation2 + $0xb4] sm:$0xe]  ;;  %v2466_v49 = vld [vmem:[#allocation2 + $0x30] sm:$0xf] }
 0x193   : > { %3934 = vrot.lane.b32.xlu0 %v3663_v56, %s6096_s21  ;;  %2386 = vrot.lane.b32.xlu2 %v2293_v41, %s6096_s21  ;;  %v2329_v35 = vpop.permute.xlu1 %2328  ;;  %v1034_v56 = vshll.u32 %v763_v53, 16  ;;  %v4053_v41 = vld [vmem:[#allocation2 + $0x44] sm:$0x1]  ;;  %4288 = vst.msk [vmem:[#allocation3 + $0x50] sm:$0xf] %vm510_vm0, %v4162_v45  ;;  %v2578_v59 = vshrl.u32 %v2466_v49, 16 }
 0x194   : > { %2425 = vst.msk [vmem:[#allocation3] sm:$0xf] %vm2424_vm3, %v2329_v35  ;;  %v4164_v8 = vrot.slane %v4053_v41, 5  ;;  %v2467_v52 = vld [vmem:[#allocation2 + $0x34] sm:$0xf] }
 0x195   : > { %v2333_v51 = vpop.permute.xlu0 %2332  ;;  %v7484_v23 = vpop.permute.xlu2 %3918  ;;  %v1036_v13 = vor.u32 %v1034_v56, %v7501_v34  ;;  %v2587_v18 = vshll.u32 %v2467_v52, 16  ;;  %v2591_v53 = vshrl.u32 %v2467_v52, 16  ;;  %v2580_v63 = vrot.slane %v2578_v59, 4  ;;  %v4054_v45 = vld [vmem:[#allocation2 + $0x48] sm:$0xe] }
 0x196   : > { %2427 = vst.msk [vmem:[#allocation3 + $0x18] sm:$0xf] %vm2424_vm3, %v2333_v51  ;;  %v3677_v51 = vrot.slane %v3675_v40, 4  ;;  %v4165_v35 = vsel %vm6889_vm13, %v4163_v11, %v4164_v8  ;;  %v7543_v40 = vld [vmem:[#allocation2 + $0xa0] sm:$0xf]  ;;  %v5571_v52 = vrot.slane %v4054_v45, 9 }
 0x197   : > { %v1037_v0 = vsel %vm6168_vm4, %v1029_v14, %v1036_v13  ;;  %4289 = vst.msk [vmem:[#allocation3 + $0x5c] sm:$0xf] %vm510_vm0, %v4165_v35  ;;  %v3135_v37 = vrot.slane %v7543_v40, 5  ;;  %v2294_v29 = vld [vmem:[#allocation2 + $0xc0] sm:$0xf] }
 0x198   : > { %v5878_v16 = vld [vmem:[#allocation3 + $0x40] sm:$0xf0]  ;;  %1201 = vst.msk [vmem:[#allocation2 + $0xc4] sm:$0xf] %vm510_vm0, %v1037_v0  ;;  %v3681_v56 = vor.u32 %v3680_v47, %v3677_v51  ;;  %v2991_v8 = vld [vmem:[#allocation2 + $0xa4] sm:$0x1] }
 0x199   : > { %3183 = vrot.lane.b32.xlu1 %v3090_v33, %s6094_s15  ;;  %v5618_v19 = vor.u32 %v5878_v16, %v5617_v9  ;;  %v2468_v33 = vld [vmem:[#allocation2 + $0x38] sm:$0x1]  ;;  %v2593_v9 = vrot.slane %v2591_v53, 4  ;;  %v3137_v59 = vrot.slane %v3135_v37, 4  ;;  %v2278_v40 = vld [vmem:[#allocation2 + $0x60] sm:$0xf] }
 0x19a   : > { %v2597_v58 = vshll.u32 %v2468_v33, 16  ;;  %v3682_v10 = vrot.slane %v3681_v56, 4 }
 0x19b   : > { %2197 = vrot.lane.b32.xlu0 %v2134_v6, %s6095_s20  ;;  %3374 = vrot.lane.b32.xlu2 %v3300_v17, %s6095_s20  ;;  %v3917_v32 = vpop.permute.xlu1 %3916  ;;  %v5585_v27 = vld [vmem:[#allocation3] sm:$0xf]  ;;  %v2581_v6 = vshll.u32 %v2466_v49, 16  ;;  %v5550_v17 = vrot.slane %v1969_v4, 9  ;;  %v4056_v49 = vld [vmem:[#allocation2 + $0x50] sm:$0x1] }
 0x19c   : > { %4011 = vst.msk [vmem:[#allocation3 + $0x10] sm:$0xf] %vm2424_vm3, %v3917_v32  ;;  %v5586_v42 = vor.u32 %v5871_v50, %v5585_v27  ;;  %5849 = vmatmul.msk.bf16.gmra.mxu2 %vm4762_vm2, %v5618_v19  ;;  %v7541_v32 = vrot.slane %v3684_v26, 5  ;;  %v4171_v53 = vrot.slane %v4056_v49, 5 }
 0x19d   : > { %v3921_v30 = vpop.permute.xlu0 %3920  ;;  %v3172_v36 = vpop.permute.xlu2 %3171  ;;  %v2583_v50 = vrot.slane %v2581_v6, 5  ;;  %v2131_v43 = vsel %vm6889_vm13, %v5550_v17, %v2130_v28  ;;  %v3138_v6 = vrot.slane %v2991_v8, 5  ;;  %v5597_v33 = vld [vmem:[#allocation3 + $0x18] sm:$0xf] }
 0x19e   : > { %4013 = vst.msk [vmem:[#allocation3 + $0x28] sm:$0xf] %vm2424_vm3, %v3921_v30  ;;  %4819 = vmatmul.bf16.vlgmr.msra.gmra.mxu0 %v5586_v42  ;;  %v2589_v30 = vrot.slane %v2587_v18, 5  ;;  %v5629_v42 = vld [vmem:[#allocation3 + $0x50] sm:$0xf] }
 0x19f   : > { %3262 = vst.msk [vmem:[#allocation3 + $0x40] sm:$0xf] %vm1891_vm14, %v3172_v36  ;;  %v2584_v14 = vor.u32 %v2583_v50, %v2580_v63  ;;  %v5881_v28 = vld [vmem:[#allocation3 + $0x58] sm:$0xf0]  ;;  %v2295_v51 = vld [vmem:[#allocation2 + $0xc4] sm:$0xf] }
 0x1a0   : > { %v2594_v27 = vor.u32 %v2593_v9, %v2589_v30  ;;  %v5630_v11 = vor.u32 %v5881_v28, %v5629_v42  ;;  %v7565_v18 = vld [vmem:[#allocation2 + $0xac] sm:$0xf]  ;;  %v3139_v9 = vsel %vm6889_vm13, %v3137_v59, %v3138_v6  ;;  %v4058_v42 = vld [vmem:[#allocation2 + $0x58] sm:$0xf] }
 0x1a1   : > { %2348 = vrot.lane.b32.xlu1 %v2274_v25, %s6096_s21  ;;  %v2585_v41 = vrot.slane %v2584_v14, 4  ;;  %v3687_v25 = vsel %vm6249_vm8, %v3682_v10, %v7541_v32  ;;  %v3828_v50 = vshll.u32 %v7565_v18, 16  ;;  %v4175_v8 = vrot.slane %v4058_v42, 5 }
 0x1a2   : > { %v2595_v16 = vrot.slane %v2594_v27, 4 }
 0x1a3   : > { %3185 = vrot.lane.b32.xlu0 %v3094_v20, %s6094_s15  ;;  %2350 = vrot.lane.b32.xlu2 %v2275_v54, %s6096_s21  ;;  %v3359_v15 = vpop.permute.xlu1 %3358  ;;  %v5587_v48 = vld [vmem:[#allocation3 + $0xc] sm:$0xf0]  ;;  %v2590_v46 = vsel %vm6249_vm8, %v2585_v41, %v2589_v30  ;;  %v2973_v54 = vld [vmem:[#allocation2 + $0x5c] sm:$0x1]  ;;  %v2470_v41 = vld [vmem:[#allocation2 + $0x40] sm:$0xf] }
 0x1a4   : > { %3452 = vst.msk [vmem:[#allocation3 + $0x1c] sm:$0xf] %vm2231_vm15, %v3359_v15  ;;  %v5590_v55 = vor.u32 %v5870_v12, %v5587_v48  ;;  %v3518_v20 = vld [vmem:[#allocation2 + $0xa8] sm:$0xf]  ;;  %v4055_v12 = vld [vmem:[#allocation2 + $0x4c] sm:$0xf] }
 0x1a5   : > { %v7523_v39 = vpop.permute.xlu0 %3362  ;;  %v2337_v62 = vpop.permute.xlu2 %2336  ;;  %4012 = vst.msk [vmem:[#allocation3 + $0x1c] sm:$0xf] %vm2424_vm3, %v7484_v23  ;;  %v2599_v23 = vrot.slane %v2597_v58, 5  ;;  %v3819_v61 = vshrl.u32 %v3518_v20, 16  ;;  %v3822_v13 = vshll.u32 %v3518_v20, 16  ;;  %v4168_v35 = vrot.slane %v4055_v12, 5 }
 0x1a6   : > { %4908 = vmatmul.bf16.vlgmr.msra.gmra.mxu1 %v5590_v55  ;;  %2429 = vst.msk [vmem:[#allocation3 + $0x30] sm:$0xf] %vm2424_vm3, %v2337_v62  ;;  %v5599_v4 = vld [vmem:[#allocation3 + $0x24] sm:$0xf0]  ;;  %v3095_v55 = vrot.slane %v3093_v38, 4 }
 0x1a7   : > { %2927 = vst.msk [vmem:[#allocation3 + $0x4c] sm:$0xf] %vm510_vm0, %v2590_v46  ;;  %v2600_v19 = vsel %vm6249_vm8, %v2595_v16, %v2599_v23  ;;  %v3821_v47 = vrot.slane %v3819_v61, 4  ;;  %v3824_v2 = vrot.slane %v3822_v13, 5  ;;  %v4169_v48 = vsel %vm6889_vm13, %v5571_v52, %v4168_v35  ;;  %v7590_v20 = vld [vmem:[#allocation2 + $0x64] sm:$0xf] }
 0x1a8   : > { %2928 = vst.msk [vmem:[#allocation3 + $0x58] sm:$0xf] %vm510_vm0, %v2600_v19  ;;  %v4170_v17 = vrot.slane %v4168_v35, 4  ;;  %v7588_v23 = vrot.slane %v3828_v50, 5  ;;  %v3100_v16 = vrot.slane %v7590_v20, 5 }
 0x1a9   : > { %3936 = vrot.lane.b32.xlu1 %v3673_v22, %s6096_s21  ;;  %v3825_v63 = vor.u32 %v3824_v2, %v3821_v47  ;;  %4290 = vst.msk [vmem:[#allocation3 + $0x68] sm:$0xf] %vm510_vm0, %v4169_v48  ;;  %v3688_v22 = vshrl.u32 %v7512_v44, 16  ;;  %v2469_v44 = vld [vmem:[#allocation2 + $0x3c] sm:$0xf] }
 0x1aa   : > { %v4172_v38 = vsel %vm6889_vm13, %v4170_v17, %v4171_v53  ;;  %v2602_v46 = vshrl.u32 %v2469_v44, 16  ;;  %v2605_v28 = vshll.u32 %v2469_v44, 16  ;;  %v2976_v19 = vld [vmem:[#allocation2 + $0x68] sm:$0x1]  ;;  %v2277_v47 = vld [vmem:[#allocation2 + $0x58] sm:$0xf] }
 0x1ab   : > { %3380 = vrot.lane.b32.xlu0 %v3303_v7, %s6095_s20  ;;  %2195 = vrot.lane.b32.xlu2 %v2131_v43, %s6095_s20  ;;  %v2335_v31 = vpop.permute.xlu1 %2334  ;;  %v3096_v7 = vrot.slane %v2973_v54, 5  ;;  %v3302_v43 = vld [vmem:[#allocation2 + $0x60] sm:$0xf]  ;;  %v3826_v27 = vrot.slane %v3825_v63, 4  ;;  %4291 = vst.msk [vmem:[#allocation3 + $0x74] sm:$0xf] %vm510_vm0, %v4172_v38 }
 0x1ac   : > { %2428 = vst.msk [vmem:[#allocation3 + $0x24] sm:$0xf] %vm2424_vm3, %v2335_v31  ;;  %v5873_v26 = vld [vmem:[#allocation3 + $0x1c] sm:$0xf]  ;;  %5850 = vmatmul.msk.bf16.gmra.mxu2 %vm4762_vm2, %v5630_v11  ;;  %v2604_v12 = vrot.slane %v2602_v46, 4  ;;  %v2611_v54 = vshll.u32 %v2470_v41, 16 }
 0x1ad   : > { %v2339_v36 = vpop.permute.xlu0 %2338  ;;  %v7558_v0 = vpop.permute.xlu2 %3924  ;;  %v5602_v58 = vor.u32 %v5873_v26, %v5599_v4  ;;  %v3097_v14 = vsel %vm6889_vm13, %v3095_v55, %v3096_v7  ;;  %v3831_v13 = vsel %vm6249_vm8, %v3826_v27, %v7588_v23  ;;  %v5609_v4 = vld [vmem:[#allocation3 + $0x30] sm:$0xf]  ;;  %v4057_v2 = vld [vmem:[#allocation2 + $0x54] sm:$0xe]  ;;  %v3102_v49 = vrot.slane %v3100_v16, 4 }
 0x1ae   : > { %2430 = vst.msk [vmem:[#allocation3 + $0x3c] sm:$0xf] %vm2424_vm3, %v2339_v36  ;;  %v3690_v36 = vrot.slane %v3688_v22, 4  ;;  %v5572_v59 = vrot.slane %v4057_v2, 9  ;;  %v3103_v6 = vrot.slane %v2976_v19, 5  ;;  %v2613_v17 = vrot.slane %v2611_v54, 5 }
 0x1af   : > { %v4059_v55 = vld [vmem:[#allocation2 + $0x5c] sm:$0x1]  ;;  %v3832_v44 = vshrl.u32 %v7565_v18, 16  ;;  %v2472_v20 = vld [vmem:[#allocation2 + $0x48] sm:$0xf] }
 0x1b0   : > { %v5641_v11 = vld [vmem:[#allocation3 + $0x68] sm:$0xf]  ;;  %v3691_v26 = vor.u32 %v3690_v36, %v7541_v32  ;;  %v4176_v32 = vsel %vm6889_vm13, %v5572_v59, %v4175_v8  ;;  %v3314_v59 = vld [vmem:[#allocation2 + $0xa8] sm:$0xf] }
 0x1b1   : > { %2388 = vrot.lane.b32.xlu1 %v2294_v29, %s6096_s21  ;;  %v2607_v29 = vrot.slane %v2605_v28, 5  ;;  %4292 = vst.msk [vmem:[#allocation3 + $0x80] sm:$0xf] %vm510_vm0, %v4176_v32  ;;  %v3505_v28 = vld [vmem:[#allocation2 + $0x74] sm:$0x1] }
 0x1b2   : > { %v5884_v52 = vld [vmem:[#allocation3 + $0x70] sm:$0xf0]  ;;  %v3692_v63 = vrot.slane %v3691_v26, 4 }
 0x1b3   : > { %3938 = vrot.lane.b32.xlu0 %v3687_v25, %s6096_s21  ;;  %2390 = vrot.lane.b32.xlu2 %v2295_v51, %s6096_s21  ;;  %v3170_v62 = vpop.permute.xlu1 %3169  ;;  %v5874_v56 = vld [vmem:[#allocation3 + $0x20] sm:$0xf0]  ;;  %v2276_v25 = vld [vmem:[#allocation2 + $0x54] sm:$0xf]  ;;  %v2608_v35 = vor.u32 %v2607_v29, %v2604_v12  ;;  %v5642_v53 = vor.u32 %v5884_v52, %v5641_v11  ;;  %v3834_v12 = vrot.slane %v3832_v44, 4  ;;  %v3718_v29 = vshll.u32 %v3505_v28, 16 }
 0x1b4   : > { %3261 = vst.msk [vmem:[#allocation3 + $0x34] sm:$0xf] %vm1891_vm14, %v3170_v62  ;;  %v5598_v30 = vor.u32 %v5874_v56, %v5597_v33  ;;  %v2989_v33 = vld [vmem:[#allocation2 + $0x9c] sm:$0xe]  ;;  %v4178_v62 = vrot.slane %v4059_v55, 5 }
 0x1b5   : > { %v2377_v15 = vpop.permute.xlu0 %2376  ;;  %v3174_v21 = vpop.permute.xlu2 %3173  ;;  %3454 = vst.msk [vmem:[#allocation3 + $0x34] sm:$0xf] %vm2231_vm15, %v7523_v39  ;;  %v3502_v39 = vld [vmem:[#allocation2 + $0x68] sm:$0x1]  ;;  %v5877_v51 = vld [vmem:[#allocation3 + $0x38] sm:$0xf0] }
 0x1b6   : > { %2449 = vst.msk [vmem:[#allocation3 + $0x120] sm:$0xf] %vm2424_vm3, %v2377_v15  ;;  %4824 = vmatmul.bf16.gmra.mxu0 %v5598_v30  ;;  %4913 = vmatmul.bf16.gmra.mxu1 %v5602_v58  ;;  %v3694_v31 = vshll.u32 %v3502_v39, 16  ;;  %v4177_v15 = vrot.slane %v4175_v8, 4  ;;  %v2609_v48 = vrot.slane %v2608_v35, 4  ;;  %v2615_v58 = vshrl.u32 %v2470_v41, 16 }
 0x1b7   : > { %3263 = vst.msk [vmem:[#allocation3 + $0x4c] sm:$0xf] %vm1891_vm14, %v3174_v21  ;;  %v5610_v56 = vor.u32 %v5877_v51, %v5609_v4  ;;  %v5563_v21 = vrot.slane %v2989_v33, 9  ;;  %v3315_v33 = vld [vmem:[#allocation2 + $0xac] sm:$0xf] }
 0x1b8   : > { %v3696_v50 = vrot.slane %v3694_v31, 5  ;;  %v2614_v30 = vsel %vm6249_vm8, %v2609_v48, %v2613_v17  ;;  %v2617_v39 = vrot.slane %v2615_v58, 4  ;;  %v2974_v48 = vld [vmem:[#allocation2 + $0x60] sm:$0xe] }
 0x1b9   : > { %3187 = vrot.lane.b32.xlu1 %v3097_v14, %s6094_s15  ;;  %2929 = vst.msk [vmem:[#allocation3 + $0x64] sm:$0xf] %vm510_vm0, %v2614_v30  ;;  %v4179_v14 = vsel %vm6889_vm13, %v4177_v15, %v4178_v62  ;;  %v3136_v46 = vsel %vm6889_vm13, %v5563_v21, %v3135_v37  ;;  %v5653_v37 = vld [vmem:[#allocation3 + $0x80] sm:$0xf]  ;;  %v5558_v30 = vrot.slane %v2974_v48, 9 }
 0x1ba   : > { %4293 = vst.msk [vmem:[#allocation3 + $0x8c] sm:$0xf] %vm510_vm0, %v4179_v14  ;;  %v3697_v41 = vsel %vm6249_vm8, %v3692_v63, %v3696_v50  ;;  %v2618_v42 = vor.u32 %v2617_v39, %v2613_v17  ;;  %v4062_v17 = vld [vmem:[#allocation2 + $0x68] sm:$0x1] }
 0x1bb   : > { %3211 = vrot.lane.b32.xlu0 %v3139_v9, %s6094_s15  ;;  %3378 = vrot.lane.b32.xlu2 %v3302_v43, %s6095_s20  ;;  %v3365_v61 = vpop.permute.xlu1 %3364  ;;  %v3104_v43 = vsel %vm6889_vm13, %v3102_v49, %v3103_v6  ;;  %v3835_v6 = vor.u32 %v3834_v12, %v7588_v23  ;;  %v4185_v32 = vrot.slane %v4062_v17, 5  ;;  %v3101_v28 = vsel %vm6889_vm13, %v5558_v30, %v3100_v16  ;;  %v3316_v16 = vld [vmem:[#allocation2 + $0xb4] sm:$0xf] }
 0x1bc   : > { %3455 = vst.msk [vmem:[#allocation3 + $0x40] sm:$0xf] %vm2231_vm15, %v3365_v61  ;;  %5851 = vmatmul.msk.bf16.gmra.mxu2 %vm4762_vm2, %v5642_v53  ;;  %v2619_v31 = vrot.slane %v2618_v42, 4 }
 0x1bd   : > { %v3176_v10 = vpop.permute.xlu0 %3175  ;;  %v3369_v45 = vpop.permute.xlu2 %3368  ;;  %4015 = vst.msk [vmem:[#allocation3 + $0x40] sm:$0xf] %vm2424_vm3, %v7558_v0  ;;  %v3504_v0 = vld [vmem:[#allocation2 + $0x70] sm:$0xf]  ;;  %v3836_v63 = vrot.slane %v3835_v6, 4 }
 0x1be   : > { %3264 = vst.msk [vmem:[#allocation3 + $0x58] sm:$0xf] %vm1891_vm14, %v3176_v10  ;;  %v3708_v38 = vshll.u32 %v3504_v0, 16  ;;  %v3712_v22 = vshrl.u32 %v3504_v0, 16  ;;  %v2471_v10 = vld [vmem:[#allocation2 + $0x44] sm:$0x1] }
 0x1bf   : > { %3457 = vst.msk [vmem:[#allocation3 + $0x58] sm:$0xf] %vm2231_vm15, %v3369_v45  ;;  %v2621_v36 = vshll.u32 %v2471_v10, 16  ;;  %v4061_v45 = vld [vmem:[#allocation2 + $0x64] sm:$0xf]  ;;  %v3720_v0 = vrot.slane %v3718_v29, 5 }
 0x1c0   : > { %v7634_v61 = vrot.slane %v3708_v38, 5  ;;  %v4182_v52 = vrot.slane %v4061_v45, 5  ;;  %v2473_v45 = vld [vmem:[#allocation2 + $0x4c] sm:$0xf] }
 0x1c1   : > { %2352 = vrot.lane.b32.xlu1 %v2276_v25, %s6096_s21  ;;  %v2623_v19 = vrot.slane %v2621_v36, 5  ;;  %v3520_v25 = vld [vmem:[#allocation2 + $0xb0] sm:$0x1]  ;;  %v5887_v49 = vld [vmem:[#allocation3 + $0x88] sm:$0xf0] }
 0x1c2   : > { %v5654_v35 = vor.u32 %v5887_v49, %v5653_v37  ;;  %v3838_v53 = vshll.u32 %v3520_v25, 16  ;;  %v4184_v55 = vrot.slane %v4182_v52, 4  ;;  %v2626_v37 = vshrl.u32 %v2472_v20, 16 }
 0x1c3   : > { %3962 = vrot.lane.b32.xlu0 %v3831_v13, %s6096_s21  ;;  %2354 = vrot.lane.b32.xlu2 %v2277_v47, %s6096_s21  ;;  %v3923_v9 = vpop.permute.xlu1 %3922  ;;  %v3714_v13 = vrot.slane %v3712_v22, 4  ;;  %v2624_v54 = vsel %vm6249_vm8, %v2619_v31, %v2623_v19  ;;  %v4060_v47 = vld [vmem:[#allocation2 + $0x60] sm:$0xe]  ;;  %v3503_v22 = vld [vmem:[#allocation2 + $0x6c] sm:$0xf] }
 0x1c4   : > { %4014 = vst.msk [vmem:[#allocation3 + $0x34] sm:$0xf] %vm2424_vm3, %v3923_v9  ;;  %v5611_v18 = vld [vmem:[#allocation3 + $0x3c] sm:$0xf0]  ;;  %v5573_v58 = vrot.slane %v4060_v47, 9  ;;  %v3840_v50 = vrot.slane %v3838_v53, 5  ;;  %v4186_v44 = vsel %vm6889_vm13, %v4184_v55, %v4185_v32 }
 0x1c5   : > { %v2341_v7 = vpop.permute.xlu0 %2340  ;;  %v7623_v27 = vpop.permute.xlu2 %3926  ;;  %v3715_v51 = vor.u32 %v3714_v13, %v7634_v61  ;;  %2930 = vst.msk [vmem:[#allocation3 + $0x70] sm:$0xf] %vm510_vm0, %v2624_v54  ;;  %v3699_v36 = vshrl.u32 %v3503_v22, 16  ;;  %v2629_v54 = vshll.u32 %v2472_v20, 16  ;;  %v4065_v47 = vld [vmem:[#allocation2 + $0x74] sm:$0x1] }
 0x1c6   : > { %2431 = vst.msk [vmem:[#allocation3 + $0x48] sm:$0xf] %vm2424_vm3, %v2341_v7  ;;  %4829 = vmatmul.bf16.gmra.mxu0 %v5610_v56  ;;  %v5729_v7 = vld [vmem:[#allocation3 + $0x120] sm:$0xf]  ;;  %v4183_v23 = vsel %vm6889_vm13, %v5573_v58, %v4182_v52  ;;  %v3841_v42 = vsel %vm6249_vm8, %v3836_v63, %v3840_v50  ;;  %v3305_v58 = vld [vmem:[#allocation2 + $0x70] sm:$0xf] }
 0x1c7   : > { %v3716_v15 = vrot.slane %v3715_v51, 4  ;;  %v3522_v56 = vld [vmem:[#allocation2 + $0xb8] sm:$0xf]  ;;  %4294 = vst.msk [vmem:[#allocation3 + $0x98] sm:$0xf] %vm510_vm0, %v4183_v23  ;;  %v3701_v12 = vrot.slane %v3699_v36, 4 }
 0x1c8   : > { %v3852_v39 = vshll.u32 %v3522_v56, 16  ;;  %v3856_v10 = vshrl.u32 %v3522_v56, 16  ;;  %4295 = vst.msk [vmem:[#allocation3 + $0xa4] sm:$0xf] %vm510_vm0, %v4186_v44  ;;  %v4063_v51 = vld [vmem:[#allocation2 + $0x6c] sm:$0xe] }
 0x1c9   : > { %3940 = vrot.lane.b32.xlu1 %v3697_v41, %s6096_s21  ;;  %v3721_v38 = vsel %vm6249_vm8, %v3716_v15, %v3720_v0  ;;  %v3523_v41 = vld [vmem:[#allocation2 + $0xbc] sm:$0x1]  ;;  %v2631_v6 = vrot.slane %v2629_v54, 5  ;;  %v3304_v0 = vld [vmem:[#allocation2 + $0x6c] sm:$0xf] }
 0x1ca   : > { %v7673_v13 = vrot.slane %v3852_v39, 5  ;;  %v3858_v31 = vrot.slane %v3856_v10, 4  ;;  %v3862_v19 = vshll.u32 %v3523_v41, 16  ;;  %v2992_v39 = vld [vmem:[#allocation2 + $0xa8] sm:$0xe] }
 0x1cb   : > { %3191 = vrot.lane.b32.xlu0 %v3104_v43, %s6094_s15  ;;  %3209 = vrot.lane.b32.xlu2 %v3136_v46, %s6094_s15  ;;  %v2379_v8 = vpop.permute.xlu1 %2378  ;;  %v5876_v4 = vld [vmem:[#allocation3 + $0x34] sm:$0xf]  ;;  %v3702_v46 = vshll.u32 %v3503_v22, 16 }
 0x1cc   : > { %2450 = vst.msk [vmem:[#allocation3 + $0x12c] sm:$0xf] %vm2424_vm3, %v2379_v8  ;;  %v5614_v2 = vor.u32 %v5876_v4, %v5611_v18  ;;  %5852 = vmatmul.msk.bf16.gmra.mxu2 %vm4762_vm2, %v5654_v35  ;;  %v4064_v18 = vld [vmem:[#allocation2 + $0x70] sm:$0xf]  ;;  %v2635_v4 = vshll.u32 %v2473_v45, 16  ;;  %v3859_v35 = vor.u32 %v3858_v31, %v7673_v13  ;;  %v3864_v23 = vrot.slane %v3862_v19, 5 }
 0x1cd   : > { %v3929_v11 = vpop.permute.xlu0 %3928  ;;  %v2383_v26 = vpop.permute.xlu2 %2382  ;;  %v3704_v29 = vrot.slane %v3702_v46, 5  ;;  %v5621_v30 = vld [vmem:[#allocation3 + $0x48] sm:$0xf]  ;;  %v3521_v46 = vld [vmem:[#allocation2 + $0xb4] sm:$0xf] }
 0x1ce   : > { %4017 = vst.msk [vmem:[#allocation3 + $0x58] sm:$0xf] %vm2424_vm3, %v3929_v11  ;;  %4918 = vmatmul.bf16.gmra.mxu1 %v5614_v2  ;;  %v4189_v2 = vrot.slane %v4064_v18, 5  ;;  %v3860_v56 = vrot.slane %v3859_v35, 4  ;;  %v2637_v50 = vrot.slane %v2635_v4, 5  ;;  %v3846_v20 = vshll.u32 %v3521_v46, 16 }
 0x1cf   : > { %2452 = vst.msk [vmem:[#allocation3 + $0x144] sm:$0xf] %vm2424_vm3, %v2383_v26  ;;  %v6068_v26 = vld [vmem:[%s8469_s5 + $0x80] sm:$0xff]  ;;  %v5890_v15 = vld [vmem:[#allocation3 + $0xa0] sm:$0xf0]  ;;  %v3705_v48 = vor.u32 %v3704_v29, %v3701_v12 }
 0x1d0   : > { %v3865_v41 = vsel %vm6249_vm8, %v3860_v56, %v3864_v23  ;;  %v2279_v31 = vld [vmem:[#allocation2 + $0x64] sm:$0xf]  ;;  %v2994_v18 = vld [vmem:[#allocation2 + $0xb0] sm:$0x1]  ;;  %v4067_v4 = vld [vmem:[#allocation2 + $0x7c] sm:$0xf] }
 0x1d1   : > { %3402 = vrot.lane.b32.xlu1 %v3314_v59, %s6095_s20  ;;  %v2628_v59 = vrot.slane %v2626_v37, 4  ;;  %v3848_v35 = vrot.slane %v3846_v20, 5  ;;  %v7744_v20 = vld [vmem:[#allocation2 + $0x58] sm:$0xf] }
 0x1d3   : > { %2356 = vrot.lane.b32.xlu0 %v2278_v40, %s6096_s21  ;;  %3404 = vrot.lane.b32.xlu2 %v3315_v33, %s6095_s20  ;;  %v3367_v9 = vpop.permute.xlu1 %3366  ;;  %v5907_v21 = vld [vmem:[#allocation3 + $0x128] sm:$0xf0]  ;;  %v5665_v40 = vld [vmem:[#allocation3 + $0x98] sm:$0xf]  ;;  %v5574_v33 = vrot.slane %v4063_v51, 9  ;;  %v2632_v17 = vor.u32 %v2631_v6, %v2628_v59  ;;  %v3145_v51 = vrot.slane %v2994_v18, 5 }
 0x1d4   : > { %3456 = vst.msk [vmem:[#allocation3 + $0x4c] sm:$0xf] %vm2231_vm15, %v3367_v9  ;;  %v5730_v14 = vor.u32 %v5907_v21, %v5729_v7  ;;  %v5666_v55 = vor.u32 %v5890_v15, %v5665_v40  ;;  %v4191_v7 = vrot.slane %v4189_v2, 4  ;;  %v2639_v21 = vshrl.u32 %v2473_v45, 16  ;;  %v3306_v6 = vld [vmem:[#allocation2 + $0x78] sm:$0xf] }
 0x1d5   : > { %v3178_v62 = vpop.permute.xlu0 %3177  ;;  %v3371_v43 = vpop.permute.xlu2 %3370  ;;  %4016 = vst.msk [vmem:[#allocation3 + $0x4c] sm:$0xf] %vm2424_vm3, %v7623_v27  ;;  %v6067_v27 = vld [vmem:[%s8469_s5 + $0x88] sm:$0xff]  ;;  %v5623_v11 = vld [vmem:[#allocation3 + $0x54] sm:$0xf0]  ;;  %v4190_v32 = vsel %vm6889_vm13, %v5574_v33, %v4189_v2  ;;  %v2633_v63 = vrot.slane %v2632_v17, 4 }
 0x1d6   : > { %3265 = vst.msk [vmem:[#allocation3 + $0x64] sm:$0xf] %vm1891_vm14, %v3178_v62  ;;  %4879 = vmatmul.bf16.vlgmr.msra.gmra.mxu3 %v5730_v14  ;;  %v4192_v62 = vrot.slane %v4065_v47, 5  ;;  %v5564_v40 = vrot.slane %v2992_v39, 9  ;;  %v5910_v29 = vld [vmem:[#allocation3 + $0x140] sm:$0xf0] }
 0x1d7   : > { %3458 = vst.msk [vmem:[#allocation3 + $0x64] sm:$0xf] %vm2231_vm15, %v3371_v43  ;;  %6031 = vmatpush.bf16.msra.mxu3 %v6067_v27  ;;  %v2638_v22 = vsel %vm6249_vm8, %v2633_v63, %v2637_v50  ;;  %v2641_v27 = vrot.slane %v2639_v21, 4  ;;  %v4066_v47 = vld [vmem:[#allocation2 + $0x78] sm:$0xe]  ;;  %v4196_v15 = vrot.slane %v4067_v4, 5 }
 0x1d8   : > { %4296 = vst.msk [vmem:[#allocation3 + $0xb0] sm:$0xf] %vm510_vm0, %v4190_v32  ;;  %v4193_v10 = vsel %vm6889_vm13, %v4191_v7, %v4192_v62  ;;  %v4068_v17 = vld [vmem:[#allocation2 + $0x80] sm:$0x1]  ;;  %v3317_v39 = vld [vmem:[#allocation2 + $0xb8] sm:$0xf] }
 0x1d9   : > { %3964 = vrot.lane.b32.xlu1 %v3841_v42, %s6096_s21  ;;  %2931 = vst.msk [vmem:[#allocation3 + $0x7c] sm:$0xf] %vm510_vm0, %v2638_v22  ;;  %v2993_v42 = vld [vmem:[#allocation2 + $0xac] sm:$0xf]  ;;  %v2642_v45 = vor.u32 %v2641_v27, %v2637_v50  ;;  %v4198_v62 = vrot.slane %v4196_v15, 4  ;;  %v4199_v56 = vrot.slane %v4068_v17, 5 }
 0x1da   : > { %4297 = vst.msk [vmem:[#allocation3 + $0xbc] sm:$0xf] %vm510_vm0, %v4193_v10  ;;  %v3142_v12 = vrot.slane %v2993_v42, 5  ;;  %v7733_v22 = vld [vmem:[#allocation2 + $0xb8] sm:$0xf] }
 0x1db   : > { %3944 = vrot.lane.b32.xlu0 %v3721_v38, %s6096_s21  ;;  %3189 = vrot.lane.b32.xlu2 %v3101_v28, %s6094_s15  ;;  %v2343_v8 = vpop.permute.xlu1 %2342  ;;  %v3706_v38 = vrot.slane %v3705_v48, 4  ;;  %v2474_v28 = vld [vmem:[#allocation2 + $0x50] sm:$0x1]  ;;  %v2643_v54 = vrot.slane %v2642_v45, 4  ;;  %v4200_v63 = vsel %vm6889_vm13, %v4198_v62, %v4199_v56  ;;  %v3506_v10 = vld [vmem:[#allocation2 + $0x78] sm:$0xf] }
 0x1dc   : > { %6032 = vmatpush.bf16.msra.mxu3 %v6068_v26  ;;  %2432 = vst.msk [vmem:[#allocation3 + $0x54] sm:$0xf] %vm2424_vm3, %v2343_v8  ;;  %v5879_v49 = vld [vmem:[#allocation3 + $0x4c] sm:$0xf]  ;;  %5853 = vmatmul.msk.bf16.gmra.mxu2 %vm4762_vm2, %v5666_v55  ;;  %v3149_v42 = vrot.slane %v7733_v22, 5  ;;  %v3726_v18 = vshll.u32 %v3506_v10, 16 }
 0x1dd   : > { %v7676_v25 = vpop.permute.xlu0 %3372  ;;  %v2347_v52 = vpop.permute.xlu2 %2346  ;;  %v5626_v53 = vor.u32 %v5879_v49, %v5623_v11  ;;  %v3711_v19 = vsel %vm6249_vm8, %v3706_v38, %v7634_v61  ;;  %v3843_v11 = vshrl.u32 %v3521_v46, 16  ;;  %v3144_v61 = vrot.slane %v3142_v12, 4  ;;  %4299 = vst.msk [vmem:[#allocation3 + $0xd4] sm:$0xf] %vm510_vm0, %v4200_v63  ;;  %v2995_v38 = vld [vmem:[#allocation2 + $0xb4] sm:$0xe] }
 0x1de   : > { %2434 = vst.msk [vmem:[#allocation3 + $0x6c] sm:$0xf] %vm2424_vm3, %v2347_v52  ;;  %v2979_v27 = vld [vmem:[#allocation2 + $0x74] sm:$0x1]  ;;  %v3507_v4 = vld [vmem:[#allocation2 + $0x7c] sm:$0xf] }
 0x1df   : > { %4923 = vmatmul.bf16.gmra.mxu1 %v5626_v53  ;;  %v5677_v49 = vld [vmem:[#allocation3 + $0xb0] sm:$0xf]  ;;  %v3845_v52 = vrot.slane %v3843_v11, 4  ;;  %v3146_v32 = vsel %vm6889_vm13, %v3144_v61, %v3145_v51  ;;  %v2475_v11 = vld [vmem:[#allocation2 + $0x54] sm:$0xf]  ;;  %v2663_v63 = vshrl.u32 %v7744_v20, 16 }
 0x1e0   : > { %v3309_v22 = vld [vmem:[#allocation2 + $0x88] sm:$0xf] }
 0x1e1   : > { %3382 = vrot.lane.b32.xlu1 %v3304_v0, %s6095_s20  ;;  %v5575_v0 = vrot.slane %v4066_v47, 9  ;;  %v5893_v48 = vld [vmem:[#allocation3 + $0xb8] sm:$0xf0]  ;;  %v3849_v7 = vor.u32 %v3848_v35, %v3845_v52 }
 0x1e2   : > { %v5678_v55 = vor.u32 %v5893_v48, %v5677_v49  ;;  %v3736_v49 = vshrl.u32 %v3507_v4, 16 }
 0x1e3   : > { %3406 = vrot.lane.b32.xlu0 %v3316_v16, %s6095_s20  ;;  %3384 = vrot.lane.b32.xlu2 %v3305_v58, %s6095_s20  ;;  %v2381_v14 = vpop.permute.xlu1 %2380  ;;  %v5880_v43 = vld [vmem:[#allocation3 + $0x50] sm:$0xf0]  ;;  %v2645_v16 = vshll.u32 %v2474_v28, 16  ;;  %v3143_v58 = vsel %vm6889_vm13, %v5564_v40, %v3142_v12  ;;  %v2653_v40 = vshll.u32 %v2475_v11, 16 }
 0x1e4   : > { %2451 = vst.msk [vmem:[#allocation3 + $0x138] sm:$0xf] %vm2424_vm3, %v2381_v14  ;;  %v5622_v44 = vor.u32 %v5880_v43, %v5621_v30  ;;  %v2281_v30 = vld [vmem:[#allocation2 + $0x70] sm:$0xf]  ;;  %v2977_v14 = vld [vmem:[#allocation2 + $0x6c] sm:$0xe] }
 0x1e5   : > { %v3931_v9 = vpop.permute.xlu0 %3930  ;;  %v2192_v36 = vpop.permute.xlu2 %2191  ;;  %v2647_v8 = vrot.slane %v2645_v16, 5  ;;  %v2978_v43 = vld [vmem:[#allocation2 + $0x70] sm:$0xf]  ;;  %v5559_v46 = vrot.slane %v2977_v14, 9  ;;  %v2650_v16 = vshrl.u32 %v2475_v11, 16  ;;  %v1038_v11 = vrot.slane %v7501_v34, 4 }
 0x1e6   : > { %4018 = vst.msk [vmem:[#allocation3 + $0x64] sm:$0xf] %vm2424_vm3, %v3931_v9  ;;  %4834 = vmatmul.bf16.gmra.mxu0 %v5622_v44  ;;  %v3850_v9 = vrot.slane %v3849_v7, 4  ;;  %v3107_v28 = vrot.slane %v2978_v43, 5  ;;  %v2477_v34 = vld [vmem:[#allocation2 + $0x5c] sm:$0x1] }
 0x1e7   : > { %2260 = vst.msk [vmem:[#allocation3 + $0x150] sm:$0xf] %vm2231_vm15, %v2192_v36  ;;  %v2648_v33 = vsel %vm6249_vm8, %v2643_v54, %v2647_v8  ;;  %v5883_v36 = vld [vmem:[#allocation3 + $0x68] sm:$0xf0]  ;;  %v3110_v8 = vrot.slane %v2979_v27, 5  ;;  %v2652_v47 = vrot.slane %v2650_v16, 4 }
 0x1e8   : > { %2932 = vst.msk [vmem:[#allocation3 + $0x88] sm:$0xf] %vm510_vm0, %v2648_v33  ;;  %v3855_v44 = vsel %vm6249_vm8, %v3850_v9, %v7673_v13  ;;  %v5896_v13 = vld [vmem:[#allocation3 + $0xd0] sm:$0xf0]  ;;  %v3109_v54 = vrot.slane %v3107_v28, 4  ;;  %v2665_v16 = vrot.slane %v2663_v63, 4 }
 0x1e9   : > { %2358 = vrot.lane.b32.xlu1 %v2279_v31, %s6096_s21  ;;  %v7774_v27 = vld [vmem:[#allocation2 + $0x7c] sm:$0xf] }
 0x1ea   : > { %v3111_v48 = vsel %vm6889_vm13, %v3109_v54, %v3110_v8 }
 0x1eb   : > { %3968 = vrot.lane.b32.xlu0 %v3865_v41, %s6096_s21  ;;  %3942 = vrot.lane.b32.xlu2 %v3711_v19, %s6096_s21  ;;  %v3180_v2 = vpop.permute.xlu1 %3179  ;;  %v5741_v26 = vld [vmem:[#allocation3 + $0x138] sm:$0xf]  ;;  %v5565_v41 = vrot.slane %v2995_v38, 9  ;;  %v3723_v19 = vshrl.u32 %v3506_v10, 16 }
 0x1ec   : > { %3266 = vst.msk [vmem:[#allocation3 + $0x70] sm:$0xf] %vm1891_vm14, %v3180_v2  ;;  %v5742_v59 = vor.u32 %v5910_v29, %v5741_v26  ;;  %5854 = vmatmul.msk.bf16.gmra.mxu2 %vm4762_vm2, %v5678_v55  ;;  %v2655_v2 = vrot.slane %v2653_v40, 5  ;;  %v2659_v26 = vshll.u32 %v7744_v20, 16  ;;  %v7780_v20 = vld [vmem:[#allocation2 + $0xc0] sm:$0xf] }
 0x1ed   : > { %v2194_v37 = vpop.permute.xlu0 %2193  ;;  %v2387_v53 = vpop.permute.xlu2 %2386  ;;  %3459 = vst.msk [vmem:[#allocation3 + $0x70] sm:$0xf] %vm2231_vm15, %v7676_v25  ;;  %v4197_v25 = vsel %vm6889_vm13, %v5575_v0, %v4196_v15  ;;  %v4069_v0 = vld [vmem:[#allocation2 + $0x84] sm:$0xe]  ;;  %v4071_v15 = vld [vmem:[#allocation2 + $0x8c] sm:$0x1] }
 0x1ee   : > { %2261 = vst.msk [vmem:[#allocation3 + $0x15c] sm:$0xf] %vm2231_vm15, %v2194_v37  ;;  %4884 = vmatmul.bf16.gmra.mxu3 %v5742_v59  ;;  %v3150_v37 = vsel %vm6889_vm13, %v5565_v41, %v3149_v42  ;;  %v4070_v59 = vld [vmem:[#allocation2 + $0x88] sm:$0xf]  ;;  %v2656_v33 = vor.u32 %v2655_v2, %v2652_v47  ;;  %v3725_v17 = vrot.slane %v3723_v19, 4  ;;  %v5576_v55 = vrot.slane %v4069_v0, 9 }
 0x1ef   : > { %2454 = vst.msk [vmem:[#allocation3 + $0x15c] sm:$0xf] %vm2424_vm3, %v2387_v53  ;;  %v7754_v35 = vpop.f32.mrf.mxu2  ;;  %v3732_v53 = vshll.u32 %v3507_v4, 16  ;;  %v2661_v7 = vrot.slane %v2659_v26, 5  ;;  %v4206_v62 = vrot.slane %v4071_v15, 5  ;;  %v3114_v4 = vrot.slane %v7774_v27, 5 }
 0x1f0   : > { %4298 = vst.msk [vmem:[#allocation3 + $0xc8] sm:$0xf] %vm510_vm0, %v4197_v25  ;;  %v4203_v25 = vrot.slane %v4070_v59, 5  ;;  %v5882_v56 = vld [vmem:[#allocation3 + $0x64] sm:$0xf]  ;;  %v2669_v47 = vshll.u32 %v2477_v34, 16 }
 0x1f1   : > { %3213 = vrot.lane.b32.xlu1 %v3143_v58, %s6094_s15  ;;  %v3728_v58 = vrot.slane %v3726_v18, 5  ;;  %v7766_v9 = vrot.slane %v3732_v53, 5  ;;  %v2280_v40 = vld [vmem:[#allocation2 + $0x6c] sm:$0xf]  ;;  %v2666_v8 = vor.u32 %v2665_v16, %v2661_v7  ;;  %v1202_v2 = vld [vmem:[#allocation2 + $0xc8] sm:$0x1] }
 0x1f2   : > { %v4205_v14 = vrot.slane %v4203_v25, 4  ;;  %v4204_v41 = vsel %vm6889_vm13, %v5576_v55, %v4203_v25  ;;  %v1203_v53 = vsel %vm6193_vm5, %v1038_v11, %v1202_v2  ;;  %v2671_v15 = vrot.slane %v2669_v47, 5  ;;  %v4072_v55 = vld [vmem:[#allocation2 + $0x90] sm:$0xe]  ;;  %v2494_v34 = vld [vmem:[#allocation2 + $0xa0] sm:$0xf] }
 0x1f3   : > { %3386 = vrot.lane.b32.xlu0 %v3306_v6, %s6095_s20  ;;  %3215 = vrot.lane.b32.xlu2 %v3146_v32, %s6094_s15  ;;  %v2345_v50 = vpop.permute.xlu1 %2344  ;;  %v3108_v6 = vsel %vm6889_vm13, %v5559_v46, %v3107_v28  ;;  %v2657_v32 = vrot.slane %v2656_v33, 4  ;;  %v3729_v10 = vor.u32 %v3728_v58, %v3725_v17  ;;  %v3307_v46 = vld [vmem:[#allocation2 + $0x7c] sm:$0xf]  ;;  %4300 = vst.msk [vmem:[#allocation3 + $0xe0] sm:$0xf] %vm510_vm0, %v4204_v41  ;;  %v5577_v63 = vrot.slane %v4072_v55, 9 }
 0x1f4   : > { %2433 = vst.msk [vmem:[#allocation3 + $0x60] sm:$0xf] %vm2424_vm3, %v2345_v50  ;;  %v3508_v50 = vld [vmem:[#allocation2 + $0x80] sm:$0x1]  ;;  %v4207_v18 = vsel %vm6889_vm13, %v4205_v14, %v4206_v62  ;;  %v1289_v33 = vld [vmem:[#allocation2 + $0xcc] sm:$0xf] }
 0x1f5   : > { %v3182_v23 = vpop.permute.xlu0 %3181  ;;  %v3375_v21 = vpop.permute.xlu2 %3374  ;;  %v2662_v38 = vsel %vm6249_vm8, %v2657_v32, %v2661_v7  ;;  %v3742_v19 = vshll.u32 %v3508_v50, 16  ;;  %4301 = vst.msk [vmem:[#allocation3 + $0xec] sm:$0xf] %vm510_vm0, %v4207_v18  ;;  %v2997_v7 = vld [vmem:[#allocation2 + $0xbc] sm:$0x1]  ;;  %v3870_v50 = vshll.u32 %v7780_v20, 16 }
 0x1f6   : > { %3267 = vst.msk [vmem:[#allocation3 + $0x7c] sm:$0xf] %vm1891_vm14, %v3182_v23  ;;  %v3152_v18 = vrot.slane %v2997_v7, 5  ;;  %v2803_v2 = vshll.u32 %v2494_v34, 16  ;;  %v2478_v27 = vld [vmem:[#allocation2 + $0x60] sm:$0xf] }
 0x1f7   : > { %3460 = vst.msk [vmem:[#allocation3 + $0x7c] sm:$0xf] %vm2231_vm15, %v3375_v21  ;;  %v5689_v45 = vld [vmem:[#allocation3 + $0xc8] sm:$0xf]  ;;  %v3319_v21 = vld [vmem:[#allocation2 + $0xc4] sm:$0xf] }
 0x1f8   : > { %v5690_v52 = vor.u32 %v5896_v13, %v5689_v45  ;;  %2933 = vst.msk [vmem:[#allocation3 + $0x94] sm:$0xf] %vm510_vm0, %v2662_v38  ;;  %v7783_v13 = vpop.f32.mrf.mxu2  ;;  %v1290_v38 = vsel %vm6294_vm10, %v6163_v1, %v1289_v33 }
 0x1f9   : > { %3408 = vrot.lane.b32.xlu1 %v3317_v39, %s6095_s20  ;;  %1204 = vst [vmem:[#allocation2 + $0xc8] sm:$0x1] %v1203_v53  ;;  %v7839_v53 = vld [vmem:[#allocation2 + $0xc4] sm:$0xf] }
 0x1fa   : > { %1291 = vst [vmem:[#allocation2 + $0xcc] sm:$0xf] %v1290_v38 }
 0x1fb   : > { %2362 = vrot.lane.b32.xlu0 %v2281_v30, %s6096_s21  ;;  %3966 = vrot.lane.b32.xlu2 %v3855_v44, %s6096_s21  ;;  %v3933_v12 = vpop.permute.xlu1 %3932  ;;  %v5633_v29 = vld [vmem:[#allocation3 + $0x60] sm:$0xf]  ;;  %v3738_v30 = vrot.slane %v3736_v49, 4  ;;  %v3525_v49 = vld [vmem:[#allocation2 + $0xc4] sm:$0xf] }
 0x1fc   : > { %4019 = vst.msk [vmem:[#allocation3 + $0x70] sm:$0xf] %vm2424_vm3, %v3933_v12  ;;  %v5634_v61 = vor.u32 %v5883_v36, %v5633_v29  ;;  %5855 = vmatmul.msk.bf16.gmra.mxu2 %vm4762_vm2, %v5690_v52  ;;  %v2980_v44 = vld [vmem:[#allocation2 + $0x78] sm:$0xe]  ;;  %v3509_v12 = vld [vmem:[#allocation2 + $0x84] sm:$0xf] }
 0x1fd   : > { %v7742_v31 = vpop.permute.xlu0 %3376  ;;  %v2351_v51 = vpop.permute.xlu2 %2350  ;;  %v3739_v45 = vor.u32 %v3738_v30, %v7766_v9  ;;  %v5913_v29 = vld [vmem:[#allocation3 + $0x158] sm:$0xf0]  ;;  %v5560_v54 = vrot.slane %v2980_v44, 9  ;;  %v3747_v59 = vshrl.u32 %v3509_v12, 16  ;;  %v3750_v0 = vshll.u32 %v3509_v12, 16 }
 0x1fe   : > { %2436 = vst.msk [vmem:[#allocation3 + $0x84] sm:$0xf] %vm2424_vm3, %v2351_v51  ;;  %4839 = vmatmul.bf16.gmra.mxu0 %v5634_v61  ;;  %v3867_v61 = vshrl.u32 %v7780_v20, 16  ;;  %v3744_v51 = vrot.slane %v3742_v19, 5  ;;  %v3880_v30 = vshrl.u32 %v3525_v49, 16 }
 0x1ff   : > { %v3740_v52 = vrot.slane %v3739_v45, 4  ;;  %v3115_v25 = vsel %vm6889_vm13, %v5560_v54, %v3114_v4  ;;  %v3749_v57 = vrot.slane %v3747_v59, 4  ;;  %v3752_v1 = vrot.slane %v3750_v0, 5  ;;  %v2493_v54 = vld [vmem:[#allocation2 + $0x9c] sm:$0xf] }
 0x200   : > { %v3869_v20 = vrot.slane %v3867_v61, 4  ;;  %v3872_v45 = vrot.slane %v3870_v50, 5  ;;  %v3882_v16 = vrot.slane %v3880_v30, 4  ;;  %v2797_v47 = vshll.u32 %v2493_v54, 16 }
 0x201   : > { %3193 = vrot.lane.b32.xlu1 %v3108_v6, %s6094_s15  ;;  %v2667_v6 = vrot.slane %v2666_v8, 4 }
 0x202   : > { %v2799_v0 = vrot.slane %v2797_v47, 5 }
 0x203   : > { %3217 = vrot.lane.b32.xlu0 %v3150_v37, %s6094_s15  ;;  %3195 = vrot.lane.b32.xlu2 %v3111_v48, %s6094_s15  ;;  %v2385_v43 = vpop.permute.xlu1 %2384  ;;  %v5635_v39 = vld [vmem:[#allocation3 + $0x6c] sm:$0xf0]  ;;  %v3730_v37 = vrot.slane %v3729_v10, 4  ;;  %v4073_v48 = vld [vmem:[#allocation2 + $0x94] sm:$0xf] }
 0x204   : > { %2453 = vst.msk [vmem:[#allocation3 + $0x150] sm:$0xf] %vm2424_vm3, %v2385_v43  ;;  %v5638_v36 = vor.u32 %v5882_v56, %v5635_v39  ;;  %v2672_v56 = vsel %vm6249_vm8, %v2667_v6, %v2671_v15  ;;  %v3876_v43 = vshll.u32 %v3525_v49, 16  ;;  %v3745_v39 = vsel %vm6249_vm8, %v3740_v52, %v3744_v51 }
 0x205   : > { %v3935_v23 = vpop.permute.xlu0 %3934  ;;  %v2196_v28 = vpop.permute.xlu2 %2195  ;;  %v3735_v14 = vsel %vm6249_vm8, %v3730_v37, %v7766_v9  ;;  %v4210_v44 = vrot.slane %v4073_v48, 5  ;;  %2934 = vst.msk [vmem:[#allocation3 + $0xa0] sm:$0xf] %vm510_vm0, %v2672_v56  ;;  %v3151_v9 = vrot.slane %v3149_v42, 4  ;;  %v3526_v42 = vld [vmem:[#allocation2 + $0xc8] sm:$0x1]  ;;  %v3873_v52 = vor.u32 %v3872_v45, %v3869_v20 }
 0x206   : > { %4020 = vst.msk [vmem:[#allocation3 + $0x7c] sm:$0xf] %vm2424_vm3, %v3935_v23  ;;  %4928 = vmatmul.bf16.gmra.mxu1 %v5638_v36  ;;  %v4074_v23 = vld [vmem:[#allocation2 + $0x98] sm:$0x1]  ;;  %v7829_v12 = vrot.slane %v3876_v43, 5  ;;  %v2794_v51 = vshrl.u32 %v2493_v54, 16 }
 0x207   : > { %2262 = vst.msk [vmem:[#allocation3 + $0x168] sm:$0xf] %vm2231_vm15, %v2196_v28  ;;  %v4213_v36 = vrot.slane %v4074_v23, 5  ;;  %v4211_v28 = vsel %vm6889_vm13, %v5577_v63, %v4210_v44  ;;  %v4212_v19 = vrot.slane %v4210_v44, 4  ;;  %v3153_v49 = vsel %vm6889_vm13, %v3151_v9, %v3152_v18  ;;  %v2495_v48 = vld [vmem:[#allocation2 + $0xa4] sm:$0x1] }
 0x208   : > { %4302 = vst.msk [vmem:[#allocation3 + $0xf8] sm:$0xf] %vm510_vm0, %v4211_v28  ;;  %v3883_v59 = vor.u32 %v3882_v16, %v7829_v12  ;;  %v3886_v6 = vshll.u32 %v3526_v42, 16  ;;  %v2796_v33 = vrot.slane %v2794_v51, 4  ;;  %v2805_v15 = vrot.slane %v2803_v2, 5 }
 0x209   : > { %3388 = vrot.lane.b32.xlu1 %v3307_v46, %s6095_s20  ;;  %v7820_v46 = vld [vmem:[#allocation2 + $0x88] sm:$0xf]  ;;  %v4214_v8 = vsel %vm6889_vm13, %v4212_v19, %v4213_v36  ;;  %v2813_v55 = vshll.u32 %v2495_v48, 16  ;;  %v3527_v23 = vld [vmem:[#allocation2 + $0xcc] sm:$0xf]  ;;  %v3874_v50 = vrot.slane %v3873_v52, 4 }
 0x20a   : > { %v7814_v10 = vpop.f32.mrf.mxu2  ;;  %v3756_v37 = vshll.u32 %v7820_v46, 16  ;;  %4303 = vst.msk [vmem:[#allocation3 + $0x104] sm:$0xf] %vm510_vm0, %v4214_v8  ;;  %v5886_v63 = vld [vmem:[#allocation3 + $0x80] sm:$0xf0]  ;;  %v3888_v43 = vrot.slane %v3886_v6, 5 }
 0x20b   : > { %3412 = vrot.lane.b32.xlu0 %v3319_v21, %s6095_s20  ;;  %2360 = vrot.lane.b32.xlu2 %v2280_v40, %s6096_s21  ;;  %v3184_v17 = vpop.permute.xlu1 %3183  ;;  %v5753_v58 = vld [vmem:[#allocation3 + $0x150] sm:$0xf]  ;;  %v5701_v21 = vld [vmem:[#allocation3 + $0xe0] sm:$0xf]  ;;  %v2815_v38 = vrot.slane %v2813_v55, 5  ;;  %v3891_v36 = vshrl.u32 %v3527_v23, 16 }
 0x20c   : > { %3268 = vst.msk [vmem:[#allocation3 + $0x88] sm:$0xf] %vm1891_vm14, %v3184_v17  ;;  %v5754_v32 = vor.u32 %v5913_v29, %v5753_v58  ;;  %v3753_v29 = vor.u32 %v3752_v1, %v3749_v57  ;;  %v3318_v58 = vld [vmem:[#allocation2 + $0xc0] sm:$0xf]  ;;  %v7843_v7 = vrot.slane %v3756_v37, 5  ;;  %v3894_v9 = vshll.u32 %v3527_v23, 16 }
 0x20d   : > { %v2198_v26 = vpop.permute.xlu0 %2197  ;;  %v2391_v62 = vpop.permute.xlu2 %2390  ;;  %3461 = vst.msk [vmem:[#allocation3 + $0x88] sm:$0xf] %vm2231_vm15, %v7742_v31  ;;  %v5899_v31 = vld [vmem:[#allocation3 + $0xe8] sm:$0xf0]  ;;  %v4075_v45 = vld [vmem:[#allocation2 + $0x9c] sm:$0xe] }
 0x20e   : > { %2263 = vst.msk [vmem:[#allocation3 + $0x174] sm:$0xf] %vm2231_vm15, %v2198_v26  ;;  %4889 = vmatmul.bf16.gmra.mxu3 %v5754_v32  ;;  %v5702_v41 = vor.u32 %v5899_v31, %v5701_v21  ;;  %v2807_v26 = vshrl.u32 %v2494_v34, 16  ;;  %v3754_v32 = vrot.slane %v3753_v29, 4  ;;  %v3156_v21 = vrot.slane %v7839_v53, 5 }
 0x20f   : > { %2456 = vst.msk [vmem:[#allocation3 + $0x174] sm:$0xf] %vm2424_vm3, %v2391_v62  ;;  %v2800_v62 = vor.u32 %v2799_v0, %v2796_v33  ;;  %v5713_v1 = vld [vmem:[#allocation3 + $0xf8] sm:$0xf]  ;;  %v4076_v16 = vld [vmem:[#allocation2 + $0xa0] sm:$0xf]  ;;  %v3879_v29 = vsel %vm6249_vm8, %v3874_v50, %v7829_v12 }
 0x210   : > { %5856 = vmatmul.msk.bf16.gmra.mxu2 %vm4762_vm2, %v5702_v41  ;;  %v2809_v17 = vrot.slane %v2807_v26, 4  ;;  %v3759_v19 = vsel %vm6249_vm8, %v3754_v32, %v7843_v7  ;;  %v3158_v42 = vrot.slane %v3156_v21, 4  ;;  %v4217_v34 = vrot.slane %v4076_v16, 5  ;;  %v7871_v51 = vld [vmem:[#allocation2 + $0xd0] sm:$0xf] }
 0x211   : > { %3946 = vrot.lane.b32.xlu1 %v3735_v14, %s6096_s21  ;;  %v3884_v14 = vrot.slane %v3883_v59, 4  ;;  %v2801_v31 = vrot.slane %v2800_v62, 4  ;;  %v5902_v54 = vld [vmem:[#allocation3 + $0x100] sm:$0xf0]  ;;  %v3893_v47 = vrot.slane %v3891_v36, 4  ;;  %v3896_v2 = vrot.slane %v3894_v9, 5 }
 0x212   : > { %v2810_v56 = vor.u32 %v2809_v17, %v2805_v15  ;;  %v4077_v26 = vld [vmem:[#allocation2 + $0xa4] sm:$0x1]  ;;  %v5885_v59 = vld [vmem:[#allocation3 + $0x7c] sm:$0xf]  ;;  %v3116_v6 = vrot.slane %v3114_v4, 4  ;;  %v3900_v17 = vshll.u32 %v7871_v51, 16 }
 0x213   : > { %3197 = vrot.lane.b32.xlu0 %v3115_v25, %s6094_s15  ;;  %3948 = vrot.lane.b32.xlu2 %v3745_v39, %s6096_s21  ;;  %v2349_v40 = vpop.permute.xlu1 %2348  ;;  %v7845_v25 = vpop.f32.mrf.mxu2  ;;  %v3000_v39 = vld [vmem:[#allocation2 + $0xc8] sm:$0x1]  ;;  %v3889_v8 = vsel %vm6249_vm8, %v3884_v14, %v3888_v43  ;;  %v4220_v0 = vrot.slane %v4077_v26, 5  ;;  %v3897_v32 = vor.u32 %v3896_v2, %v3893_v47  ;;  %v2479_v62 = vld [vmem:[#allocation2 + $0x64] sm:$0xf]  ;;  %v2677_v23 = vshll.u32 %v2478_v27, 16 }
 0x214   : > { %2435 = vst.msk [vmem:[#allocation3 + $0x78] sm:$0xf] %vm2424_vm3, %v2349_v40  ;;  %v2811_v44 = vrot.slane %v2810_v56, 4  ;;  %v5578_v40 = vrot.slane %v4075_v45, 9  ;;  %v3159_v37 = vrot.slane %v3000_v39, 5  ;;  %v2674_v56 = vshrl.u32 %v2478_v27, 16 }
 0x215   : > { %v3186_v11 = vpop.permute.xlu0 %3185  ;;  %v3379_v61 = vpop.permute.xlu2 %3378  ;;  %v7889_v39 = vld [vmem:[#allocation2 + $0x88] sm:$0xf]  ;;  %v2679_v36 = vrot.slane %v2677_v23, 5  ;;  %v2998_v23 = vld [vmem:[#allocation2 + $0xc0] sm:$0xe] }
 0x216   : > { %3269 = vst.msk [vmem:[#allocation3 + $0x94] sm:$0xf] %vm1891_vm14, %v3186_v11  ;;  %v2806_v11 = vsel %vm6249_vm8, %v2801_v31, %v2805_v15  ;;  %v2816_v20 = vsel %vm6249_vm8, %v2811_v44, %v2815_v38  ;;  %v4218_v12 = vsel %vm6889_vm13, %v5578_v40, %v4217_v34  ;;  %v3160_v48 = vsel %vm6889_vm13, %v3158_v42, %v3159_v37  ;;  %v3511_v42 = vld [vmem:[#allocation2 + $0x8c] sm:$0x1] }
 0x217   : > { %3462 = vst.msk [vmem:[#allocation3 + $0x94] sm:$0xf] %vm2231_vm15, %v3379_v61  ;;  %v5714_v61 = vor.u32 %v5902_v54, %v5713_v1  ;;  %v2683_v31 = vshll.u32 %v2479_v62, 16  ;;  %v2687_v44 = vshrl.u32 %v2479_v62, 16  ;;  %v2676_v1 = vrot.slane %v2674_v56, 4 }
 0x218   : > { %2945 = vst.msk [vmem:[#allocation3 + $0x124] sm:$0xf] %vm510_vm0, %v2806_v11  ;;  %v3898_v40 = vrot.slane %v3897_v32, 4  ;;  %v5916_v54 = vld [vmem:[#allocation3 + $0x170] sm:$0xf0] }
 0x219   : > { %3219 = vrot.lane.b32.xlu1 %v3153_v49, %s6094_s15  ;;  %2946 = vst.msk [vmem:[#allocation3 + $0x130] sm:$0xf] %vm510_vm0, %v2816_v20  ;;  %v4219_v49 = vrot.slane %v4217_v34, 4  ;;  %v2689_v11 = vrot.slane %v2687_v44, 4  ;;  %v1293_v20 = vld [vmem:[#allocation2 + $0xd4] sm:$0x1]  ;;  %v2680_v45 = vor.u32 %v2679_v36, %v2676_v1 }
 0x21a   : > { %4304 = vst.msk [vmem:[#allocation3 + $0x110] sm:$0xf] %vm510_vm0, %v4218_v12  ;;  %v1294_v16 = vsel %vm6193_vm5, %v6173_v3, %v1293_v20  ;;  %v7920_v3 = vld [vmem:[#allocation2 + $0x8c] sm:$0x1]  ;;  %v2283_v62 = vld [vmem:[#allocation2 + $0x7c] sm:$0xf] }
 0x21b   : > { %3392 = vrot.lane.b32.xlu0 %v3309_v22, %s6095_s20  ;;  %3410 = vrot.lane.b32.xlu2 %v3318_v58, %s6095_s20  ;;  %v3937_v41 = vpop.permute.xlu1 %3936  ;;  %v5645_v57 = vld [vmem:[#allocation3 + $0x78] sm:$0xf]  ;;  %v2982_v22 = vld [vmem:[#allocation2 + $0x80] sm:$0x1]  ;;  %v4820_v52 = vpop.f32.mrf.mxu0  ;;  %1295 = vst [vmem:[#allocation2 + $0xd4] sm:$0x1] %v1294_v16 }
 0x21c   : > { %4021 = vst.msk [vmem:[#allocation3 + $0x88] sm:$0xf] %vm2424_vm3, %v3937_v41  ;;  %v5646_v28 = vor.u32 %v5886_v63, %v5645_v57  ;;  %v3117_v15 = vrot.slane %v2982_v22, 5  ;;  %v4221_v63 = vsel %vm6889_vm13, %v4219_v49, %v4220_v0  ;;  %v2480_v41 = vld [vmem:[#allocation2 + $0x68] sm:$0x1]  ;;  %v3760_v57 = vshrl.u32 %v7820_v46, 16 }
 0x21d   : > { %v7848_v30 = vpop.permute.xlu0 %3380  ;;  %v2355_v18 = vpop.permute.xlu2 %2354  ;;  %v2693_v9 = vshll.u32 %v2480_v41, 16  ;;  %v3308_v46 = vld [vmem:[#allocation2 + $0x84] sm:$0xf]  ;;  %4305 = vst.msk [vmem:[#allocation3 + $0x11c] sm:$0xf] %vm510_vm0, %v4221_v63  ;;  %v3766_v49 = vshll.u32 %v3511_v42, 16 }
 0x21e   : > { %2438 = vst.msk [vmem:[#allocation3 + $0x9c] sm:$0xf] %vm2424_vm3, %v2355_v18  ;;  %4844 = vmatmul.bf16.gmra.mxu0 %v5646_v28  ;;  %v2685_v18 = vrot.slane %v2683_v31, 5  ;;  %v3513_v31 = vld [vmem:[#allocation2 + $0x94] sm:$0xf] }
 0x21f   : > { %v7885_v58 = vpop.f32.mrf.mxu2  ;;  %v2695_v47 = vrot.slane %v2693_v9, 5  ;;  %v3768_v9 = vrot.slane %v3766_v49, 5  ;;  %v3780_v16 = vshll.u32 %v3513_v31, 16 }
 0x220   : > { %5857 = vmatmul.msk.bf16.gmra.mxu2 %vm4762_vm2, %v5714_v61  ;;  %v2690_v37 = vor.u32 %v2689_v11, %v2685_v18  ;;  %v2681_v61 = vrot.slane %v2680_v45, 4 }
 0x221   : > { %3970 = vrot.lane.b32.xlu1 %v3879_v29, %s6096_s21  ;;  %v7914_v29 = vrot.slane %v3900_v17, 5 }
 0x222   : > { %v2691_v2 = vrot.slane %v2690_v37, 4  ;;  %v3784_v37 = vshrl.u32 %v3513_v31, 16  ;;  %v4089_v24 = vld [vmem:[#allocation2 + $0xd4] sm:$0x1] }
 0x223   : > { %3950 = vrot.lane.b32.xlu0 %v3759_v19, %s6096_s21  ;;  %3972 = vrot.lane.b32.xlu2 %v3889_v8, %s6096_s21  ;;  %v4909_v4 = vpop.f32.mrf.mxu1  ;;  %v5647_v55 = vld [vmem:[#allocation3 + $0x84] sm:$0xf0]  ;;  %v2389_v38 = vpop.permute.xlu1 %2388  ;;  %v3118_v19 = vsel %vm6889_vm13, %v3116_v6, %v3117_v15  ;;  %v3762_v8 = vrot.slane %v3760_v57, 4  ;;  %v5725_v6 = vld [vmem:[#allocation3 + $0x110] sm:$0xf]  ;;  %v3903_v17 = vsel %vm6249_vm8, %v3898_v40, %v7914_v29 }
 0x224   : > { %v4910_v50 = vadd.f32 %v4909_v4, %v4820_v52  ;;  %v5650_v14 = vor.u32 %v5885_v59, %v5647_v55  ;;  %2455 = vst.msk [vmem:[#allocation3 + $0x168] sm:$0xf] %vm2424_vm3, %v2389_v38  ;;  %v4822_v26 = vpop.f32.mrf.mxu0  ;;  %v2686_v59 = vsel %vm6249_vm8, %v2681_v61, %v2685_v18  ;;  %v4078_v4 = vld [vmem:[#allocation2 + $0xa8] sm:$0xe]  ;;  %v2696_v56 = vsel %vm6249_vm8, %v2691_v2, %v2695_v47  ;;  %v5905_v38 = vld [vmem:[#allocation3 + $0x118] sm:$0xf0] }
 0x225   : > { %v3939_v33 = vpop.permute.xlu0 %3938  ;;  %v3210_v43 = vpop.permute.xlu2 %3209  ;;  %2935 = vst.msk [vmem:[#allocation3 + $0xac] sm:$0xf] %vm510_vm0, %v2686_v59  ;;  %v3763_v32 = vor.u32 %v3762_v8, %v7843_v7  ;;  %v3124_v7 = vrot.slane %v7920_v3, 5  ;;  %v5579_v44 = vrot.slane %v4078_v4, 9  ;;  %v4080_v18 = vld [vmem:[#allocation2 + $0xb0] sm:$0x1] }
 0x226   : > { %4022 = vst.msk [vmem:[#allocation3 + $0x94] sm:$0xf] %vm2424_vm3, %v3939_v33  ;;  %v7894_v28 = vadd.f32 %v7754_v35, %v4910_v50  ;;  %4933 = vmatmul.bf16.gmra.mxu1 %v5650_v14  ;;  %v3121_v35 = vrot.slane %v7889_v39, 5  ;;  %v4079_v14 = vld [vmem:[#allocation2 + $0xac] sm:$0xf]  ;;  %v4227_v2 = vrot.slane %v4080_v18, 5 }
 0x227   : > { %3281 = vst.msk [vmem:[#allocation3 + $0x124] sm:$0xf] %vm1891_vm14, %v3210_v43  ;;  %v7922_v5 = vpop.f32.mrf.mxu2  ;;  %v5726_v43 = vor.u32 %v5905_v38, %v5725_v6  ;;  %v3764_v36 = vrot.slane %v3763_v32, 4  ;;  %v4224_v11 = vrot.slane %v4079_v14, 5  ;;  %v3514_v59 = vld [vmem:[#allocation2 + $0x98] sm:$0x1] }
 0x228   : > { %v5078_v22 = vpack.c.bf16 %v7894_v28, %v7894_v28  ;;  %v3123_v52 = vrot.slane %v3121_v35, 4  ;;  %v5212_v63 = vmul.f32 %v7894_v28, %v7894_v28  ;;  %v5142_v41 = vsel %vm4762_vm2, %v7894_v28, 0.0  ;;  %2936 = vst.msk [vmem:[#allocation3 + $0xb8] sm:$0xf] %vm510_vm0, %v2696_v56  ;;  %v3529_v4 = vld [vmem:[#allocation2 + $0xd4] sm:$0x1] }
 0x229   : > { %3199 = vrot.lane.b32.xlu1 %v3118_v19, %s6094_s15  ;;  %v3769_v49 = vsel %vm6249_vm8, %v3764_v36, %v3768_v9  ;;  %v3790_v53 = vshll.u32 %v3514_v59, 16  ;;  %v2284_v32 = vld [vmem:[#allocation2 + $0x84] sm:$0xf]  ;;  %v2497_v56 = vld [vmem:[#allocation2 + $0xac] sm:$0xf]  ;;  %v3910_v18 = vshll.u32 %v3529_v4, 16 }
 0x22a   : > { %5110 = vst.msk [vmem:[%s7904_s22] sm:$0xf] %vm510_vm0, %v5078_v22  ;;  %v5244_v20 = vsel %vm4762_vm2, %v5212_v63, 0.0  ;;  %v3125_v47 = vsel %vm6889_vm13, %v3123_v52, %v3124_v7  ;;  %v2498_v7 = vld [vmem:[#allocation2 + $0xb0] sm:$0x1] }
 0x22b   : > { %3223 = vrot.lane.b32.xlu0 %v3160_v48, %s6094_s15  ;;  %3390 = vrot.lane.b32.xlu2 %v3308_v46, %s6095_s20  ;;  %v4911_v12 = vpop.f32.mrf.mxu1  ;;  %v3188_v0 = vpop.permute.xlu1 %3187  ;;  %v5765_v15 = vld [vmem:[#allocation3 + $0x168] sm:$0xf]  ;;  %v2282_v48 = vld [vmem:[#allocation2 + $0x78] sm:$0xf]  ;;  %v5566_v46 = vrot.slane %v2998_v23, 9 }
 0x22c   : > { %v4912_v33 = vadd.f32 %v4911_v12, %v4822_v26  ;;  %3270 = vst.msk [vmem:[#allocation3 + $0xa0] sm:$0xf] %vm1891_vm14, %v3188_v0  ;;  %v5766_v55 = vor.u32 %v5916_v54, %v5765_v15  ;;  %v4225_v54 = vsel %vm6889_vm13, %v5579_v44, %v4224_v11  ;;  %v3904_v26 = vshrl.u32 %v7871_v51, 16 }
 0x22d   : > { %v3212_v34 = vpop.permute.xlu0 %3211  ;;  %v3405_v27 = vpop.permute.xlu2 %3404  ;;  %3463 = vst.msk [vmem:[#allocation3 + $0xa0] sm:$0xf] %vm2231_vm15, %v7848_v30  ;;  %v3157_v52 = vsel %vm6889_vm13, %v5566_v46, %v3156_v21  ;;  %v7978_v51 = vrot.slane %v3780_v16, 5 }
 0x22e   : > { %3282 = vst.msk [vmem:[#allocation3 + $0x130] sm:$0xf] %vm1891_vm14, %v3212_v34  ;;  %v5001_v50 = vadd.f32 %v7783_v13, %v4912_v33  ;;  %4894 = vmatmul.bf16.gmra.mxu3 %v5766_v55  ;;  %v4226_v34 = vrot.slane %v4224_v11, 4  ;;  %v3906_v55 = vrot.slane %v3904_v26, 4  ;;  %v3792_v11 = vrot.slane %v3790_v53, 5 }
 0x22f   : > { %3475 = vst.msk [vmem:[#allocation3 + $0x130] sm:$0xf] %vm2231_vm15, %v3405_v27  ;;  %v7958_v45 = vpop.f32.mrf.mxu2 }
 0x230   : > { %v5079_v13 = vpack.c.bf16 %v5001_v50, %v5001_v50  ;;  %v5143_v57 = vsel %vm4762_vm2, %v5001_v50, 0.0  ;;  %v5213_v30 = vmul.f32 %v5001_v50, %v5001_v50  ;;  %5858 = vmatmul.msk.bf16.gmra.mxu2 %vm4762_vm2, %v5726_v43  ;;  %4306 = vst.msk [vmem:[#allocation3 + $0x128] sm:$0xf] %vm510_vm0, %v4225_v54  ;;  %v4228_v6 = vsel %vm6889_vm13, %v4226_v34, %v4227_v2  ;;  %v5888_v2 = vld [vmem:[#allocation3 + $0x94] sm:$0xf] }
 0x231   : > { %v5144_v1 = vadd.f32 %v5143_v57, %v5142_v41  ;;  %2364 = vrot.lane.b32.xlu1 %v2282_v48, %s6096_s21  ;;  %4307 = vst.msk [vmem:[#allocation3 + $0x134] sm:$0xf] %vm510_vm0, %v4228_v6  ;;  %v3320_v41 = vld [vmem:[#allocation2 + $0xcc] sm:$0xf]  ;;  %v2827_v57 = vshll.u32 %v2497_v56, 16  ;;  %v3907_v9 = vor.u32 %v3906_v55, %v7914_v29 }
 0x232   : > { %5111 = vst.msk [vmem:[%s7904_s22 + $0x4] sm:$0xf] %vm510_vm0, %v5079_v13  ;;  %v5245_v28 = vsel %vm4762_vm2, %v5213_v30, 0.0  ;;  %v2831_v30 = vshrl.u32 %v2497_v56, 16 }
 0x233   : > { %3974 = vrot.lane.b32.xlu0 %v3903_v17, %s6096_s21  ;;  %2366 = vrot.lane.b32.xlu2 %v2283_v62, %s6096_s21  ;;  %v5246_v22 = vadd.f32 %v5245_v28, %v5244_v20  ;;  %v4914_v42 = vpop.f32.mrf.mxu1  ;;  %v4825_v40 = vpop.f32.mrf.mxu0  ;;  %v5889_v17 = vld [vmem:[#allocation3 + $0x98] sm:$0xf0]  ;;  %v2496_v20 = vld [vmem:[#allocation2 + $0xa8] sm:$0xf]  ;;  %v2829_v16 = vrot.slane %v2827_v57, 5  ;;  %v3908_v26 = vrot.slane %v3907_v9, 4 }
 0x234   : > { %v2353_v8 = vpop.permute.xlu1 %2352  ;;  %v4915_v61 = vadd.f32 %v4914_v42, %v4825_v40  ;;  %v3321_v42 = vld [vmem:[#allocation2 + $0xd0] sm:$0xf]  ;;  %v2818_v34 = vshrl.u32 %v2496_v20, 16 }
 0x235   : > { %v7950_v19 = vpop.permute.xlu0 %3962  ;;  %v3190_v3 = vpop.permute.xlu2 %3189  ;;  %2437 = vst.msk [vmem:[#allocation3 + $0x90] sm:$0xf] %vm2424_vm3, %v2353_v8 }
 0x236   : > { %v5004_v12 = vadd.f32 %v7814_v10, %v4915_v61  ;;  %3271 = vst.msk [vmem:[#allocation3 + $0xac] sm:$0xf] %vm1891_vm14, %v3190_v3  ;;  %v3786_v10 = vrot.slane %v3784_v37, 4 }
 0x237   : > { %v7987_v62 = vpop.f32.mrf.mxu2  ;;  %v5737_v14 = vld [vmem:[#allocation3 + $0x128] sm:$0xf] }
 0x238   : > { %v5080_v33 = vpack.c.bf16 %v5004_v12, %v5004_v12  ;;  %v5145_v0 = vsel %vm4762_vm2, %v5004_v12, 0.0  ;;  %v5214_v15 = vmul.f32 %v5004_v12, %v5004_v12  ;;  %v3787_v38 = vor.u32 %v3786_v10, %v7978_v51  ;;  %v5908_v46 = vld [vmem:[#allocation3 + $0x130] sm:$0xf0] }
 0x239   : > { %v5146_v48 = vadd.f32 %v5145_v0, %v5144_v1  ;;  %3952 = vrot.lane.b32.xlu1 %v3769_v49, %s6096_s21  ;;  %v2837_v1 = vshll.u32 %v2498_v7, 16  ;;  %v5738_v37 = vor.u32 %v5908_v46, %v5737_v14  ;;  %v3912_v12 = vrot.slane %v3910_v18, 5  ;;  %v2481_v18 = vld [vmem:[#allocation2 + $0x6c] sm:$0xf] }
 0x23a   : > { %5112 = vst.msk [vmem:[%s7904_s22 + $0x8] sm:$0xf] %vm510_vm0, %v5080_v33  ;;  %v5247_v21 = vsel %vm4762_vm2, %v5214_v15, 0.0  ;;  %v3788_v40 = vrot.slane %v3787_v38, 4  ;;  %v2821_v10 = vshll.u32 %v2496_v20, 16 }
 0x23b   : > { %3203 = vrot.lane.b32.xlu0 %v3125_v47, %s6094_s15  ;;  %3221 = vrot.lane.b32.xlu2 %v3157_v52, %s6094_s15  ;;  %v5248_v23 = vadd.f32 %v5247_v21, %v5246_v22  ;;  %v4916_v63 = vpop.f32.mrf.mxu1  ;;  %v4827_v50 = vpop.f32.mrf.mxu0  ;;  %v2833_v22 = vrot.slane %v2831_v30, 4  ;;  %v2839_v54 = vrot.slane %v2837_v1, 5  ;;  %v2983_v47 = vld [vmem:[#allocation2 + $0x84] sm:$0xe]  ;;  %v2820_v52 = vrot.slane %v2818_v34, 4 }
 0x23c   : > { %v3941_v43 = vpop.permute.xlu1 %3940  ;;  %v4917_v31 = vadd.f32 %v4916_v63, %v4827_v50  ;;  %v5657_v44 = vld [vmem:[#allocation3 + $0x90] sm:$0xf]  ;;  %v5561_v0 = vrot.slane %v2983_v47, 9  ;;  %v3512_v15 = vld [vmem:[#allocation2 + $0x90] sm:$0xf]  ;;  %v2823_v53 = vrot.slane %v2821_v10, 5  ;;  %v3913_v56 = vsel %vm6249_vm8, %v3908_v26, %v3912_v12 }
 0x23d   : > { %v3192_v27 = vpop.permute.xlu0 %3191  ;;  %v3385_v13 = vpop.permute.xlu2 %3384  ;;  %4023 = vst.msk [vmem:[#allocation3 + $0xa0] sm:$0xf] %vm2424_vm3, %v3941_v43  ;;  %v5658_v36 = vor.u32 %v5889_v17, %v5657_v44  ;;  %v3771_v63 = vshrl.u32 %v3512_v15, 16  ;;  %v3774_v50 = vshll.u32 %v3512_v15, 16  ;;  %v3312_v1 = vld [vmem:[#allocation2 + $0x9c] sm:$0xf] }
 0x23e   : > { %3272 = vst.msk [vmem:[#allocation3 + $0xb8] sm:$0xf] %vm1891_vm14, %v3192_v27  ;;  %v5006_v28 = vadd.f32 %v7845_v25, %v4917_v31  ;;  %v2834_v25 = vor.u32 %v2833_v22, %v2829_v16  ;;  %v3793_v27 = vsel %vm6249_vm8, %v3788_v40, %v3792_v11  ;;  %v3122_v38 = vsel %vm6889_vm13, %v5561_v0, %v3121_v35  ;;  %v2482_v35 = vld [vmem:[#allocation2 + $0x70] sm:$0xf] }
 0x23f   : > { %3465 = vst.msk [vmem:[#allocation3 + $0xb8] sm:$0xf] %vm2231_vm15, %v3385_v13  ;;  %4849 = vmatmul.bf16.gmra.mxu0 %v5658_v36  ;;  %v3773_v31 = vrot.slane %v3771_v63, 4  ;;  %v3776_v44 = vrot.slane %v3774_v50, 5  ;;  %v2707_v36 = vshll.u32 %v2482_v35, 16  ;;  %v2711_v9 = vshrl.u32 %v2482_v35, 16 }
 0x240   : > { %v5081_v29 = vpack.c.bf16 %v5006_v28, %v5006_v28  ;;  %v5147_v8 = vsel %vm4762_vm2, %v5006_v28, 0.0  ;;  %v5215_v61 = vmul.f32 %v5006_v28, %v5006_v28  ;;  %5859 = vmatmul.msk.bf16.gmra.mxu2 %vm4762_vm2, %v5738_v37  ;;  %v2835_v6 = vrot.slane %v2834_v25, 4  ;;  %v3310_v11 = vld [vmem:[#allocation2 + $0x90] sm:$0xf]  ;;  %v4082_v25 = vld [vmem:[#allocation2 + $0xb8] sm:$0xf] }
 0x241   : > { %v7997_v3 = vadd.f32 %v5147_v8, %v5146_v48  ;;  %3414 = vrot.lane.b32.xlu1 %v3320_v41, %s6095_s20  ;;  %v2483_v41 = vld [vmem:[#allocation2 + $0x74] sm:$0x1]  ;;  %v8038_v22 = vrot.slane %v2707_v36, 5  ;;  %v3777_v40 = vor.u32 %v3776_v44, %v3773_v31  ;;  %v2701_v34 = vshll.u32 %v2481_v18, 16  ;;  %v2986_v35 = vld [vmem:[#allocation2 + $0x90] sm:$0xe] }
 0x242   : > { %5113 = vst.msk [vmem:[%s7904_s22 + $0xc] sm:$0xf] %vm510_vm0, %v5081_v29  ;;  %v5249_v59 = vsel %vm4762_vm2, %v5215_v61, 0.0  ;;  %v2840_v55 = vsel %vm6249_vm8, %v2835_v6, %v2839_v54  ;;  %v2717_v28 = vshll.u32 %v2483_v41, 16  ;;  %v2698_v54 = vshrl.u32 %v2481_v18, 16 }
 0x243   : > { %2368 = vrot.lane.b32.xlu0 %v2284_v32, %s6096_s21  ;;  %3416 = vrot.lane.b32.xlu2 %v3321_v42, %s6095_s20  ;;  %v8005_v33 = vadd.f32 %v5249_v59, %v5248_v23  ;;  %v8015_v32 = vpop.f32.mrf.mxu2  ;;  %v2824_v23 = vor.u32 %v2823_v53, %v2820_v52  ;;  %2948 = vst.msk [vmem:[#allocation3 + $0x148] sm:$0xf] %vm510_vm0, %v2840_v55  ;;  %v4830_v7 = vpop.f32.mrf.mxu0  ;;  %v2713_v42 = vrot.slane %v2711_v9, 4  ;;  %v4081_v29 = vld [vmem:[#allocation2 + $0xb4] sm:$0xe]  ;;  %v2703_v10 = vrot.slane %v2701_v34, 5 }
 0x244   : > { %v3403_v48 = vpop.permute.xlu1 %3402  ;;  %v5659_v17 = vld [vmem:[#allocation3 + $0x9c] sm:$0xf0]  ;;  %v2719_v37 = vrot.slane %v2717_v28, 5  ;;  %v4083_v59 = vld [vmem:[#allocation2 + $0xbc] sm:$0x1]  ;;  %v5580_v0 = vrot.slane %v4081_v29, 9 }
 0x245   : > { %v2357_v49 = vpop.permute.xlu0 %2356  ;;  %v8010_v4 = vpop.permute.xlu2 %3942  ;;  %3474 = vst.msk [vmem:[#allocation3 + $0x124] sm:$0xf] %vm2231_vm15, %v3403_v48  ;;  %v5662_v21 = vor.u32 %v5888_v2, %v5659_v17  ;;  %v2825_v14 = vrot.slane %v2824_v23, 4  ;;  %v3778_v17 = vrot.slane %v3777_v40, 4  ;;  %v2287_v23 = vld [vmem:[#allocation2 + $0x94] sm:$0xf] }
 0x246   : > { %2439 = vst.msk [vmem:[#allocation3 + $0xa8] sm:$0xf] %vm2424_vm3, %v2357_v49  ;;  %v2700_v49 = vrot.slane %v2698_v54, 4  ;;  %v2987_v44 = vld [vmem:[#allocation2 + $0x94] sm:$0xf]  ;;  %v5562_v28 = vrot.slane %v2986_v35, 9 }
 0x247   : > { %4034 = vst.msk [vmem:[#allocation3 + $0x124] sm:$0xf] %vm2424_vm3, %v7950_v19  ;;  %4938 = vmatmul.bf16.gmra.mxu1 %v5662_v21  ;;  %v2830_v43 = vsel %vm6249_vm8, %v2825_v14, %v2829_v16  ;;  %v3311_v16 = vld [vmem:[#allocation2 + $0x94] sm:$0xf]  ;;  %v3783_v41 = vsel %vm6249_vm8, %v3778_v17, %v7978_v51  ;;  %v3128_v51 = vrot.slane %v2987_v44, 5 }
 0x248   : > { %2947 = vst.msk [vmem:[#allocation3 + $0x13c] sm:$0xf] %vm510_vm0, %v2830_v43  ;;  %v2704_v50 = vor.u32 %v2703_v10, %v2700_v49  ;;  %v3515_v18 = vld [vmem:[#allocation2 + $0x9c] sm:$0xf]  ;;  %v3517_v44 = vld [vmem:[#allocation2 + $0xa4] sm:$0x1] }
 0x249   : > { %3976 = vrot.lane.b32.xlu1 %v3913_v56, %s6096_s21  ;;  %v3798_v54 = vshll.u32 %v3515_v18, 16  ;;  %v3313_v35 = vld [vmem:[#allocation2 + $0xa0] sm:$0xf] }
 0x24b   : > { %3956 = vrot.lane.b32.xlu0 %v3793_v27, %s6096_s21  ;;  %3201 = vrot.lane.b32.xlu2 %v3122_v38, %s6094_s15  ;;  %v4919_v39 = vpop.f32.mrf.mxu1  ;;  %v8034_v20 = vpop.f32.mrf.mxu2  ;;  %v4231_v27 = vrot.slane %v4082_v25, 5  ;;  %v4234_v38 = vrot.slane %v4083_v59, 5  ;;  %v2499_v25 = vld [vmem:[#allocation2 + $0xb4] sm:$0xf] }
 0x24c   : > { %v4920_v13 = vadd.f32 %v4919_v39, %v4830_v7  ;;  %v3965_v57 = vpop.permute.xlu1 %3964  ;;  %v4832_v48 = vpop.f32.mrf.mxu0  ;;  %v2285_v7 = vld [vmem:[#allocation2 + $0x88] sm:$0xf]  ;;  %v2705_v39 = vrot.slane %v2704_v50, 4  ;;  %v2842_v59 = vshrl.u32 %v2499_v25, 16 }
 0x24d   : > { %v3945_v19 = vpop.permute.xlu0 %3944  ;;  %v3216_v30 = vpop.permute.xlu2 %3215  ;;  %4035 = vst.msk [vmem:[#allocation3 + $0x130] sm:$0xf] %vm2424_vm3, %v3965_v57  ;;  %v4233_v43 = vrot.slane %v4231_v27, 4 }
 0x24e   : > { %4025 = vst.msk [vmem:[#allocation3 + $0xb8] sm:$0xf] %vm2424_vm3, %v3945_v19  ;;  %v5009_v46 = vadd.f32 %v7885_v58, %v4920_v13  ;;  %v2714_v58 = vor.u32 %v2713_v42, %v8038_v22  ;;  %v5906_v26 = vld [vmem:[#allocation3 + $0x124] sm:$0xf]  ;;  %v4232_v19 = vsel %vm6889_vm13, %v5580_v0, %v4231_v27  ;;  %v2844_v17 = vrot.slane %v2842_v59, 4 }
 0x24f   : > { %3284 = vst.msk [vmem:[#allocation3 + $0x148] sm:$0xf] %vm1891_vm14, %v3216_v30  ;;  %v4235_v13 = vsel %vm6889_vm13, %v4233_v43, %v4234_v38  ;;  %v2710_v30 = vsel %vm6249_vm8, %v2705_v39, %v8038_v22  ;;  %v3130_v22 = vrot.slane %v3128_v51, 4 }
 0x250   : > { %v5082_v8 = vpack.c.bf16 %v5009_v46, %v5009_v46  ;;  %v5149_v61 = vsel %vm4762_vm2, %v5009_v46, 0.0  ;;  %v5216_v47 = vmul.f32 %v5009_v46, %v5009_v46  ;;  %v2715_v52 = vrot.slane %v2714_v58, 4  ;;  %4308 = vst.msk [vmem:[#allocation3 + $0x140] sm:$0xf] %vm510_vm0, %v4232_v19 }
 0x251   : > { %v5150_v2 = vadd.f32 %v5149_v61, %v7997_v3  ;;  %3394 = vrot.lane.b32.xlu1 %v3310_v11, %s6095_s20  ;;  %2937 = vst.msk [vmem:[#allocation3 + $0xc4] sm:$0xf] %vm510_vm0, %v2710_v30  ;;  %v3129_v58 = vsel %vm6889_vm13, %v5562_v28, %v3128_v51 }
 0x252   : > { %5114 = vst.msk [vmem:[%s7904_s22 + $0x10] sm:$0xf] %vm510_vm0, %v5082_v8  ;;  %v5251_v6 = vsel %vm4762_vm2, %v5216_v47, 0.0  ;;  %v2720_v63 = vsel %vm6249_vm8, %v2715_v52, %v2719_v37  ;;  %v3795_v37 = vshrl.u32 %v3515_v18, 16  ;;  %v3516_v8 = vld [vmem:[#allocation2 + $0xa0] sm:$0xf] }
 0x253   : > { %3398 = vrot.lane.b32.xlu0 %v3312_v1, %s6095_s20  ;;  %3396 = vrot.lane.b32.xlu2 %v3311_v16, %s6095_s20  ;;  %v5252_v15 = vadd.f32 %v5251_v6, %v8005_v33  ;;  %v4921_v3 = vpop.f32.mrf.mxu1  ;;  %v8057_v33 = vpop.f32.mrf.mxu2  ;;  %2938 = vst.msk [vmem:[#allocation3 + $0xd0] sm:$0xf] %vm510_vm0, %v2720_v63  ;;  %v2988_v1 = vld [vmem:[#allocation2 + $0x98] sm:$0x1]  ;;  %v2845_v6 = vshll.u32 %v2499_v25, 16 }
 0x254   : > { %v4922_v55 = vadd.f32 %v4921_v3, %v4832_v48  ;;  %v3383_v53 = vpop.permute.xlu1 %3382  ;;  %v5731_v21 = vld [vmem:[#allocation3 + $0x12c] sm:$0xf0]  ;;  %4309 = vst.msk [vmem:[#allocation3 + $0x14c] sm:$0xf] %vm510_vm0, %v4235_v13  ;;  %v3131_v42 = vrot.slane %v2988_v1, 5  ;;  %v3804_v3 = vshll.u32 %v3516_v8, 16 }
 0x255   : > { %v8045_v12 = vpop.permute.xlu0 %3406  ;;  %v8052_v56 = vpop.permute.xlu2 %3966  ;;  %3464 = vst.msk [vmem:[#allocation3 + $0xac] sm:$0xf] %vm2231_vm15, %v3383_v53  ;;  %v5734_v14 = vor.u32 %v5906_v26, %v5731_v21  ;;  %v5671_v16 = vld [vmem:[#allocation3 + $0xb4] sm:$0xf0]  ;;  %v3808_v26 = vshrl.u32 %v3516_v8, 16  ;;  %v2847_v27 = vrot.slane %v2845_v6, 5 }
 0x256   : > { %v5011_v31 = vadd.f32 %v7922_v5, %v4922_v55  ;;  %4024 = vst.msk [vmem:[#allocation3 + $0xac] sm:$0xf] %vm2424_vm3, %v8010_v4  ;;  %v3132_v49 = vsel %vm6889_vm13, %v3130_v22, %v3131_v42  ;;  %v3797_v55 = vrot.slane %v3795_v37, 4  ;;  %v3800_v53 = vrot.slane %v3798_v54, 5  ;;  %v2501_v1 = vld [vmem:[#allocation2 + $0xbc] sm:$0x1] }
 0x257   : > { %4968 = vmatmul.bf16.vlgmr.msrb.gmra.mxu3 %v5734_v14  ;;  %v5749_v52 = vld [vmem:[#allocation3 + $0x140] sm:$0xf]  ;;  %v2848_v38 = vor.u32 %v2847_v27, %v2844_v17  ;;  %v3810_v14 = vrot.slane %v3808_v26, 4  ;;  %v2861_v22 = vshll.u32 %v2501_v1, 16 }
 0x258   : > { %v5083_v5 = vpack.c.bf16 %v5011_v31, %v5011_v31  ;;  %v5151_v57 = vsel %vm4762_vm2, %v5011_v31, 0.0  ;;  %v5217_v4 = vmul.f32 %v5011_v31, %v5011_v31  ;;  %v3801_v30 = vor.u32 %v3800_v53, %v3797_v55 }
 0x259   : > { %v8076_v36 = vadd.f32 %v5151_v57, %v5150_v2  ;;  %2370 = vrot.lane.b32.xlu1 %v2285_v7, %s6096_s21  ;;  %v2500_v2 = vld [vmem:[#allocation2 + $0xb8] sm:$0xf]  ;;  %v2849_v57 = vrot.slane %v2848_v38, 4  ;;  %v2863_v54 = vrot.slane %v2861_v22, 5 }
 0x25a   : > { %5115 = vst.msk [vmem:[%s7904_s22 + $0x14] sm:$0xf] %vm510_vm0, %v5083_v5  ;;  %v5253_v11 = vsel %vm4762_vm2, %v5217_v4, 0.0  ;;  %v2851_v10 = vshll.u32 %v2500_v2, 16 }
 0x25b   : > { %2374 = vrot.lane.b32.xlu0 %v2287_v23, %s6096_s21  ;;  %3954 = vrot.lane.b32.xlu2 %v3783_v41, %s6096_s21  ;;  %v8086_v46 = vadd.f32 %v5253_v11, %v5252_v15  ;;  %v8090_v61 = vpop.f32.mrf.mxu2  ;;  %v5669_v15 = vld [vmem:[#allocation3 + $0xa8] sm:$0xf]  ;;  %v5911_v21 = vld [vmem:[#allocation3 + $0x148] sm:$0xf0]  ;;  %v2855_v23 = vshrl.u32 %v2500_v2, 16  ;;  %v3806_v41 = vrot.slane %v3804_v3, 5 }
 0x25c   : > { %v2359_v40 = vpop.permute.xlu1 %2358  ;;  %v4924_v0 = vpop.f32.mrf.mxu1  ;;  %v5750_v50 = vor.u32 %v5911_v21, %v5749_v52  ;;  %v2853_v31 = vrot.slane %v2851_v10, 5  ;;  %v2286_v11 = vld [vmem:[#allocation2 + $0x90] sm:$0xf] }
 0x25d   : > { %v8079_v9 = vpop.permute.xlu0 %3968  ;;  %2440 = vst.msk [vmem:[#allocation3 + $0xb4] sm:$0xf] %vm2424_vm3, %v2359_v40  ;;  %v5891_v34 = vld [vmem:[#allocation3 + $0xac] sm:$0xf]  ;;  %v3196_v29 = vpop.permute.xlu2 %3195  ;;  %v2857_v51 = vrot.slane %v2855_v23, 4  ;;  %v3811_v28 = vor.u32 %v3810_v14, %v3806_v41 }
 0x25e   : > { %v5674_v47 = vor.u32 %v5891_v34, %v5671_v16  ;;  %3274 = vst.msk [vmem:[#allocation3 + $0xd0] sm:$0xf] %vm1891_vm14, %v3196_v29  ;;  %5860 = vmatmul.msk.bf16.gmra.mxu2 %vm4762_vm2, %v5750_v50  ;;  %v2854_v18 = vsel %vm6249_vm8, %v2849_v57, %v2853_v31  ;;  %v3814_v16 = vshll.u32 %v3517_v44, 16  ;;  %v3802_v29 = vrot.slane %v3801_v30, 4  ;;  %v2485_v14 = vld [vmem:[#allocation2 + $0x7c] sm:$0xf] }
 0x25f   : > { %2949 = vst.msk [vmem:[#allocation3 + $0x154] sm:$0xf] %vm510_vm0, %v2854_v18  ;;  %v2735_v44 = vshrl.u32 %v2485_v14, 16  ;;  %v2486_v30 = vld [vmem:[#allocation2 + $0x80] sm:$0x1] }
 0x260   : > { %4943 = vmatmul.bf16.gmra.mxu1 %v5674_v47  ;;  %v3816_v2 = vrot.slane %v3814_v16, 5  ;;  %v3807_v10 = vsel %vm6249_vm8, %v3802_v29, %v3806_v41  ;;  %v2741_v18 = vshll.u32 %v2486_v30, 16 }
 0x261   : > { %3205 = vrot.lane.b32.xlu1 %v3129_v58, %s6094_s15  ;;  %v2737_v1 = vrot.slane %v2735_v44, 4 }
 0x262   : > { %v2743_v22 = vrot.slane %v2741_v18, 5 }
 0x263   : > { %3207 = vrot.lane.b32.xlu2 %v3132_v49, %s6094_s15  ;;  %v4835_v63 = vpop.f32.mrf.mxu0  ;;  %v8103_v5 = vpop.f32.mrf.mxu2 }
 0x264   : > { %v3214_v7 = vpop.permute.xlu1 %3213  ;;  %v4925_v19 = vadd.f32 %v4924_v0, %v4835_v63  ;;  %v5892_v43 = vld [vmem:[#allocation3 + $0xb0] sm:$0xf0]  ;;  %v4926_v58 = vpop.f32.mrf.mxu1 }
 0x265   : > { %v8098_v48 = vpop.permute.xlu0 %3386  ;;  %3283 = vst.msk [vmem:[#allocation3 + $0x13c] sm:$0xf] %vm1891_vm14, %v3214_v7  ;;  %v5670_v39 = vor.u32 %v5892_v43, %v5669_v15  ;;  %v2361_v13 = vpop.permute.xlu2 %2360 }
 0x266   : > { %3476 = vst.msk [vmem:[#allocation3 + $0x13c] sm:$0xf] %vm2231_vm15, %v8045_v12  ;;  %v5014_v4 = vadd.f32 %v7958_v45, %v4925_v19  ;;  %v2858_v45 = vor.u32 %v2857_v51, %v2853_v31  ;;  %v2731_v31 = vshll.u32 %v2485_v14, 16 }
 0x267   : > { %4036 = vst.msk [vmem:[#allocation3 + $0x13c] sm:$0xf] %vm2424_vm3, %v8052_v56  ;;  %4854 = vmatmul.bf16.gmra.mxu0 %v5670_v39 }
 0x268   : > { %v5084_v42 = vpack.c.bf16 %v5014_v4, %v5014_v4  ;;  %v5153_v12 = vsel %vm4762_vm2, %v5014_v4, 0.0  ;;  %v5218_v40 = vmul.f32 %v5014_v4, %v5014_v4  ;;  %2441 = vst.msk [vmem:[#allocation3 + $0xc0] sm:$0xf] %vm2424_vm3, %v2361_v13  ;;  %v2859_v8 = vrot.slane %v2858_v45, 4 }
 0x269   : > { %v5154_v37 = vadd.f32 %v5153_v12, %v8076_v36  ;;  %3400 = vrot.lane.b32.xlu1 %v3313_v35, %s6095_s20  ;;  %v3812_v36 = vrot.slane %v3811_v28, 4  ;;  %v2733_v4 = vrot.slane %v2731_v31, 5  ;;  %s500_s20 = scalar_lea.vmem %s8471_s7, %s8488_s26 }
 0x26a   : > { %5116 = vst.msk [vmem:[%s7904_s22 + $0x18] sm:$0xf] %vm510_vm0, %v5084_v42  ;;  %v5255_v34 = vsel %vm4762_vm2, %v5218_v40, 0.0  ;;  %v2864_v59 = vsel %vm6249_vm8, %v2859_v8, %v2863_v54 }
 0x26b   : > { %2372 = vrot.lane.b32.xlu2 %v2286_v11, %s6096_s21  ;;  %v5256_v47 = vadd.f32 %v5255_v34, %v8086_v46  ;;  %v4837_v25 = vpop.f32.mrf.mxu0  ;;  %v8126_v52 = vpop.f32.mrf.mxu2  ;;  %v3817_v0 = vsel %vm6249_vm8, %v3812_v36, %v3816_v2  ;;  %2950 = vst.msk [vmem:[#allocation3 + $0x160] sm:$0xf] %vm510_vm0, %v2864_v59  ;;  %v2738_v11 = vor.u32 %v2737_v1, %v2733_v4  ;;  %v2502_v34 = vld [vmem:[#allocation2 + $0xc0] sm:$0xf]  ;;  %v2503_v59 = vld [vmem:[#allocation2 + $0xc4] sm:$0xf] }
 0x26c   : > { %v3409_v26 = vpop.permute.xlu1 %3408  ;;  %v4927_v49 = vadd.f32 %v4926_v58, %v4837_v25  ;;  %v2866_v8 = vshrl.u32 %v2502_v34, 16 }
 0x26d   : > { %v2363_v56 = vpop.permute.xlu0 %2362  ;;  %3477 = vst.msk [vmem:[#allocation3 + $0x148] sm:$0xf] %vm2231_vm15, %v3409_v26  ;;  %v3949_v6 = vpop.permute.xlu2 %3948  ;;  %v2739_v42 = vrot.slane %v2738_v11, 4 }
 0x26e   : > { %2442 = vst.msk [vmem:[#allocation3 + $0xcc] sm:$0xf] %vm2424_vm3, %v2363_v56  ;;  %v5016_v46 = vadd.f32 %v7987_v62, %v4927_v49  ;;  %v2484_v62 = vld [vmem:[#allocation2 + $0x78] sm:$0xf]  ;;  %v2868_v2 = vrot.slane %v2866_v8, 4 }
 0x26f   : > { %4037 = vst.msk [vmem:[#allocation3 + $0x148] sm:$0xf] %vm2424_vm3, %v8079_v9  ;;  %v5681_v27 = vld [vmem:[#allocation3 + $0xc0] sm:$0xf]  ;;  %v5909_v9 = vld [vmem:[#allocation3 + $0x13c] sm:$0xf] }
 0x270   : > { %v5085_v15 = vpack.c.bf16 %v5016_v46, %v5016_v46  ;;  %v5155_v3 = vsel %vm4762_vm2, %v5016_v46, 0.0  ;;  %v5219_v17 = vmul.f32 %v5016_v46, %v5016_v46  ;;  %v2722_v63 = vshrl.u32 %v2484_v62, 16 }
 0x271   : > { %v8137_v55 = vadd.f32 %v5155_v3, %v5154_v37  ;;  %3958 = vrot.lane.b32.xlu1 %v3807_v10, %s6096_s21  ;;  %v2725_v7 = vshll.u32 %v2484_v62, 16  ;;  %v2875_v10 = vshll.u32 %v2503_v59, 16 }
 0x272   : > { %5117 = vst.msk [vmem:[%s7904_s22 + $0x1c] sm:$0xf] %vm510_vm0, %v5085_v15  ;;  %v5257_v21 = vsel %vm4762_vm2, %v5219_v17, 0.0  ;;  %v2724_v43 = vrot.slane %v2722_v63, 4 }
 0x273   : > { %3960 = vrot.lane.b32.xlu2 %v3817_v0, %s6096_s21  ;;  %v8144_v50 = vadd.f32 %v5257_v21, %v5256_v47  ;;  %v8148_v41 = vpop.f32.mrf.mxu2  ;;  %v2727_v13 = vrot.slane %v2725_v7, 5  ;;  %v2869_v47 = vshll.u32 %v2502_v34, 16  ;;  %v2879_v21 = vshrl.u32 %v2503_v59, 16  ;;  %v2504_v7 = vld [vmem:[#allocation2 + $0xc8] sm:$0x1] }
 0x274   : > { %v3194_v19 = vpop.permute.xlu1 %3193  ;;  %v2885_v44 = vshll.u32 %v2504_v7, 16 }
 0x275   : > { %v3218_v53 = vpop.permute.xlu0 %3217  ;;  %v5895_v23 = vld [vmem:[#allocation3 + $0xc8] sm:$0xf0]  ;;  %3273 = vst.msk [vmem:[#allocation3 + $0xc4] sm:$0xf] %vm1891_vm14, %v3194_v19  ;;  %v3411_v35 = vpop.permute.xlu2 %3410  ;;  %v2728_v51 = vor.u32 %v2727_v13, %v2724_v43  ;;  %v2871_v26 = vrot.slane %v2869_v47, 5  ;;  %v2881_v31 = vrot.slane %v2879_v21, 4 }
 0x276   : > { %3285 = vst.msk [vmem:[#allocation3 + $0x154] sm:$0xf] %vm1891_vm14, %v3218_v53  ;;  %v5682_v38 = vor.u32 %v5895_v23, %v5681_v27  ;;  %v5743_v39 = vld [vmem:[#allocation3 + $0x144] sm:$0xf0]  ;;  %v2877_v53 = vrot.slane %v2875_v10, 5 }
 0x277   : > { %3466 = vst.msk [vmem:[#allocation3 + $0xc4] sm:$0xf] %vm2231_vm15, %v8098_v48  ;;  %v5746_v57 = vor.u32 %v5909_v9, %v5743_v39  ;;  %v2729_v16 = vrot.slane %v2728_v51, 4  ;;  %v2744_v48 = vsel %vm6249_vm8, %v2739_v42, %v2743_v22  ;;  %v2872_v46 = vor.u32 %v2871_v26, %v2868_v2  ;;  %v2487_v42 = vld [vmem:[#allocation2 + $0x84] sm:$0xf] }
 0x278   : > { %4859 = vmatmul.bf16.gmra.mxu0 %v5682_v38  ;;  %3478 = vst.msk [vmem:[#allocation3 + $0x154] sm:$0xf] %vm2231_vm15, %v3411_v35  ;;  %v2882_v13 = vor.u32 %v2881_v31, %v2877_v53 }
 0x279   : > { %4973 = vmatmul.bf16.gmra.mxu3 %v5746_v57  ;;  %v2734_v12 = vsel %vm6249_vm8, %v2729_v16, %v2733_v4  ;;  %2940 = vst.msk [vmem:[#allocation3 + $0xe8] sm:$0xf] %vm510_vm0, %v2744_v48  ;;  %v2873_v9 = vrot.slane %v2872_v46, 4  ;;  %v2887_v57 = vrot.slane %v2885_v44, 5  ;;  %v2749_v48 = vshll.u32 %v2487_v42, 16 }
 0x27a   : > { %2939 = vst.msk [vmem:[#allocation3 + $0xdc] sm:$0xf] %vm510_vm0, %v2734_v12  ;;  %v2883_v51 = vrot.slane %v2882_v13, 4 }
 0x27b   : > { %v8159_v37 = vpop.f32.mrf.mxu2  ;;  %v4840_v56 = vpop.f32.mrf.mxu0  ;;  %v2878_v14 = vsel %vm6249_vm8, %v2873_v9, %v2877_v53  ;;  %v2751_v34 = vrot.slane %v2749_v48, 5 }
 0x27c   : > { %v3389_v40 = vpop.permute.xlu1 %3388  ;;  %2951 = vst.msk [vmem:[#allocation3 + $0x16c] sm:$0xf] %vm510_vm0, %v2878_v14  ;;  %v2888_v22 = vsel %vm6249_vm8, %v2883_v51, %v2887_v57 }
 0x27d   : > { %v3413_v28 = vpop.permute.xlu0 %3412  ;;  %3467 = vst.msk [vmem:[#allocation3 + $0xd0] sm:$0xf] %vm2231_vm15, %v3389_v40  ;;  %v3973_v45 = vpop.permute.xlu2 %3972  ;;  %v2746_v40 = vshrl.u32 %v2487_v42, 16  ;;  %v2490_v42 = vld [vmem:[#allocation2 + $0x90] sm:$0xf] }
 0x27e   : > { %4027 = vst.msk [vmem:[#allocation3 + $0xd0] sm:$0xf] %vm2424_vm3, %v3949_v6 }
 0x27f   : > { %2952 = vst.msk [vmem:[#allocation3 + $0x178] sm:$0xf] %vm510_vm0, %v2888_v22  ;;  %v2491_v22 = vld [vmem:[#allocation2 + $0x94] sm:$0xf] }
 0x283   : > { %v4929_v29 = vpop.f32.mrf.mxu1  ;;  %v8167_v6 = vpop.f32.mrf.mxu2 }
 0x284   : > { %v4930_v58 = vadd.f32 %v4929_v29, %v4840_v56  ;;  %v3947_v25 = vpop.permute.xlu1 %3946  ;;  %v4842_v63 = vpop.f32.mrf.mxu0  ;;  %v2488_v29 = vld [vmem:[#allocation2 + $0x88] sm:$0xf] }
 0x285   : > { %v3198_v54 = vpop.permute.xlu0 %3197  ;;  %4026 = vst.msk [vmem:[#allocation3 + $0xc4] sm:$0xf] %vm2424_vm3, %v3947_v25  ;;  %v3391_v36 = vpop.permute.xlu2 %3390  ;;  %v5683_v62 = vld [vmem:[#allocation3 + $0xcc] sm:$0xf0]  ;;  %v2755_v47 = vshll.u32 %v2488_v29, 16 }
 0x286   : > { %3275 = vst.msk [vmem:[#allocation3 + $0xdc] sm:$0xf] %vm1891_vm14, %v3198_v54  ;;  %v5019_v49 = vadd.f32 %v8015_v32, %v4930_v58  ;;  %v2748_v54 = vrot.slane %v2746_v40, 4  ;;  %v2759_v58 = vshrl.u32 %v2488_v29, 16  ;;  %v2489_v25 = vld [vmem:[#allocation2 + $0x8c] sm:$0x1] }
 0x287   : > { %3468 = vst.msk [vmem:[#allocation3 + $0xdc] sm:$0xf] %vm2231_vm15, %v3391_v36  ;;  %v2765_v36 = vshll.u32 %v2489_v25, 16 }
 0x288   : > { %v5086_v0 = vpack.c.bf16 %v5019_v49, %v5019_v49  ;;  %v5157_v15 = vsel %vm4762_vm2, %v5019_v49, 0.0  ;;  %v5220_v3 = vmul.f32 %v5019_v49, %v5019_v49  ;;  %v2752_v8 = vor.u32 %v2751_v34, %v2748_v54 }
 0x289   : > { %v5158_v17 = vadd.f32 %v5157_v15, %v8137_v55  ;;  %v2757_v49 = vrot.slane %v2755_v47, 5  ;;  %v2761_v59 = vrot.slane %v2759_v58, 4  ;;  %v2770_v54 = vshrl.u32 %v2490_v42, 16  ;;  %v4086_v47 = vld [vmem:[#allocation2 + $0xc8] sm:$0x1] }
 0x28a   : > { %5118 = vst.msk [vmem:[%s7904_s22 + $0x20] sm:$0xf] %vm510_vm0, %v5086_v0  ;;  %v5259_v32 = vsel %vm4762_vm2, %v5220_v3, 0.0  ;;  %v2753_v26 = vrot.slane %v2752_v8, 4  ;;  %v2767_v3 = vrot.slane %v2765_v36, 5  ;;  %v2773_v8 = vshll.u32 %v2490_v42, 16 }
 0x28b   : > { %v5260_v23 = vadd.f32 %v5259_v32, %v8144_v50  ;;  %v4931_v38 = vpop.f32.mrf.mxu1  ;;  %v8188_v16 = vpop.f32.mrf.mxu2  ;;  %v2762_v15 = vor.u32 %v2761_v59, %v2757_v49  ;;  %v2492_v59 = vld [vmem:[#allocation2 + $0x98] sm:$0x1] }
 0x28c   : > { %v4932_v19 = vadd.f32 %v4931_v38, %v4842_v63  ;;  %v3220_v55 = vpop.permute.xlu1 %3219  ;;  %v5894_v43 = vld [vmem:[#allocation3 + $0xc4] sm:$0xf]  ;;  %v2758_v0 = vsel %vm6249_vm8, %v2753_v26, %v2757_v49  ;;  %v2772_v26 = vrot.slane %v2770_v54, 4 }
 0x28d   : > { %v8171_v27 = vpop.permute.xlu0 %3392  ;;  %3286 = vst.msk [vmem:[#allocation3 + $0x160] sm:$0xf] %vm1891_vm14, %v3220_v55  ;;  %v5686_v39 = vor.u32 %v5894_v43, %v5683_v62  ;;  %v2367_v35 = vpop.permute.xlu2 %2366  ;;  %v2763_v21 = vrot.slane %v2762_v15, 4 }
 0x28e   : > { %v5021_v50 = vadd.f32 %v8034_v20, %v4932_v19  ;;  %3479 = vst.msk [vmem:[#allocation3 + $0x160] sm:$0xf] %vm2231_vm15, %v3413_v28  ;;  %v8190_v20 = vpop.f32.mrf.mxu3 }
 0x28f   : > { %4039 = vst.msk [vmem:[#allocation3 + $0x160] sm:$0xf] %vm2424_vm3, %v3973_v45  ;;  %4948 = vmatmul.bf16.gmra.mxu1 %v5686_v39 }
 0x290   : > { %v5087_v4 = vpack.c.bf16 %v5021_v50, %v5021_v50  ;;  %v5159_v30 = vsel %vm4762_vm2, %v5021_v50, 0.0  ;;  %v5221_v1 = vmul.f32 %v5021_v50, %v5021_v50  ;;  %2444 = vst.msk [vmem:[#allocation3 + $0xe4] sm:$0xf] %vm2424_vm3, %v2367_v35  ;;  %v4085_v50 = vld [vmem:[#allocation2 + $0xc4] sm:$0xf] }
 0x291   : > { %v8186_v18 = vadd.f32 %v5159_v30, %v5158_v17  ;;  %2941 = vst.msk [vmem:[#allocation3 + $0xf4] sm:$0xf] %vm510_vm0, %v2758_v0  ;;  %v4238_v51 = vrot.slane %v4085_v50, 5 }
 0x292   : > { %5119 = vst.msk [vmem:[%s7904_s22 + $0x24] sm:$0xf] %vm510_vm0, %v5087_v4  ;;  %v5261_v28 = vsel %vm4762_vm2, %v5221_v1, 0.0  ;;  %v4084_v1 = vld [vmem:[#allocation2 + $0xc0] sm:$0xe] }
 0x293   : > { %v5262_v12 = vadd.f32 %v5261_v28, %v5260_v23  ;;  %v8202_v10 = vpop.f32.mrf.mxu2  ;;  %v2768_v23 = vsel %vm6249_vm8, %v2763_v21, %v2767_v3  ;;  %v5581_v58 = vrot.slane %v4084_v1, 9  ;;  %v4240_v15 = vrot.slane %v4238_v51, 4 }
 0x294   : > { %v3971_v45 = vpop.permute.xlu1 %3970  ;;  %2942 = vst.msk [vmem:[#allocation3 + $0x100] sm:$0xf] %vm510_vm0, %v2768_v23  ;;  %v4241_v3 = vrot.slane %v4086_v47, 5  ;;  %v2789_v23 = vshll.u32 %v2492_v59, 16 }
 0x295   : > { %v3951_v11 = vpop.permute.xlu0 %3950  ;;  %4038 = vst.msk [vmem:[#allocation3 + $0x154] sm:$0xf] %vm2424_vm3, %v3971_v45  ;;  %v3222_v56 = vpop.permute.xlu2 %3221  ;;  %v4239_v0 = vsel %vm6889_vm13, %v5581_v58, %v4238_v51  ;;  %v4088_v51 = vld [vmem:[#allocation2 + $0xd0] sm:$0xf] }
 0x296   : > { %4028 = vst.msk [vmem:[#allocation3 + $0xdc] sm:$0xf] %vm2424_vm3, %v3951_v11  ;;  %v5755_v46 = vld [vmem:[#allocation3 + $0x15c] sm:$0xf0]  ;;  %v8206_v17 = vpop.f32.mrf.mxu3 }
 0x297   : > { %3287 = vst.msk [vmem:[#allocation3 + $0x16c] sm:$0xf] %vm1891_vm14, %v3222_v56  ;;  %v5898_v57 = vld [vmem:[#allocation3 + $0xe0] sm:$0xf0]  ;;  %v2779_v56 = vshll.u32 %v2491_v22, 16 }
 0x298   : > { %4310 = vst.msk [vmem:[#allocation3 + $0x158] sm:$0xf] %vm510_vm0, %v4239_v0 }
 0x299   : > { %v2781_v36 = vrot.slane %v2779_v56, 5 }
 0x29b   : > { %v4845_v63 = vpop.f32.mrf.mxu0 }
 0x29c   : > { %v3200_v9 = vpop.permute.xlu1 %3199  ;;  %v5912_v53 = vld [vmem:[#allocation3 + $0x154] sm:$0xf] }
 0x29d   : > { %v3224_v2 = vpop.permute.xlu0 %3223  ;;  %3276 = vst.msk [vmem:[#allocation3 + $0xe8] sm:$0xf] %vm1891_vm14, %v3200_v9  ;;  %v5758_v32 = vor.u32 %v5912_v53, %v5755_v46  ;;  %v3417_v62 = vpop.permute.xlu2 %3416  ;;  %v2775_v46 = vrot.slane %v2773_v8, 5 }
 0x29e   : > { %3288 = vst.msk [vmem:[#allocation3 + $0x178] sm:$0xf] %vm1891_vm14, %v3224_v2  ;;  %v8218_v7 = vpop.f32.mrf.mxu3 }
 0x29f   : > { %3469 = vst.msk [vmem:[#allocation3 + $0xe8] sm:$0xf] %vm2231_vm15, %v8171_v27  ;;  %4978 = vmatmul.bf16.gmra.mxu3 %v5758_v32  ;;  %v8221_v27 = vpop.f32.mrf.mxu2 }
 0x2a0   : > { %3481 = vst.msk [vmem:[#allocation3 + $0x178] sm:$0xf] %vm2231_vm15, %v3417_v62 }
 0x2a3   : > { %v4934_v14 = vpop.f32.mrf.mxu1  ;;  %v4847_v28 = vpop.f32.mrf.mxu0 }
 0x2a4   : > { %v4935_v19 = vadd.f32 %v4934_v14, %v4845_v63  ;;  %v2365_v55 = vpop.permute.xlu1 %2364  ;;  %v2776_v63 = vor.u32 %v2775_v46, %v2772_v26  ;;  %v4242_v14 = vsel %vm6889_vm13, %v4240_v15, %v4241_v3 }
 0x2a5   : > { %v8216_v38 = vpop.permute.xlu0 %3974  ;;  %2443 = vst.msk [vmem:[#allocation3 + $0xd8] sm:$0xf] %vm2424_vm3, %v2365_v55  ;;  %v3202_v43 = vpop.permute.xlu2 %3201  ;;  %v5897_v55 = vld [vmem:[#allocation3 + $0xdc] sm:$0xf] }
 0x2a6   : > { %v5024_v31 = vadd.f32 %v8057_v33, %v4935_v19  ;;  %3277 = vst.msk [vmem:[#allocation3 + $0xf4] sm:$0xf] %vm1891_vm14, %v3202_v43 }
 0x2a7   : > { %v8236_v49 = vpop.f32.mrf.mxu2  ;;  %4311 = vst.msk [vmem:[#allocation3 + $0x164] sm:$0xf] %vm510_vm0, %v4242_v14 }
 0x2a8   : > { %v5088_v44 = vpack.c.bf16 %v5024_v31, %v5024_v31  ;;  %v5161_v39 = vsel %vm4762_vm2, %v5024_v31, 0.0  ;;  %v5222_v35 = vmul.f32 %v5024_v31, %v5024_v31 }
 0x2a9   : > { %v5162_v13 = vadd.f32 %v5161_v39, %v8186_v18  ;;  %v2783_v18 = vshrl.u32 %v2491_v22, 16  ;;  %v2777_v39 = vrot.slane %v2776_v63, 4  ;;  %v4087_v22 = vld [vmem:[#allocation2 + $0xcc] sm:$0xe] }
 0x2aa   : > { %5120 = vst.msk [vmem:[%s7904_s22 + $0x28] sm:$0xf] %vm510_vm0, %v5088_v44  ;;  %v5263_v30 = vsel %vm4762_vm2, %v5222_v35, 0.0  ;;  %v2791_v44 = vrot.slane %v2789_v23, 5  ;;  %v5582_v42 = vrot.slane %v4087_v22, 9 }
 0x2ab   : > { %v5264_v11 = vadd.f32 %v5263_v30, %v5262_v12  ;;  %v4936_v33 = vpop.f32.mrf.mxu1  ;;  %v8232_v12 = vpop.f32.mrf.mxu3  ;;  %v2785_v2 = vrot.slane %v2783_v18, 4  ;;  %v2782_v30 = vsel %vm6249_vm8, %v2777_v39, %v2781_v36 }
 0x2ac   : > { %v4937_v40 = vadd.f32 %v4936_v33, %v4847_v28  ;;  %v3953_v48 = vpop.permute.xlu1 %3952  ;;  %v5693_v45 = vld [vmem:[#allocation3 + $0xd8] sm:$0xf]  ;;  %2943 = vst.msk [vmem:[#allocation3 + $0x10c] sm:$0xf] %vm510_vm0, %v2782_v30  ;;  %v4245_v33 = vrot.slane %v4088_v51, 5 }
 0x2ad   : > { %v3204_v4 = vpop.permute.xlu0 %3203  ;;  %4029 = vst.msk [vmem:[#allocation3 + $0xe8] sm:$0xf] %vm2424_vm3, %v3953_v48  ;;  %v5694_v34 = vor.u32 %v5898_v57, %v5693_v45  ;;  %v3397_v29 = vpop.permute.xlu2 %3396  ;;  %v2786_v32 = vor.u32 %v2785_v2, %v2781_v36  ;;  %v4248_v45 = vrot.slane %v4089_v24, 5 }
 0x2ae   : > { %3278 = vst.msk [vmem:[#allocation3 + $0x100] sm:$0xf] %vm1891_vm14, %v3204_v4  ;;  %v5026_v25 = vadd.f32 %v8090_v61, %v4937_v40  ;;  %v4247_v40 = vrot.slane %v4245_v33, 4  ;;  %v4246_v56 = vsel %vm6889_vm13, %v5582_v42, %v4245_v33  ;;  %v5914_v39 = vld [vmem:[#allocation3 + $0x160] sm:$0xf0] }
 0x2af   : > { %3471 = vst.msk [vmem:[#allocation3 + $0x100] sm:$0xf] %vm2231_vm15, %v3397_v29  ;;  %4864 = vmatmul.bf16.gmra.mxu0 %v5694_v34  ;;  %v2787_v43 = vrot.slane %v2786_v32, 4 }
 0x2b0   : > { %v5089_v9 = vpack.c.bf16 %v5026_v25, %v5026_v25  ;;  %v5163_v53 = vsel %vm4762_vm2, %v5026_v25, 0.0  ;;  %v5223_v61 = vmul.f32 %v5026_v25, %v5026_v25  ;;  %v4249_v18 = vsel %vm6889_vm13, %v4247_v40, %v4248_v45  ;;  %4312 = vst.msk [vmem:[#allocation3 + $0x170] sm:$0xf] %vm510_vm0, %v4246_v56 }
 0x2b1   : > { %v8242_v62 = vadd.f32 %v5163_v53, %v5162_v13  ;;  %v2792_v4 = vsel %vm6249_vm8, %v2787_v43, %v2791_v44  ;;  %4313 = vst.msk [vmem:[#allocation3 + $0x17c] sm:$0xf] %vm510_vm0, %v4249_v18  ;;  %v5761_v44 = vld [vmem:[#allocation3 + $0x158] sm:$0xf] }
 0x2b2   : > { %5121 = vst.msk [vmem:[%s7904_s22 + $0x2c] sm:$0xf] %vm510_vm0, %v5089_v9  ;;  %v5265_v19 = vsel %vm4762_vm2, %v5223_v61, 0.0  ;;  %v5762_v51 = vor.u32 %v5914_v39, %v5761_v44 }
 0x2b3   : > { %v5266_v31 = vadd.f32 %v5265_v19, %v5264_v11  ;;  %v8256_v1 = vpop.f32.mrf.mxu3  ;;  %2944 = vst.msk [vmem:[#allocation3 + $0x118] sm:$0xf] %vm510_vm0, %v2792_v4  ;;  %v8262_v11 = vpop.f32.mrf.mxu2 }
 0x2b4   : > { %v3415_v35 = vpop.permute.xlu1 %3414  ;;  %v5695_v50 = vld [vmem:[#allocation3 + $0xe4] sm:$0xf0] }
 0x2b5   : > { %v2369_v21 = vpop.permute.xlu0 %2368  ;;  %3480 = vst.msk [vmem:[#allocation3 + $0x16c] sm:$0xf] %vm2231_vm15, %v3415_v35  ;;  %v5698_v13 = vor.u32 %v5897_v55, %v5695_v50  ;;  %v3955_v57 = vpop.permute.xlu2 %3954 }
 0x2b6   : > { %2445 = vst.msk [vmem:[#allocation3 + $0xf0] sm:$0xf] %vm2424_vm3, %v2369_v21 }
 0x2b7   : > { %4040 = vst.msk [vmem:[#allocation3 + $0x16c] sm:$0xf] %vm2424_vm3, %v8216_v38  ;;  %4953 = vmatmul.bf16.gmra.mxu1 %v5698_v13  ;;  %v5773_v18 = vld [vmem:[#allocation3 + $0x170] sm:$0xf] }
 0x2bb   : > { %v8272_v54 = vpop.f32.mrf.mxu3  ;;  %v8275_v47 = vpop.f32.mrf.mxu2 }
 0x2bc   : > { %v3977_v48 = vpop.permute.xlu1 %3976  ;;  %v4850_v34 = vpop.f32.mrf.mxu0 }
 0x2bd   : > { %v3957_v28 = vpop.permute.xlu0 %3956  ;;  %4041 = vst.msk [vmem:[#allocation3 + $0x178] sm:$0xf] %vm2424_vm3, %v3977_v48  ;;  %v3208_v38 = vpop.permute.xlu2 %3207  ;;  %v5705_v4 = vld [vmem:[#allocation3 + $0xf0] sm:$0xf] }
 0x2be   : > { %4031 = vst.msk [vmem:[#allocation3 + $0x100] sm:$0xf] %vm2424_vm3, %v3957_v28  ;;  %v5915_v8 = vld [vmem:[#allocation3 + $0x16c] sm:$0xf] }
 0x2bf   : > { %3280 = vst.msk [vmem:[#allocation3 + $0x118] sm:$0xf] %vm1891_vm14, %v3208_v38 }
 0x2c3   : > { %v8281_v46 = vpop.f32.mrf.mxu3  ;;  %v8290_v55 = vpop.f32.mrf.mxu2 }
 0x2c4   : > { %v4939_v58 = vpop.f32.mrf.mxu1  ;;  %v3395_v25 = vpop.permute.xlu1 %3394  ;;  %v5767_v36 = vld [vmem:[#allocation3 + $0x174] sm:$0xf0] }
 0x2c5   : > { %v3399_v29 = vpop.permute.xlu0 %3398  ;;  %v4940_v2 = vadd.f32 %v4939_v58, %v4850_v34  ;;  %3470 = vst.msk [vmem:[#allocation3 + $0xf4] sm:$0xf] %vm2231_vm15, %v3395_v25  ;;  %v5770_v60 = vor.u32 %v5915_v8, %v5767_v36  ;;  %v2373_v26 = vpop.permute.xlu2 %2372  ;;  %v5917_v8 = vld [vmem:[#allocation3 + $0x178] sm:$0xf0] }
 0x2c6   : > { %4030 = vst.msk [vmem:[#allocation3 + $0xf4] sm:$0xf] %vm2424_vm3, %v3955_v57  ;;  %v4852_v32 = vpop.f32.mrf.mxu0 }
 0x2c7   : > { %v5029_v59 = vadd.f32 %v8103_v5, %v4940_v2  ;;  %4983 = vmatmul.bf16.gmra.mxu3 %v5770_v60  ;;  %2447 = vst.msk [vmem:[#allocation3 + $0x108] sm:$0xf] %vm2424_vm3, %v2373_v26  ;;  %v5707_v5 = vld [vmem:[#allocation3 + $0xfc] sm:$0xf0]  ;;  %v5774_v60 = vor.u32 %v5917_v8, %v5773_v18 }
 0x2c9   : > { %v5090_v0 = vpack.c.bf16 %v5029_v59, %v5029_v59  ;;  %v5165_v15 = vsel %vm4762_vm2, %v5029_v59, 0.0  ;;  %v5224_v3 = vmul.f32 %v5029_v59, %v5029_v59 }
 0x2ca   : > { %v5166_v53 = vadd.f32 %v5165_v15, %v8242_v62 }
 0x2cb   : > { %5122 = vst.msk [vmem:[%s7904_s22 + $0x30] sm:$0xf] %vm510_vm0, %v5090_v0  ;;  %v5267_v61 = vsel %vm4762_vm2, %v5224_v3, 0.0  ;;  %v5058_v24 = vpop.f32.mrf.mxu2 }
 0x2cc   : > { %v5268_v21 = vadd.f32 %v5267_v61, %v5266_v31  ;;  %v4941_v23 = vpop.f32.mrf.mxu1  ;;  %v2371_v63 = vpop.permute.xlu1 %2370 }
 0x2cd   : > { %v2375_v9 = vpop.permute.xlu0 %2374  ;;  %v4942_v14 = vadd.f32 %v4941_v23, %v4852_v32  ;;  %2446 = vst.msk [vmem:[#allocation3 + $0xfc] sm:$0xf] %vm2424_vm3, %v2371_v63  ;;  %v5900_v19 = vld [vmem:[#allocation3 + $0xf4] sm:$0xf]  ;;  %v8294_v31 = vpop.f32.mrf.mxu3 }
 0x2ce   : > { %2448 = vst.msk [vmem:[#allocation3 + $0x114] sm:$0xf] %vm2424_vm3, %v2375_v9  ;;  %v5710_v43 = vor.u32 %v5900_v19, %v5707_v5  ;;  %v3961_v48 = vpop.permute.xlu2 %3960  ;;  %v5717_v34 = vld [vmem:[#allocation3 + $0x108] sm:$0xf] }
 0x2cf   : > { %v5031_v62 = vadd.f32 %v8126_v52, %v4942_v14 }
 0x2d0   : > { %4958 = vmatmul.bf16.gmra.mxu1 %v5710_v43 }
 0x2d1   : > { %v5091_v35 = vpack.c.bf16 %v5031_v62, %v5031_v62  ;;  %v5167_v50 = vsel %vm4762_vm2, %v5031_v62, 0.0  ;;  %v5225_v13 = vmul.f32 %v5031_v62, %v5031_v62 }
 0x2d2   : > { %v5168_v57 = vadd.f32 %v5167_v50, %v5166_v53 }
 0x2d3   : > { %5123 = vst.msk [vmem:[%s7904_s22 + $0x34] sm:$0xf] %vm510_vm0, %v5091_v35  ;;  %v5269_v30 = vsel %vm4762_vm2, %v5225_v13, 0.0  ;;  %v5060_v58 = vpop.f32.mrf.mxu2 }
 0x2d4   : > { %v5270_v28 = vadd.f32 %v5269_v30, %v5268_v21  ;;  %v3206_v33 = vpop.permute.xlu1 %3205  ;;  %v5901_v22 = vld [vmem:[#allocation3 + $0xf8] sm:$0xf0] }
 0x2d5   : > { %3279 = vst.msk [vmem:[#allocation3 + $0x10c] sm:$0xf] %vm1891_vm14, %v3206_v33  ;;  %v5706_v52 = vor.u32 %v5901_v22, %v5705_v4 }
 0x2d6   : > { %3472 = vst.msk [vmem:[#allocation3 + $0x10c] sm:$0xf] %vm2231_vm15, %v3399_v29  ;;  %v5904_v29 = vld [vmem:[#allocation3 + $0x110] sm:$0xf0] }
 0x2d7   : > { %4869 = vmatmul.bf16.gmra.mxu0 %v5706_v52  ;;  %5861 = vmatmul.msk.bf16.vlgmr.msra.gmra.mxu3 %vm4762_vm2, %v5762_v51  ;;  %v5718_v2 = vor.u32 %v5904_v29, %v5717_v34 }
 0x2da   : > { %v4969_v42 = vpop.f32.mrf.mxu3 }
 0x2db   : > { %v4970_v40 = vadd.f32 %v4969_v42, %v8190_v20 }
 0x2dc   : > { %v3401_v45 = vpop.permute.xlu1 %3400 }
 0x2dd   : > { %v8303_v38 = vadd.f32 %v5058_v24, %v4970_v40  ;;  %3473 = vst.msk [vmem:[#allocation3 + $0x118] sm:$0xf] %vm2231_vm15, %v3401_v45  ;;  %v4944_v20 = vpop.f32.mrf.mxu1 }
 0x2de   : > { %4033 = vst.msk [vmem:[#allocation3 + $0x118] sm:$0xf] %vm2424_vm3, %v3961_v48 }
 0x2df   : > { %v5102_v56 = vpack.c.bf16 %v8303_v38, %v8303_v38 }
 0x2e1   : > { %5134 = vst.msk [vmem:[%s7904_s22 + $0x60] sm:$0xf] %vm510_vm0, %v5102_v56  ;;  %v5063_v4 = vpop.f32.mrf.mxu2 }
 0x2e2   : > { %v4971_v25 = vpop.f32.mrf.mxu3 }
 0x2e3   : > { %v4972_v36 = vadd.f32 %v4971_v25, %v8206_v17 }
 0x2e4   : > { %v3959_v26 = vpop.permute.xlu1 %3958  ;;  %v4855_v59 = vpop.f32.mrf.mxu0 }
 0x2e5   : > { %v8312_v0 = vadd.f32 %v5060_v58, %v4972_v36  ;;  %4032 = vst.msk [vmem:[#allocation3 + $0x10c] sm:$0xf] %vm2424_vm3, %v3959_v26  ;;  %v4945_v15 = vadd.f32 %v4944_v20, %v4855_v59  ;;  %v5719_v5 = vld [vmem:[#allocation3 + $0x114] sm:$0xf0]  ;;  %v4946_v63 = vpop.f32.mrf.mxu1 }
 0x2e7   : > { %v5103_v3 = vpack.c.bf16 %v8312_v0, %v8312_v0  ;;  %v5034_v9 = vadd.f32 %v8148_v41, %v4945_v15  ;;  %4874 = vmatmul.bf16.gmra.mxu0 %v5718_v2  ;;  %5862 = vmatmul.msk.bf16.gmra.mxu3 %vm4762_vm2, %v5774_v60 }
 0x2e9   : > { %5135 = vst.msk [vmem:[%s7904_s22 + $0x64] sm:$0xf] %vm510_vm0, %v5103_v3  ;;  %v5092_v17 = vpack.c.bf16 %v5034_v9, %v5034_v9  ;;  %v5169_v53 = vsel %vm4762_vm2, %v5034_v9, 0.0  ;;  %v5226_v61 = vmul.f32 %v5034_v9, %v5034_v9  ;;  %v5065_v22 = vpop.f32.mrf.mxu2 }
 0x2ea   : > { %v5170_v32 = vadd.f32 %v5169_v53, %v5168_v57 }
 0x2eb   : > { %5124 = vst.msk [vmem:[%s7904_s22 + $0x38] sm:$0xf] %vm510_vm0, %v5092_v17  ;;  %v5271_v21 = vsel %vm4762_vm2, %v5226_v61, 0.0 }
 0x2ec   : > { %v5272_v23 = vadd.f32 %v5271_v21, %v5270_v28  ;;  %v4857_v14 = vpop.f32.mrf.mxu0  ;;  %v5903_v41 = vld [vmem:[#allocation3 + $0x10c] sm:$0xf] }
 0x2ed   : > { %v4947_v19 = vadd.f32 %v4946_v63, %v4857_v14  ;;  %v5722_v43 = vor.u32 %v5903_v41, %v5719_v5 }
 0x2ef   : > { %v5036_v62 = vadd.f32 %v8159_v37, %v4947_v19  ;;  %4963 = vmatmul.bf16.gmra.mxu1 %v5722_v43 }
 0x2f1   : > { %v5093_v44 = vpack.c.bf16 %v5036_v62, %v5036_v62  ;;  %v5171_v39 = vsel %vm4762_vm2, %v5036_v62, 0.0  ;;  %v5227_v35 = vmul.f32 %v5036_v62, %v5036_v62 }
 0x2f2   : > { %v5172_v50 = vadd.f32 %v5171_v39, %v5170_v32 }
 0x2f3   : > { %5125 = vst.msk [vmem:[%s7904_s22 + $0x3c] sm:$0xf] %vm510_vm0, %v5093_v44  ;;  %v5273_v13 = vsel %vm4762_vm2, %v5227_v35, 0.0 }
 0x2f4   : > { %v5274_v57 = vadd.f32 %v5273_v13, %v5272_v23 }
 0x2f5   : > { %v4860_v40 = vpop.f32.mrf.mxu0 }
 0x2fc   : > { %v4974_v30 = vpop.f32.mrf.mxu3 }
 0x2fd   : > { %v4975_v51 = vadd.f32 %v4974_v30, %v8218_v7  ;;  %v4862_v8 = vpop.f32.mrf.mxu0 }
 0x2ff   : > { %v8331_v28 = vadd.f32 %v5063_v4, %v4975_v51 }
 0x301   : > { %v5104_v37 = vpack.c.bf16 %v8331_v28, %v8331_v28 }
 0x303   : > { %5136 = vst.msk [vmem:[%s7904_s22 + $0x68] sm:$0xf] %vm510_vm0, %v5104_v37 }
 0x304   : > { %v4976_v33 = vpop.f32.mrf.mxu3 }
 0x305   : > { %v4977_v52 = vadd.f32 %v4976_v33, %v8232_v12 }
 0x307   : > { %v8338_v24 = vadd.f32 %v5065_v22, %v4977_v52 }
 0x309   : > { %v5105_v42 = vpack.c.bf16 %v8338_v24, %v8338_v24 }
 0x30b   : > { %5137 = vst.msk [vmem:[%s7904_s22 + $0x6c] sm:$0xf] %vm510_vm0, %v5105_v42 }
 0x30c   : > { %v4949_v7 = vpop.f32.mrf.mxu1 }
 0x30d   : > { %v4950_v48 = vadd.f32 %v4949_v7, %v4860_v40 }
 0x30f   : > { %v5039_v45 = vadd.f32 %v8167_v6, %v4950_v48 }
 0x311   : > { %v5094_v56 = vpack.c.bf16 %v5039_v45, %v5039_v45  ;;  %v5173_v18 = vsel %vm4762_vm2, %v5039_v45, 0.0  ;;  %v5228_v34 = vmul.f32 %v5039_v45, %v5039_v45 }
 0x312   : > { %v5174_v29 = vadd.f32 %v5173_v18, %v5172_v50 }
 0x313   : > { %5126 = vst.msk [vmem:[%s7904_s22 + $0x40] sm:$0xf] %vm510_vm0, %v5094_v56  ;;  %v5275_v12 = vsel %vm4762_vm2, %v5228_v34, 0.0 }
 0x314   : > { %v5276_v58 = vadd.f32 %v5275_v12, %v5274_v57  ;;  %v4951_v20 = vpop.f32.mrf.mxu1 }
 0x315   : > { %v4952_v25 = vadd.f32 %v4951_v20, %v4862_v8 }
 0x317   : > { %v5041_v36 = vadd.f32 %v8188_v16, %v4952_v25 }
 0x319   : > { %v5095_v2 = vpack.c.bf16 %v5041_v36, %v5041_v36  ;;  %v5175_v6 = vsel %vm4762_vm2, %v5041_v36, 0.0  ;;  %v5229_v60 = vmul.f32 %v5041_v36, %v5041_v36 }
 0x31a   : > { %v5176_v26 = vadd.f32 %v5175_v6, %v5174_v29 }
 0x31b   : > { %5127 = vst.msk [vmem:[%s7904_s22 + $0x44] sm:$0xf] %vm510_vm0, %v5095_v2  ;;  %v5277_v59 = vsel %vm4762_vm2, %v5229_v60, 0.0 }
 0x31c   : > { %v5278_v15 = vadd.f32 %v5277_v59, %v5276_v58 }
 0x322   : > { %v4979_v61 = vpop.f32.mrf.mxu3 }
 0x323   : > { %v4980_v39 = vadd.f32 %v4979_v61, %v8256_v1 }
 0x32a   : > { %v4981_v14 = vpop.f32.mrf.mxu3 }
 0x32c   : > { %v4865_v3 = vpop.f32.mrf.mxu0 }
 0x334   : > { %v4954_v9 = vpop.f32.mrf.mxu1  ;;  %v4867_v16 = vpop.f32.mrf.mxu0 }
 0x335   : > { %v4955_v17 = vadd.f32 %v4954_v9, %v4865_v3 }
 0x337   : > { %v5044_v53 = vadd.f32 %v8202_v10, %v4955_v17 }
 0x339   : > { %v5096_v32 = vpack.c.bf16 %v5044_v53, %v5044_v53  ;;  %v5230_v7 = vmul.f32 %v5044_v53, %v5044_v53  ;;  %v5177_v45 = vsel %vm4762_vm2, %v5044_v53, 0.0 }
 0x33a   : > { %v5178_v8 = vadd.f32 %v5177_v45, %v5176_v26 }
 0x33b   : > { %5128 = vst.msk [vmem:[%s7904_s22 + $0x48] sm:$0xf] %vm510_vm0, %v5096_v32  ;;  %v5279_v34 = vsel %vm4762_vm2, %v5230_v7, 0.0 }
 0x33c   : > { %v4956_v5 = vpop.f32.mrf.mxu1  ;;  %v5280_v6 = vadd.f32 %v5279_v34, %v5278_v15 }
 0x33d   : > { %v4957_v21 = vadd.f32 %v4956_v5, %v4867_v16 }
 0x33f   : > { %v5046_v23 = vadd.f32 %v8221_v27, %v4957_v21 }
 0x341   : > { %v5097_v63 = vpack.c.bf16 %v5046_v23, %v5046_v23  ;;  %v5179_v29 = vsel %vm4762_vm2, %v5046_v23, 0.0 }
 0x342   : > { %v5180_v60 = vadd.f32 %v5179_v29, %v5178_v8 }
 0x343   : > { %5129 = vst.msk [vmem:[%s7904_s22 + $0x4c] sm:$0xf] %vm510_vm0, %v5097_v63 }
 0x34a   : > { %v4984_v41 = vpop.f32.mrf.mxu3 }
 0x34b   : > { %v4985_v52 = vadd.f32 %v4984_v41, %v8281_v46 }
 0x34d   : > { %v4959_v19 = vpop.f32.mrf.mxu1 }
 0x352   : > { %v4986_v43 = vpop.f32.mrf.mxu3 }
 0x353   : > { %v4987_v20 = vadd.f32 %v4986_v43, %v8294_v31  ;;  %v5236_v43 = vmul.f32 %v8303_v38, %v8303_v38 }
 0x354   : > { %v4870_v62 = vpop.f32.mrf.mxu0 }
 0x355   : > { %v4960_v10 = vadd.f32 %v4959_v19, %v4870_v62  ;;  %v4961_v13 = vpop.f32.mrf.mxu1 }
 0x357   : > { %v5049_v44 = vadd.f32 %v8236_v49, %v4960_v10  ;;  %v4982_v49 = vadd.f32 %v4981_v14, %v8272_v54  ;;  %v5231_v54 = vmul.f32 %v5046_v23, %v5046_v23 }
 0x359   : > { %v5098_v35 = vpack.c.bf16 %v5049_v44, %v5049_v44  ;;  %v5232_v12 = vmul.f32 %v5049_v44, %v5049_v44  ;;  %v5281_v58 = vsel %vm4762_vm2, %v5231_v54, 0.0  ;;  %v5181_v25 = vsel %vm4762_vm2, %v5049_v44, 0.0 }
 0x35a   : > { %v5068_v50 = vpop.f32.mrf.mxu3  ;;  %v5282_v17 = vadd.f32 %v5281_v58, %v5280_v6  ;;  %v5182_v53 = vadd.f32 %v5181_v25, %v5180_v60 }
 0x35b   : > { %5130 = vst.msk [vmem:[%s7904_s22 + $0x50] sm:$0xf] %vm510_vm0, %v5098_v35  ;;  %v8364_v27 = vadd.f32 %v5068_v50, %v4980_v39  ;;  %v5283_v3 = vsel %vm4762_vm2, %v5232_v12, 0.0  ;;  %v5189_v50 = vsel %vm4762_vm2, %v8303_v38, 0.0 }
 0x35c   : > { %v4872_v57 = vpop.f32.mrf.mxu0  ;;  %v5284_v21 = vadd.f32 %v5283_v3, %v5282_v17 }
 0x35d   : > { %v5106_v4 = vpack.c.bf16 %v8364_v27, %v8364_v27  ;;  %v4962_v30 = vadd.f32 %v4961_v13, %v4872_v57  ;;  %v5237_v13 = vmul.f32 %v8312_v0, %v8312_v0  ;;  %v5240_v54 = vmul.f32 %v8364_v27, %v8364_v27 }
 0x35f   : > { %5138 = vst.msk [vmem:[%s7904_s22 + $0x70] sm:$0xf] %vm510_vm0, %v5106_v4  ;;  %v5051_v51 = vadd.f32 %v8262_v11, %v4962_v30  ;;  %v5291_v30 = vsel %vm4762_vm2, %v5236_v43, 0.0  ;;  %v5293_v38 = vsel %vm4762_vm2, %v5237_v13, 0.0  ;;  %v5299_v12 = vsel %vm4762_vm2, %v5240_v54, 0.0 }
 0x361   : > { %v5099_v1 = vpack.c.bf16 %v5051_v51, %v5051_v51  ;;  %v5233_v36 = vmul.f32 %v5051_v51, %v5051_v51  ;;  %v5183_v9 = vsel %vm4762_vm2, %v5051_v51, 0.0  ;;  %v5191_v51 = vsel %vm4762_vm2, %v8312_v0, 0.0 }
 0x362   : > { %v5070_v37 = vpop.f32.mrf.mxu3  ;;  %v5184_v23 = vadd.f32 %v5183_v9, %v5182_v53  ;;  %v5195_v0 = vsel %vm4762_vm2, %v8338_v24, 0.0 }
 0x363   : > { %5131 = vst.msk [vmem:[%s7904_s22 + $0x54] sm:$0xf] %vm510_vm0, %v5099_v1  ;;  %v8374_v33 = vadd.f32 %v5070_v37, %v4982_v49  ;;  %v5285_v32 = vsel %vm4762_vm2, %v5233_v36, 0.0  ;;  %v5238_v49 = vmul.f32 %v8331_v28, %v8331_v28 }
 0x364   : > { %v4875_v42 = vpop.f32.mrf.mxu0  ;;  %v5286_v41 = vadd.f32 %v5285_v32, %v5284_v21 }
 0x365   : > { %v5107_v22 = vpack.c.bf16 %v8374_v33, %v8374_v33  ;;  %v5295_v7 = vsel %vm4762_vm2, %v5238_v49, 0.0 }
 0x367   : > { %5139 = vst.msk [vmem:[%s7904_s22 + $0x74] sm:$0xf] %vm510_vm0, %v5107_v22  ;;  %v5193_v22 = vsel %vm4762_vm2, %v8331_v28, 0.0  ;;  %v5197_v28 = vsel %vm4762_vm2, %v8364_v27, 0.0 }
 0x36a   : > { %v5073_v40 = vpop.f32.mrf.mxu3 }
 0x36b   : > { %v8381_v11 = vadd.f32 %v5073_v40, %v4985_v52  ;;  %v5239_v52 = vmul.f32 %v8338_v24, %v8338_v24  ;;  %v5199_v24 = vsel %vm4762_vm2, %v8374_v33, 0.0 }
 0x36c   : > { %v4964_v48 = vpop.f32.mrf.mxu1  ;;  %v4877_v61 = vpop.f32.mrf.mxu0 }
 0x36d   : > { %v5108_v56 = vpack.c.bf16 %v8381_v11, %v8381_v11  ;;  %v4965_v18 = vadd.f32 %v4964_v48, %v4875_v42  ;;  %v5201_v27 = vsel %vm4762_vm2, %v8381_v11, 0.0 }
 0x36f   : > { %5140 = vst.msk [vmem:[%s7904_s22 + $0x78] sm:$0xf] %vm510_vm0, %v5108_v56  ;;  %v5054_v46 = vadd.f32 %v8275_v47, %v4965_v18  ;;  %v5297_v56 = vsel %vm4762_vm2, %v5239_v52, 0.0  ;;  %v5241_v18 = vmul.f32 %v8374_v33, %v8374_v33 }
 0x371   : > { %v5100_v2 = vpack.c.bf16 %v5054_v46, %v5054_v46  ;;  %v5234_v47 = vmul.f32 %v5054_v46, %v5054_v46  ;;  %v5185_v16 = vsel %vm4762_vm2, %v5054_v46, 0.0  ;;  %v5242_v46 = vmul.f32 %v8381_v11, %v8381_v11 }
 0x372   : > { %v5075_v59 = vpop.f32.mrf.mxu3  ;;  %v5186_v19 = vadd.f32 %v5185_v16, %v5184_v23 }
 0x373   : > { %5132 = vst.msk [vmem:[%s7904_s22 + $0x58] sm:$0xf] %vm510_vm0, %v5100_v2  ;;  %v5076_v26 = vadd.f32 %v5075_v59, %v4987_v20  ;;  %v5287_v63 = vsel %vm4762_vm2, %v5234_v47, 0.0  ;;  %v5301_v20 = vsel %vm4762_vm2, %v5241_v18, 0.0  ;;  %v5303_v6 = vsel %vm4762_vm2, %v5242_v46, 0.0 }
 0x374   : > { %v4966_v31 = vpop.f32.mrf.mxu1  ;;  %v5288_v39 = vadd.f32 %v5287_v63, %v5286_v41 }
 0x375   : > { %v5109_v15 = vpack.c.bf16 %v5076_v26, %v5076_v26  ;;  %v4967_v5 = vadd.f32 %v4966_v31, %v4877_v61  ;;  %v5243_v25 = vmul.f32 %v5076_v26, %v5076_v26  ;;  %v5203_v60 = vsel %vm4762_vm2, %v5076_v26, 0.0 }
 0x377   : > { %5141 = vst.msk [vmem:[%s7904_s22 + $0x7c] sm:$0xf] %vm510_vm0, %v5109_v15  ;;  %v5056_v14 = vadd.f32 %v8290_v55, %v4967_v5  ;;  %v5305_v3 = vsel %vm4762_vm2, %v5243_v25, 0.0 }
 0x379   : > { %v5101_v62 = vpack.c.bf16 %v5056_v14, %v5056_v14  ;;  %v5187_v10 = vsel %vm4762_vm2, %v5056_v14, 0.0  ;;  %v5235_v44 = vmul.f32 %v5056_v14, %v5056_v14 }
 0x37a   : > { %v5188_v35 = vadd.f32 %v5187_v10, %v5186_v19 }
 0x37b   : > { %5133 = vst.msk [vmem:[%s7904_s22 + $0x5c] sm:$0xf] %vm510_vm0, %v5101_v62  ;;  %v5289_v55 = vsel %vm4762_vm2, %v5235_v44, 0.0 }
 0x37c   : > { %v5190_v57 = vadd.f32 %v5189_v50, %v5188_v35  ;;  %v5290_v4 = vadd.f32 %v5289_v55, %v5288_v39 }
 0x37e   : > { %v5192_v1 = vadd.f32 %v5191_v51, %v5190_v57  ;;  %v5292_v37 = vadd.f32 %v5291_v30, %v5290_v4 }
 0x380   : > { %v5194_v42 = vadd.f32 %v5193_v22, %v5192_v1  ;;  %v5294_v40 = vadd.f32 %v5293_v38, %v5292_v37 }
 0x382   : > { %v5196_v48 = vadd.f32 %v5195_v0, %v5194_v42  ;;  %v5296_v45 = vadd.f32 %v5295_v7, %v5294_v40 }
 0x384   : > { %v5198_v34 = vadd.f32 %v5197_v28, %v5196_v48  ;;  %v5298_v29 = vadd.f32 %v5297_v56, %v5296_v45 }
 0x386   : > { %v5200_v8 = vadd.f32 %v5199_v24, %v5198_v34  ;;  %v5300_v58 = vadd.f32 %v5299_v12, %v5298_v29 }
 0x388   : > { %v5202_v36 = vadd.f32 %v5201_v27, %v5200_v8  ;;  %v5302_v2 = vadd.f32 %v5301_v20, %v5300_v58 }
 0x38a   : > { %v5204_v59 = vadd.f32 %v5203_v60, %v5202_v36  ;;  %v5304_v33 = vadd.f32 %v5303_v6, %v5302_v2 }
 0x38c   : > { %v5205_v9 = vrot.slane %v5204_v59, 4  ;;  %v5306_v47 = vadd.f32 %v5305_v3, %v5304_v33 }
 0x38e   : > { %v5206_v17 = vadd.f32 %v5205_v9, %v5204_v59  ;;  %v5307_v53 = vrot.slane %v5306_v47, 4 }
 0x390   : > { %v5207_v61 = vrot.slane %v5206_v17, 2  ;;  %v5308_v31 = vadd.f32 %v5307_v53, %v5306_v47 }
 0x392   : > { %v5208_v11 = vadd.f32 %v5207_v61, %v5206_v17  ;;  %v5309_v32 = vrot.slane %v5308_v31, 2 }
 0x394   : > { %v5209_v16 = vrot.slane %v5208_v11, 1  ;;  %v5310_v15 = vadd.f32 %v5309_v32, %v5308_v31 }
 0x396   : > { %v5210_v26 = vadd.f32 %v5209_v16, %v5208_v11  ;;  %v5311_v5 = vrot.slane %v5310_v15, 1 }
 0x398   : > { %5211 = vst.msk [vmem:[%s500_s20] sm:$0x1] %vm513_vm1, %v5210_v26  ;;  %v5312_v21 = vadd.f32 %v5311_v5, %v5310_v15 }
 0x39a   : > { %5313 = vst.msk [vmem:[%s506_s10] sm:$0x1] %vm513_vm1, %v5312_v21 }
 0x39b PF: > { %s19_s27 = sadd.s32 1, %s6091_s27   ;;  %s8483_s26 = smov %s6087_s2 }
 0x39c   : > { %p16_p5 = scmp.ge.s32.totalorder %s19_s27, 4   ;;  %s8484_s2 = smov %s8486_s28 }
 0x39e   :  { %18 = sbr.rel (!%p16_p5) target bundleno = 2 (0x2), region = 107 }

</bundles_post_ra>
